<compile_context>
chip_gen: v7x
topology: tpu7x:2x2x1
jax: 0.10.0
libtpu: 0.0.40
codegen_flags: <defaults>
</compile_context>

<pallas_src>
import functools

import jax
import jax.numpy as jnp
from jax.experimental import pallas as pl
from jax.experimental.pallas import tpu as pltpu

# --- model hyperparameters (from model.py) ---
N_EMBD = 384
N_HEAD = 6
N_LAYER = 6
BLOCK_SIZE = 30
HEAD_SIZE = N_EMBD // N_HEAD      # 64
FF_DIM = 4 * N_EMBD               # 1536
LN_EPS = 1e-5


def _layer_norm(v, g, b):
    """LayerNorm along the last axis (biased variance, eps=1e-5), affine."""
    mu = jnp.mean(v, axis=-1, keepdims=True)
    var = jnp.mean(jnp.square(v - mu), axis=-1, keepdims=True)
    return (v - mu) * jax.lax.rsqrt(var + LN_EPS) * g + b


def _gpt_kernel(x_ref,
                ln1g_ref, ln1b_ref, wqkv_ref, wproj_ref, bproj_ref,
                ln2g_ref, ln2b_ref, wfc1_ref, bfc1_ref, wfc2_ref, bfc2_ref,
                lnfg_ref, lnfb_ref, wlm_ref, blm_ref,
                logits_ref, xres_ref,
                *, B, T, H, Dh, n_layer):
    """One grid step == one transformer Block (pre-LN, causal MHA, MLP, residuals).

    The residual stream lives in the VMEM scratch `xres_ref` across grid steps;
    all per-layer intermediates are register values (no scratch round-trips).
    After the last block, the final LayerNorm + lm_head are applied and the
    (lane-padded) logits are written.
    """
    C = H * Dh
    l = pl.program_id(0)

    # seed the residual stream from the embeddings at the first layer
    @pl.when(l == 0)
    def _():
        xres_ref[...] = x_ref[...]

    x = xres_ref[...]                                              # (B*T, C) f32

    # ---------------- ln1 + fused QKV projection (scale folded into Q) ----------
    h1 = _layer_norm(x, ln1g_ref[0], ln1b_ref[0])
    qkv = jnp.dot(h1.astype(jnp.bfloat16), wqkv_ref[0],
                  preferred_element_type=jnp.float32).astype(jnp.bfloat16)  # (B*T, 3C)

    # causal mask, built once per step, reused for every (batch, head);
    # diagonal always kept -> no all-masked rows -> no NaN (also covers padded rows)
    row = jax.lax.broadcasted_iota(jnp.int32, (T, T), 0)
    col = jax.lax.broadcasted_iota(jnp.int32, (T, T), 1)
    causal = col <= row

    # ---------------- multi-head causal self-attention (register resident) ------
    attn_rows = []
    for b in range(B):                     # B, H tiny -> statically unrolled
        qkv_b = qkv[b * T:(b + 1) * T, :]  # (T, 3C) bf16
        outs = []
        for hh in range(H):
            q = qkv_b[:, hh * Dh:(hh + 1) * Dh]                      # (T, Dh) bf16
            k = qkv_b[:, C + hh * Dh:C + (hh + 1) * Dh]
            v = qkv_b[:, 2 * C + hh * Dh:2 * C + (hh + 1) * Dh]
            s = jax.lax.dot_general(q, k, (((1,), (1,)), ((), ())),
                                    preferred_element_type=jnp.float32)   # (T, T)
            s = jnp.where(causal, s, -1e30)
            s = s - jnp.max(s, axis=-1, keepdims=True)
            p = jnp.exp(s)
            p = p * pl.reciprocal(jnp.sum(p, axis=-1, keepdims=True), approx=True)
            outs.append(jnp.dot(p.astype(jnp.bfloat16), v,
                                preferred_element_type=jnp.float32))       # (T, Dh)
        attn_rows.append(jnp.concatenate(outs, axis=-1))                   # (T, C)
    attn = jnp.concatenate(attn_rows, axis=0).astype(jnp.bfloat16)         # (B*T, C)

    # fused output projection + residual  (dropout: eval mode -> identity)
    x = x + jnp.dot(attn, wproj_ref[0],
                    preferred_element_type=jnp.float32) + bproj_ref[0]

    # ---------------- ln2 + MLP (Linear -> ReLU -> Linear) + residual ------------
    h2 = _layer_norm(x, ln2g_ref[0], ln2b_ref[0])
    ff = jnp.dot(h2.astype(jnp.bfloat16), wfc1_ref[0],
                 preferred_element_type=jnp.float32) + bfc1_ref[0]          # (B*T, 4C)
    ff = jnp.maximum(ff, 0.0).astype(jnp.bfloat16)
    x = x + jnp.dot(ff, wfc2_ref[0],
                    preferred_element_type=jnp.float32) + bfc2_ref[0]

    xres_ref[...] = x

    # ---------------- final LayerNorm + lm_head (after the last block) -----------
    @pl.when(l == n_layer - 1)
    def _():
        hf = _layer_norm(x, lnfg_ref[...], lnfb_ref[...])
        logits_ref[...] = jnp.dot(hf.astype(jnp.bfloat16), wlm_ref[...],
                                  preferred_element_type=jnp.float32) + blm_ref[...]


def gpt_forward(idx, params):
    """GPT.forward(idx) -> logits (B, T, vocab).  Eval mode (dropout = identity)."""
    B, T = idx.shape
    C, H, Dh, L = N_EMBD, N_HEAD, HEAD_SIZE, N_LAYER
    vocab = params["w_lm"].shape[-1]

    # token + position embeddings (gather) in plain JAX
    x = params["tok_emb"][idx] + params["pos_emb"][:T]               # (B, T, C) f32

    # pad T to a sublane multiple (8) so all tiles are unmasked; the causal mask
    # keeps real rows from attending to padded columns; padded rows are sliced off.
    T_pad = ((T + 7) // 8) * 8
    if T_pad != T:
        x = jnp.pad(x, ((0, 0), (0, T_pad - T), (0, 0)))
    BT = B * T_pad
    x_flat = x.reshape(BT, C).astype(jnp.float32)

    # lm_head padded to a lane multiple (128)
    vpad = ((vocab + 127) // 128) * 128
    w_lm = jnp.pad(params["w_lm"].astype(jnp.bfloat16), ((0, 0), (0, vpad - vocab)))
    b_lm = jnp.pad(params["b_lm"].astype(jnp.float32), ((0, 0), (0, vpad - vocab)))

    # fold the softmax scale (C**-0.5, C = n_embd, as in the torch module) into the
    # Q columns of the packed [Q|K|V] weight -> deletes the per-head (T,T) multiply
    scale = float(C) ** -0.5
    wqkv_f32 = params["w_qkv"].astype(jnp.float32)
    w_qkv = jnp.concatenate([wqkv_f32[..., :C] * scale, wqkv_f32[..., C:]],
                            axis=-1).astype(jnp.bfloat16)

    kernel = functools.partial(_gpt_kernel, B=B, T=T_pad, H=H, Dh=Dh, n_layer=L)

    # per-layer weight blocks (double-buffered -> DMA overlaps previous layer's
    # compute) vs. once-fetched constant blocks (activations, ln_f, lm_head)
    layer2 = lambda r, c: pl.BlockSpec((1, r, c), lambda l: (l, 0, 0))
    whole = lambda r, c: pl.BlockSpec((r, c), lambda l: (0, 0))

    logits = pl.pallas_call(
        kernel,
        out_shape=jax.ShapeDtypeStruct((BT, vpad), jnp.float32),
        grid_spec=pltpu.PrefetchScalarGridSpec(
            num_scalar_prefetch=0,
            grid=(L,),                                   # one step per transformer block
            in_specs=[
                whole(BT, C),                            # embeddings (fetched once)
                layer2(1, C), layer2(1, C),              # ln1 gamma / beta
                layer2(C, 3 * C),                        # fused QKV weight (bf16, scaled Q)
                layer2(C, C), layer2(1, C),              # proj weight (bf16) / bias
                layer2(1, C), layer2(1, C),              # ln2 gamma / beta
                layer2(C, FF_DIM), layer2(1, FF_DIM),    # fc1 weight (bf16) / bias
                layer2(FF_DIM, C), layer2(1, C),         # fc2 weight (bf16) / bias
                whole(1, C), whole(1, C),                # ln_f gamma / beta
                whole(C, vpad), whole(1, vpad),          # lm_head weight (bf16) / bias
            ],
            out_specs=whole(BT, vpad),
            scratch_shapes=[pltpu.VMEM((BT, C), jnp.float32)],   # residual-stream carry
        ),
        compiler_params=pltpu.CompilerParams(
            dimension_semantics=("arbitrary",),          # layers are sequential
            vmem_limit_bytes=48 * 1024 * 1024),
    )(x_flat,
      params["ln1_g"], params["ln1_b"], w_qkv, params["w_proj"], params["b_proj"],
      params["ln2_g"], params["ln2_b"], params["w_fc1"], params["b_fc1"],
      params["w_fc2"], params["b_fc2"],
      params["lnf_g"], params["lnf_b"], w_lm, b_lm)

    return logits.reshape(B, T_pad, vpad)[:, :T, :vocab]


def _gpt_reference(idx, params):
    """Pure-JAX f32 mirror of GPT.forward (eval mode) using the same bf16 weights."""
    B, T = idx.shape
    C, H, Dh = N_EMBD, N_HEAD, HEAD_SIZE
    x = params["tok_emb"][idx] + params["pos_emb"][:T]
    row = jnp.arange(T)[:, None]
    col = jnp.arange(T)[None, :]
    for l in range(N_LAYER):
        h = _layer_norm(x, params["ln1_g"][l, 0], params["ln1_b"][l, 0])
        qkv = h @ params["w_qkv"][l].astype(jnp.float32)           # (B, T, 3C)
        outs = []
        for hh in range(H):
            q = qkv[..., hh * Dh:(hh + 1) * Dh]
            k = qkv[..., C + hh * Dh:C + (hh + 1) * Dh]
            v = qkv[..., 2 * C + hh * Dh:2 * C + (hh + 1) * Dh]
            wei = q @ jnp.swapaxes(k, -1, -2) * (C ** -0.5)
            wei = jnp.where(col <= row, wei, -jnp.inf)
            wei = jax.nn.softmax(wei, axis=-1)
            outs.append(wei @ v)
        sa = jnp.concatenate(outs, axis=-1) @ params["w_proj"][l].astype(jnp.float32) \
            + params["b_proj"][l, 0]
        x = x + sa
        h2 = _layer_norm(x, params["ln2_g"][l, 0], params["ln2_b"][l, 0])
        ff = jnp.maximum(h2 @ params["w_fc1"][l].astype(jnp.float32)
                         + params["b_fc1"][l, 0], 0.0)
        x = x + ff @ params["w_fc2"][l].astype(jnp.float32) + params["b_fc2"][l, 0]
    xf = _layer_norm(x, params["lnf_g"][0], params["lnf_b"][0])
    return xf @ params["w_lm"].astype(jnp.float32) + params["b_lm"][0]


if __name__ == "__main__":
    key = jax.random.PRNGKey(0)
    B, T, VOCAB = 2, 8, 65                      # T <= block_size (30)
    C, L, FF = N_EMBD, N_LAYER, FF_DIM

    ks = iter(jax.random.split(key, 24))
    nrm = lambda shape, s=1.0: jax.random.normal(next(ks), shape, jnp.float32) * s

    # Per-layer weights stacked along a leading layer axis; matmul weights are
    # stored pre-transposed to (in, out) and quantized to bf16 (as shipped to the
    # kernel); LN params / biases stay f32.
    params = {
        "tok_emb": nrm((VOCAB, C)),
        "pos_emb": nrm((BLOCK_SIZE, C)),
        "ln1_g": 1.0 + 0.1 * nrm((L, 1, C)),
        "ln1_b": 0.1 * nrm((L, 1, C)),
        "w_qkv": nrm((L, C, 3 * C), 0.02).astype(jnp.bfloat16),   # [Q heads | K heads | V heads]
        "w_proj": nrm((L, C, C), 0.02).astype(jnp.bfloat16),
        "b_proj": nrm((L, 1, C), 0.02),
        "ln2_g": 1.0 + 0.1 * nrm((L, 1, C)),
        "ln2_b": 0.1 * nrm((L, 1, C)),
        "w_fc1": nrm((L, C, FF), 0.02).astype(jnp.bfloat16),
        "b_fc1": nrm((L, 1, FF), 0.02),
        "w_fc2": nrm((L, FF, C), 0.02).astype(jnp.bfloat16),
        "b_fc2": nrm((L, 1, C), 0.02),
        "lnf_g": 1.0 + 0.1 * nrm((1, C)),
        "lnf_b": 0.1 * nrm((1, C)),
        "w_lm": nrm((C, VOCAB), 0.02).astype(jnp.bfloat16),
        "b_lm": nrm((1, VOCAB), 0.02),
    }

    idx = jax.random.randint(next(ks), (B, T), 0, VOCAB)

    logits = gpt_forward(idx, params)
    logits = jax.block_until_ready(logits)

    ref = _gpt_reference(idx, params)

    assert logits.shape == (B, T, VOCAB)
    # bf16 MXU operands + approx reciprocal, accumulated over 6 blocks -> relaxed tol
    max_err = float(jnp.max(jnp.abs(logits - ref)))
    assert jnp.allclose(logits, ref, atol=4e-2, rtol=4e-2), \
        f"mismatch vs reference (max abs err {max_err:.4f})"

    print("KERNEL_OK")
</pallas_src>

<mosaic_0001>
module attributes {stable_mosaic.version = 11 : i64} {
  func.func @_gpt_kernel(%arg0: i32, %arg1: memref<16x384xf32, #tpu.memory_space<vmem>>, %arg2: memref<1x1x384xf32, #tpu.memory_space<vmem>>, %arg3: memref<1x1x384xf32, #tpu.memory_space<vmem>>, %arg4: memref<1x384x1152xbf16, #tpu.memory_space<vmem>>, %arg5: memref<1x384x384xbf16, #tpu.memory_space<vmem>>, %arg6: memref<1x1x384xf32, #tpu.memory_space<vmem>>, %arg7: memref<1x1x384xf32, #tpu.memory_space<vmem>>, %arg8: memref<1x1x384xf32, #tpu.memory_space<vmem>>, %arg9: memref<1x384x1536xbf16, #tpu.memory_space<vmem>>, %arg10: memref<1x1x1536xf32, #tpu.memory_space<vmem>>, %arg11: memref<1x1536x384xbf16, #tpu.memory_space<vmem>>, %arg12: memref<1x1x384xf32, #tpu.memory_space<vmem>>, %arg13: memref<1x384xf32, #tpu.memory_space<vmem>>, %arg14: memref<1x384xf32, #tpu.memory_space<vmem>>, %arg15: memref<384x128xbf16, #tpu.memory_space<vmem>>, %arg16: memref<1x128xf32, #tpu.memory_space<vmem>>, %arg17: memref<16x128xf32, #tpu.memory_space<vmem>>, %arg18: memref<16x384xf32, #tpu.memory_space<vmem>>) attributes {dimension_semantics = [#tpu.dimension_semantics<arbitrary>], iteration_bounds = array<i64: 6>, scalar_prefetch = 0 : i64, scratch_operands = 1 : i64, tpu.core_type = #tpu.core_type<tc>, window_params = [{pipeline_mode = #tpu.pipeline_mode<synchronous>, transform_indices = @transform_0, window_bounds = array<i64: 16, 384>}, {transform_indices = @transform_1, window_bounds = array<i64: 1, 1, 384>}, {transform_indices = @transform_2, window_bounds = array<i64: 1, 1, 384>}, {transform_indices = @transform_3, window_bounds = array<i64: 1, 384, 1152>}, {transform_indices = @transform_4, window_bounds = array<i64: 1, 384, 384>}, {transform_indices = @transform_5, window_bounds = array<i64: 1, 1, 384>}, {transform_indices = @transform_6, window_bounds = array<i64: 1, 1, 384>}, {transform_indices = @transform_7, window_bounds = array<i64: 1, 1, 384>}, {transform_indices = @transform_8, window_bounds = array<i64: 1, 384, 1536>}, {transform_indices = @transform_9, window_bounds = array<i64: 1, 1, 1536>}, {transform_indices = @transform_10, window_bounds = array<i64: 1, 1536, 384>}, {transform_indices = @transform_11, window_bounds = array<i64: 1, 1, 384>}, {pipeline_mode = #tpu.pipeline_mode<synchronous>, transform_indices = @transform_12, window_bounds = array<i64: 1, 384>}, {pipeline_mode = #tpu.pipeline_mode<synchronous>, transform_indices = @transform_13, window_bounds = array<i64: 1, 384>}, {pipeline_mode = #tpu.pipeline_mode<synchronous>, transform_indices = @transform_14, window_bounds = array<i64: 384, 128>}, {pipeline_mode = #tpu.pipeline_mode<synchronous>, transform_indices = @transform_15, window_bounds = array<i64: 1, 128>}, {pipeline_mode = #tpu.pipeline_mode<synchronous>, transform_indices = @transform_16, window_bounds = array<i64: 16, 128>}]} {
    %c0_i32 = arith.constant 0 : i32
    %0 = arith.cmpi eq, %arg0, %c0_i32 : i32
    %1 = arith.extui %0 : i1 to i32
    %c0_i32_0 = arith.constant 0 : i32
    %2 = arith.cmpi ne, %1, %c0_i32_0 : i32
    scf.if %2 {
      %c0_112 = arith.constant 0 : index
      %c0_113 = arith.constant 0 : index
      %317 = vector.load %arg1[%c0_112, %c0_113] : memref<16x384xf32, #tpu.memory_space<vmem>>, vector<16x384xf32>
      %c0_114 = arith.constant 0 : index
      %c0_115 = arith.constant 0 : index
      %318 = vector.load %arg18[%c0_114, %c0_115] : memref<16x384xf32, #tpu.memory_space<vmem>>, vector<16x384xf32>
      tpu.vector_store %arg18[%c0_114, %c0_115], %317 {strides = array<i32>} : memref<16x384xf32, #tpu.memory_space<vmem>>, vector<16x384xf32>,
    } else {
    }
    %c0 = arith.constant 0 : index
    %c0_1 = arith.constant 0 : index
    %3 = vector.load %arg18[%c0, %c0_1] : memref<16x384xf32, #tpu.memory_space<vmem>>, vector<16x384xf32>
    %c0_2 = arith.constant 0 : index
    %c0_3 = arith.constant 0 : index
    %c0_4 = arith.constant 0 : index
    %4 = vector.load %arg2[%c0_2, %c0_3, %c0_4] : memref<1x1x384xf32, #tpu.memory_space<vmem>>, vector<1x1x384xf32>
    %5 = vector.shape_cast %4 : vector<1x1x384xf32> to vector<1x384xf32>
    %c0_5 = arith.constant 0 : index
    %c0_6 = arith.constant 0 : index
    %c0_7 = arith.constant 0 : index
    %6 = vector.load %arg3[%c0_5, %c0_6, %c0_7] : memref<1x1x384xf32, #tpu.memory_space<vmem>>, vector<1x1x384xf32>
    %7 = vector.shape_cast %6 : vector<1x1x384xf32> to vector<1x384xf32>
    %cst = arith.constant dense<0.000000e+00> : vector<16xf32>
    %8 = vector.multi_reduction <add>, %3, %cst [1] : vector<16x384xf32> to vector<16xf32>
    %9 = vector.shape_cast %8 : vector<16xf32> to vector<16x1xf32>
    %cst_8 = arith.constant 3.840000e+02 : f32
    %10 = vector.broadcast %cst_8 : f32 to vector<16x1xf32>
    %11 = arith.divf %9, %10 : vector<16x1xf32>
    %12 = vector.broadcast %11 : vector<16x1xf32> to vector<16x384xf32>
    %13 = arith.subf %3, %12 : vector<16x384xf32>
    %14 = arith.mulf %13, %13 : vector<16x384xf32>
    %cst_9 = arith.constant dense<0.000000e+00> : vector<16xf32>
    %15 = vector.multi_reduction <add>, %14, %cst_9 [1] : vector<16x384xf32> to vector<16xf32>
    %16 = vector.shape_cast %15 : vector<16xf32> to vector<16x1xf32>
    %cst_10 = arith.constant 3.840000e+02 : f32
    %17 = vector.broadcast %cst_10 : f32 to vector<16x1xf32>
    %18 = arith.divf %16, %17 : vector<16x1xf32>
    %19 = vector.broadcast %11 : vector<16x1xf32> to vector<16x384xf32>
    %20 = arith.subf %3, %19 : vector<16x384xf32>
    %cst_11 = arith.constant 9.99999974E-6 : f32
    %21 = vector.broadcast %cst_11 : f32 to vector<16x1xf32>
    %22 = arith.addf %18, %21 : vector<16x1xf32>
    %23 = math.rsqrt %22 : vector<16x1xf32>
    %24 = vector.broadcast %23 : vector<16x1xf32> to vector<16x384xf32>
    %25 = arith.mulf %20, %24 : vector<16x384xf32>
    %26 = vector.broadcast %5 : vector<1x384xf32> to vector<16x384xf32>
    %27 = arith.mulf %25, %26 : vector<16x384xf32>
    %28 = vector.broadcast %7 : vector<1x384xf32> to vector<16x384xf32>
    %29 = arith.addf %27, %28 : vector<16x384xf32>
    %30 = arith.truncf %29 : vector<16x384xf32> to vector<16x384xbf16>
    %c0_12 = arith.constant 0 : index
    %c0_13 = arith.constant 0 : index
    %c0_14 = arith.constant 0 : index
    %31 = vector.load %arg4[%c0_12, %c0_13, %c0_14] : memref<1x384x1152xbf16, #tpu.memory_space<vmem>>, vector<1x384x1152xbf16>
    %32 = vector.shape_cast %31 : vector<1x384x1152xbf16> to vector<384x1152xbf16>
    %cst_15 = arith.constant dense<0.000000e+00> : vector<16x1152xf32>
    %33 = tpu.matmul %30, %32, %cst_15 {dimension_numbers = #tpu.dot_dimension_numbers<[1], [0], [0], [1], [0, 0, 1, 1], [], []>} : vector<16x384xbf16>, vector<384x1152xbf16>, vector<16x1152xf32> -> vector<16x1152xf32>
    %34 = arith.truncf %33 : vector<16x1152xf32> to vector<16x1152xbf16>
    %35 = tpu.iota {dimensions = array<i32: 0>} : vector<8x8xi32>
    %36 = tpu.iota {dimensions = array<i32: 1>} : vector<8x8xi32>
    %37 = arith.cmpi sle, %36, %35 : vector<8x8xi32>
    %38 = vector.extract_strided_slice %34 {offsets = [0, 0], sizes = [8, 1152], strides = [1, 1]} : vector<16x1152xbf16> to vector<8x1152xbf16>
    %39 = vector.extract_strided_slice %38 {offsets = [0, 0], sizes = [8, 64], strides = [1, 1]} : vector<8x1152xbf16> to vector<8x64xbf16>
    %40 = vector.extract_strided_slice %38 {offsets = [0, 384], sizes = [8, 64], strides = [1, 1]} : vector<8x1152xbf16> to vector<8x64xbf16>
    %41 = vector.extract_strided_slice %38 {offsets = [0, 768], sizes = [8, 64], strides = [1, 1]} : vector<8x1152xbf16> to vector<8x64xbf16>
    %cst_16 = arith.constant dense<0.000000e+00> : vector<8x8xf32>
    %42 = tpu.matmul %39, %40, %cst_16 {dimension_numbers = #tpu.dot_dimension_numbers<[1], [1], [0], [0], [0, 0, 1, 0], [], []>} : vector<8x64xbf16>, vector<8x64xbf16>, vector<8x8xf32> -> vector<8x8xf32>
    %cst_17 = arith.constant -1.000000e+30 : f32
    %43 = vector.broadcast %cst_17 : f32 to vector<8x8xf32>
    %44 = arith.select %37, %42, %43 : vector<8x8xi1>, vector<8x8xf32>
    %cst_18 = arith.constant dense<0xFF800000> : vector<8xf32>
    %45 = vector.multi_reduction <maximumf>, %44, %cst_18 [1] : vector<8x8xf32> to vector<8xf32>
    %46 = vector.shape_cast %45 : vector<8xf32> to vector<8x1xf32>
    %47 = vector.broadcast %46 : vector<8x1xf32> to vector<8x8xf32>
    %48 = arith.subf %44, %47 : vector<8x8xf32>
    %49 = math.exp %48 : vector<8x8xf32>
    %cst_19 = arith.constant dense<0.000000e+00> : vector<8xf32>
    %50 = vector.multi_reduction <add>, %49, %cst_19 [1] : vector<8x8xf32> to vector<8xf32>
    %51 = vector.shape_cast %50 : vector<8xf32> to vector<8x1xf32>
    %52 = tpu.reciprocal %51 {approx = true} : vector<8x1xf32> -> vector<8x1xf32>
    %53 = vector.broadcast %52 : vector<8x1xf32> to vector<8x8xf32>
    %54 = arith.mulf %49, %53 : vector<8x8xf32>
    %55 = arith.truncf %54 : vector<8x8xf32> to vector<8x8xbf16>
    %cst_20 = arith.constant dense<0.000000e+00> : vector<8x64xf32>
    %56 = tpu.matmul %55, %41, %cst_20 {dimension_numbers = #tpu.dot_dimension_numbers<[1], [0], [0], [1], [0, 0, 1, 1], [], []>} : vector<8x8xbf16>, vector<8x64xbf16>, vector<8x64xf32> -> vector<8x64xf32>
    %57 = vector.extract_strided_slice %38 {offsets = [0, 64], sizes = [8, 64], strides = [1, 1]} : vector<8x1152xbf16> to vector<8x64xbf16>
    %58 = vector.extract_strided_slice %38 {offsets = [0, 448], sizes = [8, 64], strides = [1, 1]} : vector<8x1152xbf16> to vector<8x64xbf16>
    %59 = vector.extract_strided_slice %38 {offsets = [0, 832], sizes = [8, 64], strides = [1, 1]} : vector<8x1152xbf16> to vector<8x64xbf16>
    %cst_21 = arith.constant dense<0.000000e+00> : vector<8x8xf32>
    %60 = tpu.matmul %57, %58, %cst_21 {dimension_numbers = #tpu.dot_dimension_numbers<[1], [1], [0], [0], [0, 0, 1, 0], [], []>} : vector<8x64xbf16>, vector<8x64xbf16>, vector<8x8xf32> -> vector<8x8xf32>
    %cst_22 = arith.constant -1.000000e+30 : f32
    %61 = vector.broadcast %cst_22 : f32 to vector<8x8xf32>
    %62 = arith.select %37, %60, %61 : vector<8x8xi1>, vector<8x8xf32>
    %cst_23 = arith.constant dense<0xFF800000> : vector<8xf32>
    %63 = vector.multi_reduction <maximumf>, %62, %cst_23 [1] : vector<8x8xf32> to vector<8xf32>
    %64 = vector.shape_cast %63 : vector<8xf32> to vector<8x1xf32>
    %65 = vector.broadcast %64 : vector<8x1xf32> to vector<8x8xf32>
    %66 = arith.subf %62, %65 : vector<8x8xf32>
    %67 = math.exp %66 : vector<8x8xf32>
    %cst_24 = arith.constant dense<0.000000e+00> : vector<8xf32>
    %68 = vector.multi_reduction <add>, %67, %cst_24 [1] : vector<8x8xf32> to vector<8xf32>
    %69 = vector.shape_cast %68 : vector<8xf32> to vector<8x1xf32>
    %70 = tpu.reciprocal %69 {approx = true} : vector<8x1xf32> -> vector<8x1xf32>
    %71 = vector.broadcast %70 : vector<8x1xf32> to vector<8x8xf32>
    %72 = arith.mulf %67, %71 : vector<8x8xf32>
    %73 = arith.truncf %72 : vector<8x8xf32> to vector<8x8xbf16>
    %cst_25 = arith.constant dense<0.000000e+00> : vector<8x64xf32>
    %74 = tpu.matmul %73, %59, %cst_25 {dimension_numbers = #tpu.dot_dimension_numbers<[1], [0], [0], [1], [0, 0, 1, 1], [], []>} : vector<8x8xbf16>, vector<8x64xbf16>, vector<8x64xf32> -> vector<8x64xf32>
    %75 = vector.extract_strided_slice %38 {offsets = [0, 128], sizes = [8, 64], strides = [1, 1]} : vector<8x1152xbf16> to vector<8x64xbf16>
    %76 = vector.extract_strided_slice %38 {offsets = [0, 512], sizes = [8, 64], strides = [1, 1]} : vector<8x1152xbf16> to vector<8x64xbf16>
    %77 = vector.extract_strided_slice %38 {offsets = [0, 896], sizes = [8, 64], strides = [1, 1]} : vector<8x1152xbf16> to vector<8x64xbf16>
    %cst_26 = arith.constant dense<0.000000e+00> : vector<8x8xf32>
    %78 = tpu.matmul %75, %76, %cst_26 {dimension_numbers = #tpu.dot_dimension_numbers<[1], [1], [0], [0], [0, 0, 1, 0], [], []>} : vector<8x64xbf16>, vector<8x64xbf16>, vector<8x8xf32> -> vector<8x8xf32>
    %cst_27 = arith.constant -1.000000e+30 : f32
    %79 = vector.broadcast %cst_27 : f32 to vector<8x8xf32>
    %80 = arith.select %37, %78, %79 : vector<8x8xi1>, vector<8x8xf32>
    %cst_28 = arith.constant dense<0xFF800000> : vector<8xf32>
    %81 = vector.multi_reduction <maximumf>, %80, %cst_28 [1] : vector<8x8xf32> to vector<8xf32>
    %82 = vector.shape_cast %81 : vector<8xf32> to vector<8x1xf32>
    %83 = vector.broadcast %82 : vector<8x1xf32> to vector<8x8xf32>
    %84 = arith.subf %80, %83 : vector<8x8xf32>
    %85 = math.exp %84 : vector<8x8xf32>
    %cst_29 = arith.constant dense<0.000000e+00> : vector<8xf32>
    %86 = vector.multi_reduction <add>, %85, %cst_29 [1] : vector<8x8xf32> to vector<8xf32>
    %87 = vector.shape_cast %86 : vector<8xf32> to vector<8x1xf32>
    %88 = tpu.reciprocal %87 {approx = true} : vector<8x1xf32> -> vector<8x1xf32>
    %89 = vector.broadcast %88 : vector<8x1xf32> to vector<8x8xf32>
    %90 = arith.mulf %85, %89 : vector<8x8xf32>
    %91 = arith.truncf %90 : vector<8x8xf32> to vector<8x8xbf16>
    %cst_30 = arith.constant dense<0.000000e+00> : vector<8x64xf32>
    %92 = tpu.matmul %91, %77, %cst_30 {dimension_numbers = #tpu.dot_dimension_numbers<[1], [0], [0], [1], [0, 0, 1, 1], [], []>} : vector<8x8xbf16>, vector<8x64xbf16>, vector<8x64xf32> -> vector<8x64xf32>
    %93 = vector.extract_strided_slice %38 {offsets = [0, 192], sizes = [8, 64], strides = [1, 1]} : vector<8x1152xbf16> to vector<8x64xbf16>
    %94 = vector.extract_strided_slice %38 {offsets = [0, 576], sizes = [8, 64], strides = [1, 1]} : vector<8x1152xbf16> to vector<8x64xbf16>
    %95 = vector.extract_strided_slice %38 {offsets = [0, 960], sizes = [8, 64], strides = [1, 1]} : vector<8x1152xbf16> to vector<8x64xbf16>
    %cst_31 = arith.constant dense<0.000000e+00> : vector<8x8xf32>
    %96 = tpu.matmul %93, %94, %cst_31 {dimension_numbers = #tpu.dot_dimension_numbers<[1], [1], [0], [0], [0, 0, 1, 0], [], []>} : vector<8x64xbf16>, vector<8x64xbf16>, vector<8x8xf32> -> vector<8x8xf32>
    %cst_32 = arith.constant -1.000000e+30 : f32
    %97 = vector.broadcast %cst_32 : f32 to vector<8x8xf32>
    %98 = arith.select %37, %96, %97 : vector<8x8xi1>, vector<8x8xf32>
    %cst_33 = arith.constant dense<0xFF800000> : vector<8xf32>
    %99 = vector.multi_reduction <maximumf>, %98, %cst_33 [1] : vector<8x8xf32> to vector<8xf32>
    %100 = vector.shape_cast %99 : vector<8xf32> to vector<8x1xf32>
    %101 = vector.broadcast %100 : vector<8x1xf32> to vector<8x8xf32>
    %102 = arith.subf %98, %101 : vector<8x8xf32>
    %103 = math.exp %102 : vector<8x8xf32>
    %cst_34 = arith.constant dense<0.000000e+00> : vector<8xf32>
    %104 = vector.multi_reduction <add>, %103, %cst_34 [1] : vector<8x8xf32> to vector<8xf32>
    %105 = vector.shape_cast %104 : vector<8xf32> to vector<8x1xf32>
    %106 = tpu.reciprocal %105 {approx = true} : vector<8x1xf32> -> vector<8x1xf32>
    %107 = vector.broadcast %106 : vector<8x1xf32> to vector<8x8xf32>
    %108 = arith.mulf %103, %107 : vector<8x8xf32>
    %109 = arith.truncf %108 : vector<8x8xf32> to vector<8x8xbf16>
    %cst_35 = arith.constant dense<0.000000e+00> : vector<8x64xf32>
    %110 = tpu.matmul %109, %95, %cst_35 {dimension_numbers = #tpu.dot_dimension_numbers<[1], [0], [0], [1], [0, 0, 1, 1], [], []>} : vector<8x8xbf16>, vector<8x64xbf16>, vector<8x64xf32> -> vector<8x64xf32>
    %111 = vector.extract_strided_slice %38 {offsets = [0, 256], sizes = [8, 64], strides = [1, 1]} : vector<8x1152xbf16> to vector<8x64xbf16>
    %112 = vector.extract_strided_slice %38 {offsets = [0, 640], sizes = [8, 64], strides = [1, 1]} : vector<8x1152xbf16> to vector<8x64xbf16>
    %113 = vector.extract_strided_slice %38 {offsets = [0, 1024], sizes = [8, 64], strides = [1, 1]} : vector<8x1152xbf16> to vector<8x64xbf16>
    %cst_36 = arith.constant dense<0.000000e+00> : vector<8x8xf32>
    %114 = tpu.matmul %111, %112, %cst_36 {dimension_numbers = #tpu.dot_dimension_numbers<[1], [1], [0], [0], [0, 0, 1, 0], [], []>} : vector<8x64xbf16>, vector<8x64xbf16>, vector<8x8xf32> -> vector<8x8xf32>
    %cst_37 = arith.constant -1.000000e+30 : f32
    %115 = vector.broadcast %cst_37 : f32 to vector<8x8xf32>
    %116 = arith.select %37, %114, %115 : vector<8x8xi1>, vector<8x8xf32>
    %cst_38 = arith.constant dense<0xFF800000> : vector<8xf32>
    %117 = vector.multi_reduction <maximumf>, %116, %cst_38 [1] : vector<8x8xf32> to vector<8xf32>
    %118 = vector.shape_cast %117 : vector<8xf32> to vector<8x1xf32>
    %119 = vector.broadcast %118 : vector<8x1xf32> to vector<8x8xf32>
    %120 = arith.subf %116, %119 : vector<8x8xf32>
    %121 = math.exp %120 : vector<8x8xf32>
    %cst_39 = arith.constant dense<0.000000e+00> : vector<8xf32>
    %122 = vector.multi_reduction <add>, %121, %cst_39 [1] : vector<8x8xf32> to vector<8xf32>
    %123 = vector.shape_cast %122 : vector<8xf32> to vector<8x1xf32>
    %124 = tpu.reciprocal %123 {approx = true} : vector<8x1xf32> -> vector<8x1xf32>
    %125 = vector.broadcast %124 : vector<8x1xf32> to vector<8x8xf32>
    %126 = arith.mulf %121, %125 : vector<8x8xf32>
    %127 = arith.truncf %126 : vector<8x8xf32> to vector<8x8xbf16>
    %cst_40 = arith.constant dense<0.000000e+00> : vector<8x64xf32>
    %128 = tpu.matmul %127, %113, %cst_40 {dimension_numbers = #tpu.dot_dimension_numbers<[1], [0], [0], [1], [0, 0, 1, 1], [], []>} : vector<8x8xbf16>, vector<8x64xbf16>, vector<8x64xf32> -> vector<8x64xf32>
    %129 = vector.extract_strided_slice %38 {offsets = [0, 320], sizes = [8, 64], strides = [1, 1]} : vector<8x1152xbf16> to vector<8x64xbf16>
    %130 = vector.extract_strided_slice %38 {offsets = [0, 704], sizes = [8, 64], strides = [1, 1]} : vector<8x1152xbf16> to vector<8x64xbf16>
    %131 = vector.extract_strided_slice %38 {offsets = [0, 1088], sizes = [8, 64], strides = [1, 1]} : vector<8x1152xbf16> to vector<8x64xbf16>
    %cst_41 = arith.constant dense<0.000000e+00> : vector<8x8xf32>
    %132 = tpu.matmul %129, %130, %cst_41 {dimension_numbers = #tpu.dot_dimension_numbers<[1], [1], [0], [0], [0, 0, 1, 0], [], []>} : vector<8x64xbf16>, vector<8x64xbf16>, vector<8x8xf32> -> vector<8x8xf32>
    %cst_42 = arith.constant -1.000000e+30 : f32
    %133 = vector.broadcast %cst_42 : f32 to vector<8x8xf32>
    %134 = arith.select %37, %132, %133 : vector<8x8xi1>, vector<8x8xf32>
    %cst_43 = arith.constant dense<0xFF800000> : vector<8xf32>
    %135 = vector.multi_reduction <maximumf>, %134, %cst_43 [1] : vector<8x8xf32> to vector<8xf32>
    %136 = vector.shape_cast %135 : vector<8xf32> to vector<8x1xf32>
    %137 = vector.broadcast %136 : vector<8x1xf32> to vector<8x8xf32>
    %138 = arith.subf %134, %137 : vector<8x8xf32>
    %139 = math.exp %138 : vector<8x8xf32>
    %cst_44 = arith.constant dense<0.000000e+00> : vector<8xf32>
    %140 = vector.multi_reduction <add>, %139, %cst_44 [1] : vector<8x8xf32> to vector<8xf32>
    %141 = vector.shape_cast %140 : vector<8xf32> to vector<8x1xf32>
    %142 = tpu.reciprocal %141 {approx = true} : vector<8x1xf32> -> vector<8x1xf32>
    %143 = vector.broadcast %142 : vector<8x1xf32> to vector<8x8xf32>
    %144 = arith.mulf %139, %143 : vector<8x8xf32>
    %145 = arith.truncf %144 : vector<8x8xf32> to vector<8x8xbf16>
    %cst_45 = arith.constant dense<0.000000e+00> : vector<8x64xf32>
    %146 = tpu.matmul %145, %131, %cst_45 {dimension_numbers = #tpu.dot_dimension_numbers<[1], [0], [0], [1], [0, 0, 1, 1], [], []>} : vector<8x8xbf16>, vector<8x64xbf16>, vector<8x64xf32> -> vector<8x64xf32>
    %147 = tpu.concatenate %56, %74, %92, %110, %128, %146 in 1 : vector<8x64xf32>, vector<8x64xf32>, vector<8x64xf32>, vector<8x64xf32>, vector<8x64xf32>, vector<8x64xf32> -> vector<8x384xf32>
    %148 = vector.extract_strided_slice %34 {offsets = [8, 0], sizes = [8, 1152], strides = [1, 1]} : vector<16x1152xbf16> to vector<8x1152xbf16>
    %149 = vector.extract_strided_slice %148 {offsets = [0, 0], sizes = [8, 64], strides = [1, 1]} : vector<8x1152xbf16> to vector<8x64xbf16>
    %150 = vector.extract_strided_slice %148 {offsets = [0, 384], sizes = [8, 64], strides = [1, 1]} : vector<8x1152xbf16> to vector<8x64xbf16>
    %151 = vector.extract_strided_slice %148 {offsets = [0, 768], sizes = [8, 64], strides = [1, 1]} : vector<8x1152xbf16> to vector<8x64xbf16>
    %cst_46 = arith.constant dense<0.000000e+00> : vector<8x8xf32>
    %152 = tpu.matmul %149, %150, %cst_46 {dimension_numbers = #tpu.dot_dimension_numbers<[1], [1], [0], [0], [0, 0, 1, 0], [], []>} : vector<8x64xbf16>, vector<8x64xbf16>, vector<8x8xf32> -> vector<8x8xf32>
    %cst_47 = arith.constant -1.000000e+30 : f32
    %153 = vector.broadcast %cst_47 : f32 to vector<8x8xf32>
    %154 = arith.select %37, %152, %153 : vector<8x8xi1>, vector<8x8xf32>
    %cst_48 = arith.constant dense<0xFF800000> : vector<8xf32>
    %155 = vector.multi_reduction <maximumf>, %154, %cst_48 [1] : vector<8x8xf32> to vector<8xf32>
    %156 = vector.shape_cast %155 : vector<8xf32> to vector<8x1xf32>
    %157 = vector.broadcast %156 : vector<8x1xf32> to vector<8x8xf32>
    %158 = arith.subf %154, %157 : vector<8x8xf32>
    %159 = math.exp %158 : vector<8x8xf32>
    %cst_49 = arith.constant dense<0.000000e+00> : vector<8xf32>
    %160 = vector.multi_reduction <add>, %159, %cst_49 [1] : vector<8x8xf32> to vector<8xf32>
    %161 = vector.shape_cast %160 : vector<8xf32> to vector<8x1xf32>
    %162 = tpu.reciprocal %161 {approx = true} : vector<8x1xf32> -> vector<8x1xf32>
    %163 = vector.broadcast %162 : vector<8x1xf32> to vector<8x8xf32>
    %164 = arith.mulf %159, %163 : vector<8x8xf32>
    %165 = arith.truncf %164 : vector<8x8xf32> to vector<8x8xbf16>
    %cst_50 = arith.constant dense<0.000000e+00> : vector<8x64xf32>
    %166 = tpu.matmul %165, %151, %cst_50 {dimension_numbers = #tpu.dot_dimension_numbers<[1], [0], [0], [1], [0, 0, 1, 1], [], []>} : vector<8x8xbf16>, vector<8x64xbf16>, vector<8x64xf32> -> vector<8x64xf32>
    %167 = vector.extract_strided_slice %148 {offsets = [0, 64], sizes = [8, 64], strides = [1, 1]} : vector<8x1152xbf16> to vector<8x64xbf16>
    %168 = vector.extract_strided_slice %148 {offsets = [0, 448], sizes = [8, 64], strides = [1, 1]} : vector<8x1152xbf16> to vector<8x64xbf16>
    %169 = vector.extract_strided_slice %148 {offsets = [0, 832], sizes = [8, 64], strides = [1, 1]} : vector<8x1152xbf16> to vector<8x64xbf16>
    %cst_51 = arith.constant dense<0.000000e+00> : vector<8x8xf32>
    %170 = tpu.matmul %167, %168, %cst_51 {dimension_numbers = #tpu.dot_dimension_numbers<[1], [1], [0], [0], [0, 0, 1, 0], [], []>} : vector<8x64xbf16>, vector<8x64xbf16>, vector<8x8xf32> -> vector<8x8xf32>
    %cst_52 = arith.constant -1.000000e+30 : f32
    %171 = vector.broadcast %cst_52 : f32 to vector<8x8xf32>
    %172 = arith.select %37, %170, %171 : vector<8x8xi1>, vector<8x8xf32>
    %cst_53 = arith.constant dense<0xFF800000> : vector<8xf32>
    %173 = vector.multi_reduction <maximumf>, %172, %cst_53 [1] : vector<8x8xf32> to vector<8xf32>
    %174 = vector.shape_cast %173 : vector<8xf32> to vector<8x1xf32>
    %175 = vector.broadcast %174 : vector<8x1xf32> to vector<8x8xf32>
    %176 = arith.subf %172, %175 : vector<8x8xf32>
    %177 = math.exp %176 : vector<8x8xf32>
    %cst_54 = arith.constant dense<0.000000e+00> : vector<8xf32>
    %178 = vector.multi_reduction <add>, %177, %cst_54 [1] : vector<8x8xf32> to vector<8xf32>
    %179 = vector.shape_cast %178 : vector<8xf32> to vector<8x1xf32>
    %180 = tpu.reciprocal %179 {approx = true} : vector<8x1xf32> -> vector<8x1xf32>
    %181 = vector.broadcast %180 : vector<8x1xf32> to vector<8x8xf32>
    %182 = arith.mulf %177, %181 : vector<8x8xf32>
    %183 = arith.truncf %182 : vector<8x8xf32> to vector<8x8xbf16>
    %cst_55 = arith.constant dense<0.000000e+00> : vector<8x64xf32>
    %184 = tpu.matmul %183, %169, %cst_55 {dimension_numbers = #tpu.dot_dimension_numbers<[1], [0], [0], [1], [0, 0, 1, 1], [], []>} : vector<8x8xbf16>, vector<8x64xbf16>, vector<8x64xf32> -> vector<8x64xf32>
    %185 = vector.extract_strided_slice %148 {offsets = [0, 128], sizes = [8, 64], strides = [1, 1]} : vector<8x1152xbf16> to vector<8x64xbf16>
    %186 = vector.extract_strided_slice %148 {offsets = [0, 512], sizes = [8, 64], strides = [1, 1]} : vector<8x1152xbf16> to vector<8x64xbf16>
    %187 = vector.extract_strided_slice %148 {offsets = [0, 896], sizes = [8, 64], strides = [1, 1]} : vector<8x1152xbf16> to vector<8x64xbf16>
    %cst_56 = arith.constant dense<0.000000e+00> : vector<8x8xf32>
    %188 = tpu.matmul %185, %186, %cst_56 {dimension_numbers = #tpu.dot_dimension_numbers<[1], [1], [0], [0], [0, 0, 1, 0], [], []>} : vector<8x64xbf16>, vector<8x64xbf16>, vector<8x8xf32> -> vector<8x8xf32>
    %cst_57 = arith.constant -1.000000e+30 : f32
    %189 = vector.broadcast %cst_57 : f32 to vector<8x8xf32>
    %190 = arith.select %37, %188, %189 : vector<8x8xi1>, vector<8x8xf32>
    %cst_58 = arith.constant dense<0xFF800000> : vector<8xf32>
    %191 = vector.multi_reduction <maximumf>, %190, %cst_58 [1] : vector<8x8xf32> to vector<8xf32>
    %192 = vector.shape_cast %191 : vector<8xf32> to vector<8x1xf32>
    %193 = vector.broadcast %192 : vector<8x1xf32> to vector<8x8xf32>
    %194 = arith.subf %190, %193 : vector<8x8xf32>
    %195 = math.exp %194 : vector<8x8xf32>
    %cst_59 = arith.constant dense<0.000000e+00> : vector<8xf32>
    %196 = vector.multi_reduction <add>, %195, %cst_59 [1] : vector<8x8xf32> to vector<8xf32>
    %197 = vector.shape_cast %196 : vector<8xf32> to vector<8x1xf32>
    %198 = tpu.reciprocal %197 {approx = true} : vector<8x1xf32> -> vector<8x1xf32>
    %199 = vector.broadcast %198 : vector<8x1xf32> to vector<8x8xf32>
    %200 = arith.mulf %195, %199 : vector<8x8xf32>
    %201 = arith.truncf %200 : vector<8x8xf32> to vector<8x8xbf16>
    %cst_60 = arith.constant dense<0.000000e+00> : vector<8x64xf32>
    %202 = tpu.matmul %201, %187, %cst_60 {dimension_numbers = #tpu.dot_dimension_numbers<[1], [0], [0], [1], [0, 0, 1, 1], [], []>} : vector<8x8xbf16>, vector<8x64xbf16>, vector<8x64xf32> -> vector<8x64xf32>
    %203 = vector.extract_strided_slice %148 {offsets = [0, 192], sizes = [8, 64], strides = [1, 1]} : vector<8x1152xbf16> to vector<8x64xbf16>
    %204 = vector.extract_strided_slice %148 {offsets = [0, 576], sizes = [8, 64], strides = [1, 1]} : vector<8x1152xbf16> to vector<8x64xbf16>
    %205 = vector.extract_strided_slice %148 {offsets = [0, 960], sizes = [8, 64], strides = [1, 1]} : vector<8x1152xbf16> to vector<8x64xbf16>
    %cst_61 = arith.constant dense<0.000000e+00> : vector<8x8xf32>
    %206 = tpu.matmul %203, %204, %cst_61 {dimension_numbers = #tpu.dot_dimension_numbers<[1], [1], [0], [0], [0, 0, 1, 0], [], []>} : vector<8x64xbf16>, vector<8x64xbf16>, vector<8x8xf32> -> vector<8x8xf32>
    %cst_62 = arith.constant -1.000000e+30 : f32
    %207 = vector.broadcast %cst_62 : f32 to vector<8x8xf32>
    %208 = arith.select %37, %206, %207 : vector<8x8xi1>, vector<8x8xf32>
    %cst_63 = arith.constant dense<0xFF800000> : vector<8xf32>
    %209 = vector.multi_reduction <maximumf>, %208, %cst_63 [1] : vector<8x8xf32> to vector<8xf32>
    %210 = vector.shape_cast %209 : vector<8xf32> to vector<8x1xf32>
    %211 = vector.broadcast %210 : vector<8x1xf32> to vector<8x8xf32>
    %212 = arith.subf %208, %211 : vector<8x8xf32>
    %213 = math.exp %212 : vector<8x8xf32>
    %cst_64 = arith.constant dense<0.000000e+00> : vector<8xf32>
    %214 = vector.multi_reduction <add>, %213, %cst_64 [1] : vector<8x8xf32> to vector<8xf32>
    %215 = vector.shape_cast %214 : vector<8xf32> to vector<8x1xf32>
    %216 = tpu.reciprocal %215 {approx = true} : vector<8x1xf32> -> vector<8x1xf32>
    %217 = vector.broadcast %216 : vector<8x1xf32> to vector<8x8xf32>
    %218 = arith.mulf %213, %217 : vector<8x8xf32>
    %219 = arith.truncf %218 : vector<8x8xf32> to vector<8x8xbf16>
    %cst_65 = arith.constant dense<0.000000e+00> : vector<8x64xf32>
    %220 = tpu.matmul %219, %205, %cst_65 {dimension_numbers = #tpu.dot_dimension_numbers<[1], [0], [0], [1], [0, 0, 1, 1], [], []>} : vector<8x8xbf16>, vector<8x64xbf16>, vector<8x64xf32> -> vector<8x64xf32>
    %221 = vector.extract_strided_slice %148 {offsets = [0, 256], sizes = [8, 64], strides = [1, 1]} : vector<8x1152xbf16> to vector<8x64xbf16>
    %222 = vector.extract_strided_slice %148 {offsets = [0, 640], sizes = [8, 64], strides = [1, 1]} : vector<8x1152xbf16> to vector<8x64xbf16>
    %223 = vector.extract_strided_slice %148 {offsets = [0, 1024], sizes = [8, 64], strides = [1, 1]} : vector<8x1152xbf16> to vector<8x64xbf16>
    %cst_66 = arith.constant dense<0.000000e+00> : vector<8x8xf32>
    %224 = tpu.matmul %221, %222, %cst_66 {dimension_numbers = #tpu.dot_dimension_numbers<[1], [1], [0], [0], [0, 0, 1, 0], [], []>} : vector<8x64xbf16>, vector<8x64xbf16>, vector<8x8xf32> -> vector<8x8xf32>
    %cst_67 = arith.constant -1.000000e+30 : f32
    %225 = vector.broadcast %cst_67 : f32 to vector<8x8xf32>
    %226 = arith.select %37, %224, %225 : vector<8x8xi1>, vector<8x8xf32>
    %cst_68 = arith.constant dense<0xFF800000> : vector<8xf32>
    %227 = vector.multi_reduction <maximumf>, %226, %cst_68 [1] : vector<8x8xf32> to vector<8xf32>
    %228 = vector.shape_cast %227 : vector<8xf32> to vector<8x1xf32>
    %229 = vector.broadcast %228 : vector<8x1xf32> to vector<8x8xf32>
    %230 = arith.subf %226, %229 : vector<8x8xf32>
    %231 = math.exp %230 : vector<8x8xf32>
    %cst_69 = arith.constant dense<0.000000e+00> : vector<8xf32>
    %232 = vector.multi_reduction <add>, %231, %cst_69 [1] : vector<8x8xf32> to vector<8xf32>
    %233 = vector.shape_cast %232 : vector<8xf32> to vector<8x1xf32>
    %234 = tpu.reciprocal %233 {approx = true} : vector<8x1xf32> -> vector<8x1xf32>
    %235 = vector.broadcast %234 : vector<8x1xf32> to vector<8x8xf32>
    %236 = arith.mulf %231, %235 : vector<8x8xf32>
    %237 = arith.truncf %236 : vector<8x8xf32> to vector<8x8xbf16>
    %cst_70 = arith.constant dense<0.000000e+00> : vector<8x64xf32>
    %238 = tpu.matmul %237, %223, %cst_70 {dimension_numbers = #tpu.dot_dimension_numbers<[1], [0], [0], [1], [0, 0, 1, 1], [], []>} : vector<8x8xbf16>, vector<8x64xbf16>, vector<8x64xf32> -> vector<8x64xf32>
    %239 = vector.extract_strided_slice %148 {offsets = [0, 320], sizes = [8, 64], strides = [1, 1]} : vector<8x1152xbf16> to vector<8x64xbf16>
    %240 = vector.extract_strided_slice %148 {offsets = [0, 704], sizes = [8, 64], strides = [1, 1]} : vector<8x1152xbf16> to vector<8x64xbf16>
    %241 = vector.extract_strided_slice %148 {offsets = [0, 1088], sizes = [8, 64], strides = [1, 1]} : vector<8x1152xbf16> to vector<8x64xbf16>
    %cst_71 = arith.constant dense<0.000000e+00> : vector<8x8xf32>
    %242 = tpu.matmul %239, %240, %cst_71 {dimension_numbers = #tpu.dot_dimension_numbers<[1], [1], [0], [0], [0, 0, 1, 0], [], []>} : vector<8x64xbf16>, vector<8x64xbf16>, vector<8x8xf32> -> vector<8x8xf32>
    %cst_72 = arith.constant -1.000000e+30 : f32
    %243 = vector.broadcast %cst_72 : f32 to vector<8x8xf32>
    %244 = arith.select %37, %242, %243 : vector<8x8xi1>, vector<8x8xf32>
    %cst_73 = arith.constant dense<0xFF800000> : vector<8xf32>
    %245 = vector.multi_reduction <maximumf>, %244, %cst_73 [1] : vector<8x8xf32> to vector<8xf32>
    %246 = vector.shape_cast %245 : vector<8xf32> to vector<8x1xf32>
    %247 = vector.broadcast %246 : vector<8x1xf32> to vector<8x8xf32>
    %248 = arith.subf %244, %247 : vector<8x8xf32>
    %249 = math.exp %248 : vector<8x8xf32>
    %cst_74 = arith.constant dense<0.000000e+00> : vector<8xf32>
    %250 = vector.multi_reduction <add>, %249, %cst_74 [1] : vector<8x8xf32> to vector<8xf32>
    %251 = vector.shape_cast %250 : vector<8xf32> to vector<8x1xf32>
    %252 = tpu.reciprocal %251 {approx = true} : vector<8x1xf32> -> vector<8x1xf32>
    %253 = vector.broadcast %252 : vector<8x1xf32> to vector<8x8xf32>
    %254 = arith.mulf %249, %253 : vector<8x8xf32>
    %255 = arith.truncf %254 : vector<8x8xf32> to vector<8x8xbf16>
    %cst_75 = arith.constant dense<0.000000e+00> : vector<8x64xf32>
    %256 = tpu.matmul %255, %241, %cst_75 {dimension_numbers = #tpu.dot_dimension_numbers<[1], [0], [0], [1], [0, 0, 1, 1], [], []>} : vector<8x8xbf16>, vector<8x64xbf16>, vector<8x64xf32> -> vector<8x64xf32>
    %257 = tpu.concatenate %166, %184, %202, %220, %238, %256 in 1 : vector<8x64xf32>, vector<8x64xf32>, vector<8x64xf32>, vector<8x64xf32>, vector<8x64xf32>, vector<8x64xf32> -> vector<8x384xf32>
    %258 = tpu.concatenate %147, %257 in 0 : vector<8x384xf32>, vector<8x384xf32> -> vector<16x384xf32>
    %259 = arith.truncf %258 : vector<16x384xf32> to vector<16x384xbf16>
    %c0_76 = arith.constant 0 : index
    %c0_77 = arith.constant 0 : index
    %c0_78 = arith.constant 0 : index
    %260 = vector.load %arg5[%c0_76, %c0_77, %c0_78] : memref<1x384x384xbf16, #tpu.memory_space<vmem>>, vector<1x384x384xbf16>
    %261 = vector.shape_cast %260 : vector<1x384x384xbf16> to vector<384x384xbf16>
    %cst_79 = arith.constant dense<0.000000e+00> : vector<16x384xf32>
    %262 = tpu.matmul %259, %261, %cst_79 {dimension_numbers = #tpu.dot_dimension_numbers<[1], [0], [0], [1], [0, 0, 1, 1], [], []>} : vector<16x384xbf16>, vector<384x384xbf16>, vector<16x384xf32> -> vector<16x384xf32>
    %263 = arith.addf %3, %262 : vector<16x384xf32>
    %c0_80 = arith.constant 0 : index
    %c0_81 = arith.constant 0 : index
    %c0_82 = arith.constant 0 : index
    %264 = vector.load %arg6[%c0_80, %c0_81, %c0_82] : memref<1x1x384xf32, #tpu.memory_space<vmem>>, vector<1x1x384xf32>
    %265 = vector.shape_cast %264 : vector<1x1x384xf32> to vector<1x384xf32>
    %266 = vector.broadcast %265 : vector<1x384xf32> to vector<16x384xf32>
    %267 = arith.addf %263, %266 : vector<16x384xf32>
    %c0_83 = arith.constant 0 : index
    %c0_84 = arith.constant 0 : index
    %c0_85 = arith.constant 0 : index
    %268 = vector.load %arg7[%c0_83, %c0_84, %c0_85] : memref<1x1x384xf32, #tpu.memory_space<vmem>>, vector<1x1x384xf32>
    %269 = vector.shape_cast %268 : vector<1x1x384xf32> to vector<1x384xf32>
    %c0_86 = arith.constant 0 : index
    %c0_87 = arith.constant 0 : index
    %c0_88 = arith.constant 0 : index
    %270 = vector.load %arg8[%c0_86, %c0_87, %c0_88] : memref<1x1x384xf32, #tpu.memory_space<vmem>>, vector<1x1x384xf32>
    %271 = vector.shape_cast %270 : vector<1x1x384xf32> to vector<1x384xf32>
    %cst_89 = arith.constant dense<0.000000e+00> : vector<16xf32>
    %272 = vector.multi_reduction <add>, %267, %cst_89 [1] : vector<16x384xf32> to vector<16xf32>
    %273 = vector.shape_cast %272 : vector<16xf32> to vector<16x1xf32>
    %cst_90 = arith.constant 3.840000e+02 : f32
    %274 = vector.broadcast %cst_90 : f32 to vector<16x1xf32>
    %275 = arith.divf %273, %274 : vector<16x1xf32>
    %276 = vector.broadcast %275 : vector<16x1xf32> to vector<16x384xf32>
    %277 = arith.subf %267, %276 : vector<16x384xf32>
    %278 = arith.mulf %277, %277 : vector<16x384xf32>
    %cst_91 = arith.constant dense<0.000000e+00> : vector<16xf32>
    %279 = vector.multi_reduction <add>, %278, %cst_91 [1] : vector<16x384xf32> to vector<16xf32>
    %280 = vector.shape_cast %279 : vector<16xf32> to vector<16x1xf32>
    %cst_92 = arith.constant 3.840000e+02 : f32
    %281 = vector.broadcast %cst_92 : f32 to vector<16x1xf32>
    %282 = arith.divf %280, %281 : vector<16x1xf32>
    %283 = vector.broadcast %275 : vector<16x1xf32> to vector<16x384xf32>
    %284 = arith.subf %267, %283 : vector<16x384xf32>
    %cst_93 = arith.constant 9.99999974E-6 : f32
    %285 = vector.broadcast %cst_93 : f32 to vector<16x1xf32>
    %286 = arith.addf %282, %285 : vector<16x1xf32>
    %287 = math.rsqrt %286 : vector<16x1xf32>
    %288 = vector.broadcast %287 : vector<16x1xf32> to vector<16x384xf32>
    %289 = arith.mulf %284, %288 : vector<16x384xf32>
    %290 = vector.broadcast %269 : vector<1x384xf32> to vector<16x384xf32>
    %291 = arith.mulf %289, %290 : vector<16x384xf32>
    %292 = vector.broadcast %271 : vector<1x384xf32> to vector<16x384xf32>
    %293 = arith.addf %291, %292 : vector<16x384xf32>
    %294 = arith.truncf %293 : vector<16x384xf32> to vector<16x384xbf16>
    %c0_94 = arith.constant 0 : index
    %c0_95 = arith.constant 0 : index
    %c0_96 = arith.constant 0 : index
    %295 = vector.load %arg9[%c0_94, %c0_95, %c0_96] : memref<1x384x1536xbf16, #tpu.memory_space<vmem>>, vector<1x384x1536xbf16>
    %296 = vector.shape_cast %295 : vector<1x384x1536xbf16> to vector<384x1536xbf16>
    %cst_97 = arith.constant dense<0.000000e+00> : vector<16x1536xf32>
    %297 = tpu.matmul %294, %296, %cst_97 {dimension_numbers = #tpu.dot_dimension_numbers<[1], [0], [0], [1], [0, 0, 1, 1], [], []>} : vector<16x384xbf16>, vector<384x1536xbf16>, vector<16x1536xf32> -> vector<16x1536xf32>
    %c0_98 = arith.constant 0 : index
    %c0_99 = arith.constant 0 : index
    %c0_100 = arith.constant 0 : index
    %298 = vector.load %arg10[%c0_98, %c0_99, %c0_100] : memref<1x1x1536xf32, #tpu.memory_space<vmem>>, vector<1x1x1536xf32>
    %299 = vector.shape_cast %298 : vector<1x1x1536xf32> to vector<1x1536xf32>
    %300 = vector.broadcast %299 : vector<1x1536xf32> to vector<16x1536xf32>
    %301 = arith.addf %297, %300 : vector<16x1536xf32>
    %cst_101 = arith.constant 0.000000e+00 : f32
    %302 = vector.broadcast %cst_101 : f32 to vector<16x1536xf32>
    %303 = arith.maximumf %301, %302 : vector<16x1536xf32>
    %304 = arith.truncf %303 : vector<16x1536xf32> to vector<16x1536xbf16>
    %c0_102 = arith.constant 0 : index
    %c0_103 = arith.constant 0 : index
    %c0_104 = arith.constant 0 : index
    %305 = vector.load %arg11[%c0_102, %c0_103, %c0_104] : memref<1x1536x384xbf16, #tpu.memory_space<vmem>>, vector<1x1536x384xbf16>
    %306 = vector.shape_cast %305 : vector<1x1536x384xbf16> to vector<1536x384xbf16>
    %cst_105 = arith.constant dense<0.000000e+00> : vector<16x384xf32>
    %307 = tpu.matmul %304, %306, %cst_105 {dimension_numbers = #tpu.dot_dimension_numbers<[1], [0], [0], [1], [0, 0, 1, 1], [], []>} : vector<16x1536xbf16>, vector<1536x384xbf16>, vector<16x384xf32> -> vector<16x384xf32>
    %308 = arith.addf %267, %307 : vector<16x384xf32>
    %c0_106 = arith.constant 0 : index
    %c0_107 = arith.constant 0 : index
    %c0_108 = arith.constant 0 : index
    %309 = vector.load %arg12[%c0_106, %c0_107, %c0_108] : memref<1x1x384xf32, #tpu.memory_space<vmem>>, vector<1x1x384xf32>
    %310 = vector.shape_cast %309 : vector<1x1x384xf32> to vector<1x384xf32>
    %311 = vector.broadcast %310 : vector<1x384xf32> to vector<16x384xf32>
    %312 = arith.addf %308, %311 : vector<16x384xf32>
    %c0_109 = arith.constant 0 : index
    %c0_110 = arith.constant 0 : index
    %313 = vector.load %arg18[%c0_109, %c0_110] : memref<16x384xf32, #tpu.memory_space<vmem>>, vector<16x384xf32>
    tpu.vector_store %arg18[%c0_109, %c0_110], %312 {strides = array<i32>} : memref<16x384xf32, #tpu.memory_space<vmem>>, vector<16x384xf32>,
    %c5_i32 = arith.constant 5 : i32
    %314 = arith.cmpi eq, %arg0, %c5_i32 : i32
    %315 = arith.extui %314 : i1 to i32
    %c0_i32_111 = arith.constant 0 : i32
    %316 = arith.cmpi ne, %315, %c0_i32_111 : i32
    scf.if %316 {
      %c0_112 = arith.constant 0 : index
      %c0_113 = arith.constant 0 : index
      %317 = vector.load %arg13[%c0_112, %c0_113] : memref<1x384xf32, #tpu.memory_space<vmem>>, vector<1x384xf32>
      %c0_114 = arith.constant 0 : index
      %c0_115 = arith.constant 0 : index
      %318 = vector.load %arg14[%c0_114, %c0_115] : memref<1x384xf32, #tpu.memory_space<vmem>>, vector<1x384xf32>
      %cst_116 = arith.constant dense<0.000000e+00> : vector<16xf32>
      %319 = vector.multi_reduction <add>, %312, %cst_116 [1] : vector<16x384xf32> to vector<16xf32>
      %320 = vector.shape_cast %319 : vector<16xf32> to vector<16x1xf32>
      %cst_117 = arith.constant 3.840000e+02 : f32
      %321 = vector.broadcast %cst_117 : f32 to vector<16x1xf32>
      %322 = arith.divf %320, %321 : vector<16x1xf32>
      %323 = vector.broadcast %322 : vector<16x1xf32> to vector<16x384xf32>
      %324 = arith.subf %312, %323 : vector<16x384xf32>
      %325 = arith.mulf %324, %324 : vector<16x384xf32>
      %cst_118 = arith.constant dense<0.000000e+00> : vector<16xf32>
      %326 = vector.multi_reduction <add>, %325, %cst_118 [1] : vector<16x384xf32> to vector<16xf32>
      %327 = vector.shape_cast %326 : vector<16xf32> to vector<16x1xf32>
      %cst_119 = arith.constant 3.840000e+02 : f32
      %328 = vector.broadcast %cst_119 : f32 to vector<16x1xf32>
      %329 = arith.divf %327, %328 : vector<16x1xf32>
      %330 = vector.broadcast %322 : vector<16x1xf32> to vector<16x384xf32>
      %331 = arith.subf %312, %330 : vector<16x384xf32>
      %cst_120 = arith.constant 9.99999974E-6 : f32
      %332 = vector.broadcast %cst_120 : f32 to vector<16x1xf32>
      %333 = arith.addf %329, %332 : vector<16x1xf32>
      %334 = math.rsqrt %333 : vector<16x1xf32>
      %335 = vector.broadcast %334 : vector<16x1xf32> to vector<16x384xf32>
      %336 = arith.mulf %331, %335 : vector<16x384xf32>
      %337 = vector.broadcast %317 : vector<1x384xf32> to vector<16x384xf32>
      %338 = arith.mulf %336, %337 : vector<16x384xf32>
      %339 = vector.broadcast %318 : vector<1x384xf32> to vector<16x384xf32>
      %340 = arith.addf %338, %339 : vector<16x384xf32>
      %341 = arith.truncf %340 : vector<16x384xf32> to vector<16x384xbf16>
      %c0_121 = arith.constant 0 : index
      %c0_122 = arith.constant 0 : index
      %342 = vector.load %arg15[%c0_121, %c0_122] : memref<384x128xbf16, #tpu.memory_space<vmem>>, vector<384x128xbf16>
      %cst_123 = arith.constant dense<0.000000e+00> : vector<16x128xf32>
      %343 = tpu.matmul %341, %342, %cst_123 {dimension_numbers = #tpu.dot_dimension_numbers<[1], [0], [0], [1], [0, 0, 1, 1], [], []>} : vector<16x384xbf16>, vector<384x128xbf16>, vector<16x128xf32> -> vector<16x128xf32>
      %c0_124 = arith.constant 0 : index
      %c0_125 = arith.constant 0 : index
      %344 = vector.load %arg16[%c0_124, %c0_125] : memref<1x128xf32, #tpu.memory_space<vmem>>, vector<1x128xf32>
      %345 = vector.broadcast %344 : vector<1x128xf32> to vector<16x128xf32>
      %346 = arith.addf %343, %345 : vector<16x128xf32>
      %c0_126 = arith.constant 0 : index
      %c0_127 = arith.constant 0 : index
      %347 = vector.load %arg17[%c0_126, %c0_127] : memref<16x128xf32, #tpu.memory_space<vmem>>, vector<16x128xf32>
      tpu.vector_store %arg17[%c0_126, %c0_127], %346 {strides = array<i32>} : memref<16x128xf32, #tpu.memory_space<vmem>>, vector<16x128xf32>,
    } else {
    }
    return
  }
  func.func @transform_0(%arg0: i32) -> (i32, i32) {
    %c0_i32 = arith.constant 0 : i32
    %c0_i32_0 = arith.constant 0 : i32
    %c0_i32_1 = arith.constant 0 : i32
    return %c0_i32, %c0_i32_0 : i32, i32
  }
  func.func @transform_1(%arg0: i32) -> (i32, i32, i32) {
    %c0_i32 = arith.constant 0 : i32
    %c0_i32_0 = arith.constant 0 : i32
    %c0_i32_1 = arith.constant 0 : i32
    return %arg0, %c0_i32, %c0_i32_0 : i32, i32, i32
  }
  func.func @transform_2(%arg0: i32) -> (i32, i32, i32) {
    %c0_i32 = arith.constant 0 : i32
    %c0_i32_0 = arith.constant 0 : i32
    %c0_i32_1 = arith.constant 0 : i32
    return %arg0, %c0_i32, %c0_i32_0 : i32, i32, i32
  }
  func.func @transform_3(%arg0: i32) -> (i32, i32, i32) {
    %c0_i32 = arith.constant 0 : i32
    %c0_i32_0 = arith.constant 0 : i32
    %c0_i32_1 = arith.constant 0 : i32
    return %arg0, %c0_i32, %c0_i32_0 : i32, i32, i32
  }
  func.func @transform_4(%arg0: i32) -> (i32, i32, i32) {
    %c0_i32 = arith.constant 0 : i32
    %c0_i32_0 = arith.constant 0 : i32
    %c0_i32_1 = arith.constant 0 : i32
    return %arg0, %c0_i32, %c0_i32_0 : i32, i32, i32
  }
  func.func @transform_5(%arg0: i32) -> (i32, i32, i32) {
    %c0_i32 = arith.constant 0 : i32
    %c0_i32_0 = arith.constant 0 : i32
    %c0_i32_1 = arith.constant 0 : i32
    return %arg0, %c0_i32, %c0_i32_0 : i32, i32, i32
  }
  func.func @transform_6(%arg0: i32) -> (i32, i32, i32) {
    %c0_i32 = arith.constant 0 : i32
    %c0_i32_0 = arith.constant 0 : i32
    %c0_i32_1 = arith.constant 0 : i32
    return %arg0, %c0_i32, %c0_i32_0 : i32, i32, i32
  }
  func.func @transform_7(%arg0: i32) -> (i32, i32, i32) {
    %c0_i32 = arith.constant 0 : i32
    %c0_i32_0 = arith.constant 0 : i32
    %c0_i32_1 = arith.constant 0 : i32
    return %arg0, %c0_i32, %c0_i32_0 : i32, i32, i32
  }
  func.func @transform_8(%arg0: i32) -> (i32, i32, i32) {
    %c0_i32 = arith.constant 0 : i32
    %c0_i32_0 = arith.constant 0 : i32
    %c0_i32_1 = arith.constant 0 : i32
    return %arg0, %c0_i32, %c0_i32_0 : i32, i32, i32
  }
  func.func @transform_9(%arg0: i32) -> (i32, i32, i32) {
    %c0_i32 = arith.constant 0 : i32
    %c0_i32_0 = arith.constant 0 : i32
    %c0_i32_1 = arith.constant 0 : i32
    return %arg0, %c0_i32, %c0_i32_0 : i32, i32, i32
  }
  func.func @transform_10(%arg0: i32) -> (i32, i32, i32) {
    %c0_i32 = arith.constant 0 : i32
    %c0_i32_0 = arith.constant 0 : i32
    %c0_i32_1 = arith.constant 0 : i32
    return %arg0, %c0_i32, %c0_i32_0 : i32, i32, i32
  }
  func.func @transform_11(%arg0: i32) -> (i32, i32, i32) {
    %c0_i32 = arith.constant 0 : i32
    %c0_i32_0 = arith.constant 0 : i32
    %c0_i32_1 = arith.constant 0 : i32
    return %arg0, %c0_i32, %c0_i32_0 : i32, i32, i32
  }
  func.func @transform_12(%arg0: i32) -> (i32, i32) {
    %c0_i32 = arith.constant 0 : i32
    %c0_i32_0 = arith.constant 0 : i32
    %c0_i32_1 = arith.constant 0 : i32
    return %c0_i32, %c0_i32_0 : i32, i32
  }
  func.func @transform_13(%arg0: i32) -> (i32, i32) {
    %c0_i32 = arith.constant 0 : i32
    %c0_i32_0 = arith.constant 0 : i32
    %c0_i32_1 = arith.constant 0 : i32
    return %c0_i32, %c0_i32_0 : i32, i32
  }
  func.func @transform_14(%arg0: i32) -> (i32, i32) {
    %c0_i32 = arith.constant 0 : i32
    %c0_i32_0 = arith.constant 0 : i32
    %c0_i32_1 = arith.constant 0 : i32
    return %c0_i32, %c0_i32_0 : i32, i32
  }
  func.func @transform_15(%arg0: i32) -> (i32, i32) {
    %c0_i32 = arith.constant 0 : i32
    %c0_i32_0 = arith.constant 0 : i32
    %c0_i32_1 = arith.constant 0 : i32
    return %c0_i32, %c0_i32_0 : i32, i32
  }
  func.func @transform_16(%arg0: i32) -> (i32, i32) {
    %c0_i32 = arith.constant 0 : i32
    %c0_i32_0 = arith.constant 0 : i32
    %c0_i32_1 = arith.constant 0 : i32
    return %c0_i32, %c0_i32_0 : i32, i32
  }
}

</mosaic_0001>

<bundles_post_ra>
// kernel: tpu_custom_call.1
= control target key start
LH: loop header
LB: loop body
LE: loop exit
PB: predicated region body
PF: predicated region fallthrough
CT: control target
= control target key end

     0   :  { %s16448_s0 = inlined_call_operand.hbm [shape: f32[16,384], index: 0, kind: input, shape index: {}]   ;;  %s16449_s1 = inlined_call_operand.hbm [shape: f32[6,1,384], index: 1, kind: input, shape index: {}]   ;;  %s16450_s2 = inlined_call_operand.hbm [shape: f32[6,1,384], index: 2, kind: input, shape index: {}]   ;;  %s16451_s3 = inlined_call_operand.hbm [shape: bf16[6,384,1152], index: 3, kind: input, shape index: {}]   ;;  %s16452_s4 = inlined_call_operand.hbm [shape: bf16[6,384,384], index: 4, kind: input, shape index: {}]   ;;  %s16453_s5 = inlined_call_operand.hbm [shape: f32[6,1,384], index: 5, kind: input, shape index: {}]   ;;  %s16454_s6 = inlined_call_operand.hbm [shape: f32[6,1,384], index: 6, kind: input, shape index: {}]   ;;  %s16455_s7 = inlined_call_operand.hbm [shape: f32[6,1,384], index: 7, kind: input, shape index: {}]   ;;  %s16456_s8 = inlined_call_operand.hbm [shape: bf16[6,384,1536], index: 8, kind: input, shape index: {}]   ;;  %s16457_s9 = inlined_call_operand.hbm [shape: f32[6,1,1536], index: 9, kind: input, shape index: {}]   ;;  %s16458_s10 = inlined_call_operand.hbm [shape: bf16[6,1536,384], index: 10, kind: input, shape index: {}]   ;;  %s16459_s11 = inlined_call_operand.hbm [shape: f32[6,1,384], index: 11, kind: input, shape index: {}]   ;;  %s16460_s12 = inlined_call_operand.hbm [shape: f32[1,384], index: 12, kind: input, shape index: {}]   ;;  %s16461_s13 = inlined_call_operand.hbm [shape: f32[1,384], index: 13, kind: input, shape index: {}]   ;;  %s16462_s14 = inlined_call_operand.hbm [shape: bf16[384,128], index: 14, kind: input, shape index: {}]   ;;  %s16463_s15 = inlined_call_operand.hbm [shape: f32[1,128], index: 15, kind: input, shape index: {}]   ;;  %s16464_s16 = inlined_call_operand.hbm [shape: f32[16,128], index: 16, kind: output, shape index: {}]  }
   0x1   :  { %16502 = sst [smem:[#allocation48_spill]] %s16448_s0 }
   0x2   :  { %16503 = sst [smem:[#allocation49_spill]] %s16449_s1 }
   0x3   :  { %16504 = sst [smem:[#allocation50_spill]] %s16451_s3 }
   0x4   :  { %16505 = sst [smem:[#allocation51_spill]] %s16454_s6 }
   0x5   :  { %16506 = sst [smem:[#allocation52_spill]] %s16456_s8 }
   0x6   :  { %16507 = sst [smem:[#allocation53_spill]] %s16458_s10 }
   0x7   :  { %16508 = sst [smem:[#allocation54_spill]] %s16459_s11 }
   0x8   :  { %16509 = sst [smem:[#allocation55_spill]] %s16460_s12 }
   0x9   :  { %16510 = sst [smem:[#allocation56_spill]] %s16461_s13 }
   0xa   :  { %16511 = sst [smem:[#allocation57_spill]] %s16464_s16 }
   0xb   :  { %21 = vsyncpa [#allocation4], 0 }
   0xc   :  { %22 = vsyncpa [#allocation7], 0 }
   0xd   :  { %24 = vsyncpa [#allocation7 + $0x1], 0 }
   0xe   :  { %25 = vsyncpa [#allocation10], 0 }
   0xf   :  { %27 = vsyncpa [#allocation10 + $0x1], 0 }
  0x10   :  { %28 = vsyncpa [#allocation13], 0 }
  0x11   :  { %30 = vsyncpa [#allocation13 + $0x1], 0 }
  0x12   :  { %31 = vsyncpa [#allocation16], 0 }
  0x13   :  { %33 = vsyncpa [#allocation16 + $0x1], 0 }
  0x14   :  { %34 = vsyncpa [#allocation19], 0 }
  0x15   :  { %36 = vsyncpa [#allocation19 + $0x1], 0 }
  0x16   :  { %37 = vsyncpa [#allocation22], 0 }
  0x17   :  { %39 = vsyncpa [#allocation22 + $0x1], 0 }
  0x18   :  { %40 = vsyncpa [#allocation25], 0 }
  0x19   :  { %41 = vsyncpa [#allocation28], 0 }
  0x1a   :  { %42 = vsyncpa [#allocation5], 0  ;;  %s14210_s21 = smov 0   ;;  %s14212_s22 = smov 0  }
  0x1b   :  { %s14214_s23 = smov 0   ;;  %s14216_s24 = smov 0  }
  0x1c LB: > { %16512 = sst [smem:[#allocation41_spill]] %s14080_s22  ;;  %s14229_s25 = sadd.s32 4294967295, %s14088_s24   ;;  %s14088_s24 = sphi %s14216_s24, %s16572_s24   ;;  %s14084_s23 = sphi %s14214_s23, %s16575_s23   ;;  %s14080_s22 = sphi %s14212_s22, %s16574_s22   ;;  %s14076_s21 = sphi %s14210_s21, %s16573_s21  }
  0x1d   : > { %16513 = sst [smem:[#allocation42_spill]] %s14084_s23  ;;  %s14232_s26 = sadd.s32 1, %s14088_s24  }
  0x1e   : > { %16514 = sst [smem:[#allocation43_spill]] %s14229_s25  ;;  %s73_s27 = ssub.s32 %s14088_s24, %s14232_s26 }
  0x1f   : > { %16515 = sst [smem:[#allocation44_spill]] %s14232_s26  ;;  %s76_s28 = sadd.s32 1, %s14084_s23 }
  0x20   : > { %p74_p0 = scmp.eq.s32.totalorder %s73_s27, 0  ;;  %p83_p1 = scmp.ne.s32.totalorder %s14084_s23, %s14080_s22 }
  0x21   : > { %p84_p2 = scmp.eq.s32.totalorder %s14088_s24, 0  ;;  %p89_p3 = scmp.ne.s32.totalorder %s14080_s22, %s14076_s21 }
  0x22   : > { %s14242_s29 = scalar_select %p74_p0, %s14084_s23, %s76_s28  }
  0x23   : > { %p14244_p4 = por %p84_p2, %p83_p1  ;;  %p16475_p5 = scmp.eq.s32.totalorder %s14229_s25, 0 }
  0x24   : > { %16516 = sst [smem:[#allocation45_spill]] %s14242_s29  ;;  %p10489_p6 = scmp.ge.s32.totalorder %s14088_s24, 1 }
  0x25   : > { %p465_p7 = scmp.lt.s32.totalorder %s14088_s24, 7  ;;  %p14253_p8 = por %p16475_p5, %p89_p3 }
  0x26   : > { %s14090_s18 = smov [#allocation23]   ;;  %p12125_p12 = scmp.lt.s32.totalorder %s14088_s24, 6 }
  0x27   : > { %s16518_s0 = scalar_select %p14253_p8, 1, 0 }
  0x28   : > { %p14258_p10 = pnand %p10489_p6, %p465_p7  ;;  %s491_s19 = sshll.u32 %s14090_s18, 4  ;;  %s492_s19 = int_to_ptr.vmem [resolvable:$true] %s491_s19 }
  0x29   : > { %16519 = sst [smem:[#allocation46_spill]] %s16518_s0  ;;  %s14091_s21 = smov [#allocation24]  }
  0x2a   : > { %s16520_s17 = scalar_select %p14258_p10, 1, 0 }
  0x2b   : > { %p12070_p11 = pneg %p14258_p10  ;;  %s502_s27 = sshll.u32 %s14091_s21, 4  ;;  %s14277_s27 = int_to_ptr.vmem [resolvable:$true] %s502_s27 }
  0x2c   : > { %16521 = sst [smem:[#allocation47_spill]] %s16520_s17  ;;  %p14273_p0 = pnand %p12125_p12, %p14244_p4 }
  0x2d   : > { %p14267_p13 = pnand %p12070_p11, %p16475_p5  ;;  %s14280_s18 = sand.u32 1, %s14088_s24  }
  0x2e   : > { %s16523_s28 = scalar_select %p14273_p0, 1, 0 }
  0x2f   : > { %s16522_s20 = scalar_select %p14267_p13, 1, 0 }
  0x30   : > { %s16524_s12 = sld [smem:[#allocation55_spill]]  ;;  %p14290_p2 = pneg %p14267_p13 }
  0x32   : > { %s16525_s21 = scalar_select %p14290_p2, 1, 0 }
  0x36   : > { %s13518_s16 = scalar_lea.hbm %s16524_s12, 48 }
  0x37   : > { %p13519_p1 = scmp.ne.s32.totalorder %s16524_s12, %s13518_s16  ;;  %p13525_p6 = scmp.lt.u32.totalorder %s13518_s16, %s16524_s12 }
  0x39   : > { %p13521_p3 = pnand %p14290_p2, %p13519_p1 }
  0x3b   : > { %p13522_p4 = pneg %p13521_p3 }
  0x3d   : > { %p13527_p7 = pnand %p13525_p6, %p13522_p4 }
  0x3f   : > { %13530 = shalt.err (!%p13527_p7)
}
  0x40   : > { %s13531_s26 = scalar_lea.vmem %s492_s19, 48  ;;  %s13538_s22 = scalar_lea.vmem %s492_s19, 64 }
  0x41   : > { %p13532_p11 = scmp.ne.s32.totalorder %s492_s19, %s13531_s26  ;;  %p13539_p5 = scmp.lt.s32.totalorder %s492_s19, %s492_s19 }
  0x42   : > { %p13540_p8 = scmp.lt.s32.totalorder %s13538_s22, %s13531_s26 }
  0x43   : > { %p13534_p12 = pnand %p13532_p11, %p14290_p2 }
  0x44   : > { %p13541_p10 = por %p13540_p8, %p13539_p5 }
  0x45   : > { %p13535_p9 = pneg %p13534_p12 }
  0x47   : > { %p13542_p0 = pnand %p13541_p10, %p13535_p9 }
  0x49   : > { %13545 = shalt.err (!%p13542_p0)
}
  0x4a   : > { %12076 = dma.hbm_to_vmem [thread:$0]  (!%p14267_p13), %s16524_s12, 48, %s492_s19, [#allocation22]  }
  0x4b   : > { %s16526_s13 = sld [smem:[#allocation56_spill]] }
  0x51   : > { %s13546_s30 = scalar_lea.hbm %s16526_s13, 48 }
  0x52   : > { %p13547_p1 = scmp.ne.s32.totalorder %s16526_s13, %s13546_s30  ;;  %p13553_p8 = scmp.lt.u32.totalorder %s13546_s30, %s16526_s13 }
  0x54   : > { %p13549_p3 = pnand %p13547_p1, %p14290_p2 }
  0x56   : > { %p13550_p5 = pneg %p13549_p3 }
  0x58   : > { %p13555_p9 = pnand %p13553_p8, %p13550_p5 }
  0x5a   : > { %13558 = shalt.err (!%p13555_p9)
}
  0x5b   : > { %s13559_s19 = scalar_lea.vmem %s14277_s27, 48  ;;  %s13566_s11 = scalar_lea.vmem %s14277_s27, 64 }
  0x5c   : > { %p13560_p10 = scmp.ne.s32.totalorder %s14277_s27, %s13559_s19  ;;  %p13567_p6 = scmp.lt.s32.totalorder %s14277_s27, %s14277_s27 }
  0x5d   : > { %p13568_p7 = scmp.lt.s32.totalorder %s13566_s11, %s13559_s19 }
  0x5e   : > { %p13562_p0 = pnand %p13560_p10, %p14290_p2 }
  0x5f   : > { %p13569_p11 = por %p13568_p7, %p13567_p6 }
  0x60   : > { %p13563_p4 = pneg %p13562_p0 }
  0x62   : > { %p13570_p12 = pnand %p13569_p11, %p13563_p4 }
  0x64   : > { %13573 = shalt.err (!%p13570_p12)
}
  0x65   : > { %12079 = dma.hbm_to_vmem [thread:$0]  (!%p14267_p13), %s16526_s13, 48, %s14277_s27, [#allocation25]  }
  0x66   : > { %s14331_s0 = sand.u32 1, %s14084_s23   ;;  %s14334_s16 = smul.u32 48, %s14088_s24 }
  0x67   : > { %s14337_s25 = smul.u32 3, %s14331_s0  ;;  %s16527_s1 = sld [smem:[#allocation49_spill]] }
  0x68   : > { %s12002_s27 = smul.u32 27648, %s14088_s24  ;;  %s16528_s3 = sld [smem:[#allocation50_spill]] }
  0x69   : > { %s541_s11 = scalar_lea.vmem [#allocation6], %s14337_s25  ;;  %s16495_s23 = scalar_lea.sflag [#allocation7], %s14280_s18 }
  0x6a   : > { %s549_s17 = sshll.u32 %s541_s11, 4  ;;  %p16529_p3 = scmp.ne.s32.totalorder %s16523_s28, 0  ;;  %s14348_s17 = int_to_ptr.vmem [resolvable:$true] %s549_s17 }
  0x6c   : > { %p14360_p5 = pneg %p16529_p3 }
  0x6d   : > { %s14343_s22 = scalar_lea.hbm %s16527_s1, %s14334_s16  ;;  %s13579_s10 = scalar_lea.hbm %s16527_s1, 288 }
  0x6e   : > { %s14353_s13 = scalar_lea.hbm %s16528_s3, %s12002_s27  ;;  %s13574_s30 = scalar_lea.hbm %s14343_s22, 48 }
  0x6f   : > { %p13575_p1 = scmp.ne.s32.totalorder %s14343_s22, %s13574_s30  ;;  %p13580_p10 = scmp.lt.u32.totalorder %s14343_s22, %s16527_s1 }
  0x70   : > { %s16530_s26 = scalar_select %p14360_p5, 1, 0 }
  0x71   : > { %p13577_p8 = pnand %p14360_p5, %p13575_p1  ;;  %p13581_p0 = scmp.lt.u32.totalorder %s13579_s10, %s13574_s30 }
  0x72   : > { %p13583_p6 = scmp.lt.u32.totalorder %s13574_s30, %s14343_s22 }
  0x73   : > { %p13578_p9 = pneg %p13577_p8  ;;  %p13582_p4 = por %p13581_p0, %p13580_p10 }
  0x75   : > { %p13584_p7 = por %p13583_p6, %p13582_p4 }
  0x77   : > { %p13585_p11 = pnand %p13584_p7, %p13578_p9 }
  0x79   : > { %13588 = shalt.err (!%p13585_p11)
}
  0x7a   : > { %s13589_s27 = scalar_lea.vmem %s14348_s17, 48  ;;  %s14092_s19 = smov [#allocation6]  }
  0x7b   : > { %p13590_p12 = scmp.ne.s32.totalorder %s14348_s17, %s13589_s27  ;;  %s13594_s29 = sshll.u32 %s14092_s19, 4  ;;  %s13595_s29 = int_to_ptr.vmem [resolvable:$false] %s13594_s29 }
  0x7c   : > { %s13596_s8 = scalar_lea.vmem %s13595_s29, 96  ;;  %p13597_p13 = scmp.lt.s32.totalorder %s14348_s17, %s13595_s29 }
  0x7d   : > { %p13592_p1 = pnand %p13590_p12, %p14360_p5  ;;  %p13598_p2 = scmp.lt.s32.totalorder %s13596_s8, %s13589_s27 }
  0x7f   : > { %p13593_p8 = pneg %p13592_p1  ;;  %p13599_p10 = por %p13598_p2, %p13597_p13 }
  0x81   : > { %p13600_p0 = pnand %p13599_p10, %p13593_p8 }
  0x83   : > { %13603 = shalt.err (!%p13600_p0)
}
  0x84   : > { %12089 = dma.hbm_to_vmem [thread:$0]  (!%p16529_p3), %s14343_s22, 48, %s14348_s17, %s16495_s23  }
  0x85   : > { %s16531_s10 = smul.u32 1728, %s14331_s0  ;;  %s16493_s12 = scalar_lea.sflag [#allocation10], %s14280_s18 }
  0x86   : > { %s13604_s27 = scalar_lea.hbm %s14353_s13, 27648  ;;  %s13609_s8 = scalar_lea.hbm %s16528_s3, 165888 }
  0x87   : > { %s579_s30 = scalar_lea.vmem [#allocation9], %s16531_s10  ;;  %p13605_p13 = scmp.ne.s32.totalorder %s14353_s13, %s13604_s27 }
  0x88   : > { %s586_s11 = sshll.u32 %s579_s30, 4  ;;  %p13610_p4 = scmp.lt.u32.totalorder %s14353_s13, %s16528_s3  ;;  %s14387_s11 = int_to_ptr.vmem [resolvable:$true] %s586_s11 }
  0x89   : > { %p13607_p2 = pnand %p13605_p13, %p14360_p5  ;;  %p13611_p6 = scmp.lt.u32.totalorder %s13609_s8, %s13604_s27 }
  0x8a   : > { %p13613_p11 = scmp.lt.u32.totalorder %s13604_s27, %s14353_s13 }
  0x8b   : > { %p13608_p9 = pneg %p13607_p2  ;;  %p13612_p7 = por %p13611_p6, %p13610_p4 }
  0x8d   : > { %p13614_p12 = por %p13613_p11, %p13612_p7 }
  0x8f   : > { %p13615_p1 = pnand %p13614_p12, %p13608_p9 }
  0x91   : > { %13618 = shalt.err (!%p13615_p1)
}
  0x92   : > { %s13619_s22 = scalar_lea.vmem %s14387_s11, 27648  ;;  %s14093_s17 = smov [#allocation9]  }
  0x93   : > { %p13620_p8 = scmp.ne.s32.totalorder %s14387_s11, %s13619_s22  ;;  %s13624_s10 = sshll.u32 %s14093_s17, 4  ;;  %s13625_s10 = int_to_ptr.vmem [resolvable:$false] %s13624_s10 }
  0x94   : > { %s13626_s1 = scalar_lea.vmem %s13625_s10, 55296  ;;  %p13627_p13 = scmp.lt.s32.totalorder %s14387_s11, %s13625_s10 }
  0x95   : > { %p13622_p10 = pnand %p13620_p8, %p14360_p5  ;;  %p13628_p2 = scmp.lt.s32.totalorder %s13626_s1, %s13619_s22 }
  0x97   : > { %p13623_p0 = pneg %p13622_p10  ;;  %p13629_p4 = por %p13628_p2, %p13627_p13 }
  0x99   : > { %p13630_p6 = pnand %p13629_p4, %p13623_p0 }
  0x9b   : > { %13633 = shalt.err (!%p13630_p6)
}
  0x9c   : > { %s14094_s6 = smov 576   ;;  %s14095_s30 = smov 36  }
  0x9d   : > { %12095 = dma.hbm_to_vmem [thread:$0]  (!%p16529_p3), %s14353_s13, 27648, %s14387_s11, %s16493_s12, %s14094_s6, %s14094_s6, %s14095_s30  }
  0x9e   : > { %s14417_s29 = scalar_lea.hbm %s16453_s5, %s14334_s16  ;;  %s621_s8 = scalar_lea.vmem [#allocation12], %s14337_s25 }
  0x9f   : > { %s629_s22 = sshll.u32 %s621_s8, 4  ;;  %s16490_s17 = scalar_lea.sflag [#allocation13], %s14280_s18  ;;  %s630_s22 = int_to_ptr.vmem [resolvable:$true] %s629_s22 }
  0xa0   : > { %s13634_s10 = scalar_lea.hbm %s14417_s29, 48  ;;  %s13639_s11 = scalar_lea.hbm %s16453_s5, 288 }
  0xa1   : > { %p13635_p9 = scmp.ne.s32.totalorder %s14417_s29, %s13634_s10  ;;  %p13640_p12 = scmp.lt.u32.totalorder %s14417_s29, %s16453_s5 }
  0xa2   : > { %p13641_p1 = scmp.lt.u32.totalorder %s13639_s11, %s13634_s10  ;;  %p13643_p10 = scmp.lt.u32.totalorder %s13634_s10, %s14417_s29 }
  0xa3   : > { %p13637_p7 = pnand %p13635_p9, %p14360_p5 }
  0xa4   : > { %p13642_p8 = por %p13641_p1, %p13640_p12 }
  0xa5   : > { %p13638_p11 = pneg %p13637_p7 }
  0xa6   : > { %p13644_p0 = por %p13643_p10, %p13642_p8 }
  0xa8   : > { %p13645_p13 = pnand %p13644_p0, %p13638_p11 }
  0xaa   : > { %13648 = shalt.err (!%p13645_p13)
}
  0xab   : > { %s13649_s27 = scalar_lea.vmem %s630_s22, 48  ;;  %s14096_s19 = smov [#allocation12]  }
  0xac   : > { %p13650_p2 = scmp.ne.s32.totalorder %s630_s22, %s13649_s27  ;;  %s13654_s8 = sshll.u32 %s14096_s19, 4  ;;  %s13655_s8 = int_to_ptr.vmem [resolvable:$false] %s13654_s8 }
  0xad   : > { %s13656_s1 = scalar_lea.vmem %s13655_s8, 96  ;;  %p13657_p9 = scmp.lt.s32.totalorder %s630_s22, %s13655_s8 }
  0xae   : > { %p13652_p4 = pnand %p13650_p2, %p14360_p5  ;;  %p13658_p7 = scmp.lt.s32.totalorder %s13656_s1, %s13649_s27 }
  0xb0   : > { %p13653_p6 = pneg %p13652_p4  ;;  %p13659_p3 = por %p13658_p7, %p13657_p9 }
  0xb2   : > { %p13660_p1 = pnand %p13659_p3, %p13653_p6 }
  0xb4   : > { %13663 = shalt.err (!%p13660_p1)
}
  0xb5   : > { %p16532_p12 = scmp.ne.s32.totalorder %s16523_s28, 0  ;;  %s14444_s11 = scalar_lea.hbm %s16455_s7, %s14334_s16 }
  0xb6   : > { %s659_s6 = scalar_lea.vmem [#allocation15], %s14337_s25  ;;  %s12013_s27 = smul.u32 12, %s14331_s0 }
  0xb7   : > { %12101 = dma.hbm_to_vmem [thread:$0]  (!%p16532_p12), %s14417_s29, 48, %s630_s22, %s16490_s17  }
  0xb8   : > { %s667_s30 = sshll.u32 %s659_s6, 4  ;;  %s16491_s19 = scalar_lea.sflag [#allocation16], %s14280_s18  ;;  %s14447_s30 = int_to_ptr.vmem [resolvable:$true] %s667_s30 }
  0xb9   : > { %s13664_s8 = scalar_lea.hbm %s14444_s11, 48  ;;  %s13669_s1 = scalar_lea.hbm %s16455_s7, 288 }
  0xba   : > { %p13665_p3 = scmp.ne.s32.totalorder %s14444_s11, %s13664_s8  ;;  %p13670_p10 = scmp.lt.u32.totalorder %s14444_s11, %s16455_s7 }
  0xbb   : > { %p13671_p0 = scmp.lt.u32.totalorder %s13669_s1, %s13664_s8  ;;  %p13673_p2 = scmp.lt.u32.totalorder %s13664_s8, %s14444_s11 }
  0xbc   : > { %p13667_p11 = pnand %p13665_p3, %p14360_p5 }
  0xbd   : > { %p13672_p13 = por %p13671_p0, %p13670_p10 }
  0xbe   : > { %p13668_p8 = pneg %p13667_p11 }
  0xbf   : > { %p13674_p4 = por %p13673_p2, %p13672_p13 }
  0xc1   : > { %p13675_p6 = pnand %p13674_p4, %p13668_p8 }
  0xc3   : > { %13678 = shalt.err (!%p13675_p6)
}
  0xc4   : > { %s13679_s6 = scalar_lea.vmem %s14447_s30, 48  ;;  %s14097_s29 = smov [#allocation15]  }
  0xc5   : > { %p13680_p9 = scmp.ne.s32.totalorder %s14447_s30, %s13679_s6  ;;  %s13684_s22 = sshll.u32 %s14097_s29, 4  ;;  %s13685_s22 = int_to_ptr.vmem [resolvable:$false] %s13684_s22 }
  0xc6   : > { %s13686_s10 = scalar_lea.vmem %s13685_s22, 96  ;;  %p13687_p3 = scmp.lt.s32.totalorder %s14447_s30, %s13685_s22 }
  0xc7   : > { %p13682_p7 = pnand %p13680_p9, %p14360_p5  ;;  %p13688_p11 = scmp.lt.s32.totalorder %s13686_s10, %s13679_s6 }
  0xc9   : > { %p13683_p1 = pneg %p13682_p7  ;;  %p13689_p10 = por %p13688_p11, %p13687_p3 }
  0xcb   : > { %p13690_p0 = pnand %p13689_p10, %p13683_p1 }
  0xcd   : > { %13693 = shalt.err (!%p13690_p0)
}
  0xce   : > { %12107 = dma.hbm_to_vmem [thread:$0]  (!%p16532_p12), %s14444_s11, 48, %s14447_s30, %s16491_s19  }
  0xcf   : > { %s12014_s8 = smul.u32 192, %s14088_s24  ;;  %s699_s1 = scalar_lea.vmem [#allocation18], %s12013_s27 }
  0xd0   : > { %s707_s13 = sshll.u32 %s699_s1, 4  ;;  %s16494_s10 = scalar_lea.sflag [#allocation19], %s14280_s18  ;;  %s708_s13 = int_to_ptr.vmem [resolvable:$true] %s707_s13 }
  0xd1   : > { %s14480_s22 = scalar_lea.hbm %s16457_s9, %s12014_s8  ;;  %s13699_s27 = scalar_lea.hbm %s16457_s9, 1152 }
  0xd2   : > { %s13694_s17 = scalar_lea.hbm %s14480_s22, 192  ;;  %p13700_p4 = scmp.lt.u32.totalorder %s14480_s22, %s16457_s9 }
  0xd3   : > { %p13695_p8 = scmp.ne.s32.totalorder %s14480_s22, %s13694_s17  ;;  %p13701_p6 = scmp.lt.u32.totalorder %s13699_s27, %s13694_s17 }
  0xd4   : > { %p13703_p7 = scmp.lt.u32.totalorder %s13694_s17, %s14480_s22 }
  0xd5   : > { %p13697_p13 = pnand %p13695_p8, %p14360_p5  ;;  %p13702_p9 = por %p13701_p6, %p13700_p4 }
  0xd7   : > { %p13698_p2 = pneg %p13697_p13  ;;  %p13704_p1 = por %p13703_p7, %p13702_p9 }
  0xd9   : > { %p13705_p3 = pnand %p13704_p1, %p13698_p2 }
  0xdb   : > { %13708 = shalt.err (!%p13705_p3)
}
  0xdc   : > { %s13709_s8 = scalar_lea.vmem %s708_s13, 192  ;;  %s14098_s29 = smov [#allocation18]  }
  0xdd   : > { %p13710_p11 = scmp.ne.s32.totalorder %s708_s13, %s13709_s8  ;;  %s13714_s6 = sshll.u32 %s14098_s29, 4  ;;  %s13715_s6 = int_to_ptr.vmem [resolvable:$false] %s13714_s6 }
  0xde   : > { %s13716_s11 = scalar_lea.vmem %s13715_s6, 384  ;;  %p13717_p8 = scmp.lt.s32.totalorder %s708_s13, %s13715_s6 }
  0xdf   : > { %p13712_p10 = pnand %p13710_p11, %p14360_p5  ;;  %p13718_p13 = scmp.lt.s32.totalorder %s13716_s11, %s13709_s8 }
  0xe1   : > { %p13713_p0 = pneg %p13712_p10  ;;  %p13719_p12 = por %p13718_p13, %p13717_p8 }
  0xe3   : > { %p13720_p4 = pnand %p13719_p12, %p13713_p0 }
  0xe5   : > { %13723 = shalt.err (!%p13720_p4)
}
  0xe6   : > { %p16533_p6 = scmp.ne.s32.totalorder %s16523_s28, 0  ;;  %s14099_s17 = smov [#allocation3]  }
  0xe7   : > { %s477_s19 = sshll.u32 %s14099_s17, 4  ;;  %s16534_s1 = sld [smem:[#allocation48_spill]]  ;;  %s478_s19 = int_to_ptr.vmem [resolvable:$true] %s477_s19 }
  0xe8   : > { %12113 = dma.hbm_to_vmem [thread:$0]  (!%p16533_p6), %s14480_s22, 192, %s708_s13, %s16494_s10  }
  0xe9   : > { %p16535_p12 = scmp.ne.s32.totalorder %s16525_s21, 0 }
  0xed   : > { %s13724_s29 = scalar_lea.hbm %s16534_s1, 768 }
  0xee   : > { %p13725_p2 = scmp.ne.s32.totalorder %s16534_s1, %s13724_s29  ;;  %p13731_p1 = scmp.lt.u32.totalorder %s13724_s29, %s16534_s1 }
  0xf0   : > { %p13727_p9 = pnand %p13725_p2, %p16535_p12 }
  0xf2   : > { %p13728_p7 = pneg %p13727_p9 }
  0xf4   : > { %p13733_p3 = pnand %p13731_p1, %p13728_p7 }
  0xf6   : > { %13736 = shalt.err (!%p13733_p3)
}
  0xf7   : > { %s13737_s13 = scalar_lea.vmem %s478_s19, 768  ;;  %p13745_p8 = scmp.lt.s32.totalorder %s478_s19, %s478_s19 }
  0xf8   : > { %p13738_p11 = scmp.ne.s32.totalorder %s478_s19, %s13737_s13  ;;  %p13746_p13 = scmp.lt.s32.totalorder %s13737_s13, %s13737_s13 }
  0xfa   : > { %p13740_p10 = pnand %p13738_p11, %p16535_p12  ;;  %p13747_p4 = por %p13746_p13, %p13745_p8 }
  0xfc   : > { %p13741_p0 = pneg %p13740_p10 }
  0xfe   : > { %p13748_p6 = pnand %p13747_p4, %p13741_p0 }
 0x100   : > { %13751 = shalt.err (!%p13748_p6)
}
 0x101   : > { %s14100_s12 = smov 384   ;;  %s14101_s22 = smov 24  }
 0x102   : > { %p16536_p2 = scmp.ne.s32.totalorder %s16522_s20, 0  ;;  %s14102_s27 = smov [#allocation26]  }
 0x103   : > { %s512_s29 = sshll.u32 %s14102_s27, 4  ;;  %s13752_s11 = scalar_lea.hbm %s16462_s14, 3072  ;;  %s513_s29 = int_to_ptr.vmem [resolvable:$true] %s512_s29 }
 0x104   : > { %12073 = dma.hbm_to_vmem [thread:$0]  (!%p16536_p2), %s16534_s1, 768, %s478_s19, [#allocation4], %s14100_s12, %s14100_s12, %s14101_s22  }
 0x105   : > { %p13753_p6 = scmp.ne.s32.totalorder %s16462_s14, %s13752_s11  ;;  %p13759_p1 = scmp.lt.u32.totalorder %s13752_s11, %s16462_s14 }
 0x107   : > { %p13755_p9 = pnand %p13753_p6, %p16535_p12 }
 0x109   : > { %p13756_p7 = pneg %p13755_p9 }
 0x10b   : > { %p13761_p3 = pnand %p13759_p1, %p13756_p7 }
 0x10d   : > { %13764 = shalt.err (!%p13761_p3)
}
 0x10e   : > { %s13765_s19 = scalar_lea.vmem %s513_s29, 3072  ;;  %p13773_p8 = scmp.lt.s32.totalorder %s513_s29, %s513_s29 }
 0x10f   : > { %p13766_p11 = scmp.ne.s32.totalorder %s513_s29, %s13765_s19  ;;  %p13774_p13 = scmp.lt.s32.totalorder %s13765_s19, %s13765_s19 }
 0x111   : > { %p13768_p10 = pnand %p13766_p11, %p16535_p12  ;;  %p13775_p4 = por %p13774_p13, %p13773_p8 }
 0x113   : > { %p13769_p0 = pneg %p13768_p10 }
 0x115   : > { %p13776_p5 = pnand %p13775_p4, %p13769_p0 }
 0x117   : > { %13779 = shalt.err (!%p13776_p5)
}
 0x118   : > { %s14103_s10 = smov 64   ;;  %s14104_s12 = smov 4  }
 0x119   : > { %12082 = dma.hbm_to_vmem [thread:$0]  (!%p16536_p2), %s16462_s14, 3072, %s513_s29, [#allocation25], %s14103_s10, %s14103_s10, %s14104_s12  }
 0x11a   : > { %s14105_s22 = smov [#allocation27]   ;;  %s14542_s6 = scalar_lea.hbm %s16450_s2, %s14334_s16 }
 0x11b   : > { %s526_s17 = sshll.u32 %s14105_s22, 4  ;;  %s13780_s13 = scalar_lea.hbm %s16463_s15, 16  ;;  %s527_s17 = int_to_ptr.vmem [resolvable:$true] %s526_s17 }
 0x11c   : > { %p13781_p5 = scmp.ne.s32.totalorder %s16463_s15, %s13780_s13  ;;  %p13787_p7 = scmp.lt.u32.totalorder %s13780_s13, %s16463_s15 }
 0x11e   : > { %p13783_p6 = pnand %p13781_p5, %p16535_p12 }
 0x120   : > { %p13784_p9 = pneg %p13783_p6 }
 0x122   : > { %p13789_p1 = pnand %p13787_p7, %p13784_p9 }
 0x124   : > { %13792 = shalt.err (!%p13789_p1)
}
 0x125   : > { %s13793_s12 = scalar_lea.vmem %s527_s17, 16  ;;  %s13800_s3 = scalar_lea.vmem %s527_s17, 32 }
 0x126   : > { %p13794_p3 = scmp.ne.s32.totalorder %s527_s17, %s13793_s12  ;;  %p13801_p0 = scmp.lt.s32.totalorder %s527_s17, %s527_s17 }
 0x127   : > { %p13802_p8 = scmp.lt.s32.totalorder %s13800_s3, %s13793_s12 }
 0x128   : > { %p13796_p11 = pnand %p13794_p3, %p16535_p12 }
 0x129   : > { %p13803_p13 = por %p13802_p8, %p13801_p0 }
 0x12a   : > { %p13797_p10 = pneg %p13796_p11 }
 0x12c   : > { %p13804_p4 = pnand %p13803_p13, %p13797_p10 }
 0x12e   : > { %13807 = shalt.err (!%p13804_p4)
}
 0x12f   : > { %12085 = dma.hbm_to_vmem [thread:$0]  (!%p16536_p2), %s16463_s15, 16, %s527_s17, [#allocation28]  }
 0x130   : > { %s560_s21 = scalar_lea.vmem [#allocation8], %s14337_s25  ;;  %s12003_s30 = smul.u32 576, %s14331_s0 }
 0x131   : > { %s568_s22 = sshll.u32 %s560_s21, 4  ;;  %s12004_s27 = smul.u32 9216, %s14088_s24  ;;  %s569_s22 = int_to_ptr.vmem [resolvable:$true] %s568_s22 }
 0x132   : > { %s13808_s8 = scalar_lea.hbm %s14542_s6, 48  ;;  %p16537_p5 = scmp.ne.s32.totalorder %s16530_s26, 0 }
 0x133   : > { %p13809_p12 = scmp.ne.s32.totalorder %s14542_s6, %s13808_s8  ;;  %s13813_s13 = scalar_lea.hbm %s16450_s2, 288 }
 0x134   : > { %p13814_p7 = scmp.lt.u32.totalorder %s14542_s6, %s16450_s2  ;;  %p13815_p1 = scmp.lt.u32.totalorder %s13813_s13, %s13808_s8 }
 0x135   : > { %p13811_p6 = pnand %p13809_p12, %p16537_p5  ;;  %p13817_p3 = scmp.lt.u32.totalorder %s13808_s8, %s14542_s6 }
 0x136   : > { %p13816_p2 = por %p13815_p1, %p13814_p7 }
 0x137   : > { %p13812_p9 = pneg %p13811_p6 }
 0x138   : > { %p13818_p11 = por %p13817_p3, %p13816_p2 }
 0x13a   : > { %p13819_p10 = pnand %p13818_p11, %p13812_p9 }
 0x13c   : > { %13822 = shalt.err (!%p13819_p10)
}
 0x13d   : > { %s13823_s17 = scalar_lea.vmem %s569_s22, 48  ;;  %s14106_s10 = smov [#allocation8]  }
 0x13e   : > { %p13824_p0 = scmp.ne.s32.totalorder %s569_s22, %s13823_s17  ;;  %s13828_s12 = sshll.u32 %s14106_s10, 4  ;;  %s13829_s12 = int_to_ptr.vmem [resolvable:$false] %s13828_s12 }
 0x13f   : > { %s13830_s3 = scalar_lea.vmem %s13829_s12, 96  ;;  %p13831_p4 = scmp.lt.s32.totalorder %s569_s22, %s13829_s12 }
 0x140   : > { %p13826_p8 = pnand %p13824_p0, %p16537_p5  ;;  %p13832_p12 = scmp.lt.s32.totalorder %s13830_s3, %s13823_s17 }
 0x142   : > { %p13827_p13 = pneg %p13826_p8  ;;  %p13833_p6 = por %p13832_p12, %p13831_p4 }
 0x144   : > { %p13834_p1 = pnand %p13833_p6, %p13827_p13 }
 0x146   : > { %13837 = shalt.err (!%p13834_p1)
}
 0x147   : > { %p16538_p7 = scmp.ne.s32.totalorder %s16523_s28, 0  ;;  %s16539_s1 = scalar_lea.sflag [#allocation7], %s14280_s18 }
 0x148   : > { %s14587_s8 = scalar_lea.hbm %s16452_s4, %s12004_s27  ;;  %s600_s20 = scalar_lea.vmem [#allocation11], %s12003_s30 }
 0x149   : > { %12092 = dma.hbm_to_vmem [thread:$0]  (!%p16538_p7), %s14542_s6, 48, %s569_s22, %s16539_s1  }
 0x14a   : > { %s607_s11 = sshll.u32 %s600_s20, 4  ;;  %s13838_s13 = scalar_lea.hbm %s14587_s8, 9216  ;;  %s14591_s11 = int_to_ptr.vmem [resolvable:$true] %s607_s11 }
 0x14b   : > { %p13839_p9 = scmp.ne.s32.totalorder %s14587_s8, %s13838_s13  ;;  %s13843_s19 = scalar_lea.hbm %s16452_s4, 55296 }
 0x14c   : > { %p13844_p11 = scmp.lt.u32.totalorder %s14587_s8, %s16452_s4  ;;  %p13845_p10 = scmp.lt.u32.totalorder %s13843_s19, %s13838_s13 }
 0x14d   : > { %p13841_p2 = pnand %p13839_p9, %p16537_p5  ;;  %p13847_p8 = scmp.lt.u32.totalorder %s13838_s13, %s14587_s8 }
 0x14e   : > { %p13846_p0 = por %p13845_p10, %p13844_p11 }
 0x14f   : > { %p13842_p3 = pneg %p13841_p2 }
 0x150   : > { %p13848_p13 = por %p13847_p8, %p13846_p0 }
 0x152   : > { %p13849_p4 = pnand %p13848_p13, %p13842_p3 }
 0x154   : > { %13852 = shalt.err (!%p13849_p4)
}
 0x155   : > { %s13853_s30 = scalar_lea.vmem %s14591_s11, 9216  ;;  %s14107_s17 = smov [#allocation11]  }
 0x156   : > { %p13854_p12 = scmp.ne.s32.totalorder %s14591_s11, %s13853_s30  ;;  %s13858_s10 = sshll.u32 %s14107_s17, 4  ;;  %s13859_s10 = int_to_ptr.vmem [resolvable:$false] %s13858_s10 }
 0x157   : > { %s13860_s12 = scalar_lea.vmem %s13859_s10, 18432  ;;  %p13861_p9 = scmp.lt.s32.totalorder %s14591_s11, %s13859_s10 }
 0x158   : > { %p13856_p6 = pnand %p13854_p12, %p16537_p5  ;;  %p13862_p2 = scmp.lt.s32.totalorder %s13860_s12, %s13853_s30 }
 0x15a   : > { %p13857_p1 = pneg %p13856_p6  ;;  %p13863_p11 = por %p13862_p2, %p13861_p9 }
 0x15c   : > { %p13864_p10 = pnand %p13863_p11, %p13857_p1 }
 0x15e   : > { %13867 = shalt.err (!%p13864_p10)
}
 0x15f   : > { %s16500_s3 = smov 192   ;;  %s14109_s1 = smov 12  }
 0x160   : > { %s16540_s23 = scalar_lea.sflag [#allocation10], %s14280_s18  ;;  %s16541_s13 = sld [smem:[#allocation51_spill]] }
 0x161   : > { %12098 = dma.hbm_to_vmem [thread:$0]  (!%p16538_p7), %s14587_s8, 9216, %s14591_s11, %s16540_s23, %s16500_s3, %s16500_s3, %s14109_s1  }
 0x162   : > { %s640_s22 = scalar_lea.vmem [#allocation14], %s14337_s25  ;;  %s12011_s27 = smul.u32 2304, %s14331_s0 }
 0x163   : > { %s648_s19 = sshll.u32 %s640_s22, 4  ;;  %s12012_s29 = smul.u32 36864, %s14088_s24  ;;  %s649_s19 = int_to_ptr.vmem [resolvable:$true] %s648_s19 }
 0x166   : > { %s14623_s6 = scalar_lea.hbm %s16541_s13, %s14334_s16  ;;  %s13873_s17 = scalar_lea.hbm %s16541_s13, 288 }
 0x167   : > { %s13868_s30 = scalar_lea.hbm %s14623_s6, 48  ;;  %p13874_p13 = scmp.lt.u32.totalorder %s14623_s6, %s16541_s13 }
 0x168   : > { %p13869_p3 = scmp.ne.s32.totalorder %s14623_s6, %s13868_s30  ;;  %p13875_p4 = scmp.lt.u32.totalorder %s13873_s17, %s13868_s30 }
 0x169   : > { %p13877_p6 = scmp.lt.u32.totalorder %s13868_s30, %s14623_s6 }
 0x16a   : > { %p13871_p0 = pnand %p13869_p3, %p16537_p5  ;;  %p13876_p12 = por %p13875_p4, %p13874_p13 }
 0x16c   : > { %p13872_p8 = pneg %p13871_p0  ;;  %p13878_p1 = por %p13877_p6, %p13876_p12 }
 0x16e   : > { %p13879_p9 = pnand %p13878_p1, %p13872_p8 }
 0x170   : > { %13882 = shalt.err (!%p13879_p9)
}
 0x171   : > { %s13883_s23 = scalar_lea.vmem %s649_s19, 48  ;;  %s14110_s21 = smov [#allocation14]  }
 0x172   : > { %p13884_p2 = scmp.ne.s32.totalorder %s649_s19, %s13883_s23  ;;  %s13888_s20 = sshll.u32 %s14110_s21, 4  ;;  %s13889_s20 = int_to_ptr.vmem [resolvable:$false] %s13888_s20 }
 0x173   : > { %s13890_s22 = scalar_lea.vmem %s13889_s20, 96  ;;  %p13891_p3 = scmp.lt.s32.totalorder %s649_s19, %s13889_s20 }
 0x174   : > { %p13886_p11 = pnand %p13884_p2, %p16537_p5  ;;  %p13892_p0 = scmp.lt.s32.totalorder %s13890_s22, %s13883_s23 }
 0x176   : > { %p13887_p10 = pneg %p13886_p11  ;;  %p13893_p7 = por %p13892_p0, %p13891_p3 }
 0x178   : > { %p13894_p4 = pnand %p13893_p7, %p13887_p10 }
 0x17a   : > { %13897 = shalt.err (!%p13894_p4)
}
 0x17b   : > { %p16542_p13 = scmp.ne.s32.totalorder %s16523_s28, 0  ;;  %s16543_s30 = scalar_lea.sflag [#allocation13], %s14280_s18 }
 0x17c   : > { %s16544_s17 = sld [smem:[#allocation52_spill]]  ;;  %s678_s12 = scalar_lea.vmem [#allocation17], %s12011_s27 }
 0x17d   : > { %12104 = dma.hbm_to_vmem [thread:$0]  (!%p16542_p13), %s14623_s6, 48, %s649_s19, %s16543_s30  }
 0x17e   : > { %s685_s23 = sshll.u32 %s678_s12, 4  ;;  %s14656_s23 = int_to_ptr.vmem [resolvable:$true] %s685_s23 }
 0x182   : > { %s14652_s10 = scalar_lea.hbm %s16544_s17, %s12012_s29  ;;  %s13903_s20 = scalar_lea.hbm %s16544_s17, 221184 }
 0x183   : > { %s13898_s21 = scalar_lea.hbm %s14652_s10, 36864  ;;  %p13904_p6 = scmp.lt.u32.totalorder %s14652_s10, %s16544_s17 }
 0x184   : > { %p13899_p7 = scmp.ne.s32.totalorder %s14652_s10, %s13898_s21  ;;  %p13905_p1 = scmp.lt.u32.totalorder %s13903_s20, %s13898_s21 }
 0x185   : > { %p13907_p2 = scmp.lt.u32.totalorder %s13898_s21, %s14652_s10 }
 0x186   : > { %p13901_p8 = pnand %p13899_p7, %p16537_p5  ;;  %p13906_p9 = por %p13905_p1, %p13904_p6 }
 0x188   : > { %p13902_p12 = pneg %p13901_p8  ;;  %p13908_p11 = por %p13907_p2, %p13906_p9 }
 0x18a   : > { %p13909_p10 = pnand %p13908_p11, %p13902_p12 }
 0x18c   : > { %13912 = shalt.err (!%p13909_p10)
}
 0x18d   : > { %s13913_s8 = scalar_lea.vmem %s14656_s23, 36864  ;;  %s14111_s11 = smov [#allocation17]  }
 0x18e   : > { %p13914_p3 = scmp.ne.s32.totalorder %s14656_s23, %s13913_s8  ;;  %s13918_s12 = sshll.u32 %s14111_s11, 4  ;;  %s13919_s12 = int_to_ptr.vmem [resolvable:$false] %s13918_s12 }
 0x18f   : > { %s13920_s6 = scalar_lea.vmem %s13919_s12, 73728  ;;  %p13921_p7 = scmp.lt.s32.totalorder %s14656_s23, %s13919_s12 }
 0x190   : > { %p13916_p0 = pnand %p13914_p3, %p16537_p5  ;;  %p13922_p8 = scmp.lt.s32.totalorder %s13920_s6, %s13913_s8 }
 0x192   : > { %p13917_p4 = pneg %p13916_p0  ;;  %p13923_p6 = por %p13922_p8, %p13921_p7 }
 0x194   : > { %p13924_p1 = pnand %p13923_p6, %p13917_p4 }
 0x196   : > { %13927 = shalt.err (!%p13924_p1)
}
 0x197   : > { %s14112_s21 = smov 768   ;;  %s14113_s19 = smov 48  }
 0x198   : > { %s16545_s20 = scalar_lea.sflag [#allocation16], %s14280_s18  ;;  %s16546_s11 = sld [smem:[#allocation53_spill]] }
 0x199   : > { %12110 = dma.hbm_to_vmem [thread:$0]  (!%p16542_p13), %s14652_s10, 36864, %s14656_s23, %s16545_s20, %s14112_s21, %s14112_s21, %s14113_s19  }
 0x19a   : > { %s718_s12 = scalar_lea.vmem [#allocation20], %s12011_s27 }
 0x19b   : > { %s725_s6 = sshll.u32 %s718_s12, 4  ;;  %s14690_s6 = int_to_ptr.vmem [resolvable:$true] %s725_s6 }
 0x19e   : > { %s14686_s8 = scalar_lea.hbm %s16546_s11, %s12012_s29  ;;  %s13933_s23 = scalar_lea.hbm %s16546_s11, 221184 }
 0x19f   : > { %s13928_s3 = scalar_lea.hbm %s14686_s8, 36864  ;;  %p13934_p11 = scmp.lt.u32.totalorder %s14686_s8, %s16546_s11 }
 0x1a0   : > { %p13929_p12 = scmp.ne.s32.totalorder %s14686_s8, %s13928_s3  ;;  %p13935_p10 = scmp.lt.u32.totalorder %s13933_s23, %s13928_s3 }
 0x1a1   : > { %p13937_p0 = scmp.lt.u32.totalorder %s13928_s3, %s14686_s8 }
 0x1a2   : > { %p13931_p9 = pnand %p13929_p12, %p16537_p5  ;;  %p13936_p3 = por %p13935_p10, %p13934_p11 }
 0x1a4   : > { %p13932_p2 = pneg %p13931_p9  ;;  %p13938_p4 = por %p13937_p0, %p13936_p3 }
 0x1a6   : > { %p13939_p7 = pnand %p13938_p4, %p13932_p2 }
 0x1a8   : > { %13942 = shalt.err (!%p13939_p7)
}
 0x1a9   : > { %s13943_s0 = scalar_lea.vmem %s14690_s6, 36864  ;;  %s14114_s27 = smov [#allocation20]  }
 0x1aa   : > { %p13944_p8 = scmp.ne.s32.totalorder %s14690_s6, %s13943_s0  ;;  %s13948_s19 = sshll.u32 %s14114_s27, 4  ;;  %s13949_s19 = int_to_ptr.vmem [resolvable:$false] %s13948_s19 }
 0x1ab   : > { %s13950_s20 = scalar_lea.vmem %s13949_s19, 73728  ;;  %p13951_p12 = scmp.lt.s32.totalorder %s14690_s6, %s13949_s19 }
 0x1ac   : > { %p13946_p6 = pnand %p13944_p8, %p16537_p5  ;;  %p13952_p9 = scmp.lt.s32.totalorder %s13950_s20, %s13943_s0 }
 0x1ae   : > { %p13947_p1 = pneg %p13946_p6  ;;  %p13953_p11 = por %p13952_p9, %p13951_p12 }
 0x1b0   : > { %p13954_p10 = pnand %p13953_p11, %p13947_p1 }
 0x1b2   : > { %13957 = shalt.err (!%p13954_p10)
}
 0x1b3   : > { %s16547_s3 = smov 192   ;;  %s16548_s22 = scalar_lea.sflag [#allocation19], %s14280_s18 }
 0x1b4   : > { %12116 = dma.hbm_to_vmem [thread:$0]  (!%p16542_p13), %s14686_s8, 36864, %s14690_s6, %s16548_s22, %s16547_s3, %s16547_s3, %s14109_s1  }
 0x1b5   : > { %s16549_s24 = sld [smem:[#allocation54_spill]]  ;;  %s739_s29 = scalar_lea.vmem [#allocation21], %s14337_s25 }
 0x1b6   : > { %s747_s21 = sshll.u32 %s739_s29, 4  ;;  %s736_s0 = scalar_lea.sflag [#allocation22], %s14280_s18  ;;  %s748_s21 = int_to_ptr.vmem [resolvable:$true] %s747_s21 }
 0x1bb   : > { %s16550_s10 = smov %s16549_s24  ;;  %s14722_s23 = scalar_lea.hbm %s16549_s24, %s14334_s16 }
 0x1bc   : > { %s13958_s27 = scalar_lea.hbm %s14722_s23, 48  ;;  %s13963_s8 = scalar_lea.hbm %s16550_s10, 288 }
 0x1bd   : > { %p13959_p2 = scmp.ne.s32.totalorder %s14722_s23, %s13958_s27  ;;  %p13964_p4 = scmp.lt.u32.totalorder %s14722_s23, %s16550_s10 }
 0x1be   : > { %p13965_p7 = scmp.lt.u32.totalorder %s13963_s8, %s13958_s27  ;;  %p13967_p6 = scmp.lt.u32.totalorder %s13958_s27, %s14722_s23 }
 0x1bf   : > { %p13961_p3 = pnand %p13959_p2, %p16537_p5 }
 0x1c0   : > { %p13966_p8 = por %p13965_p7, %p13964_p4 }
 0x1c1   : > { %p13962_p0 = pneg %p13961_p3 }
 0x1c2   : > { %p13968_p1 = por %p13967_p6, %p13966_p8 }
 0x1c4   : > { %p13969_p12 = pnand %p13968_p1, %p13962_p0 }
 0x1c6   : > { %13972 = shalt.err (!%p13969_p12)
}
 0x1c7   : > { %s13973_s18 = scalar_lea.vmem %s748_s21, 48  ;;  %s14115_s25 = smov [#allocation21]  }
 0x1c8   : > { %p13974_p9 = scmp.ne.s32.totalorder %s748_s21, %s13973_s18  ;;  %s13978_s20 = sshll.u32 %s14115_s25, 4  ;;  %s13979_s20 = int_to_ptr.vmem [resolvable:$false] %s13978_s20 }
 0x1c9   : > { %s13980_s3 = scalar_lea.vmem %s13979_s20, 96  ;;  %p13981_p2 = scmp.lt.s32.totalorder %s748_s21, %s13979_s20 }
 0x1ca   : > { %p13976_p11 = pnand %p13974_p9, %p16537_p5  ;;  %p13982_p3 = scmp.lt.s32.totalorder %s13980_s3, %s13973_s18 }
 0x1cc   : > { %p13977_p10 = pneg %p13976_p11  ;;  %p13983_p13 = por %p13982_p3, %p13981_p2 }
 0x1ce   : > { %p13984_p4 = pnand %p13983_p13, %p13977_p10 }
 0x1d0   : > { %13987 = shalt.err (!%p13984_p4)
}
 0x1d1   : > { %p16551_p7 = scmp.ne.s32.totalorder %s16523_s28, 0  ;;  %s16552_s22 = sld [smem:[#allocation47_spill]] }
 0x1d3   : > { %12119 = dma.hbm_to_vmem [thread:$0]  (!%p16551_p7), %s14722_s23, 48, %s748_s21, %s736_s0  }
 0x1d7   : > { %p16553_p0 = scmp.ne.s32.totalorder %s16552_s22, 0 }
 0x1d8   : > { %s16554_s30 = sld [smem:[#allocation43_spill]] (!%p16553_p0) }
 0x1d9   : > { %756 = sbr.rel (%p16553_p0) target bundleno = 5205 (0x1455), region = 84 }
 0x1de   : > { %p16555_p8 = scmp.eq.s32.totalorder (!%p16553_p0), %s16554_s30, 0 }
 0x1e0   : > { %14031 = dma.done.wait (%p16555_p8), [#allocation4], 768   ;;  %p16556_p5 = pmov %p16555_p8 }
 0x1e1   : > { %s16557_s26 = sld [smem:[#allocation41_spill]]  ;;  %s16558_s12 = sld [smem:[#allocation46_spill]] }
 0x1e2   : > { %14033 = vsyncadd (%p16556_p5), [#allocation4], 4294966528  ;;  %s14750_s24 = sand.u32 1, %s16554_s30  }
 0x1e3   : > { %s763_s23 = scalar_lea.sflag [#allocation7], %s14750_s24 }
 0x1e7   : > { %s14753_s29 = sand.u32 1, %s16557_s26   ;;  %p16559_p13 = scmp.ne.s32.totalorder %s16558_s12, 0 }
 0x1e8   : > { %s14756_s28 = smul.u32 3, %s14753_s29 }
 0x1ea   : > { %s766_s21 = scalar_lea.vmem [#allocation6], %s14756_s28 }
 0x1eb   : > { %14035 = dma.done.wait (%p16559_p13), %s763_s23, 96  }
 0x1ec   : > { %14037 = vsyncadd (%p16559_p13), %s763_s23, 4294967200  ;;  %s12020_s0 = smul.u32 1728, %s14753_s29  ;;  %s775_s27 = scalar_lea.vmem [#allocation8], %s14756_s28 }
 0x1ed   : > { %s781_s19 = scalar_lea.sflag [#allocation10], %s14750_s24 }
 0x1ee   : > { %s14767_s1 = scalar_lea.vmem [#allocation9], %s12020_s0 }
 0x1ef   : > { %14039 = dma.done.wait (%p16559_p13), %s781_s19, 36864  }
 0x1f0   : > { %14041 = vsyncadd (%p16559_p13), %s781_s19, 4294930432  ;;  %s12021_s8 = smul.u32 576, %s14753_s29  ;;  %s799_s16 = scalar_lea.sflag [#allocation13], %s14750_s24 }
 0x1f1   : > { %s802_s18 = scalar_lea.vmem [#allocation12], %s14756_s28 }
 0x1f2   : > { %s14774_s6 = scalar_lea.vmem [#allocation11], %s12021_s8 }
 0x1f3   : > { %14043 = dma.done.wait (%p16559_p13), %s799_s16, 96  }
 0x1f4   : > { %14045 = vsyncadd (%p16559_p13), %s799_s16, 4294967200  ;;  %s811_s25 = scalar_lea.vmem [#allocation14], %s14756_s28  ;;  %s817_s20 = scalar_lea.sflag [#allocation16], %s14750_s24 }
 0x1f5   : > { %s820_s3 = scalar_lea.vmem [#allocation15], %s14756_s28 }
 0x1f6   : > { %14047 = dma.done.wait (%p16559_p13), %s817_s20, 36912  }
 0x1f7   : > { %14049 = vsyncadd (%p16559_p13), %s817_s20, 4294930384  ;;  %s12022_s22 = smul.u32 2304, %s14753_s29  ;;  %s835_s0 = scalar_lea.sflag [#allocation19], %s14750_s24 }
 0x1f8   : > { %s12023_s26 = smul.u32 12, %s14753_s29 }
 0x1f9   : > { %s14791_s23 = scalar_lea.vmem [#allocation17], %s12022_s22 }
 0x1fa   : > { %s14794_s19 = scalar_lea.vmem [#allocation18], %s12023_s26 }
 0x1fb   : > { %14051 = dma.done.wait (%p16559_p13), %s835_s0, 37056  }
 0x1fc   : > { %14053 = vsyncadd (%p16559_p13), %s835_s0, 4294930240  ;;  %s14800_s8 = scalar_lea.vmem [#allocation20], %s12022_s22  ;;  %s853_s16 = scalar_lea.sflag [#allocation22], %s14750_s24 }
 0x1fd   : > { %s856_s20 = scalar_lea.vmem [#allocation21], %s14756_s28 }
 0x1fe   : > { %14055 = dma.done.wait (%p16559_p13), %s853_s16, 48  }
 0x1ff   : > { %14057 = vsyncadd (%p16559_p13), %s853_s16, 4294967248  ;;  %p16560_p6 = pmov %p16556_p5 }
 0x200   : > { %p16561_p1 = pmov %p16556_p5 }
 0x201   : > { %14059 = dma.done.wait (%p16560_p6), [#allocation22], 48  }
 0x202   : > { %14061 = vsyncadd (%p16561_p1), [#allocation22], 4294967248  ;;  %p16562_p12 = pmov %p16561_p1 }
 0x203   : > { %p16563_p9 = pmov %p16561_p1 }
 0x204   : > { %14063 = dma.done.wait (%p16562_p12), [#allocation25], 3120  }
 0x205   : > { %14065 = vsyncadd (%p16563_p9), [#allocation25], 4294964176  ;;  %p16564_p11 = pmov %p16561_p1 }
 0x206   : > { %p16565_p10 = pmov %p16561_p1 }
 0x207   : > { %14067 = dma.done.wait (%p16564_p11), [#allocation28], 16  }
 0x208   : > { %14069 = vsyncadd (%p16565_p10), [#allocation28], 4294967280  ;;  %p16566_p2 = scmp.ne.s32.totalorder %s16554_s30, 0 }
 0x209   : > { %v971_v0 = vld [vmem:[#allocation3] sm:$0xff] (!%p16566_p2)  ;;  %v972_v1 = vld [vmem:[#allocation3 + $0x8] sm:$0xff] (!%p16566_p2)  ;;  %v973_v2 = vld [vmem:[#allocation3 + $0x10] sm:$0xff] (!%p16566_p2) }
 0x20a   : > { %970 = sbr.rel (%p16566_p2) target bundleno = 529 (0x211), region = 152  ;;  %977 = vst [vmem:[#allocation2] sm:$0xff] (!%p16566_p2), %v971_v0  ;;  %978 = vst [vmem:[#allocation2 + $0x8] sm:$0xff] (!%p16566_p2), %v972_v1  ;;  %v974_v3 = vld [vmem:[#allocation3 + $0x18] sm:$0xff] (!%p16566_p2)  ;;  %v975_v4 = vld [vmem:[#allocation3 + $0x20] sm:$0xff] (!%p16566_p2) }
 0x20b   : > { %979 = vst [vmem:[#allocation2 + $0x10] sm:$0xff] (!%p16566_p2), %v973_v2  ;;  %v976_v5 = vld [vmem:[#allocation3 + $0x28] sm:$0xff] (!%p16566_p2)  ;;  %980 = vst [vmem:[#allocation2 + $0x18] sm:$0xff] (!%p16566_p2), %v974_v3 }
 0x20c   : > { %981 = vst [vmem:[#allocation2 + $0x20] sm:$0xff] (!%p16566_p2), %v975_v4  ;;  %982 = vst [vmem:[#allocation2 + $0x28] sm:$0xff] (!%p16566_p2), %v976_v5 }
 0x211 PF: > { %v983_v6 = vld [vmem:[#allocation2] sm:$0xff]  ;;  %v984_v7 = vld [vmem:[#allocation2 + $0x8] sm:$0xff]  ;;  %v12204_v16 = vld [vmem:[%s14767_s1 + $0x4] ss:$36 sps:$4 sm:$0xff]   ;;  %vm14118_vm0 = vmmov 0   ;;  %vm2929_vm1 = vcmask 1043456  }
 0x212   : > { %v985_v8 = vld [vmem:[#allocation2 + $0x10] sm:$0xff]  ;;  %v991_v9 = vadd.f32 %v984_v7, %v983_v6  ;;  %v14822_v10 = vld [vmem:[#allocation2 + $0x18] sm:$0xff]  ;;  %2425 = vmatprep.subr.bf16.mxu0 %v12204_v16  ;;  %v12210_v20 = vld [vmem:[%s14767_s1 + $0x94] ss:$36 sps:$4 sm:$0xff]   ;;  %vm2865_vm2 = vcmask 523264   ;;  %vm2913_vm4 = vcmask 64512  }
 0x213   : > { %v14824_v11 = vld [vmem:[#allocation2 + $0x20] sm:$0xff]  ;;  %v14826_v12 = vld [vmem:[#allocation2 + $0x28] sm:$0xff]  ;;  %v12207_v18 = vld [vmem:[%s14767_s1 + $0x4c] ss:$36 sps:$4 sm:$0xff]   ;;  %s14119_s30 = smov 64   ;;  %s16569_s12 = sld [smem:[#allocation43_spill]] }
 0x214   : > { %v995_v13 = vadd.f32 %v14824_v11, %v14822_v10  ;;  %v992_v14 = vadd.f32 %v991_v9, %v985_v8  ;;  %v12206_v17 = vld [vmem:[%s14767_s1] ss:$36 sps:$4 sm:$0xff]   ;;  %v12209_v19 = vld [vmem:[%s14767_s1 + $0x48] ss:$36 sps:$4 sm:$0xff]   ;;  %v12212_v22 = vld [vmem:[%s14767_s1 + $0x90] ss:$36 sps:$4 sm:$0xff]  }
 0x215   : > { %2426 = vmatpush1.bf16.msra.mxu0 %v12206_v17  ;;  %v12228_v21 = vld [vmem:[%s14767_s1 + $0x48c] ss:$36 sps:$4 sm:$0xff]   ;;  %v12234_v24 = vld [vmem:[%s14767_s1 + $0x4d4] ss:$36 sps:$4 sm:$0xff]   ;;  %v12213_v25 = vld [vmem:[%s14767_s1 + $0xdc] ss:$36 sps:$4 sm:$0xff]  }
 0x216   : > { %993 = vadd.xlane.f32.xlu0 %v992_v14  ;;  %v996_v15 = vadd.f32 %v995_v13, %v14826_v12  ;;  %2427 = vmatprep.subr.bf16.mxu0 %v12207_v18  ;;  %v12232_v23 = vld [vmem:[%s14767_s1 + $0x488] ss:$36 sps:$4 sm:$0xff]   ;;  %v12238_v26 = vld [vmem:[%s14767_s1 + $0x4d0] ss:$36 sps:$4 sm:$0xff]   ;;  %v12215_v27 = vld [vmem:[%s14767_s1 + $0xd8] ss:$36 sps:$4 sm:$0xff]  }
 0x217   : > { %2554 = vmatprep.subr.bf16.mxu1 %v12228_v21  ;;  %v12216_v28 = vld [vmem:[%s14767_s1 + $0x124] ss:$36 sps:$4 sm:$0xff]   ;;  %v12219_v30 = vld [vmem:[%s14767_s1 + $0x16c] ss:$36 sps:$4 sm:$0xff]   ;;  %v12222_v32 = vld [vmem:[%s14767_s1 + $0x1b4] ss:$36 sps:$4 sm:$0xff]  }
 0x218   : > { %2555 = vmatpush1.bf16.msra.mxu1 %v12232_v23  ;;  %v12218_v29 = vld [vmem:[%s14767_s1 + $0x120] ss:$36 sps:$4 sm:$0xff]   ;;  %v12221_v31 = vld [vmem:[%s14767_s1 + $0x168] ss:$36 sps:$4 sm:$0xff]   ;;  %v12224_v33 = vld [vmem:[%s14767_s1 + $0x1b0] ss:$36 sps:$4 sm:$0xff]  }
 0x219   : > { %2428 = vmatpush1.bf16.msra.mxu0 %v12209_v19  ;;  %2556 = vmatprep.subr.bf16.mxu1 %v12234_v24  ;;  %v12225_v34 = vld [vmem:[%s14767_s1 + $0x1fc] ss:$36 sps:$4 sm:$0xff]   ;;  %v12230_v36 = vld [vmem:[%s14767_s1 + $0x244] ss:$36 sps:$4 sm:$0xff]   ;;  %v12236_v38 = vld [vmem:[%s14767_s1 + $0x28c] ss:$36 sps:$4 sm:$0xff]  }
 0x21a   : > { %997 = vadd.xlane.f32.xlu0 %v996_v15  ;;  %2429 = vmatprep.subr.bf16.mxu0 %v12210_v20  ;;  %v12227_v35 = vld [vmem:[%s14767_s1 + $0x1f8] ss:$36 sps:$4 sm:$0xff]   ;;  %v12233_v37 = vld [vmem:[%s14767_s1 + $0x240] ss:$36 sps:$4 sm:$0xff]   ;;  %v12239_v59 = vld [vmem:[%s14767_s1 + $0x288] ss:$36 sps:$4 sm:$0xff]  }
 0x21b   : > { %v12240_v60 = vld [vmem:[%s14767_s1 + $0x51c] ss:$36 sps:$4 sm:$0xff]   ;;  %v12242_v61 = vld [vmem:[%s14767_s1 + $0x2d4] ss:$36 sps:$4 sm:$0xff]   ;;  %v12246_v0 = vld [vmem:[%s14767_s1 + $0x564] ss:$36 sps:$4 sm:$0xff]  }
 0x21c   : > { %2557 = vmatpush1.bf16.msra.mxu1 %v12238_v26  ;;  %v12244_v62 = vld [vmem:[%s14767_s1 + $0x518] ss:$36 sps:$4 sm:$0xff]   ;;  %v12245_v63 = vld [vmem:[%s14767_s1 + $0x2d0] ss:$36 sps:$4 sm:$0xff]   ;;  %v12250_v2 = vld [vmem:[%s14767_s1 + $0x560] ss:$36 sps:$4 sm:$0xff]   ;;  %v1035_v26 = vlaneseq }
 0x21d   : > { %2430 = vmatpush1.bf16.msra.mxu0 %v12212_v22  ;;  %2558 = vmatprep.subr.bf16.mxu1 %v12240_v60  ;;  %v12248_v1 = vld [vmem:[%s14767_s1 + $0x31c] ss:$36 sps:$4 sm:$0xff]   ;;  %v12252_v4 = vld [vmem:[%s14767_s1 + $0x5ac] ss:$36 sps:$4 sm:$0xff]   ;;  %v12254_v5 = vld [vmem:[%s14767_s1 + $0x364] ss:$36 sps:$4 sm:$0xff]  }
 0x21e   : > { %2431 = vmatprep.subr.bf16.mxu0 %v12213_v25  ;;  %v12251_v3 = vld [vmem:[%s14767_s1 + $0x318] ss:$36 sps:$4 sm:$0xff]   ;;  %v12260_v9 = vld [vmem:[%s14767_s1 + $0x3ac] ss:$36 sps:$4 sm:$0xff]   ;;  %v12270_v16 = vld [vmem:[%s14767_s1 + $0x684] ss:$36 sps:$4 sm:$0xff]  }
 0x21f   : > { %v12266_v13 = vld [vmem:[%s14767_s1 + $0x3f4] ss:$36 sps:$4 sm:$0xff]   ;;  %v14116_v17 = vmov 0   ;;  %v12272_v18 = vld [vmem:[%s14767_s1 + $0x43c] ss:$36 sps:$4 sm:$0xff]   ;;  %p11402_p3 = scmp.ne.s32.totalorder %s16569_s12, 5 }
 0x220   : > { %2559 = vmatpush1.bf16.msra.mxu1 %v12244_v62  ;;  %v12268_v14 = vld [vmem:[%s14767_s1 + $0x638] ss:$36 sps:$4 sm:$0xff]   ;;  %v12269_v15 = vld [vmem:[%s14767_s1 + $0x3f0] ss:$36 sps:$4 sm:$0xff]   ;;  %2586 = vmatprep.mubr.bf16.mxu1 %v14116_v17  ;;  %v12274_v19 = vld [vmem:[%s14767_s1 + $0x680] ss:$36 sps:$4 sm:$0xff]  }
 0x221   : > { %2432 = vmatpush1.bf16.msra.mxu0 %v12215_v27  ;;  %2560 = vmatprep.subr.bf16.mxu1 %v12246_v0  ;;  %v12275_v20 = vld [vmem:[%s14767_s1 + $0x438] ss:$36 sps:$4 sm:$0xff]   ;;  %v12281_v22 = vld [vmem:[%s14767_s1 + $0x484] ss:$36 sps:$4 sm:$0xff]   ;;  %vm14121_vm5 = vmmov (!%p11402_p3), 0  }
 0x222   : > { %2433 = vmatprep.subr.bf16.mxu0 %v12216_v28  ;;  %v12278_v21 = vld [vmem:[%s14767_s1 + $0x1c] ss:$36 sps:$4 sm:$0xff]  }
 0x224   : > { %2561 = vmatpush1.bf16.msra.mxu1 %v12250_v2 }
 0x225   : > { %2434 = vmatpush1.bf16.msra.mxu0 %v12218_v29  ;;  %2562 = vmatprep.subr.bf16.mxu1 %v12252_v4  ;;  %v12282_v4 = vld [vmem:[%s14767_s1 + $0x60] ss:$36 sps:$4 sm:$0xff]  }
 0x226   : > { %2435 = vmatprep.subr.bf16.mxu0 %v12219_v30  ;;  %v14910_v30 = vshrl.u32 %v1035_v26, 7 }
 0x229   : > { %2436 = vmatpush1.bf16.msra.mxu0 %v12221_v31  ;;  %v989_v31 = vld [vmem:[%s766_s21] sm:$0x7] }
 0x22a   : > { %2437 = vmatprep.subr.bf16.mxu0 %v12222_v32  ;;  %v14915_v32 = vsub.s32 1, %v14910_v30 }
 0x22d   : > { %2438 = vmatpush1.bf16.msra.mxu0 %v12224_v33  ;;  %v14918_v33 = vsub.s32 2, %v14910_v30 }
 0x22e   : > { %2439 = vmatprep.subr.bf16.mxu0 %v12225_v34  ;;  %v14921_v34 = vsub.s32 0, %v14910_v30 }
 0x231   : > { %2440 = vmatpush1.bf16.msra.mxu0 %v12227_v35 }
 0x232   : > { %2441 = vmatprep.subr.bf16.mxu0 %v12230_v36  ;;  %v990_v36 = vld [vmem:[%s775_s27] sm:$0x7] }
 0x235   : > { %2442 = vmatpush1.bf16.msra.mxu0 %v12233_v37 }
 0x236   : > { %2443 = vmatprep.subr.bf16.mxu0 %v12236_v38  ;;  %v1042_v38 = vrot.slane %v989_v31, %v14915_v32 }
 0x239   : > { %2444 = vmatpush1.bf16.msra.mxu0 %v12239_v59 }
 0x23a   : > { %2445 = vmatprep.subr.bf16.mxu0 %v12242_v61 }
 0x23d   : > { %2446 = vmatpush1.bf16.msra.mxu0 %v12245_v63 }
 0x23e   : > { %2447 = vmatprep.subr.bf16.mxu0 %v12248_v1 }
 0x241   : > { %2448 = vmatpush1.bf16.msra.mxu0 %v12251_v3 }
 0x242   : > { %2449 = vmatprep.subr.bf16.mxu0 %v12254_v5  ;;  %v12287_v5 = vld [vmem:[%s14767_s1 + $0x4cc] ss:$36 sps:$4 sm:$0xff]  }
 0x2a3   : > { %v994_v39 = vpop.xlane.xlu0 %993 }
 0x2a4   : > { %v1000_v40 = vmul.f32 0.0026041667, %v994_v39 }
 0x2a6   : > { %v14854_v41 = vsub.f32 %v983_v6, %v1000_v40  ;;  %v14856_v42 = vsub.f32 %v984_v7, %v1000_v40  ;;  %v14858_v43 = vsub.f32 %v985_v8, %v1000_v40  ;;  %v12256_v6 = vld [vmem:[%s14767_s1 + $0x5a8] ss:$36 sps:$4 sm:$0xff]   ;;  %v12257_v7 = vld [vmem:[%s14767_s1 + $0x360] ss:$36 sps:$4 sm:$0xff]   ;;  %v12258_v8 = vld [vmem:[%s14767_s1 + $0x5f4] ss:$36 sps:$4 sm:$0xff]   ;;  %v1046_v40 = vrot.slane %v989_v31, %v14918_v33 }
 0x2a7   : > { %v998_v44 = vpop.xlane.xlu0 %997  ;;  %2563 = vmatpush1.bf16.msra.mxu1 %v12256_v6  ;;  %2450 = vmatpush1.bf16.msra.mxu0 %v12257_v7  ;;  %v12285_v6 = vld [vmem:[%s14767_s1 + $0x4c8] ss:$36 sps:$4 sm:$0xff]  }
 0x2a8   : > { %v1001_v45 = vmul.f32 0.0026041667, %v998_v44  ;;  %v1008_v46 = vmul.f32 %v14854_v41, %v14854_v41  ;;  %v1009_v47 = vmul.f32 %v14856_v42, %v14856_v42  ;;  %v1010_v48 = vmul.f32 %v14858_v43, %v14858_v43  ;;  %2564 = vmatprep.subr.bf16.mxu1 %v12258_v8  ;;  %2451 = vmatprep.subr.bf16.mxu0 %v12260_v9  ;;  %v12290_v7 = vld [vmem:[%s14767_s1 + $0xac] ss:$36 sps:$4 sm:$0xff]   ;;  %v12293_v8 = vld [vmem:[%s14767_s1 + $0x514] ss:$36 sps:$4 sm:$0xff]  }
 0x2a9   : > { %v12288_v9 = vld [vmem:[%s14767_s1 + $0xa8] ss:$36 sps:$4 sm:$0xff]  }
 0x2aa   : > { %v14867_v49 = vsub.f32 %v14822_v10, %v1001_v45  ;;  %v14870_v50 = vsub.f32 %v14824_v11, %v1001_v45  ;;  %v14873_v51 = vsub.f32 %v14826_v12, %v1001_v45  ;;  %v1014_v52 = vadd.f32 %v1009_v47, %v1008_v46  ;;  %v12262_v10 = vld [vmem:[%s14767_s1 + $0x5f0] ss:$36 sps:$4 sm:$0xff]   ;;  %v12263_v11 = vld [vmem:[%s14767_s1 + $0x3a8] ss:$36 sps:$4 sm:$0xff]   ;;  %v12264_v12 = vld [vmem:[%s14767_s1 + $0x63c] ss:$36 sps:$4 sm:$0xff]  }
 0x2ab   : > { %2565 = vmatpush1.bf16.msra.mxu1 %v12262_v10  ;;  %2452 = vmatpush1.bf16.msra.mxu0 %v12263_v11  ;;  %v1038_v45 = vrot.slane %v989_v31, %v14921_v34  ;;  %v1064_v47 = vrot.slane %v990_v36, %v14915_v32  ;;  %v12291_v10 = vld [vmem:[%s14767_s1 + $0x510] ss:$36 sps:$4 sm:$0xff]   ;;  %v12323_v31 = vld [vmem:[%s14767_s1 + $0x67c] ss:$36 sps:$4 sm:$0xff]  }
 0x2ac   : > { %v1015_v53 = vadd.f32 %v1014_v52, %v1010_v48  ;;  %v1011_v54 = vmul.f32 %v14867_v49, %v14867_v49  ;;  %v1012_v55 = vmul.f32 %v14870_v50, %v14870_v50  ;;  %v1013_v56 = vmul.f32 %v14873_v51, %v14873_v51  ;;  %2566 = vmatprep.subr.bf16.mxu1 %v12264_v12  ;;  %v12296_v11 = vld [vmem:[%s14767_s1 + $0xf4] ss:$36 sps:$4 sm:$0xff]   ;;  %v12299_v12 = vld [vmem:[%s14767_s1 + $0x55c] ss:$36 sps:$4 sm:$0xff]  }
 0x2ad   : > { %2453 = vmatprep.subr.bf16.mxu0 %v12266_v13  ;;  %v1068_v48 = vrot.slane %v990_v36, %v14918_v33  ;;  %v12294_v13 = vld [vmem:[%s14767_s1 + $0xf0] ss:$36 sps:$4 sm:$0xff]  }
 0x2ae   : > { %1016 = vadd.xlane.f32.xlu1 %v1015_v53  ;;  %v1018_v57 = vadd.f32 %v1012_v55, %v1011_v54 }
 0x2af   : > { %2567 = vmatpush1.bf16.msra.mxu1 %v12268_v14  ;;  %2454 = vmatpush1.bf16.msra.mxu0 %v12269_v15  ;;  %v12297_v14 = vld [vmem:[%s14767_s1 + $0x558] ss:$36 sps:$4 sm:$0xff]  }
 0x2b0   : > { %v1019_v58 = vadd.f32 %v1018_v57, %v1013_v56  ;;  %2568 = vmatprep.subr.bf16.mxu1 %v12270_v16  ;;  %2455 = vmatprep.subr.bf16.mxu0 %v12272_v18  ;;  %v12302_v15 = vld [vmem:[%s14767_s1 + $0x13c] ss:$36 sps:$4 sm:$0xff]   ;;  %v12305_v16 = vld [vmem:[%s14767_s1 + $0x5a4] ss:$36 sps:$4 sm:$0xff]  }
 0x2b1   : > { %v12300_v18 = vld [vmem:[%s14767_s1 + $0x138] ss:$36 sps:$4 sm:$0xff]  }
 0x2b2   : > { %1020 = vadd.xlane.f32.xlu1 %v1019_v58  ;;  %v12276_v58 = vld [vmem:[%s14767_s1 + $0x18] ss:$36 sps:$4 sm:$0xff]  }
 0x2b3   : > { %2569 = vmatpush1.bf16.msra.mxu1 %v12274_v19  ;;  %2456 = vmatpush1.bf16.msra.mxu0 %v12275_v20  ;;  %v12303_v19 = vld [vmem:[%s14767_s1 + $0x5a0] ss:$36 sps:$4 sm:$0xff]  }
 0x2b4   : > { %2683 = vmatprep.subr.bf16.mxu1 %v12278_v21  ;;  %2468 = vmatprep.subr.bf16.mxu0 %v12281_v22  ;;  %v12308_v20 = vld [vmem:[%s14767_s1 + $0x184] ss:$36 sps:$4 sm:$0xff]   ;;  %v12311_v21 = vld [vmem:[%s14767_s1 + $0x5ec] ss:$36 sps:$4 sm:$0xff]  }
 0x2b5   : > { %v12306_v22 = vld [vmem:[%s14767_s1 + $0x180] ss:$36 sps:$4 sm:$0xff]  }
 0x33b   : > { %v1017_v23 = vpop.xlane.xlu1 %1016 }
 0x33c   : > { %v1022_v24 = vmul.f32 0.0026041667, %v1017_v23  ;;  %v12309_v23 = vld [vmem:[%s14767_s1 + $0x5e8] ss:$36 sps:$4 sm:$0xff]  }
 0x33e   : > { %v1024_v25 = vadd.f32 1e-05, %v1022_v24  ;;  %v12314_v24 = vld [vmem:[%s14767_s1 + $0x1cc] ss:$36 sps:$4 sm:$0xff]  }
 0x33f   : > { %v1021_v27 = vpop.xlane.xlu1 %1020 }
 0x340   : > { %13428 = vrsqrt.f32 %v1024_v25  ;;  %v1023_v28 = vmul.f32 0.0026041667, %v1021_v27  ;;  %v12317_v25 = vld [vmem:[%s14767_s1 + $0x634] ss:$36 sps:$4 sm:$0xff]   ;;  %v12312_v27 = vld [vmem:[%s14767_s1 + $0x1c8] ss:$36 sps:$4 sm:$0xff]  }
 0x342   : > { %v1025_v29 = vadd.f32 1e-05, %v1023_v28  ;;  %v12315_v28 = vld [vmem:[%s14767_s1 + $0x630] ss:$36 sps:$4 sm:$0xff]  }
 0x344   : > { %13430 = vrsqrt.f32 %v1025_v29  ;;  %v12320_v29 = vld [vmem:[%s14767_s1 + $0x214] ss:$36 sps:$4 sm:$0xff]  }
 0x34a   : > { %v13429_v35 = vpop.eup %13428 }
 0x34b   : > { %v1029_v37 = vmul.f32 %v13429_v35, %v14856_v42  ;;  %v1030_v39 = vmul.f32 %v13429_v35, %v14858_v43  ;;  %v1028_v44 = vmul.f32 %v13429_v35, %v14854_v41  ;;  %v1060_v41 = vrot.slane %v990_v36, %v14921_v34  ;;  %v12318_v35 = vld [vmem:[%s14767_s1 + $0x210] ss:$36 sps:$4 sm:$0xff]   ;;  %v12321_v36 = vld [vmem:[%s14767_s1 + $0x678] ss:$36 sps:$4 sm:$0xff]  }
 0x34d   : > { %v1051_v42 = vmul.f32 %v1042_v38, %v1029_v37  ;;  %v1052_v43 = vmul.f32 %v1046_v40, %v1030_v39  ;;  %v1050_v55 = vmul.f32 %v1038_v45, %v1028_v44  ;;  %v12326_v37 = vld [vmem:[%s14767_s1 + $0x25c] ss:$36 sps:$4 sm:$0xff]   ;;  %v12332_v44 = vld [vmem:[%s14767_s1 + $0x2a4] ss:$36 sps:$4 sm:$0xff]  }
 0x34e   : > { %v13431_v46 = vpop.eup %13430  ;;  %v12324_v39 = vld [vmem:[%s14767_s1 + $0x258] ss:$36 sps:$4 sm:$0xff]  }
 0x34f   : > { %v1032_v52 = vmul.f32 %v13431_v46, %v14870_v50  ;;  %v1033_v53 = vmul.f32 %v13431_v46, %v14873_v51  ;;  %v1031_v54 = vmul.f32 %v13431_v46, %v14867_v49  ;;  %v1073_v60 = vadd.f32 %v1064_v47, %v1051_v42  ;;  %v12279_v50 = vld [vmem:[%s14767_s1 + $0x480] ss:$36 sps:$4 sm:$0xff]   ;;  %v12335_v46 = vld [vmem:[%s14767_s1 + $0x54] ss:$36 sps:$4 sm:$0xff]   ;;  %v12336_v42 = vld [vmem:[%s14767_s1 + $0x2e8] ss:$36 sps:$4 sm:$0xff]  }
 0x350   : > { %v1074_v62 = vadd.f32 %v1068_v48, %v1052_v43  ;;  %v1072_v51 = vadd.f32 %v1060_v41, %v1050_v55  ;;  %v12284_v49 = vld [vmem:[%s14767_s1 + $0x64] ss:$36 sps:$4 sm:$0xff]   ;;  %v12344_v43 = vld [vmem:[%s14767_s1 + $0x334] ss:$36 sps:$4 sm:$0xff]  }
 0x351   : > { %v1054_v56 = vmul.f32 %v1042_v38, %v1032_v52  ;;  %v1055_v57 = vmul.f32 %v1046_v40, %v1033_v53  ;;  %v1053_v59 = vmul.f32 %v1038_v45, %v1031_v54  ;;  %v12329_v38 = vld [vmem:[%s14767_s1 + $0xc] ss:$36 sps:$4 sm:$0xff]   ;;  %v12330_v45 = vld [vmem:[%s14767_s1 + $0x2a0] ss:$36 sps:$4 sm:$0xff]   ;;  %v12339_v53 = vld [vmem:[%s14767_s1 + $0x98] ss:$36 sps:$4 sm:$0xff]  }
 0x352   : > { %v12327_v40 = vld [vmem:[%s14767_s1 + $0x8] ss:$36 sps:$4 sm:$0xff]   ;;  %v12341_v52 = vld [vmem:[%s14767_s1 + $0x9c] ss:$36 sps:$4 sm:$0xff]   ;;  %v12342_v55 = vld [vmem:[%s14767_s1 + $0x330] ss:$36 sps:$4 sm:$0xff]  }
 0x353   : > { %v1076_v61 = vadd.f32 %v1064_v47, %v1054_v56  ;;  %v1077_v63 = vadd.f32 %v1068_v48, %v1055_v57  ;;  %v1075_v0 = vadd.f32 %v1060_v41, %v1053_v59  ;;  %v12333_v47 = vld [vmem:[%s14767_s1 + $0x50] ss:$36 sps:$4 sm:$0xff]   ;;  %v12347_v54 = vld [vmem:[%s14767_s1 + $0xe4] ss:$36 sps:$4 sm:$0xff]   ;;  %v12350_v56 = vld [vmem:[%s14767_s1 + $0x37c] ss:$36 sps:$4 sm:$0xff]  }
 0x354   : > { %v12338_v48 = vld [vmem:[%s14767_s1 + $0x2ec] ss:$36 sps:$4 sm:$0xff]   ;;  %v12345_v41 = vld [vmem:[%s14767_s1 + $0xe0] ss:$36 sps:$4 sm:$0xff]  }
 0x355   : > { %v14940_v1 = vpack.c.bf16 %v1076_v61, %v1073_v60  ;;  %v14942_v2 = vpack.c.bf16 %v1077_v63, %v1074_v62  ;;  %v14944_v3 = vpack.c.bf16 %v1075_v0, %v1072_v51  ;;  %v12353_v57 = vld [vmem:[%s14767_s1 + $0x12c] ss:$36 sps:$4 sm:$0xff]   ;;  %v12356_v60 = vld [vmem:[%s14767_s1 + $0x3c4] ss:$36 sps:$4 sm:$0xff]   ;;  %v12359_v61 = vld [vmem:[%s14767_s1 + $0x174] ss:$36 sps:$4 sm:$0xff]  }
 0x356   : > { %v12351_v59 = vld [vmem:[%s14767_s1 + $0x128] ss:$36 sps:$4 sm:$0xff]   ;;  %v12357_v62 = vld [vmem:[%s14767_s1 + $0x170] ss:$36 sps:$4 sm:$0xff]   ;;  %v12365_v51 = vld [vmem:[%s14767_s1 + $0x1bc] ss:$36 sps:$4 sm:$0xff]  }
 0x357   : > { %2457 = vmatprep.mubr.bf16.mxu0 %v14940_v1  ;;  %2587 = vmatmul.mubr.bf16.vlgmr.msra.gmra.mrb[0].mxu1 %v14942_v2  ;;  %v12362_v63 = vld [vmem:[%s14767_s1 + $0x40c] ss:$36 sps:$4 sm:$0xff]  }
 0x358   : > { %2684 = vmatpush1.bf16.msra.mxu1 %v12276_v58  ;;  %2458 = vmatmul.mubr.bf16.vlgmr.msra.gmra.mrb[0].mxu0 %v14944_v3  ;;  %v12348_v58 = vld [vmem:[%s14767_s1 + $0x378] ss:$36 sps:$4 sm:$0xff]   ;;  %v12360_v0 = vld [vmem:[%s14767_s1 + $0x408] ss:$36 sps:$4 sm:$0xff]  }
 0x359   : > { %2469 = vmatpush1.bf16.msra.mxu0 %v12279_v50  ;;  %2715 = vmatprep.mubr.bf16.mxu1 %v14940_v1  ;;  %v12354_v50 = vld [vmem:[%s14767_s1 + $0x3c0] ss:$36 sps:$4 sm:$0xff]  }
 0x35a   : > { %2685 = vmatprep.subr.bf16.mxu1 %v12284_v49  ;;  %2470 = vmatprep.subr.bf16.mxu0 %v12287_v5  ;;  %v12363_v49 = vld [vmem:[%s14767_s1 + $0x1b8] ss:$36 sps:$4 sm:$0xff]   ;;  %v12371_v5 = vld [vmem:[%s14767_s1 + $0x204] ss:$36 sps:$4 sm:$0xff]  }
 0x35b   : > { %2500 = vmatprep.mubr.bf16.mxu0 %v14116_v17 }
 0x35c   : > { %2686 = vmatpush1.bf16.msra.mxu1 %v12282_v4  ;;  %v12368_v4 = vld [vmem:[%s14767_s1 + $0x454] ss:$36 sps:$4 sm:$0xff]  }
 0x35d   : > { %2471 = vmatpush1.bf16.msra.mxu0 %v12285_v6  ;;  %2687 = vmatprep.subr.bf16.mxu1 %v12290_v7  ;;  %v12366_v6 = vld [vmem:[%s14767_s1 + $0x450] ss:$36 sps:$4 sm:$0xff]   ;;  %v12369_v7 = vld [vmem:[%s14767_s1 + $0x200] ss:$36 sps:$4 sm:$0xff]  }
 0x35e   : > { %2472 = vmatprep.subr.bf16.mxu0 %v12293_v8  ;;  %v12374_v8 = vld [vmem:[%s14767_s1 + $0x49c] ss:$36 sps:$4 sm:$0xff]  }
 0x360   : > { %2688 = vmatpush1.bf16.msra.mxu1 %v12288_v9  ;;  %v12377_v9 = vld [vmem:[%s14767_s1 + $0x24c] ss:$36 sps:$4 sm:$0xff]  }
 0x361   : > { %2473 = vmatpush1.bf16.msra.mxu0 %v12291_v10  ;;  %2689 = vmatprep.subr.bf16.mxu1 %v12296_v11  ;;  %v12372_v10 = vld [vmem:[%s14767_s1 + $0x498] ss:$36 sps:$4 sm:$0xff]   ;;  %v12375_v11 = vld [vmem:[%s14767_s1 + $0x248] ss:$36 sps:$4 sm:$0xff]  }
 0x362   : > { %2474 = vmatprep.subr.bf16.mxu0 %v12299_v12  ;;  %v12380_v12 = vld [vmem:[%s14767_s1 + $0x4e4] ss:$36 sps:$4 sm:$0xff]  }
 0x364   : > { %2690 = vmatpush1.bf16.msra.mxu1 %v12294_v13  ;;  %v12378_v13 = vld [vmem:[%s14767_s1 + $0x4e0] ss:$36 sps:$4 sm:$0xff]  }
 0x365   : > { %2475 = vmatpush1.bf16.msra.mxu0 %v12297_v14  ;;  %2691 = vmatprep.subr.bf16.mxu1 %v12302_v15  ;;  %v12383_v14 = vld [vmem:[%s14767_s1 + $0x294] ss:$36 sps:$4 sm:$0xff]  }
 0x366   : > { %2476 = vmatprep.subr.bf16.mxu0 %v12305_v16  ;;  %v12381_v15 = vld [vmem:[%s14767_s1 + $0x290] ss:$36 sps:$4 sm:$0xff]  }
 0x367   : > { %v12386_v16 = vld [vmem:[%s14767_s1 + $0x52c] ss:$36 sps:$4 sm:$0xff]  }
 0x368   : > { %2692 = vmatpush1.bf16.msra.mxu1 %v12300_v18  ;;  %v12384_v18 = vld [vmem:[%s14767_s1 + $0x528] ss:$36 sps:$4 sm:$0xff]  }
 0x369   : > { %2477 = vmatpush1.bf16.msra.mxu0 %v12303_v19  ;;  %2693 = vmatprep.subr.bf16.mxu1 %v12308_v20  ;;  %v12389_v19 = vld [vmem:[%s14767_s1 + $0x2dc] ss:$36 sps:$4 sm:$0xff]  }
 0x36a   : > { %2478 = vmatprep.subr.bf16.mxu0 %v12311_v21  ;;  %v12387_v20 = vld [vmem:[%s14767_s1 + $0x2d8] ss:$36 sps:$4 sm:$0xff]  }
 0x36b   : > { %v12392_v21 = vld [vmem:[%s14767_s1 + $0x574] ss:$36 sps:$4 sm:$0xff]  }
 0x36c   : > { %2694 = vmatpush1.bf16.msra.mxu1 %v12306_v22  ;;  %v12390_v22 = vld [vmem:[%s14767_s1 + $0x570] ss:$36 sps:$4 sm:$0xff]  }
 0x36d   : > { %2479 = vmatpush1.bf16.msra.mxu0 %v12309_v23  ;;  %2695 = vmatprep.subr.bf16.mxu1 %v12314_v24  ;;  %v12395_v23 = vld [vmem:[%s14767_s1 + $0x324] ss:$36 sps:$4 sm:$0xff]  }
 0x36e   : > { %2480 = vmatprep.subr.bf16.mxu0 %v12317_v25  ;;  %v12393_v24 = vld [vmem:[%s14767_s1 + $0x320] ss:$36 sps:$4 sm:$0xff]  }
 0x36f   : > { %v12398_v25 = vld [vmem:[%s14767_s1 + $0x5bc] ss:$36 sps:$4 sm:$0xff]  }
 0x370   : > { %2696 = vmatpush1.bf16.msra.mxu1 %v12312_v27  ;;  %v12396_v27 = vld [vmem:[%s14767_s1 + $0x5b8] ss:$36 sps:$4 sm:$0xff]  }
 0x371   : > { %2481 = vmatpush1.bf16.msra.mxu0 %v12315_v28  ;;  %2697 = vmatprep.subr.bf16.mxu1 %v12320_v29  ;;  %v12401_v28 = vld [vmem:[%s14767_s1 + $0x36c] ss:$36 sps:$4 sm:$0xff]  }
 0x372   : > { %2482 = vmatprep.subr.bf16.mxu0 %v12323_v31  ;;  %v12399_v29 = vld [vmem:[%s14767_s1 + $0x368] ss:$36 sps:$4 sm:$0xff]  }
 0x373   : > { %v12404_v31 = vld [vmem:[%s14767_s1 + $0x604] ss:$36 sps:$4 sm:$0xff]  }
 0x374   : > { %2698 = vmatpush1.bf16.msra.mxu1 %v12318_v35  ;;  %v12402_v35 = vld [vmem:[%s14767_s1 + $0x600] ss:$36 sps:$4 sm:$0xff]  }
 0x375   : > { %2483 = vmatpush1.bf16.msra.mxu0 %v12321_v36  ;;  %2699 = vmatprep.subr.bf16.mxu1 %v12326_v37  ;;  %v12407_v36 = vld [vmem:[%s14767_s1 + $0x3b4] ss:$36 sps:$4 sm:$0xff]  }
 0x376   : > { %2511 = vmatprep.subr.bf16.mxu0 %v12329_v38  ;;  %v12405_v37 = vld [vmem:[%s14767_s1 + $0x3b0] ss:$36 sps:$4 sm:$0xff]  }
 0x377   : > { %v12410_v38 = vld [vmem:[%s14767_s1 + $0x64c] ss:$36 sps:$4 sm:$0xff]  }
 0x378   : > { %2501 = vmatmul.mubr.bf16.vlgmr.msra.gmra.mrb[0].mxu0 %v14942_v2  ;;  %2700 = vmatpush1.bf16.msra.mxu1 %v12324_v39  ;;  %v12413_v39 = vld [vmem:[%s14767_s1 + $0x3fc] ss:$36 sps:$4 sm:$0xff]  }
 0x379   : > { %2512 = vmatpush1.bf16.msra.mxu0 %v12327_v40  ;;  %2543 = vmatprep.mubr.bf16.mxu0 %v14940_v1  ;;  %v12408_v40 = vld [vmem:[%s14767_s1 + $0x648] ss:$36 sps:$4 sm:$0xff]  }
 0x37a   : > { %2701 = vmatprep.subr.bf16.mxu1 %v12332_v44  ;;  %2513 = vmatprep.subr.bf16.mxu0 %v12335_v46  ;;  %v12411_v44 = vld [vmem:[%s14767_s1 + $0x3f8] ss:$36 sps:$4 sm:$0xff]   ;;  %v12419_v46 = vld [vmem:[%s14767_s1 + $0x444] ss:$36 sps:$4 sm:$0xff]  }
 0x37c   : > { %2702 = vmatpush1.bf16.msra.mxu1 %v12330_v45  ;;  %v12416_v45 = vld [vmem:[%s14767_s1 + $0x694] ss:$36 sps:$4 sm:$0xff]  }
 0x37d   : > { %2514 = vmatpush1.bf16.msra.mxu0 %v12333_v47  ;;  %2703 = vmatprep.subr.bf16.mxu1 %v12338_v48  ;;  %v12414_v47 = vld [vmem:[%s14767_s1 + $0x690] ss:$36 sps:$4 sm:$0xff]   ;;  %v12417_v48 = vld [vmem:[%s14767_s1 + $0x440] ss:$36 sps:$4 sm:$0xff]  }
 0x37e   : > { %2515 = vmatprep.subr.bf16.mxu0 %v12341_v52  ;;  %v12422_v52 = vld [vmem:[%s14767_s1 + $0x14] ss:$36 sps:$4 sm:$0xff]  }
 0x380   : > { %2704 = vmatpush1.bf16.msra.mxu1 %v12336_v42  ;;  %v12423_v42 = vld [vmem:[%s14767_s1 + $0x4a0] ss:$36 sps:$4 sm:$0xff]  }
 0x381   : > { %2516 = vmatpush1.bf16.msra.mxu0 %v12339_v53  ;;  %2705 = vmatprep.subr.bf16.mxu1 %v12344_v43  ;;  %v14117_v53 = vmov 0.0   ;;  %v12420_v43 = vld [vmem:[%s14767_s1 + $0x10] ss:$36 sps:$4 sm:$0xff]  }
 0x382   : > { %2517 = vmatprep.subr.bf16.mxu0 %v12347_v54  ;;  %v12426_v54 = vld [vmem:[%s14767_s1 + $0x5c] ss:$36 sps:$4 sm:$0xff]  }
 0x384   : > { %2706 = vmatpush1.bf16.msra.mxu1 %v12342_v55  ;;  %v12427_v55 = vld [vmem:[%s14767_s1 + $0x4e8] ss:$36 sps:$4 sm:$0xff]  }
 0x385   : > { %2518 = vmatpush1.bf16.msra.mxu0 %v12345_v41  ;;  %2707 = vmatprep.subr.bf16.mxu1 %v12350_v56  ;;  %v12424_v41 = vld [vmem:[%s14767_s1 + $0x58] ss:$36 sps:$4 sm:$0xff]   ;;  %v12430_v56 = vld [vmem:[%s14767_s1 + $0xa4] ss:$36 sps:$4 sm:$0xff]  }
 0x386   : > { %2519 = vmatprep.subr.bf16.mxu0 %v12353_v57  ;;  %v12431_v57 = vld [vmem:[%s14767_s1 + $0x530] ss:$36 sps:$4 sm:$0xff]  }
 0x388   : > { %2708 = vmatpush1.bf16.msra.mxu1 %v12348_v58  ;;  %v12428_v58 = vld [vmem:[%s14767_s1 + $0xa0] ss:$36 sps:$4 sm:$0xff]  }
 0x389   : > { %2520 = vmatpush1.bf16.msra.mxu0 %v12351_v59  ;;  %2709 = vmatprep.subr.bf16.mxu1 %v12356_v60  ;;  %v12434_v59 = vld [vmem:[%s14767_s1 + $0xec] ss:$36 sps:$4 sm:$0xff]   ;;  %v12435_v60 = vld [vmem:[%s14767_s1 + $0x578] ss:$36 sps:$4 sm:$0xff]  }
 0x38a   : > { %2521 = vmatprep.subr.bf16.mxu0 %v12359_v61  ;;  %v12432_v61 = vld [vmem:[%s14767_s1 + $0xe8] ss:$36 sps:$4 sm:$0xff]  }
 0x38c   : > { %2710 = vmatpush1.bf16.msra.mxu1 %v12354_v50  ;;  %v12438_v50 = vld [vmem:[%s14767_s1 + $0x134] ss:$36 sps:$4 sm:$0xff]  }
 0x38d   : > { %2522 = vmatpush1.bf16.msra.mxu0 %v12357_v62  ;;  %2711 = vmatprep.subr.bf16.mxu1 %v12362_v63  ;;  %v12439_v62 = vld [vmem:[%s14767_s1 + $0x5c0] ss:$36 sps:$4 sm:$0xff]   ;;  %v12436_v63 = vld [vmem:[%s14767_s1 + $0x130] ss:$36 sps:$4 sm:$0xff]  }
 0x38e   : > { %2523 = vmatprep.subr.bf16.mxu0 %v12365_v51  ;;  %v12442_v51 = vld [vmem:[%s14767_s1 + $0x17c] ss:$36 sps:$4 sm:$0xff]  }
 0x390   : > { %2712 = vmatpush1.bf16.msra.mxu1 %v12360_v0  ;;  %v12443_v0 = vld [vmem:[%s14767_s1 + $0x608] ss:$36 sps:$4 sm:$0xff]  }
 0x391   : > { %2524 = vmatpush1.bf16.msra.mxu0 %v12363_v49  ;;  %2713 = vmatprep.subr.bf16.mxu1 %v12368_v4  ;;  %v12440_v49 = vld [vmem:[%s14767_s1 + $0x178] ss:$36 sps:$4 sm:$0xff]   ;;  %v12446_v4 = vld [vmem:[%s14767_s1 + $0x1c4] ss:$36 sps:$4 sm:$0xff]  }
 0x392   : > { %2525 = vmatprep.subr.bf16.mxu0 %v12371_v5  ;;  %v12447_v5 = vld [vmem:[%s14767_s1 + $0x650] ss:$36 sps:$4 sm:$0xff]  }
 0x394   : > { %2714 = vmatpush1.bf16.msra.mxu1 %v12366_v6  ;;  %v12444_v6 = vld [vmem:[%s14767_s1 + $0x1c0] ss:$36 sps:$4 sm:$0xff]  }
 0x395   : > { %2526 = vmatpush1.bf16.msra.mxu0 %v12369_v7  ;;  %2726 = vmatprep.subr.bf16.mxu1 %v12374_v8  ;;  %v12450_v7 = vld [vmem:[%s14767_s1 + $0x20c] ss:$36 sps:$4 sm:$0xff]   ;;  %v12451_v8 = vld [vmem:[%s14767_s1 + $0x698] ss:$36 sps:$4 sm:$0xff]  }
 0x396   : > { %2527 = vmatprep.subr.bf16.mxu0 %v12377_v9  ;;  %v12448_v9 = vld [vmem:[%s14767_s1 + $0x208] ss:$36 sps:$4 sm:$0xff]  }
 0x397   : > { %2716 = vmatmul.mubr.bf16.vlgmr.msra.gmra.mrb[4].mxu1 %v14944_v3 }
 0x398   : > { %2727 = vmatpush1.bf16.msra.mxu1 %v12372_v10  ;;  %2758 = vmatprep.mubr.bf16.mxu1 %v14116_v17  ;;  %v12454_v10 = vld [vmem:[%s14767_s1 + $0x254] ss:$36 sps:$4 sm:$0xff]  }
 0x399   : > { %2528 = vmatpush1.bf16.msra.mxu0 %v12375_v11  ;;  %2728 = vmatprep.subr.bf16.mxu1 %v12380_v12  ;;  %v12452_v11 = vld [vmem:[%s14767_s1 + $0x250] ss:$36 sps:$4 sm:$0xff]   ;;  %v12457_v12 = vld [vmem:[%s14767_s1 + $0x29c] ss:$36 sps:$4 sm:$0xff]  }
 0x39a   : > { %2529 = vmatprep.subr.bf16.mxu0 %v12383_v14  ;;  %v12460_v14 = vld [vmem:[%s14767_s1 + $0x2e4] ss:$36 sps:$4 sm:$0xff]  }
 0x39c   : > { %2729 = vmatpush1.bf16.msra.mxu1 %v12378_v13  ;;  %v12455_v13 = vld [vmem:[%s14767_s1 + $0x298] ss:$36 sps:$4 sm:$0xff]  }
 0x39d   : > { %2530 = vmatpush1.bf16.msra.mxu0 %v12381_v15  ;;  %2730 = vmatprep.subr.bf16.mxu1 %v12386_v16  ;;  %v12458_v15 = vld [vmem:[%s14767_s1 + $0x2e0] ss:$36 sps:$4 sm:$0xff]   ;;  %v12463_v16 = vld [vmem:[%s14767_s1 + $0x32c] ss:$36 sps:$4 sm:$0xff]  }
 0x39e   : > { %2531 = vmatprep.subr.bf16.mxu0 %v12389_v19  ;;  %v12466_v19 = vld [vmem:[%s14767_s1 + $0x374] ss:$36 sps:$4 sm:$0xff]  }
 0x3a0   : > { %2731 = vmatpush1.bf16.msra.mxu1 %v12384_v18  ;;  %v12461_v18 = vld [vmem:[%s14767_s1 + $0x328] ss:$36 sps:$4 sm:$0xff]  }
 0x3a1   : > { %2532 = vmatpush1.bf16.msra.mxu0 %v12387_v20  ;;  %2732 = vmatprep.subr.bf16.mxu1 %v12392_v21  ;;  %v12464_v20 = vld [vmem:[%s14767_s1 + $0x370] ss:$36 sps:$4 sm:$0xff]   ;;  %v12469_v21 = vld [vmem:[%s14767_s1 + $0x3bc] ss:$36 sps:$4 sm:$0xff]  }
 0x3a2   : > { %2533 = vmatprep.subr.bf16.mxu0 %v12395_v23  ;;  %v12472_v23 = vld [vmem:[%s14767_s1 + $0x404] ss:$36 sps:$4 sm:$0xff]  }
 0x3a4   : > { %2733 = vmatpush1.bf16.msra.mxu1 %v12390_v22  ;;  %v12467_v22 = vld [vmem:[%s14767_s1 + $0x3b8] ss:$36 sps:$4 sm:$0xff]  }
 0x3a5   : > { %2534 = vmatpush1.bf16.msra.mxu0 %v12393_v24  ;;  %2734 = vmatprep.subr.bf16.mxu1 %v12398_v25  ;;  %v12470_v24 = vld [vmem:[%s14767_s1 + $0x400] ss:$36 sps:$4 sm:$0xff]   ;;  %v12475_v25 = vld [vmem:[%s14767_s1 + $0x44c] ss:$36 sps:$4 sm:$0xff]  }
 0x3a6   : > { %2535 = vmatprep.subr.bf16.mxu0 %v12401_v28  ;;  %v12478_v28 = vld [vmem:[%s14767_s1 + $0x494] ss:$36 sps:$4 sm:$0xff]  }
 0x3a8   : > { %2735 = vmatpush1.bf16.msra.mxu1 %v12396_v27  ;;  %v12473_v27 = vld [vmem:[%s14767_s1 + $0x448] ss:$36 sps:$4 sm:$0xff]  }
 0x3a9   : > { %2536 = vmatpush1.bf16.msra.mxu0 %v12399_v29  ;;  %2736 = vmatprep.subr.bf16.mxu1 %v12404_v31  ;;  %v12476_v29 = vld [vmem:[%s14767_s1 + $0x490] ss:$36 sps:$4 sm:$0xff]   ;;  %v12481_v31 = vld [vmem:[%s14767_s1 + $0x4dc] ss:$36 sps:$4 sm:$0xff]  }
 0x3aa   : > { %2537 = vmatprep.subr.bf16.mxu0 %v12407_v36  ;;  %v12484_v36 = vld [vmem:[%s14767_s1 + $0x524] ss:$36 sps:$4 sm:$0xff]  }
 0x3ac   : > { %2737 = vmatpush1.bf16.msra.mxu1 %v12402_v35  ;;  %v12479_v35 = vld [vmem:[%s14767_s1 + $0x4d8] ss:$36 sps:$4 sm:$0xff]  }
 0x3ad   : > { %2538 = vmatpush1.bf16.msra.mxu0 %v12405_v37  ;;  %2738 = vmatprep.subr.bf16.mxu1 %v12410_v38  ;;  %v12482_v37 = vld [vmem:[%s14767_s1 + $0x520] ss:$36 sps:$4 sm:$0xff]   ;;  %v12487_v38 = vld [vmem:[%s14767_s1 + $0x56c] ss:$36 sps:$4 sm:$0xff]  }
 0x3ae   : > { %2539 = vmatprep.subr.bf16.mxu0 %v12413_v39  ;;  %v12485_v39 = vld [vmem:[%s14767_s1 + $0x568] ss:$36 sps:$4 sm:$0xff]  }
 0x3b0   : > { %2739 = vmatpush1.bf16.msra.mxu1 %v12408_v40  ;;  %v12490_v40 = vld [vmem:[%s14767_s1 + $0x5b4] ss:$36 sps:$4 sm:$0xff]  }
 0x3b1   : > { %2540 = vmatpush1.bf16.msra.mxu0 %v12411_v44  ;;  %2740 = vmatprep.subr.bf16.mxu1 %v12416_v45  ;;  %v12488_v44 = vld [vmem:[%s14767_s1 + $0x5b0] ss:$36 sps:$4 sm:$0xff]   ;;  %v12493_v45 = vld [vmem:[%s14767_s1 + $0x5fc] ss:$36 sps:$4 sm:$0xff]  }
 0x3b2   : > { %2541 = vmatprep.subr.bf16.mxu0 %v12419_v46  ;;  %v12491_v46 = vld [vmem:[%s14767_s1 + $0x5f8] ss:$36 sps:$4 sm:$0xff]  }
 0x3b4   : > { %2741 = vmatpush1.bf16.msra.mxu1 %v12414_v47  ;;  %v12496_v47 = vld [vmem:[%s14767_s1 + $0x644] ss:$36 sps:$4 sm:$0xff]  }
 0x3b5   : > { %2542 = vmatpush1.bf16.msra.mxu0 %v12417_v48  ;;  %11705 = vmatprep.subr.bf16.mxu1 %v14117_v53  ;;  %v12494_v48 = vld [vmem:[%s14767_s1 + $0x640] ss:$36 sps:$4 sm:$0xff]  }
 0x3b6   : > { %2597 = vmatprep.subr.bf16.mxu0 %v12422_v52  ;;  %v12499_v52 = vld [vmem:[%s14767_s1 + $0x68c] ss:$36 sps:$4 sm:$0xff]  }
 0x3b7   : > { %2759 = vmatmul.mubr.bf16.vlgmr.msra.gmra.mrb[4].mxu1 %v14942_v2 }
 0x3b8   : > { %2544 = vmatmul.mubr.bf16.vlgmr.msra.gmra.mrb[4].mxu0 %v14944_v3  ;;  %11706 = vmatpush3.bf16.msra.mxu1 %v12423_v42  ;;  %v12497_v42 = vld [vmem:[%s14767_s1 + $0x688] ss:$36 sps:$4 sm:$0xff]  }
 0x3b9   : > { %2598 = vmatpush1.bf16.msra.mxu0 %v12420_v43  ;;  %2629 = vmatprep.mubr.bf16.mxu0 %v14940_v1  ;;  %v12500_v43 = vld [vmem:[%s14767_s1 + $0x260] ss:$36 sps:$4 sm:$0xff]  }
 0x3ba   : > { %11707 = vmatprep.subr.bf16.mxu1 %v14117_v53  ;;  %2599 = vmatprep.subr.bf16.mxu0 %v12426_v54  ;;  %v12501_v54 = vld [vmem:[%s14767_s1 + $0x20] ss:$36 sps:$4 sm:$0xff]  }
 0x3bb   : > { %11721 = vmatprep.mubr.msk.bf16.mxu1 %vm14118_vm0, %v14117_v53 }
 0x3bc   : > { %11708 = vmatpush3.bf16.msra.mxu1 %v12427_v55  ;;  %v12502_v55 = vld [vmem:[%s14767_s1 + $0x2a8] ss:$36 sps:$4 sm:$0xff]  }
 0x3bd   : > { %2600 = vmatpush1.bf16.msra.mxu0 %v12424_v41  ;;  %11709 = vmatprep.subr.bf16.mxu1 %v14117_v53  ;;  %v12503_v41 = vld [vmem:[%s14767_s1 + $0x68] ss:$36 sps:$4 sm:$0xff]  }
 0x3be   : > { %2601 = vmatprep.subr.bf16.mxu0 %v12430_v56  ;;  %v12504_v56 = vld [vmem:[%s14767_s1 + $0x2f0] ss:$36 sps:$4 sm:$0xff]  }
 0x3c0   : > { %11710 = vmatpush3.bf16.msra.mxu1 %v12431_v57  ;;  %v12505_v57 = vld [vmem:[%s14767_s1 + $0xb0] ss:$36 sps:$4 sm:$0xff]  }
 0x3c1   : > { %2602 = vmatpush1.bf16.msra.mxu0 %v12428_v58  ;;  %11711 = vmatprep.subr.bf16.mxu1 %v14117_v53  ;;  %v12506_v58 = vld [vmem:[%s14767_s1 + $0x338] ss:$36 sps:$4 sm:$0xff]  }
 0x3c2   : > { %2603 = vmatprep.subr.bf16.mxu0 %v12434_v59  ;;  %v12507_v59 = vld [vmem:[%s14767_s1 + $0xf8] ss:$36 sps:$4 sm:$0xff]  }
 0x3c4   : > { %11712 = vmatpush3.bf16.msra.mxu1 %v12435_v60  ;;  %v12508_v60 = vld [vmem:[%s14767_s1 + $0x380] ss:$36 sps:$4 sm:$0xff]  }
 0x3c5   : > { %2604 = vmatpush1.bf16.msra.mxu0 %v12432_v61  ;;  %11713 = vmatprep.subr.bf16.mxu1 %v14117_v53  ;;  %v12511_v61 = vld [vmem:[%s14767_s1 + $0x188] ss:$36 sps:$4 sm:$0xff]  }
 0x3c6   : > { %2605 = vmatprep.subr.bf16.mxu0 %v12438_v50 }
 0x3c8   : > { %11714 = vmatpush3.bf16.msra.mxu1 %v12439_v62  ;;  %v12512_v62 = vld [vmem:[%s14767_s1 + $0x410] ss:$36 sps:$4 sm:$0xff]  }
 0x3c9   : > { %2606 = vmatpush1.bf16.msra.mxu0 %v12436_v63  ;;  %11715 = vmatprep.subr.bf16.mxu1 %v14117_v53 }
 0x3ca   : > { %2607 = vmatprep.subr.bf16.mxu0 %v12442_v51 }
 0x3cc   : > { %11716 = vmatpush3.bf16.msra.mxu1 %v12443_v0 }
 0x3cd   : > { %2608 = vmatpush1.bf16.msra.mxu0 %v12440_v49  ;;  %11717 = vmatprep.subr.bf16.mxu1 %v14117_v53  ;;  %v12513_v49 = vld [vmem:[%s14767_s1 + $0x1d0] ss:$36 sps:$4 sm:$0xff]  }
 0x3ce   : > { %2609 = vmatprep.subr.bf16.mxu0 %v12446_v4  ;;  %v12514_v4 = vld [vmem:[%s14767_s1 + $0x458] ss:$36 sps:$4 sm:$0xff]  }
 0x3d0   : > { %11718 = vmatpush3.bf16.msra.mxu1 %v12447_v5  ;;  %v12515_v5 = vld [vmem:[%s14767_s1 + $0x218] ss:$36 sps:$4 sm:$0xff]  }
 0x3d1   : > { %2610 = vmatpush1.bf16.msra.mxu0 %v12444_v6  ;;  %11719 = vmatprep.subr.bf16.mxu1 %v14117_v53 }
 0x3d2   : > { %2611 = vmatprep.subr.bf16.mxu0 %v12450_v7 }
 0x3d4   : > { %11720 = vmatpush3.bf16.msra.mxu1 %v12451_v8 }
 0x3d5   : > { %2612 = vmatpush1.bf16.msra.mxu0 %v12448_v9  ;;  %11755 = vmatprep.subr.bf16.mxu1 %v14117_v53 }
 0x3d6   : > { %2613 = vmatprep.subr.bf16.mxu0 %v12454_v10 }
 0x3d7   : > { %11722 = vmatmul.mubr.bf16.vlgmr.msra.gmra.mrb[8].mxu1 %v14942_v2 }
 0x3d8   : > { %11757 = vmatprep.mubr.msk.bf16.mxu1 %vm14118_vm0, %v14117_v53 }
 0x3d9   : > { %2614 = vmatpush1.bf16.msra.mxu0 %v12452_v11 }
 0x3da   : > { %2615 = vmatprep.subr.bf16.mxu0 %v12457_v12 }
 0x3dd   : > { %2616 = vmatpush1.bf16.msra.mxu0 %v12455_v13 }
 0x3de   : > { %2617 = vmatprep.subr.bf16.mxu0 %v12460_v14 }
 0x3e1   : > { %2618 = vmatpush1.bf16.msra.mxu0 %v12458_v15 }
 0x3e2   : > { %2619 = vmatprep.subr.bf16.mxu0 %v12463_v16 }
 0x3e5   : > { %2620 = vmatpush1.bf16.msra.mxu0 %v12461_v18 }
 0x3e6   : > { %2621 = vmatprep.subr.bf16.mxu0 %v12466_v19 }
 0x3e9   : > { %2622 = vmatpush1.bf16.msra.mxu0 %v12464_v20 }
 0x3ea   : > { %2623 = vmatprep.subr.bf16.mxu0 %v12469_v21 }
 0x3ed   : > { %2624 = vmatpush1.bf16.msra.mxu0 %v12467_v22 }
 0x3ee   : > { %2625 = vmatprep.subr.bf16.mxu0 %v12472_v23 }
 0x3f1   : > { %2626 = vmatpush1.bf16.msra.mxu0 %v12470_v24 }
 0x3f2   : > { %2627 = vmatprep.subr.bf16.mxu0 %v12475_v25 }
 0x3f5   : > { %2628 = vmatpush1.bf16.msra.mxu0 %v12473_v27 }
 0x3f6   : > { %2640 = vmatprep.subr.bf16.mxu0 %v12478_v28 }
 0x3f8   : > { %2630 = vmatmul.mubr.bf16.vlgmr.msra.gmra.mrb[8].mxu0 %v14944_v3 }
 0x3f9   : > { %2641 = vmatpush1.bf16.msra.mxu0 %v12476_v29  ;;  %2672 = vmatprep.mubr.bf16.mxu0 %v14116_v17 }
 0x3fa   : > { %2642 = vmatprep.subr.bf16.mxu0 %v12481_v31 }
 0x3fd   : > { %2643 = vmatpush1.bf16.msra.mxu0 %v12479_v35 }
 0x3fe   : > { %2644 = vmatprep.subr.bf16.mxu0 %v12484_v36 }
 0x401   : > { %2645 = vmatpush1.bf16.msra.mxu0 %v12482_v37 }
 0x402   : > { %2646 = vmatprep.subr.bf16.mxu0 %v12487_v38 }
 0x405   : > { %2647 = vmatpush1.bf16.msra.mxu0 %v12485_v39 }
 0x406   : > { %2648 = vmatprep.subr.bf16.mxu0 %v12490_v40 }
 0x409   : > { %2649 = vmatpush1.bf16.msra.mxu0 %v12488_v44 }
 0x40a   : > { %2650 = vmatprep.subr.bf16.mxu0 %v12493_v45 }
 0x40d   : > { %2651 = vmatpush1.bf16.msra.mxu0 %v12491_v46 }
 0x40e   : > { %2652 = vmatprep.subr.bf16.mxu0 %v12496_v47 }
 0x411   : > { %2653 = vmatpush1.bf16.msra.mxu0 %v12494_v48 }
 0x412   : > { %2654 = vmatprep.subr.bf16.mxu0 %v12499_v52 }
 0x415   : > { %2655 = vmatpush1.bf16.msra.mxu0 %v12497_v42 }
 0x416   : > { %11432 = vmatprep.subr.bf16.mxu0 %v12500_v43 }
 0x418   : > { %2673 = vmatmul.mubr.bf16.vlgmr.msra.gmra.mrb[8].mxu0 %v14942_v2  ;;  %v12509_v2 = vld [vmem:[%s14767_s1 + $0x140] ss:$36 sps:$4 sm:$0xff]  }
 0x419   : > { %11433 = vmatpush3.bf16.msra.mxu0 %v12501_v54  ;;  %2801 = vmatprep.mubr.bf16.mxu0 %v14940_v1  ;;  %v12510_v1 = vld [vmem:[%s14767_s1 + $0x3c8] ss:$36 sps:$4 sm:$0xff]  }
 0x41a   : > { %11434 = vmatprep.subr.bf16.mxu0 %v12502_v55 }
 0x41d   : > { %11435 = vmatpush3.bf16.msra.mxu0 %v12503_v41 }
 0x41e   : > { %11436 = vmatprep.subr.bf16.mxu0 %v12504_v56 }
 0x421   : > { %11437 = vmatpush3.bf16.msra.mxu0 %v12505_v57 }
 0x422   : > { %11438 = vmatprep.subr.bf16.mxu0 %v12506_v58 }
 0x425   : > { %11439 = vmatpush3.bf16.msra.mxu0 %v12507_v59  ;;  %v2863_v59 = vand.u32 127, %v1035_v26 }
 0x426   : > { %11440 = vmatprep.subr.bf16.mxu0 %v12508_v60 }
 0x427   : > { %vm15176_vm3 = vcmp.le.s32.totalorder %v2863_v59, %v14910_v30 }
 0x429   : > { %11441 = vmatpush3.bf16.msra.mxu0 %v12509_v2 }
 0x42a   : > { %v2588_v50 = vpop.f32.mrb[0].mxu1  ;;  %11442 = vmatprep.subr.bf16.mxu0 %v12510_v1 }
 0x42b   : > { %v2590_v63 = vpop.f32.mrb[1].mxu1 }
 0x42c   : > { %v2592_v51 = vpop.f32.mrb[2].mxu1 }
 0x42d   : > { %11443 = vmatpush3.bf16.msra.mxu0 %v12511_v61  ;;  %v2594_v0 = vpop.f32.mrb[3].mxu1 }
 0x42e   : > { %11444 = vmatprep.subr.bf16.mxu0 %v12512_v62 }
 0x431   : > { %11445 = vmatpush3.bf16.msra.mxu0 %v12513_v49 }
 0x432   : > { %11446 = vmatprep.subr.bf16.mxu0 %v12514_v4 }
 0x435   : > { %11447 = vmatpush3.bf16.msra.mxu0 %v12515_v5 }
 0x436   : > { %11725 = vmatprep.subr.bf16.mxu0 %v14117_v53 }
 0x438   : > { %2802 = vmatmul.mubr.bf16.vlgmr.msra.gmra.mrb[12].mxu0 %v14944_v3 }
 0x439   : > { %11727 = vmatprep.mubr.msk.bf16.mxu0 %vm14118_vm0, %v14117_v53 }
 0x44b   : > { %v2502_v6 = vpop.f32.mrb[0].mxu0 }
 0x44c   : > { %v2504_v7 = vpop.f32.mrb[1].mxu0 }
 0x44d   : > { %v2506_v8 = vpop.f32.mrb[2].mxu0 }
 0x44e   : > { %v15143_v9 = vpack.c.bf16 %v2506_v8, %v2502_v6  ;;  %v2508_v10 = vpop.f32.mrb[3].mxu0 }
 0x44f   : > { %v15145_v11 = vpack.c.bf16 %v2508_v10, %v2504_v7 }
 0x48a   : > { %v2760_v12 = vpop.f32.mrb[4].mxu1 }
 0x48b   : > { %v2545_v13 = vpop.f32.mrb[4].mxu0  ;;  %v2762_v14 = vpop.f32.mrb[5].mxu1 }
 0x48c   : > { %v2589_v15 = vadd.f32 %v2588_v50, %v2545_v13  ;;  %v2547_v16 = vpop.f32.mrb[5].mxu0  ;;  %v2764_v18 = vpop.f32.mrb[6].mxu1 }
 0x48d   : > { %v2591_v19 = vadd.f32 %v2590_v63, %v2547_v16  ;;  %v15147_v20 = vpack.c.bf16 %v2764_v18, %v2760_v12  ;;  %v2549_v3 = vpop.f32.mrb[6].mxu0  ;;  %v2766_v21 = vpop.f32.mrb[7].mxu1 }
 0x48e   : > { %v2593_v22 = vadd.f32 %v2592_v51, %v2549_v3  ;;  %v15149_v23 = vpack.c.bf16 %v2766_v21, %v2762_v14  ;;  %v2551_v24 = vpop.f32.mrb[7].mxu0 }
 0x48f   : > { %v2595_v25 = vadd.f32 %v2594_v0, %v2551_v24  ;;  %v2931_v35 = vsel %vm2929_vm1, %v15147_v20, 0 }
 0x490   : > { %v15151_v27 = vpack.c.bf16 %v2593_v22, %v2589_v15  ;;  %v3150_v28 = vsel %vm2929_vm1, %v15149_v23, 0 }
 0x491   : > { %v15155_v29 = vpack.c.bf16 %v2595_v25, %v2591_v19  ;;  %11756 = vmatpush3.bf16.msra.mxu1 %v3150_v28 }
 0x492   : > { %11767 = vmatprep.subr.bf16.mxu1 %v14117_v53 }
 0x493   : > { %v2870_v31 = vsel %vm2865_vm2, %v15155_v29, 0  ;;  %v3541_v28 = vrot.slane %v15155_v29, 4 }
 0x494   : > { %11726 = vmatpush3.bf16.xpose.msra.mxu0 %v2870_v31 }
 0x495   : > { %11731 = vmatprep.subr.bf16.mxu0 %v14117_v53 }
 0x49b   : > { %11728 = vmatmul.mubr.msk.bf16.vlgmr.msra.gmra.mrb[16].mxu0 %vm2865_vm2, %v15143_v9 }
 0x49c   : > { %11732 = vmatpush3.bf16.msra.mxu0 %v2931_v35  ;;  %11733 = vmatprep.mubr.msk.bf16.mxu0 %vm14118_vm0, %v14117_v53 }
 0x49d   : > { %11737 = vmatprep.subr.bf16.mxu0 %v14117_v53 }
 0x4aa   : > { %v2844_v36 = vpop.f32.mrb[8].mxu1 }
 0x4ab   : > { %v11723_v37 = vpop.f32.mrb[9].mxu1 }
 0x4ac   : > { %v2847_v38 = vpop.f32.mrb[10].mxu1 }
 0x4ad   : > { %v11724_v39 = vpop.f32.mrb[11].mxu1 }
 0x4eb   : > { %v2674_v40 = vpop.f32.mrb[8].mxu0 }
 0x4ec   : > { %v2676_v44 = vpop.f32.mrb[9].mxu0 }
 0x4ed   : > { %v2678_v45 = vpop.f32.mrb[10].mxu0 }
 0x4ee   : > { %v15168_v46 = vpack.c.bf16 %v2678_v45, %v2674_v40  ;;  %v2680_v47 = vpop.f32.mrb[11].mxu0  ;;  %v3540_v40 = vrot.slane %v15143_v9, 4  ;;  %v3978_v45 = vrot.slane %v15151_v27, 4 }
 0x4ef   : > { %v15170_v48 = vpack.c.bf16 %v2680_v47, %v2676_v44  ;;  %v3759_v44 = vrot.slane %v15145_v11, 4 }
 0x4f0   : > { %v3760_v31 = vrot.slane %v15168_v46, 4 }
 0x4f1   : > { %v3979_v35 = vrot.slane %v15170_v48, 4  ;;  %v3310_v59 = vsel %vm2865_vm2, %v15170_v48, 0 }
 0x50b   : > { %v11448_v52 = vpop.f32.mrb[12].mxu0 }
 0x50c   : > { %v11449_v42 = vpop.f32.mrb[13].mxu0 }
 0x50d   : > { %v11450_v43 = vadd.f32 %v11449_v42, %v11448_v52  ;;  %v11451_v54 = vpop.f32.mrb[14].mxu0 }
 0x50e   : > { %v11452_v55 = vpop.f32.mrb[15].mxu0 }
 0x50f   : > { %v2845_v41 = vadd.f32 %v11450_v43, %v2844_v36  ;;  %v11453_v56 = vadd.f32 %v11452_v55, %v11451_v54  ;;  %v3091_v55 = vsel %vm2865_vm2, %v15168_v46, 0 }
 0x511   : > { %v2848_v57 = vadd.f32 %v11453_v56, %v2847_v38 }
 0x513   : > { %v15172_v58 = vpack.c.bf16 %v2848_v57, %v2845_v41 }
 0x56e   : > { %v2906_v2 = vpop.f32.mrb[16].mxu0 }
 0x56f   : > { %v2912_v1 = vsel %vm15176_vm3, %v2906_v2, -1e+30  ;;  %v11729_v61 = vpop.f32.mrb[17].mxu0 }
 0x570   : > { %v2909_v50 = vpop.f32.mrb[18].mxu0  ;;  %v2914_v62 = vsel %vm2913_vm4, %v2912_v1, -inf  ;;  %v3546_v61 = vsel %vm2865_vm2, %v3541_v28, 0 }
 0x571   : > { %2915 = vmax.xlane.f32.xlu0 %v2914_v62  ;;  %v11730_v63 = vpop.f32.mrb[19].mxu0 }
 0x587   : > { %2977 = vrot.lane.b32.xlu0 %v15155_v29, %s14119_s30 }
 0x5fe   : > { %v2916_v26 = vpop.xlane.xlu0 %2915 }
 0x5ff   : > { %v2917_v51 = vsub.f32 %v2912_v1, %v2916_v26  ;;  %v3765_v26 = vsel %vm2865_vm2, %v3760_v31, 0 }
 0x601   : > { %v2918_v0 = vmul.f32 1.442695, %v2917_v51 }
 0x602   : > { %v2978_v8 = vpop.permute.xlu0 %2977 }
 0x603   : > { %13432 = vpow2.f32 %v2918_v0  ;;  %v2983_v12 = vsel %vm2865_vm2, %v2978_v8, 0 }
 0x60d   : > { %v13433_v49 = vpop.eup %13432 }
 0x60e   : > { %v2920_v4 = vsel %vm2913_vm4, %v13433_v49, 0.0 }
 0x60f   : > { %2921 = vadd.xlane.f32.xlu1 %v2920_v4 }
 0x620   : > { %2974 = vrot.lane.b32.xlu1 %v15143_v9, %s14119_s30 }
 0x69c   : > { %v2922_v5 = vpop.xlane.xlu1 %2921 }
 0x69d   : > { %13434 = vrcp.f32 %v2922_v5 }
 0x6a0   : > { %v2975_v13 = vpop.permute.xlu1 %2974 }
 0x6a7   : > { %v13435_v6 = vpop.eup %13434 }
 0x6a8   : > { %v2924_v7 = vmul.f32 %v13435_v6, %v13433_v49  ;;  %v3984_v49 = vsel %vm2865_vm2, %v3979_v35, 0 }
 0x6aa   : > { %v2925_v10 = vpack.c.bf16 %v2924_v7, %v2924_v7 }
 0x6ac   : > { %11734 = vmatmul.mubr.msk.bf16.vlgmr.msra.gmra.mrb[20].mxu0 %vm2913_vm4, %v2925_v10 }
 0x6ad   : > { %11738 = vmatpush3.bf16.xpose.msra.mxu0 %v2983_v12  ;;  %11739 = vmatprep.mubr.msk.bf16.mxu0 %vm14118_vm0, %v14117_v53 }
 0x6ae   : > { %11743 = vmatprep.subr.bf16.mxu0 %v14117_v53 }
 0x6b4   : > { %11740 = vmatmul.mubr.msk.bf16.vlgmr.msra.gmra.mrb[24].mxu0 %vm2865_vm2, %v2975_v13 }
 0x6b5   : > { %11745 = vmatprep.mubr.msk.bf16.mxu0 %vm14118_vm0, %v14117_v53 }
 0x77f   : > { %v15196_v14 = vpop.f32.mrb[20].mxu0 }
 0x780   : > { %v11735_v15 = vpop.f32.mrb[21].mxu0 }
 0x781   : > { %v2970_v16 = vpop.f32.mrb[22].mxu0 }
 0x782   : > { %v11736_v18 = vpop.f32.mrb[23].mxu0 }
 0x787   : > { %v3019_v19 = vpop.f32.mrb[24].mxu0 }
 0x788   : > { %v3025_v3 = vsel %vm15176_vm3, %v3019_v19, -1e+30  ;;  %v11741_v21 = vpop.f32.mrb[25].mxu0 }
 0x789   : > { %v3022_v22 = vpop.f32.mrb[26].mxu0  ;;  %v3026_v24 = vsel %vm2913_vm4, %v3025_v3, -inf }
 0x78a   : > { %3027 = vmax.xlane.f32.xlu1 %v3026_v24  ;;  %v11742_v25 = vpop.f32.mrb[27].mxu0 }
 0x79b   : > { %3196 = vrot.lane.b32.xlu1 %v15168_v46, %s14119_s30 }
 0x79f   : > { %3193 = vrot.lane.b32.xlu1 %v15145_v11, %s14119_s30 }
 0x7a3   : > { %3415 = vrot.lane.b32.xlu1 %v15170_v48, %s14119_s30 }
 0x7a7   : > { %3650 = vrot.lane.b32.xlu1 %v3541_v28, %s14119_s30 }
 0x7ab   : > { %3869 = vrot.lane.b32.xlu1 %v3760_v31, %s14119_s30 }
 0x7af   : > { %4088 = vrot.lane.b32.xlu1 %v3979_v35, %s14119_s30 }
 0x817   : > { %v3028_v36 = vpop.xlane.xlu1 %3027 }
 0x818   : > { %v3029_v37 = vsub.f32 %v3025_v3, %v3028_v36 }
 0x81a   : > { %v3030_v38 = vmul.f32 1.442695, %v3029_v37 }
 0x81b   : > { %v3197_v41 = vpop.permute.xlu1 %3196 }
 0x81c   : > { %13436 = vpow2.f32 %v3030_v38  ;;  %v3202_v56 = vsel %vm2865_vm2, %v3197_v41, 0 }
 0x81f   : > { %v3194_v57 = vpop.permute.xlu1 %3193 }
 0x823   : > { %v3416_v2 = vpop.permute.xlu1 %3415 }
 0x826   : > { %v13437_v39 = vpop.eup %13436 }
 0x827   : > { %v3032_v29 = vsel %vm2913_vm4, %v13437_v39, 0.0  ;;  %v3651_v50 = vpop.permute.xlu1 %3650 }
 0x828   : > { %3033 = vadd.xlane.f32.xlu0 %v3032_v29  ;;  %v3656_v62 = vsel %vm2865_vm2, %v3651_v50, 0 }
 0x82b   : > { %v3870_v51 = vpop.permute.xlu1 %3869 }
 0x82c   : > { %v3875_v0 = vsel %vm2865_vm2, %v3870_v51, 0 }
 0x82f   : > { %v4089_v4 = vpop.permute.xlu1 %4088 }
 0x830   : > { %v4094_v5 = vsel %vm2865_vm2, %v4089_v4, 0 }
 0x83e   : > { %3039 = vrot.lane.b32.xlu0 %v15147_v20, %s14119_s30 }
 0x842   : > { %3412 = vrot.lane.b32.xlu0 %v15151_v27, %s14119_s30 }
 0x846   : > { %3648 = vrot.lane.b32.xlu0 %v3540_v40, %s14119_s30 }
 0x84a   : > { %3867 = vrot.lane.b32.xlu0 %v3759_v44, %s14119_s30 }
 0x84e   : > { %4086 = vrot.lane.b32.xlu0 %v3978_v45, %s14119_s30 }
 0x8b5   : > { %v3034_v47 = vpop.xlane.xlu0 %3033 }
 0x8b6   : > { %13438 = vrcp.f32 %v3034_v47 }
 0x8b9   : > { %v3040_v52 = vpop.permute.xlu0 %3039 }
 0x8ba   : > { %v3045_v42 = vsel %vm2929_vm1, %v3040_v52, 0 }
 0x8bb   : > { %11744 = vmatpush3.bf16.msra.mxu0 %v3045_v42 }
 0x8bc   : > { %11749 = vmatprep.subr.bf16.mxu0 %v14117_v53 }
 0x8bd   : > { %v3413_v1 = vpop.permute.xlu0 %3412 }
 0x8c0   : > { %v13439_v9 = vpop.eup %13438 }
 0x8c1   : > { %v3036_v43 = vmul.f32 %v13439_v9, %v13437_v39  ;;  %v3649_v63 = vpop.permute.xlu0 %3648 }
 0x8c3   : > { %v3037_v54 = vpack.c.bf16 %v3036_v43, %v3036_v43 }
 0x8c5   : > { %11746 = vmatmul.mubr.msk.bf16.vlgmr.msra.gmra.mrb[28].mxu0 %vm2913_vm4, %v3037_v54  ;;  %v3868_v46 = vpop.permute.xlu0 %3867 }
 0x8c6   : > { %11750 = vmatpush3.bf16.xpose.msra.mxu0 %v3091_v55  ;;  %11751 = vmatprep.mubr.msk.bf16.mxu0 %vm14118_vm0, %v14117_v53 }
 0x8c7   : > { %11761 = vmatprep.subr.bf16.mxu0 %v14117_v53 }
 0x8c9   : > { %v4087_v48 = vpop.permute.xlu0 %4086 }
 0x8cd   : > { %11752 = vmatmul.mubr.msk.bf16.vlgmr.msra.gmra.mrb[32].mxu0 %vm2865_vm2, %v15145_v11  ;;  %v3421_v11 = vsel %vm2865_vm2, %v3416_v2, 0 }
 0x8ce   : > { %11762 = vmatpush3.bf16.xpose.msra.mxu0 %v3202_v56  ;;  %11763 = vmatprep.mubr.msk.bf16.mxu0 %vm14118_vm0, %v14117_v53 }
 0x8cf   : > { %11773 = vmatprep.subr.bf16.mxu0 %v14117_v53 }
 0x8d5   : > { %11764 = vmatmul.mubr.msk.bf16.vlgmr.msra.gmra.mrb[36].mxu0 %vm2865_vm2, %v3194_v57 }
 0x8d6   : > { %11774 = vmatpush3.bf16.xpose.msra.mxu0 %v3310_v59  ;;  %11775 = vmatprep.mubr.msk.bf16.mxu0 %vm14118_vm0, %v14117_v53 }
 0x8d7   : > { %11785 = vmatprep.subr.bf16.mxu0 %v14117_v53 }
 0x8dd   : > { %11776 = vmatmul.mubr.msk.bf16.vlgmr.msra.gmra.mrb[40].mxu0 %vm2865_vm2, %v15151_v27 }
 0x8de   : > { %11786 = vmatpush3.bf16.xpose.msra.mxu0 %v3421_v11  ;;  %11787 = vmatprep.mubr.msk.bf16.mxu0 %vm14118_vm0, %v14117_v53 }
 0x8df   : > { %11797 = vmatprep.subr.bf16.mxu0 %v14117_v53 }
 0x8e5   : > { %11788 = vmatmul.mubr.msk.bf16.vlgmr.msra.gmra.mrb[44].mxu0 %vm2865_vm2, %v3413_v1 }
 0x8e6   : > { %11798 = vmatpush3.bf16.xpose.msra.mxu0 %v3546_v61  ;;  %11799 = vmatprep.mubr.msk.bf16.mxu0 %vm14118_vm0, %v14117_v53 }
 0x8e7   : > { %11809 = vmatprep.subr.bf16.mxu0 %v14117_v53 }
 0x8ed   : > { %11800 = vmatmul.mubr.msk.bf16.vlgmr.msra.gmra.mrb[48].mxu0 %vm2865_vm2, %v3540_v40 }
 0x8ee   : > { %11810 = vmatpush3.bf16.xpose.msra.mxu0 %v3656_v62  ;;  %11811 = vmatprep.mubr.msk.bf16.mxu0 %vm14118_vm0, %v14117_v53 }
 0x8ef   : > { %11821 = vmatprep.subr.bf16.mxu0 %v14117_v53 }
 0x8f5   : > { %11812 = vmatmul.mubr.msk.bf16.vlgmr.msra.gmra.mrb[52].mxu0 %vm2865_vm2, %v3649_v63 }
 0x8f6   : > { %11822 = vmatpush3.bf16.xpose.msra.mxu0 %v3765_v26  ;;  %11823 = vmatprep.mubr.msk.bf16.mxu0 %vm14118_vm0, %v14117_v53 }
 0x8f7   : > { %11833 = vmatprep.subr.bf16.mxu0 %v14117_v53 }
 0x8fd   : > { %11824 = vmatmul.mubr.msk.bf16.vlgmr.msra.gmra.mrb[56].mxu0 %vm2865_vm2, %v3759_v44 }
 0x8fe   : > { %11834 = vmatpush3.bf16.xpose.msra.mxu0 %v3875_v0  ;;  %11835 = vmatprep.mubr.msk.bf16.mxu0 %vm14118_vm0, %v14117_v53 }
 0x8ff   : > { %11845 = vmatprep.subr.bf16.mxu0 %v14117_v53 }
 0x905   : > { %11836 = vmatmul.mubr.msk.bf16.vlgmr.msra.gmra.mrb[60].mxu0 %vm2865_vm2, %v3868_v46 }
 0x906   : > { %11846 = vmatpush3.bf16.xpose.msra.mxu0 %v3984_v49  ;;  %11847 = vmatprep.mubr.msk.bf16.mxu0 %vm14118_vm0, %v14117_v53 }
 0x907   : > { %11857 = vmatprep.subr.bf16.mxu0 %v14117_v53 }
 0x90d   : > { %11848 = vmatmul.mubr.msk.bf16.vlgmr.msra.gmra.mrb[64].mxu0 %vm2865_vm2, %v3978_v45 }
 0x90e   : > { %11858 = vmatpush3.bf16.xpose.msra.mxu0 %v4094_v5  ;;  %11859 = vmatprep.mubr.msk.bf16.mxu0 %vm14118_vm0, %v14117_v53 }
 0x915   : > { %11860 = vmatmul.mubr.msk.bf16.vlgmr.msra.gmra.mrb[68].mxu0 %vm2865_vm2, %v4087_v48 }
 0x998   : > { %v15292_v6 = vpop.f32.mrb[28].mxu0 }
 0x999   : > { %v11747_v7 = vpop.f32.mrb[29].mxu0 }
 0x99a   : > { %v3084_v8 = vpop.f32.mrb[30].mxu0 }
 0x99b   : > { %v11748_v10 = vpop.f32.mrb[31].mxu0 }
 0x9a0   : > { %v3127_v12 = vpop.f32.mrb[32].mxu0 }
 0x9a1   : > { %v15296_v13 = vsel %vm15176_vm3, %v3127_v12, -1e+30  ;;  %v11753_v27 = vpop.f32.mrb[33].mxu0 }
 0x9a2   : > { %v3130_v15 = vpop.f32.mrb[34].mxu0  ;;  %v3134_v16 = vsel %vm2913_vm4, %v15296_v13, -inf }
 0x9a3   : > { %3135 = vmax.xlane.f32.xlu1 %v3134_v16  ;;  %v11754_v18 = vpop.f32.mrb[35].mxu0 }
 0x9a8   : > { %v3238_v19 = vpop.f32.mrb[36].mxu0 }
 0x9a9   : > { %v15302_v3 = vsel %vm15176_vm3, %v3238_v19, -1e+30  ;;  %v11765_v21 = vpop.f32.mrb[37].mxu0 }
 0x9aa   : > { %v3241_v22 = vpop.f32.mrb[38].mxu0  ;;  %v3245_v24 = vsel %vm2913_vm4, %v15302_v3, -inf }
 0x9ab   : > { %3246 = vmax.xlane.f32.xlu0 %v3245_v24  ;;  %v11766_v25 = vpop.f32.mrb[39].mxu0 }
 0x9b0   : > { %v3346_v28 = vpop.f32.mrb[40].mxu0 }
 0x9b1   : > { %v15308_v31 = vsel %vm15176_vm3, %v3346_v28, -1e+30  ;;  %v11777_v35 = vpop.f32.mrb[41].mxu0 }
 0x9b2   : > { %v3349_v36 = vpop.f32.mrb[42].mxu0  ;;  %v3353_v37 = vsel %vm2913_vm4, %v15308_v31, -inf }
 0x9b3   : > { %3354 = vmax.xlane.f32.xlu0 %v3353_v37  ;;  %v11778_v38 = vpop.f32.mrb[43].mxu0 }
 0x9b8   : > { %v3457_v39 = vpop.f32.mrb[44].mxu0 }
 0x9b9   : > { %v15314_v29 = vsel %vm15176_vm3, %v3457_v39, -1e+30  ;;  %v11789_v40 = vpop.f32.mrb[45].mxu0 }
 0x9ba   : > { %v3460_v44 = vpop.f32.mrb[46].mxu0  ;;  %v3464_v45 = vsel %vm2913_vm4, %v15314_v29, -inf }
 0x9bb   : > { %3465 = vmax.xlane.f32.xlu0 %v3464_v45  ;;  %v11790_v47 = vpop.f32.mrb[47].mxu0 }
 0x9c0   : > { %v3582_v52 = vpop.f32.mrb[48].mxu0 }
 0x9c1   : > { %v15320_v42 = vsel %vm15176_vm3, %v3582_v52, -1e+30  ;;  %v11801_v9 = vpop.f32.mrb[49].mxu0 }
 0x9c2   : > { %v3585_v43 = vpop.f32.mrb[50].mxu0  ;;  %v3589_v54 = vsel %vm2913_vm4, %v15320_v42, -inf }
 0x9c3   : > { %3590 = vmax.xlane.f32.xlu1 %v3589_v54  ;;  %v11802_v55 = vpop.f32.mrb[51].mxu0 }
 0x9c8   : > { %v3692_v41 = vpop.f32.mrb[52].mxu0 }
 0x9c9   : > { %v15326_v56 = vsel %vm15176_vm3, %v3692_v41, -1e+30  ;;  %v11813_v57 = vpop.f32.mrb[53].mxu0 }
 0x9ca   : > { %v3695_v59 = vpop.f32.mrb[54].mxu0  ;;  %v3699_v2 = vsel %vm2913_vm4, %v15326_v56, -inf }
 0x9cb   : > { %3700 = vmax.xlane.f32.xlu0 %v3699_v2  ;;  %v11814_v11 = vpop.f32.mrb[55].mxu0 }
 0x9d0   : > { %v3801_v1 = vpop.f32.mrb[56].mxu0 }
 0x9d1   : > { %v15332_v61 = vsel %vm15176_vm3, %v3801_v1, -1e+30  ;;  %v11825_v50 = vpop.f32.mrb[57].mxu0 }
 0x9d2   : > { %v3804_v62 = vpop.f32.mrb[58].mxu0  ;;  %v3808_v63 = vsel %vm2913_vm4, %v15332_v61, -inf }
 0x9d3   : > { %3809 = vmax.xlane.f32.xlu1 %v3808_v63  ;;  %v11826_v26 = vpop.f32.mrb[59].mxu0 }
 0x9d8   : > { %v3911_v51 = vpop.f32.mrb[60].mxu0 }
 0x9d9   : > { %v15338_v0 = vsel %vm15176_vm3, %v3911_v51, -1e+30  ;;  %v11837_v46 = vpop.f32.mrb[61].mxu0 }
 0x9da   : > { %v3914_v49 = vpop.f32.mrb[62].mxu0  ;;  %v3918_v4 = vsel %vm2913_vm4, %v15338_v0, -inf }
 0x9db   : > { %3919 = vmax.xlane.f32.xlu0 %v3918_v4  ;;  %v11838_v5 = vpop.f32.mrb[63].mxu0 }
 0x9dc   : > { %v3601_v5 = vrot.slane %v15147_v20, 4 }
 0x9e0   : > { %v4020_v48 = vpop.f32.mrb[64].mxu0 }
 0x9e1   : > { %v15344_v7 = vsel %vm15176_vm3, %v4020_v48, -1e+30  ;;  %v11849_v8 = vpop.f32.mrb[65].mxu0  ;;  %v3820_v48 = vrot.slane %v15149_v23, 4 }
 0x9e2   : > { %v4023_v10 = vpop.f32.mrb[66].mxu0  ;;  %v4027_v12 = vsel %vm2913_vm4, %v15344_v7, -inf }
 0x9e3   : > { %4028 = vmax.xlane.f32.xlu1 %v4027_v12  ;;  %v11850_v27 = vpop.f32.mrb[67].mxu0 }
 0x9e8   : > { %v4130_v15 = vpop.f32.mrb[68].mxu0 }
 0x9e9   : > { %v15350_v16 = vsel %vm15176_vm3, %v4130_v15, -1e+30  ;;  %v11861_v18 = vpop.f32.mrb[69].mxu0 }
 0x9ea   : > { %v4133_v19 = vpop.f32.mrb[70].mxu0  ;;  %v4137_v21 = vsel %vm2913_vm4, %v15350_v16, -inf }
 0x9eb   : > { %4138 = vmax.xlane.f32.xlu1 %v4137_v21  ;;  %v11862_v22 = vpop.f32.mrb[71].mxu0 }
 0xa30   : > { %v3136_v24 = vpop.xlane.xlu1 %3135 }
 0xa31   : > { %v3137_v25 = vsub.f32 %v15296_v13, %v3136_v24  ;;  %v4039_v24 = vrot.slane %v15172_v58, 4 }
 0xa33   : > { %v3138_v28 = vmul.f32 1.442695, %v3137_v25 }
 0xa35   : > { %13440 = vpow2.f32 %v3138_v28 }
 0xa38   : > { %v3247_v35 = vpop.xlane.xlu0 %3246 }
 0xa39   : > { %v3248_v36 = vsub.f32 %v15302_v3, %v3247_v35 }
 0xa3b   : > { %v3249_v37 = vmul.f32 1.442695, %v3248_v36 }
 0xa3d   : > { %13442 = vpow2.f32 %v3249_v37 }
 0xa3f   : > { %v15356_v60 = vpop.eup %13440 }
 0xa40   : > { %v3355_v38 = vpop.xlane.xlu0 %3354  ;;  %v3140_v39 = vsel %vm2913_vm4, %v15356_v60, 0.0 }
 0xa41   : > { %v3356_v40 = vsub.f32 %v15308_v31, %v3355_v38  ;;  %3141 = vadd.xlane.f32.xlu0 %v3140_v39 }
 0xa43   : > { %v3357_v44 = vmul.f32 1.442695, %v3356_v40 }
 0xa45   : > { %13444 = vpow2.f32 %v3357_v44 }
 0xa47   : > { %v15361_v45 = vpop.eup %13442 }
 0xa48   : > { %v3466_v13 = vpop.xlane.xlu0 %3465  ;;  %v3251_v47 = vsel %vm2913_vm4, %v15361_v45, 0.0 }
 0xa49   : > { %v3467_v3 = vsub.f32 %v15314_v29, %v3466_v13  ;;  %3252 = vadd.xlane.f32.xlu0 %v3251_v47  ;;  %v3369_v47 = vsel %vm2929_vm1, %v15172_v58, 0 }
 0xa4b   : > { %v3468_v52 = vmul.f32 1.442695, %v3467_v3 }
 0xa4d   : > { %13446 = vpow2.f32 %v3468_v52 }
 0xa4f   : > { %v15366_v9 = vpop.eup %13444 }
 0xa50   : > { %v3359_v43 = vsel %vm2913_vm4, %v15366_v9, 0.0  ;;  %v3591_v55 = vpop.xlane.xlu1 %3590 }
 0xa51   : > { %3360 = vadd.xlane.f32.xlu1 %v3359_v43  ;;  %v3592_v29 = vsub.f32 %v15320_v42, %v3591_v55 }
 0xa53   : > { %v3593_v57 = vmul.f32 1.442695, %v3592_v29 }
 0xa55   : > { %13448 = vpow2.f32 %v3593_v57 }
 0xa57   : > { %v15370_v31 = vpop.eup %13446 }
 0xa58   : > { %v3470_v54 = vsel %vm2913_vm4, %v15370_v31, 0.0  ;;  %v3701_v41 = vpop.xlane.xlu0 %3700 }
 0xa59   : > { %3471 = vadd.xlane.f32.xlu0 %v3470_v54  ;;  %v3702_v59 = vsub.f32 %v15326_v56, %v3701_v41 }
 0xa5b   : > { %v3703_v50 = vmul.f32 1.442695, %v3702_v59 }
 0xa5d   : > { %13450 = vpow2.f32 %v3703_v50 }
 0xa5f   : > { %v15382_v51 = vpop.eup %13448 }
 0xa60   : > { %v3810_v2 = vpop.xlane.xlu1 %3809  ;;  %v3595_v42 = vsel %vm2913_vm4, %v15382_v51, 0.0 }
 0xa61   : > { %v3811_v1 = vsub.f32 %v15332_v61, %v3810_v2 }
 0xa62   : > { %3477 = vrot.lane.b32.xlu1 %v15172_v58, %s14119_s30 }
 0xa63   : > { %v3812_v63 = vmul.f32 1.442695, %v3811_v1 }
 0xa65   : > { %13452 = vpow2.f32 %v3812_v63 }
 0xa67   : > { %v15386_v46 = vpop.eup %13450 }
 0xa68   : > { %v3920_v11 = vpop.xlane.xlu0 %3919  ;;  %v3705_v61 = vsel %vm2913_vm4, %v15386_v46, 0.0 }
 0xa69   : > { %v3921_v62 = vsub.f32 %v15338_v0, %v3920_v11 }
 0xa6b   : > { %v3922_v26 = vmul.f32 1.442695, %v3921_v62 }
 0xa6d   : > { %13454 = vpow2.f32 %v3922_v26 }
 0xa6f   : > { %3258 = vrot.lane.b32.xlu0 %v15149_v23, %s14119_s30  ;;  %v15388_v56 = vpop.eup %13452 }
 0xa70   : > { %v3814_v4 = vsel %vm2913_vm4, %v15388_v56, 0.0  ;;  %v4029_v8 = vpop.xlane.xlu1 %4028 }
 0xa71   : > { %v4030_v10 = vsub.f32 %v15344_v7, %v4029_v8 }
 0xa73   : > { %v4031_v27 = vmul.f32 1.442695, %v4030_v10 }
 0xa75   : > { %13456 = vpow2.f32 %v4031_v27 }
 0xa77   : > { %v15392_v49 = vpop.eup %13454 }
 0xa78   : > { %v3924_v0 = vsel %vm2913_vm4, %v15392_v49, 0.0  ;;  %v4139_v12 = vpop.xlane.xlu1 %4138 }
 0xa79   : > { %v4140_v15 = vsub.f32 %v15350_v16, %v4139_v12 }
 0xa7b   : > { %v4141_v18 = vmul.f32 1.442695, %v4140_v15 }
 0xa7d   : > { %13458 = vpow2.f32 %v4141_v18 }
 0xa7f   : > { %v15406_v19 = vpop.eup %13456 }
 0xa80   : > { %v4033_v20 = vsel %vm2913_vm4, %v15406_v19, 0.0 }
 0xa86   : > { %3596 = vadd.xlane.f32.xlu1 %v3595_v42 }
 0xa87   : > { %v15410_v21 = vpop.eup %13458 }
 0xa88   : > { %v4143_v22 = vsel %vm2913_vm4, %v15410_v21, 0.0 }
 0xa8a   : > { %3706 = vadd.xlane.f32.xlu1 %v3705_v61  ;;  %v3825_v61 = vsel %vm2929_vm1, %v3820_v48, 0 }
 0xa8e   : > { %3925 = vadd.xlane.f32.xlu0 %v3924_v0  ;;  %3815 = vadd.xlane.f32.xlu1 %v3814_v4 }
 0xa9f   : > { %3711 = vrot.lane.b32.xlu1 %v3601_v5, %s14119_s30 }
 0xaa4   : > { %3930 = vrot.lane.b32.xlu0 %v3820_v48, %s14119_s30 }
 0xac3   : > { %4034 = vadd.xlane.f32.xlu1 %v4033_v20 }
 0xac7   : > { %4144 = vadd.xlane.f32.xlu1 %v4143_v22 }
 0xace   : > { %v3142_v7 = vpop.xlane.xlu0 %3141 }
 0xacf   : > { %13460 = vrcp.f32 %v3142_v7 }
 0xad6   : > { %v3253_v25 = vpop.xlane.xlu0 %3252 }
 0xad7   : > { %13462 = vrcp.f32 %v3253_v25 }
 0xad8   : > { %4149 = vrot.lane.b32.xlu1 %v4039_v24, %s14119_s30 }
 0xad9   : > { %v13461_v16 = vpop.eup %13460 }
 0xada   : > { %v3144_v28 = vmul.f32 %v13461_v16, %v15356_v60 }
 0xadc   : > { %v3145_v35 = vpack.c.bf16 %v3144_v28, %v3144_v28  ;;  %v12516_v28 = vld [vmem:[%s14774_s6] ss:$12 sps:$4 sm:$0xff]  }
 0xade   : > { %11758 = vmatmul.mubr.msk.bf16.vlgmr.msra.gmra.mrb[12].mxu1 %vm2913_vm4, %v3145_v35  ;;  %v3361_v36 = vpop.xlane.xlu1 %3360  ;;  %v12518_v35 = vld [vmem:[%s14774_s6 + $0x4] ss:$12 sps:$4 sm:$0xff]  }
 0xadf   : > { %11769 = vmatprep.mubr.msk.bf16.mxu1 %vm14118_vm0, %v14117_v53  ;;  %13464 = vrcp.f32 %v3361_v36  ;;  %v12521_v36 = vld [vmem:[%s14774_s6 + $0x1c] ss:$12 sps:$4 sm:$0xff]   ;;  %4695 = vmatprep.subr.bf16.mxu0 %v12518_v35 }
 0xae0   : > { %4696 = vmatpush1.bf16.msra.mxu0 %v12516_v28 }
 0xae1   : > { %v13463_v37 = vpop.eup %13462  ;;  %4697 = vmatprep.subr.bf16.mxu0 %v12521_v36 }
 0xae2   : > { %v3255_v39 = vmul.f32 %v13463_v37, %v15361_v45  ;;  %v3478_v3 = vpop.permute.xlu1 %3477  ;;  %v12519_v37 = vld [vmem:[%s14774_s6 + $0x18] ss:$12 sps:$4 sm:$0xff]  }
 0xae3   : > { %v3483_v54 = vsel %vm2929_vm1, %v3478_v3, 0  ;;  %v12548_v3 = vld [vmem:[%s14774_s6 + $0xe0] ss:$12 sps:$4 sm:$0xff]  }
 0xae4   : > { %v3256_v13 = vpack.c.bf16 %v3255_v39, %v3255_v39  ;;  %4698 = vmatpush1.bf16.msra.mxu0 %v12519_v37 }
 0xae6   : > { %v3472_v38 = vpop.xlane.xlu0 %3471 }
 0xae7   : > { %13466 = vrcp.f32 %v3472_v38  ;;  %v12524_v38 = vld [vmem:[%s14774_s6 + $0x34] ss:$12 sps:$4 sm:$0xff]  }
 0xae8   : > { %4699 = vmatprep.subr.bf16.mxu0 %v12524_v38 }
 0xae9   : > { %v13465_v60 = vpop.eup %13464 }
 0xaea   : > { %v3259_v40 = vpop.permute.xlu0 %3258  ;;  %v3363_v45 = vmul.f32 %v13465_v60, %v15366_v9  ;;  %v3606_v9 = vsel %vm2929_vm1, %v3601_v5, 0  ;;  %v12543_v60 = vld [vmem:[%s14774_s6 + $0xc8] ss:$12 sps:$4 sm:$0xff]  }
 0xaeb   : > { %v3264_v44 = vsel %vm2929_vm1, %v3259_v40, 0 }
 0xaec   : > { %11768 = vmatpush3.bf16.msra.mxu1 %v3264_v44  ;;  %v3364_v52 = vpack.c.bf16 %v3363_v45, %v3363_v45  ;;  %v12522_v44 = vld [vmem:[%s14774_s6 + $0x30] ss:$12 sps:$4 sm:$0xff]   ;;  %v12527_v45 = vld [vmem:[%s14774_s6 + $0x4c] ss:$12 sps:$4 sm:$0xff]  }
 0xaed   : > { %11779 = vmatprep.subr.bf16.mxu1 %v14117_v53  ;;  %4700 = vmatpush1.bf16.msra.mxu0 %v12522_v44  ;;  %v12572_v44 = vld [vmem:[%s14774_s6 + $0x154] ss:$12 sps:$4 sm:$0xff]  }
 0xaee   : > { %4701 = vmatprep.subr.bf16.mxu0 %v12527_v45 }
 0xaef   : > { %11770 = vmatmul.mubr.msk.bf16.vlgmr.msra.gmra.mrb[16].mxu1 %vm2913_vm4, %v3256_v13 }
 0xaf0   : > { %11780 = vmatpush3.bf16.msra.mxu1 %v3369_v47  ;;  %11781 = vmatprep.mubr.msk.bf16.mxu1 %vm14118_vm0, %v14117_v53  ;;  %v12544_v47 = vld [vmem:[%s14774_s6 + $0x8] ss:$12 sps:$4 sm:$0xff]  }
 0xaf1   : > { %11791 = vmatprep.subr.bf16.mxu1 %v14117_v53  ;;  %v13467_v43 = vpop.eup %13466 }
 0xaf2   : > { %v3474_v55 = vmul.f32 %v13467_v43, %v15370_v31  ;;  %v12525_v43 = vld [vmem:[%s14774_s6 + $0x48] ss:$12 sps:$4 sm:$0xff]  }
 0xaf3   : > { %4702 = vmatpush1.bf16.msra.mxu0 %v12525_v43 }
 0xaf4   : > { %v3475_v29 = vpack.c.bf16 %v3474_v55, %v3474_v55 }
 0xaf7   : > { %11782 = vmatmul.mubr.msk.bf16.vlgmr.msra.gmra.mrb[20].mxu1 %vm2913_vm4, %v3364_v52  ;;  %v12549_v52 = vld [vmem:[%s14774_s6 + $0x20] ss:$12 sps:$4 sm:$0xff]  }
 0xaf8   : > { %11792 = vmatpush3.bf16.msra.mxu1 %v3483_v54  ;;  %11793 = vmatprep.mubr.msk.bf16.mxu1 %vm14118_vm0, %v14117_v53  ;;  %v12553_v54 = vld [vmem:[%s14774_s6 + $0xf8] ss:$12 sps:$4 sm:$0xff]  }
 0xaf9   : > { %11803 = vmatprep.subr.bf16.mxu1 %v14117_v53 }
 0xaff   : > { %11794 = vmatmul.mubr.msk.bf16.vlgmr.msra.gmra.mrb[24].mxu1 %vm2913_vm4, %v3475_v29  ;;  %v12530_v29 = vld [vmem:[%s14774_s6 + $0x64] ss:$12 sps:$4 sm:$0xff]  }
 0xb00   : > { %11804 = vmatpush3.bf16.msra.mxu1 %v3606_v9  ;;  %11805 = vmatprep.mubr.msk.bf16.mxu1 %vm14118_vm0, %v14117_v53 }
 0xb01   : > { %11815 = vmatprep.subr.bf16.mxu1 %v14117_v53  ;;  %4703 = vmatprep.subr.bf16.mxu0 %v12530_v29  ;;  %v12579_v29 = vld [vmem:[%s14774_s6 + $0xb0] ss:$12 sps:$4 sm:$0xff]  }
 0xb13   : > { %v3597_v41 = vpop.xlane.xlu1 %3596 }
 0xb14   : > { %13468 = vrcp.f32 %v3597_v41 }
 0xb17   : > { %v3707_v57 = vpop.xlane.xlu1 %3706 }
 0xb18   : > { %13470 = vrcp.f32 %v3707_v57  ;;  %v12554_v57 = vld [vmem:[%s14774_s6 + $0x38] ss:$12 sps:$4 sm:$0xff]  }
 0xb1b   : > { %v3816_v59 = vpop.xlane.xlu1 %3815  ;;  %v3926_v26 = vpop.xlane.xlu0 %3925 }
 0xb1c   : > { %13472 = vrcp.f32 %v3816_v59 }
 0xb1d   : > { %13474 = vrcp.f32 %v3926_v26  ;;  %v12536_v26 = vld [vmem:[%s14774_s6 + $0x94] ss:$12 sps:$4 sm:$0xff]  }
 0xb1e   : > { %v13469_v2 = vpop.eup %13468 }
 0xb1f   : > { %v3599_v31 = vmul.f32 %v13469_v2, %v15382_v51  ;;  %v3712_v11 = vpop.permute.xlu1 %3711  ;;  %v12528_v2 = vld [vmem:[%s14774_s6 + $0x60] ss:$12 sps:$4 sm:$0xff]  }
 0xb20   : > { %v3717_v62 = vsel %vm2929_vm1, %v3712_v11, 0  ;;  %v12533_v11 = vld [vmem:[%s14774_s6 + $0x7c] ss:$12 sps:$4 sm:$0xff]   ;;  %4704 = vmatpush1.bf16.msra.mxu0 %v12528_v2 }
 0xb21   : > { %v3600_v1 = vpack.c.bf16 %v3599_v31, %v3599_v31  ;;  %v12558_v31 = vld [vmem:[%s14774_s6 + $0x110] ss:$12 sps:$4 sm:$0xff]   ;;  %4705 = vmatprep.subr.bf16.mxu0 %v12533_v11 }
 0xb22   : > { %v13471_v50 = vpop.eup %13470 }
 0xb23   : > { %11806 = vmatmul.mubr.msk.bf16.vlgmr.msra.gmra.mrb[28].mxu1 %vm2913_vm4, %v3600_v1  ;;  %v3709_v63 = vmul.f32 %v13471_v50, %v15386_v46  ;;  %v3931_v46 = vpop.permute.xlu0 %3930  ;;  %v12559_v1 = vld [vmem:[%s14774_s6 + $0x50] ss:$12 sps:$4 sm:$0xff]   ;;  %v12531_v50 = vld [vmem:[%s14774_s6 + $0x78] ss:$12 sps:$4 sm:$0xff]  }
 0xb24   : > { %11816 = vmatpush3.bf16.msra.mxu1 %v3717_v62  ;;  %11817 = vmatprep.mubr.msk.bf16.mxu1 %vm14118_vm0, %v14117_v53  ;;  %v3936_v8 = vsel %vm2929_vm1, %v3931_v46, 0  ;;  %v12563_v62 = vld [vmem:[%s14774_s6 + $0x128] ss:$12 sps:$4 sm:$0xff]   ;;  %v12534_v46 = vld [vmem:[%s14774_s6 + $0x90] ss:$12 sps:$4 sm:$0xff]  }
 0xb25   : > { %11827 = vmatprep.subr.bf16.mxu1 %v14117_v53  ;;  %v3710_v42 = vpack.c.bf16 %v3709_v63, %v3709_v63  ;;  %4706 = vmatpush1.bf16.msra.mxu0 %v12531_v50 }
 0xb26   : > { %v13473_v51 = vpop.eup %13472  ;;  %4707 = vmatprep.subr.bf16.mxu0 %v12536_v26 }
 0xb27   : > { %v3818_v0 = vmul.f32 %v13473_v51, %v15388_v56  ;;  %v13475_v5 = vpop.eup %13474  ;;  %v4044_v56 = vsel %vm2929_vm1, %v4039_v24, 0 }
 0xb28   : > { %v3928_v23 = vmul.f32 %v13475_v5, %v15392_v49  ;;  %v12539_v5 = vld [vmem:[%s14774_s6 + $0xac] ss:$12 sps:$4 sm:$0xff]  }
 0xb29   : > { %v3819_v4 = vpack.c.bf16 %v3818_v0, %v3818_v0  ;;  %4708 = vmatpush1.bf16.msra.mxu0 %v12534_v46 }
 0xb2a   : > { %v3929_v48 = vpack.c.bf16 %v3928_v23, %v3928_v23  ;;  %v12537_v23 = vld [vmem:[%s14774_s6 + $0xa8] ss:$12 sps:$4 sm:$0xff]   ;;  %4709 = vmatprep.subr.bf16.mxu0 %v12539_v5 }
 0xb2b   : > { %11818 = vmatmul.mubr.msk.bf16.vlgmr.msra.gmra.mrb[32].mxu1 %vm2913_vm4, %v3710_v42 }
 0xb2c   : > { %11828 = vmatpush3.bf16.msra.mxu1 %v3825_v61  ;;  %11829 = vmatprep.mubr.msk.bf16.mxu1 %vm14118_vm0, %v14117_v53  ;;  %v12564_v61 = vld [vmem:[%s14774_s6 + $0x68] ss:$12 sps:$4 sm:$0xff]  }
 0xb2d   : > { %11839 = vmatprep.subr.bf16.mxu1 %v14117_v53  ;;  %4710 = vmatpush1.bf16.msra.mxu0 %v12537_v23 }
 0xb33   : > { %11830 = vmatmul.mubr.msk.bf16.vlgmr.msra.gmra.mrb[36].mxu1 %vm2913_vm4, %v3819_v4  ;;  %v12568_v4 = vld [vmem:[%s14774_s6 + $0x140] ss:$12 sps:$4 sm:$0xff]  }
 0xb34   : > { %11840 = vmatpush3.bf16.msra.mxu1 %v3936_v8  ;;  %11841 = vmatprep.mubr.msk.bf16.mxu1 %vm14118_vm0, %v14117_v53  ;;  %v12569_v8 = vld [vmem:[%s14774_s6 + $0x80] ss:$12 sps:$4 sm:$0xff]  }
 0xb35   : > { %11851 = vmatprep.subr.bf16.mxu1 %v14117_v53 }
 0xb3b   : > { %11842 = vmatmul.mubr.msk.bf16.vlgmr.msra.gmra.mrb[40].mxu1 %vm2913_vm4, %v3929_v48  ;;  %v12542_v48 = vld [vmem:[%s14774_s6 + $0xc4] ss:$12 sps:$4 sm:$0xff]  }
 0xb3c   : > { %11852 = vmatpush3.bf16.msra.mxu1 %v4044_v56  ;;  %11853 = vmatprep.mubr.msk.bf16.mxu1 %vm14118_vm0, %v14117_v53  ;;  %v12540_v56 = vld [vmem:[%s14774_s6 + $0xc0] ss:$12 sps:$4 sm:$0xff]  }
 0xb3d   : > { %11863 = vmatprep.subr.bf16.mxu1 %v14117_v53  ;;  %4711 = vmatprep.subr.bf16.mxu0 %v12542_v48 }
 0xb3e   : > { %4712 = vmatpush1.bf16.msra.mxu0 %v12540_v56 }
 0xb50   : > { %v4035_v10 = vpop.xlane.xlu1 %4034 }
 0xb51   : > { %13476 = vrcp.f32 %v4035_v10  ;;  %v12547_v10 = vld [vmem:[%s14774_s6 + $0xdc] ss:$12 sps:$4 sm:$0xff]  }
 0xb52   : > { %4713 = vmatprep.subr.bf16.mxu0 %v12547_v10 }
 0xb54   : > { %v4145_v12 = vpop.xlane.xlu1 %4144 }
 0xb55   : > { %13478 = vrcp.f32 %v4145_v12  ;;  %v12545_v12 = vld [vmem:[%s14774_s6 + $0xd8] ss:$12 sps:$4 sm:$0xff]  }
 0xb56   : > { %4714 = vmatpush1.bf16.msra.mxu0 %v12545_v12 }
 0xb58   : > { %v4150_v15 = vpop.permute.xlu1 %4149 }
 0xb59   : > { %v4155_v20 = vsel %vm2929_vm1, %v4150_v15, 0  ;;  %v12557_v15 = vld [vmem:[%s14774_s6 + $0x10c] ss:$12 sps:$4 sm:$0xff]  }
 0xb5b   : > { %v13477_v49 = vpop.eup %13476 }
 0xb5c   : > { %v4037_v27 = vmul.f32 %v13477_v49, %v15406_v19  ;;  %v12552_v49 = vld [vmem:[%s14774_s6 + $0xf4] ss:$12 sps:$4 sm:$0xff]  }
 0xb5d   : > { %4715 = vmatprep.subr.bf16.mxu0 %v12552_v49  ;;  %v12580_v49 = vld [vmem:[%s14774_s6 + $0x180] ss:$12 sps:$4 sm:$0xff]  }
 0xb5e   : > { %v4038_v58 = vpack.c.bf16 %v4037_v27, %v4037_v27  ;;  %v12550_v27 = vld [vmem:[%s14774_s6 + $0xf0] ss:$12 sps:$4 sm:$0xff]  }
 0xb5f   : > { %v13479_v18 = vpop.eup %13478  ;;  %4716 = vmatpush1.bf16.msra.mxu0 %v12550_v27  ;;  %v12583_v27 = vld [vmem:[%s14774_s6 + $0x188] ss:$12 sps:$4 sm:$0xff]  }
 0xb60   : > { %11854 = vmatmul.mubr.msk.bf16.vlgmr.msra.gmra.mrb[44].mxu1 %vm2913_vm4, %v4038_v58  ;;  %v4147_v22 = vmul.f32 %v13479_v18, %v15410_v21  ;;  %v12555_v58 = vld [vmem:[%s14774_s6 + $0x108] ss:$12 sps:$4 sm:$0xff]   ;;  %4717 = vmatprep.subr.bf16.mxu0 %v12557_v15  ;;  %v12562_v18 = vld [vmem:[%s14774_s6 + $0x124] ss:$12 sps:$4 sm:$0xff]  }
 0xb61   : > { %11864 = vmatpush3.bf16.msra.mxu1 %v4155_v20  ;;  %11865 = vmatprep.mubr.msk.bf16.mxu1 %vm14118_vm0, %v14117_v53  ;;  %v12560_v20 = vld [vmem:[%s14774_s6 + $0x120] ss:$12 sps:$4 sm:$0xff]   ;;  %v12586_v15 = vld [vmem:[%s14774_s6 + $0x19c] ss:$12 sps:$4 sm:$0xff]  }
 0xb62   : > { %v4148_v7 = vpack.c.bf16 %v4147_v22, %v4147_v22  ;;  %11511 = vmatprep.subr.bf16.mxu1 %v12543_v60  ;;  %v12567_v22 = vld [vmem:[%s14774_s6 + $0x13c] ss:$12 sps:$4 sm:$0xff]   ;;  %v12574_v60 = vld [vmem:[%s14774_s6 + $0x98] ss:$12 sps:$4 sm:$0xff]  }
 0xb63   : > { %4718 = vmatpush1.bf16.msra.mxu0 %v12555_v58  ;;  %v12584_v58 = vld [vmem:[%s14774_s6 + $0x198] ss:$12 sps:$4 sm:$0xff]  }
 0xb64   : > { %4719 = vmatprep.subr.bf16.mxu0 %v12562_v18  ;;  %v12587_v18 = vld [vmem:[%s14774_s6 + $0x1a0] ss:$12 sps:$4 sm:$0xff]  }
 0xb67   : > { %4720 = vmatpush1.bf16.msra.mxu0 %v12560_v20  ;;  %v12590_v20 = vld [vmem:[%s14774_s6 + $0x1b4] ss:$12 sps:$4 sm:$0xff]  }
 0xb68   : > { %11866 = vmatmul.mubr.msk.bf16.vlgmr.msra.gmra.mrb[48].mxu1 %vm2913_vm4, %v4148_v7  ;;  %v12565_v7 = vld [vmem:[%s14774_s6 + $0x138] ss:$12 sps:$4 sm:$0xff]   ;;  %4721 = vmatprep.subr.bf16.mxu0 %v12567_v22 }
 0xb69   : > { %11512 = vmatpush3.bf16.msra.mxu1 %v12544_v47  ;;  %v12591_v22 = vld [vmem:[%s14774_s6 + $0x1b8] ss:$12 sps:$4 sm:$0xff]  }
 0xb6a   : > { %11513 = vmatprep.subr.bf16.mxu1 %v12548_v3 }
 0xb6b   : > { %4722 = vmatpush1.bf16.msra.mxu0 %v12565_v7  ;;  %v12594_v7 = vld [vmem:[%s14774_s6 + $0x1cc] ss:$12 sps:$4 sm:$0xff]  }
 0xb6c   : > { %4723 = vmatprep.subr.bf16.mxu0 %v12572_v44  ;;  %v12607_v44 = vld [vmem:[%s14774_s6 + $0x218] ss:$12 sps:$4 sm:$0xff]  }
 0xb6d   : > { %11514 = vmatpush3.bf16.msra.mxu1 %v12549_v52  ;;  %v12577_v52 = vld [vmem:[%s14774_s6 + $0x16c] ss:$12 sps:$4 sm:$0xff]  }
 0xb6e   : > { %11515 = vmatprep.subr.bf16.mxu1 %v12553_v54  ;;  %v12575_v54 = vld [vmem:[%s14774_s6 + $0x168] ss:$12 sps:$4 sm:$0xff]  }
 0xb71   : > { %11516 = vmatpush3.bf16.msra.mxu1 %v12554_v57 }
 0xb72   : > { %11517 = vmatprep.subr.bf16.mxu1 %v12558_v31 }
 0xb75   : > { %11518 = vmatpush3.bf16.msra.mxu1 %v12559_v1 }
 0xb76   : > { %11519 = vmatprep.subr.bf16.mxu1 %v12563_v62 }
 0xb79   : > { %11520 = vmatpush3.bf16.msra.mxu1 %v12564_v61 }
 0xb7a   : > { %11521 = vmatprep.subr.bf16.mxu1 %v12568_v4 }
 0xb7d   : > { %11522 = vmatpush3.bf16.msra.mxu1 %v12569_v8 }
 0xbb1   : > { %v15478_v19 = vpop.f32.mrb[12].mxu1 }
 0xbb2   : > { %v11759_v24 = vpop.f32.mrb[13].mxu1 }
 0xbb3   : > { %v3189_v16 = vpop.f32.mrb[14].mxu1 }
 0xbb4   : > { %v11760_v25 = vpop.f32.mrb[15].mxu1 }
 0xbc2   : > { %v15484_v21 = vpop.f32.mrb[16].mxu1 }
 0xbc3   : > { %v11771_v39 = vpop.f32.mrb[17].mxu1 }
 0xbc4   : > { %v3303_v40 = vpop.f32.mrb[18].mxu1 }
 0xbc5   : > { %v11772_v13 = vpop.f32.mrb[19].mxu1  ;;  %v12570_v40 = vld [vmem:[%s14774_s6 + $0x150] ss:$12 sps:$4 sm:$0xff]  }
 0xbc6   : > { %v12573_v13 = vld [vmem:[%s14774_s6 + $0x158] ss:$12 sps:$4 sm:$0xff]   ;;  %4724 = vmatpush1.bf16.msra.mxu0 %v12570_v40  ;;  %v12604_v40 = vld [vmem:[%s14774_s6 + $0x210] ss:$12 sps:$4 sm:$0xff]  }
 0xbc7   : > { %11523 = vmatprep.subr.bf16.mxu1 %v12573_v13  ;;  %4725 = vmatprep.subr.bf16.mxu0 %v12577_v52  ;;  %v12610_v13 = vld [vmem:[%s14774_s6 + $0x22c] ss:$12 sps:$4 sm:$0xff]  }
 0xbc8   : > { %11524 = vmatpush3.bf16.msra.mxu1 %v12574_v60  ;;  %v12608_v60 = vld [vmem:[%s14774_s6 + $0x228] ss:$12 sps:$4 sm:$0xff]  }
 0xbca   : > { %v15495_v55 = vpop.f32.mrb[20].mxu1  ;;  %4726 = vmatpush1.bf16.msra.mxu0 %v12575_v54 }
 0xbcb   : > { %v11783_v9 = vpop.f32.mrb[21].mxu1 }
 0xbcc   : > { %v3408_v41 = vpop.f32.mrb[22].mxu1  ;;  %v12582_v9 = vld [vmem:[%s14774_s6 + $0x184] ss:$12 sps:$4 sm:$0xff]  }
 0xbcd   : > { %v11784_v59 = vpop.f32.mrb[23].mxu1  ;;  %4738 = vmatprep.subr.bf16.mxu0 %v12582_v9 }
 0xbd2   : > { %v15505_v63 = vpop.f32.mrb[24].mxu1 }
 0xbd3   : > { %v11795_v42 = vpop.f32.mrb[25].mxu1 }
 0xbd4   : > { %v3522_v51 = vpop.f32.mrb[26].mxu1 }
 0xbd5   : > { %v11796_v0 = vpop.f32.mrb[27].mxu1 }
 0xbf6   : > { %v3642_v24 = vpop.f32.mrb[28].mxu1 }
 0xbf7   : > { %v11807_v16 = vpop.f32.mrb[29].mxu1 }
 0xbf8   : > { %v3645_v25 = vpop.f32.mrb[30].mxu1  ;;  %v12595_v16 = vld [vmem:[%s14774_s6 + $0x1d0] ss:$12 sps:$4 sm:$0xff]  }
 0xbf9   : > { %v11808_v28 = vpop.f32.mrb[31].mxu1  ;;  %v12598_v25 = vld [vmem:[%s14774_s6 + $0x1e4] ss:$12 sps:$4 sm:$0xff]  }
 0xbfa   : > { %v12596_v28 = vld [vmem:[%s14774_s6 + $0x1e0] ss:$12 sps:$4 sm:$0xff]  }
 0xbfe   : > { %v3753_v35 = vpop.f32.mrb[32].mxu1 }
 0xbff   : > { %v12194_v36 = vpack.i.bf16 %v3753_v35, %v15292_v6  ;;  %v11819_v37 = vpop.f32.mrb[33].mxu1  ;;  %v12578_v6 = vld [vmem:[%s14774_s6 + $0x170] ss:$12 sps:$4 sm:$0xff]   ;;  %v12599_v35 = vld [vmem:[%s14774_s6 + $0x1e8] ss:$12 sps:$4 sm:$0xff]  }
 0xc00   : > { %v3756_v38 = vpop.f32.mrb[34].mxu1  ;;  %11525 = vmatprep.subr.bf16.mxu1 %v12578_v6  ;;  %v12600_v37 = vld [vmem:[%s14774_s6 + $0x1f8] ss:$12 sps:$4 sm:$0xff]  }
 0xc01   : > { %v11820_v39 = vpop.f32.mrb[35].mxu1  ;;  %11526 = vmatpush3.bf16.msra.mxu1 %v12579_v29  ;;  %v12603_v38 = vld [vmem:[%s14774_s6 + $0x200] ss:$12 sps:$4 sm:$0xff]  }
 0xc02   : > { %11869 = vmatprep.subr.bf16.mxu1 %v14117_v53  ;;  %v12606_v39 = vld [vmem:[%s14774_s6 + $0x214] ss:$12 sps:$4 sm:$0xff]  }
 0xc06   : > { %v3861_v47 = vpop.f32.mrb[36].mxu1 }
 0xc07   : > { %v11831_v45 = vpop.f32.mrb[37].mxu1 }
 0xc08   : > { %v3864_v3 = vpop.f32.mrb[38].mxu1 }
 0xc09   : > { %v11832_v43 = vpop.f32.mrb[39].mxu1 }
 0xc0e   : > { %v3972_v41 = vpop.f32.mrb[40].mxu1 }
 0xc0f   : > { %v12189_v57 = vpack.i.bf16 %v3972_v41, %v15484_v21  ;;  %v11843_v59 = vpop.f32.mrb[41].mxu1 }
 0xc10   : > { %v3975_v2 = vpop.f32.mrb[42].mxu1 }
 0xc11   : > { %12190 = vrot.lane.b32.xlu0 %v12189_v57, %s14119_s30  ;;  %v11844_v31 = vpop.f32.mrb[43].mxu1  ;;  %v4869_v2 = vld [vmem:[%s802_s18] sm:$0x7] }
 0xc12   : > { %v4874_v31 = vrot.slane %v4869_v2, %v14921_v34 }
 0xc15   : > { %12195 = vrot.lane.b32.xlu0 %v12194_v36, %s14119_s30  ;;  %v12602_v36 = vld [vmem:[%s14774_s6 + $0x1fc] ss:$12 sps:$4 sm:$0xff]  }
 0xc33   : > { %v15540_v11 = vpop.f32.mrb[44].mxu1 }
 0xc34   : > { %v11855_v1 = vpop.f32.mrb[45].mxu1 }
 0xc35   : > { %v4083_v50 = vpop.f32.mrb[46].mxu1 }
 0xc36   : > { %v11856_v62 = vpop.f32.mrb[47].mxu1 }
 0xc37   : > { %v13484_v62 = vld [vmem:[#allocation2] sm:$0xff] }
 0xc3b   : > { %v4191_v26 = vpop.f32.mrb[48].mxu1 }
 0xc3c   : > { %v12199_v42 = vpack.i.bf16 %v4191_v26, %v15505_v63  ;;  %v11867_v51 = vpop.f32.mrb[49].mxu1 }
 0xc3d   : > { %v4194_v61 = vpop.f32.mrb[50].mxu1 }
 0xc3e   : > { %12200 = vrot.lane.b32.xlu0 %v12199_v42, %s14119_s30  ;;  %v11868_v21 = vpop.f32.mrb[51].mxu1  ;;  %v4882_v42 = vrot.slane %v4869_v2, %v14918_v33 }
 0xc3f   : > { %v13485_v21 = vld [vmem:[#allocation2 + $0x8] sm:$0xff] }
 0xc83   : > { %v12191_v0 = vpop.permute.xlu0 %12190 }
 0xc84   : > { %v12193_v46 = vunpack.i.h.bf16 %v12191_v0  ;;  %v12192_v4 = vunpack.i.l.bf16 %v12191_v0 }
 0xc86   : > { %v3538_v5 = vsel %vm2865_vm2, %v15478_v19, %v12192_v4  ;;  %v4210_v8 = vsel %vm2865_vm2, %v3861_v47, %v12193_v46  ;;  %v12611_v47 = vld [vmem:[%s14774_s6 + $0x230] ss:$12 sps:$4 sm:$0xff]  }
 0xc87   : > { %v12196_v23 = vpop.permute.xlu0 %12195  ;;  %v4213_v48 = vpack.c.bf16 %v4210_v8, %v3538_v5  ;;  %v13486_v8 = vld [vmem:[#allocation2 + $0x10] sm:$0xff] }
 0xc88   : > { %v12198_v63 = vunpack.i.h.bf16 %v12196_v23  ;;  %v12197_v56 = vunpack.i.l.bf16 %v12196_v23 }
 0xc89   : > { %4727 = vmatprep.mubr.bf16.mxu0 %v4213_v48  ;;  %4813 = vmatprep.mubr.bf16.mxu1 %v4213_v48  ;;  %v13487_v48 = vld [vmem:[#allocation2 + $0x18] sm:$0xff] }
 0xc8a   : > { %v4209_v10 = vsel %vm2865_vm2, %v3642_v24, %v12198_v63  ;;  %v3537_v12 = vsel %vm2865_vm2, %v15196_v14, %v12197_v56  ;;  %v12588_v14 = vld [vmem:[%s14774_s6 + $0x1b0] ss:$12 sps:$4 sm:$0xff]   ;;  %v12592_v24 = vld [vmem:[%s14774_s6 + $0x1c8] ss:$12 sps:$4 sm:$0xff]  }
 0xc8b   : > { %v4212_v19 = vpack.c.bf16 %v4209_v10, %v3537_v12 }
 0xc8d   : > { %4728 = vmatmul.mubr.bf16.vlgmr.msra.gmra.mrb[72].mxu0 %v4212_v19  ;;  %4814 = vmatmul.mubr.bf16.vlgmr.msra.gmra.mrb[52].mxu1 %v4212_v19 }
 0xc8e   : > { %4739 = vmatpush1.bf16.msra.mxu0 %v12580_v49  ;;  %11870 = vmatpush3.bf16.msra.mxu1 %v12583_v27  ;;  %v13488_v27 = vld [vmem:[#allocation2 + $0x20] sm:$0xff] }
 0xc8f   : > { %4740 = vmatprep.subr.bf16.mxu0 %v12586_v15  ;;  %11871 = vmatprep.subr.bf16.mxu1 %v14117_v53 }
 0xc90   : > { %4770 = vmatprep.mubr.bf16.mxu0 %v14116_v17  ;;  %11885 = vmatprep.mubr.msk.bf16.mxu1 %vm14118_vm0, %v14117_v53 }
 0xc92   : > { %4741 = vmatpush1.bf16.msra.mxu0 %v12584_v58  ;;  %11872 = vmatpush3.bf16.msra.mxu1 %v12587_v18  ;;  %v13489_v18 = vld [vmem:[#allocation2 + $0x28] sm:$0xff] }
 0xc93   : > { %4742 = vmatprep.subr.bf16.mxu0 %v12590_v20  ;;  %11873 = vmatprep.subr.bf16.mxu1 %v14117_v53 }
 0xc96   : > { %4743 = vmatpush1.bf16.msra.mxu0 %v12588_v14  ;;  %11874 = vmatpush3.bf16.msra.mxu1 %v12591_v22 }
 0xc97   : > { %4744 = vmatprep.subr.bf16.mxu0 %v12594_v7  ;;  %11875 = vmatprep.subr.bf16.mxu1 %v14117_v53 }
 0xc9a   : > { %4745 = vmatpush1.bf16.msra.mxu0 %v12592_v24  ;;  %11876 = vmatpush3.bf16.msra.mxu1 %v12595_v16 }
 0xc9b   : > { %4746 = vmatprep.subr.bf16.mxu0 %v12598_v25  ;;  %11877 = vmatprep.subr.bf16.mxu1 %v14117_v53 }
 0xc9e   : > { %4747 = vmatpush1.bf16.msra.mxu0 %v12596_v28  ;;  %11878 = vmatpush3.bf16.msra.mxu1 %v12599_v35  ;;  %v12612_v28 = vld [vmem:[%s14791_s23] ss:$48 sps:$4 sm:$0xff]   ;;  %v12614_v35 = vld [vmem:[%s14791_s23 + $0x4] ss:$48 sps:$4 sm:$0xff]  }
 0xc9f   : > { %4748 = vmatprep.subr.bf16.mxu0 %v12602_v36  ;;  %11879 = vmatprep.subr.bf16.mxu1 %v14117_v53  ;;  %v12615_v36 = vld [vmem:[%s14791_s23 + $0x8] ss:$48 sps:$4 sm:$0xff]  }
 0xca2   : > { %4749 = vmatpush1.bf16.msra.mxu0 %v12600_v37  ;;  %11880 = vmatpush3.bf16.msra.mxu1 %v12603_v38  ;;  %v12617_v37 = vld [vmem:[%s14791_s23 + $0xc] ss:$48 sps:$4 sm:$0xff]   ;;  %v12620_v38 = vld [vmem:[%s14791_s23 + $0x64] ss:$48 sps:$4 sm:$0xff]  }
 0xca3   : > { %4750 = vmatprep.subr.bf16.mxu0 %v12606_v39  ;;  %11881 = vmatprep.subr.bf16.mxu1 %v14117_v53  ;;  %v12623_v39 = vld [vmem:[%s14791_s23 + $0x6c] ss:$48 sps:$4 sm:$0xff]  }
 0xca6   : > { %4751 = vmatpush1.bf16.msra.mxu0 %v12604_v40  ;;  %11882 = vmatpush3.bf16.msra.mxu1 %v12607_v44  ;;  %v12618_v40 = vld [vmem:[%s14791_s23 + $0x60] ss:$48 sps:$4 sm:$0xff]   ;;  %v12621_v44 = vld [vmem:[%s14791_s23 + $0x68] ss:$48 sps:$4 sm:$0xff]  }
 0xca7   : > { %4752 = vmatprep.subr.bf16.mxu0 %v12610_v13  ;;  %11883 = vmatprep.subr.bf16.mxu1 %v14117_v53  ;;  %v12626_v13 = vld [vmem:[%s14791_s23 + $0xc4] ss:$48 sps:$4 sm:$0xff]  }
 0xcaa   : > { %4753 = vmatpush1.bf16.msra.mxu0 %v12608_v60  ;;  %11884 = vmatpush3.bf16.msra.mxu1 %v12611_v47  ;;  %v12629_v60 = vld [vmem:[%s14791_s23 + $0xcc] ss:$48 sps:$4 sm:$0xff]   ;;  %v12624_v47 = vld [vmem:[%s14791_s23 + $0xc0] ss:$48 sps:$4 sm:$0xff]  }
 0xcab   : > { %6775 = vmatprep.subr.bf16.mxu1 %v12614_v35  ;;  %6861 = vmatprep.subr.bf16.mxu0 %v12617_v37 }
 0xcb0   : > { %v12201_v45 = vpop.permute.xlu0 %12200 }
 0xcb1   : > { %v12203_v3 = vunpack.i.h.bf16 %v12201_v45  ;;  %v12202_v52 = vunpack.i.l.bf16 %v12201_v45  ;;  %v12627_v45 = vld [vmem:[%s14791_s23 + $0xc8] ss:$48 sps:$4 sm:$0xff]  }
 0xcb3   : > { %v4211_v6 = vsel %vm2865_vm2, %v15540_v11, %v12203_v3  ;;  %v3539_v43 = vsel %vm2865_vm2, %v15495_v55, %v12202_v52  ;;  %v4878_v11 = vrot.slane %v4869_v2, %v14915_v32  ;;  %v12632_v3 = vld [vmem:[%s14791_s23 + $0x124] ss:$48 sps:$4 sm:$0xff]   ;;  %v12635_v52 = vld [vmem:[%s14791_s23 + $0x12c] ss:$48 sps:$4 sm:$0xff]   ;;  %v12645_v2 = vld [vmem:[%s14791_s23 + $0x1e8] ss:$48 sps:$4 sm:$0xff]  }
 0xcb4   : > { %v4214_v54 = vpack.c.bf16 %v4211_v6, %v3539_v43  ;;  %v12630_v6 = vld [vmem:[%s14791_s23 + $0x120] ss:$48 sps:$4 sm:$0xff]   ;;  %v12633_v43 = vld [vmem:[%s14791_s23 + $0x128] ss:$48 sps:$4 sm:$0xff]  }
 0xcb6   : > { %4771 = vmatmul.mubr.bf16.vlgmr.msra.gmra.mrb[72].mxu0 %v4214_v54  ;;  %11886 = vmatmul.mubr.bf16.vlgmr.msra.gmra.mrb[56].mxu1 %v4214_v54  ;;  %v12638_v54 = vld [vmem:[%s14791_s23 + $0x184] ss:$48 sps:$4 sm:$0xff]  }
 0xcb7   : > { %6776 = vmatpush1.bf16.msra.mxu1 %v12612_v28  ;;  %6862 = vmatpush1.bf16.msra.mxu0 %v12615_v36 }
 0xcb8   : > { %6777 = vmatprep.subr.bf16.mxu1 %v12620_v38  ;;  %6863 = vmatprep.subr.bf16.mxu0 %v12623_v39 }
 0xcbb   : > { %6778 = vmatpush1.bf16.msra.mxu1 %v12618_v40  ;;  %6864 = vmatpush1.bf16.msra.mxu0 %v12621_v44  ;;  %v12674_v44 = vld [vmem:[%s14791_s23 + $0x3c4] ss:$48 sps:$4 sm:$0xff]  }
 0xcbc   : > { %6779 = vmatprep.subr.bf16.mxu1 %v12626_v13  ;;  %6865 = vmatprep.subr.bf16.mxu0 %v12629_v60  ;;  %v12677_v13 = vld [vmem:[%s14791_s23 + $0x3cc] ss:$48 sps:$4 sm:$0xff]   ;;  %v12672_v60 = vld [vmem:[%s14791_s23 + $0x3c0] ss:$48 sps:$4 sm:$0xff]  }
 0xcbf   : > { %6780 = vmatpush1.bf16.msra.mxu1 %v12624_v47  ;;  %6866 = vmatpush1.bf16.msra.mxu0 %v12627_v45  ;;  %v12675_v47 = vld [vmem:[%s14791_s23 + $0x3c8] ss:$48 sps:$4 sm:$0xff]   ;;  %v12680_v45 = vld [vmem:[%s14791_s23 + $0x424] ss:$48 sps:$4 sm:$0xff]  }
 0xcc0   : > { %6781 = vmatprep.subr.bf16.mxu1 %v12632_v3  ;;  %6867 = vmatprep.subr.bf16.mxu0 %v12635_v52  ;;  %v12683_v3 = vld [vmem:[%s14791_s23 + $0x42c] ss:$48 sps:$4 sm:$0xff]   ;;  %v12678_v52 = vld [vmem:[%s14791_s23 + $0x420] ss:$48 sps:$4 sm:$0xff]  }
 0xcc3   : > { %6782 = vmatpush1.bf16.msra.mxu1 %v12630_v6  ;;  %6868 = vmatpush1.bf16.msra.mxu0 %v12633_v43  ;;  %v12681_v6 = vld [vmem:[%s14791_s23 + $0x428] ss:$48 sps:$4 sm:$0xff]   ;;  %v12684_v43 = vld [vmem:[%s14791_s23 + $0x480] ss:$48 sps:$4 sm:$0xff]  }
 0xcc4   : > { %6783 = vmatprep.subr.bf16.mxu1 %v12638_v54  ;;  %v12686_v54 = vld [vmem:[%s14791_s23 + $0x484] ss:$48 sps:$4 sm:$0xff]  }
 0xd60   : > { %v11527_v29 = vpop.f32.mrb[52].mxu1 }
 0xd61   : > { %v11528_v9 = vpop.f32.mrb[53].mxu1 }
 0xd62   : > { %v11529_v41 = vadd.f32 %v11528_v9, %v11527_v29  ;;  %v11530_v57 = vpop.f32.mrb[54].mxu1  ;;  %v12641_v29 = vld [vmem:[%s14791_s23 + $0x18c] ss:$48 sps:$4 sm:$0xff]   ;;  %v12636_v9 = vld [vmem:[%s14791_s23 + $0x180] ss:$48 sps:$4 sm:$0xff]  }
 0xd63   : > { %v11531_v53 = vpop.f32.mrb[55].mxu1  ;;  %6869 = vmatprep.subr.bf16.mxu0 %v12641_v29  ;;  %6784 = vmatpush1.bf16.msra.mxu1 %v12636_v9  ;;  %v12687_v29 = vld [vmem:[%s14791_s23 + $0x488] ss:$48 sps:$4 sm:$0xff]   ;;  %v12689_v9 = vld [vmem:[%s14791_s23 + $0x48c] ss:$48 sps:$4 sm:$0xff]  }
 0xd64   : > { %v11532_v59 = vadd.f32 %v11531_v53, %v11530_v57  ;;  %v12644_v57 = vld [vmem:[%s14791_s23 + $0x1e4] ss:$48 sps:$4 sm:$0xff]   ;;  %v12647_v53 = vld [vmem:[%s14791_s23 + $0x1ec] ss:$48 sps:$4 sm:$0xff]  }
 0xd65   : > { %6785 = vmatprep.subr.bf16.mxu1 %v12644_v57  ;;  %v12695_v57 = vld [vmem:[%s14791_s23 + $0x4ec] ss:$48 sps:$4 sm:$0xff]  }
 0xd89   : > { %v4772_v1 = vpop.f32.mrb[72].mxu0  ;;  %v4856_v50 = vpop.f32.mrb[56].mxu1 }
 0xd8a   : > { %v4863_v26 = vadd.f32 %v13484_v62, %v4772_v1  ;;  %v4857_v55 = vadd.f32 %v11529_v41, %v4856_v50  ;;  %v4774_v51 = vpop.f32.mrb[73].mxu0  ;;  %v11887_v61 = vpop.f32.mrb[57].mxu1  ;;  %v12639_v41 = vld [vmem:[%s14791_s23 + $0x188] ss:$48 sps:$4 sm:$0xff]   ;;  %v12653_v1 = vld [vmem:[%s14791_s23 + $0x24c] ss:$48 sps:$4 sm:$0xff]  }
 0xd8b   : > { %v4864_v0 = vadd.f32 %v13485_v21, %v4774_v51  ;;  %v4776_v46 = vpop.f32.mrb[74].mxu0  ;;  %v4859_v4 = vpop.f32.mrb[58].mxu1  ;;  %6870 = vmatpush1.bf16.msra.mxu0 %v12639_v41  ;;  %v12648_v50 = vld [vmem:[%s14791_s23 + $0x240] ss:$48 sps:$4 sm:$0xff]   ;;  %v12656_v62 = vld [vmem:[%s14791_s23 + $0x2a4] ss:$48 sps:$4 sm:$0xff]  }
 0xd8c   : > { %v15592_v5 = vadd.f32 %v4874_v31, %v4863_v26  ;;  %v4865_v23 = vadd.f32 %v13486_v8, %v4857_v55  ;;  %v4866_v63 = vadd.f32 %v13487_v48, %v4776_v46  ;;  %v4860_v56 = vadd.f32 %v11532_v59, %v4859_v4  ;;  %v4778_v10 = vpop.f32.mrb[75].mxu0  ;;  %v11888_v12 = vpop.f32.mrb[59].mxu1  ;;  %v12642_v59 = vld [vmem:[%s14791_s23 + $0x1e0] ss:$48 sps:$4 sm:$0xff]   ;;  %6871 = vmatprep.subr.bf16.mxu0 %v12647_v53  ;;  %v12659_v26 = vld [vmem:[%s14791_s23 + $0x2ac] ss:$48 sps:$4 sm:$0xff]  }
 0xd8d   : > { %v15594_v49 = vadd.f32 %v4878_v11, %v4864_v0  ;;  %v4867_v19 = vadd.f32 %v13488_v27, %v4778_v10  ;;  %6786 = vmatpush1.bf16.msra.mxu1 %v12642_v59  ;;  %v12654_v55 = vld [vmem:[%s14791_s23 + $0x2a0] ss:$48 sps:$4 sm:$0xff]   ;;  %v12662_v51 = vld [vmem:[%s14791_s23 + $0x304] ss:$48 sps:$4 sm:$0xff]   ;;  %v12665_v61 = vld [vmem:[%s14791_s23 + $0x30c] ss:$48 sps:$4 sm:$0xff]  }
 0xd8e   : > { %v15596_v15 = vadd.f32 %v4882_v42, %v4865_v23  ;;  %v15598_v58 = vadd.f32 %v4874_v31, %v4866_v63  ;;  %v4868_v20 = vadd.f32 %v13489_v18, %v4860_v56  ;;  %v12650_v31 = vld [vmem:[%s14791_s23 + $0x244] ss:$48 sps:$4 sm:$0xff]   ;;  %v12660_v21 = vld [vmem:[%s14791_s23 + $0x300] ss:$48 sps:$4 sm:$0xff]   ;;  %v12663_v0 = vld [vmem:[%s14791_s23 + $0x308] ss:$48 sps:$4 sm:$0xff]  }
 0xd8f   : > { %v15600_v14 = vadd.f32 %v4878_v11, %v4867_v19  ;;  %v4894_v22 = vadd.f32 %v15594_v49, %v15592_v5  ;;  %6872 = vmatpush1.bf16.msra.mxu0 %v12645_v2  ;;  %6787 = vmatprep.subr.bf16.mxu1 %v12650_v31  ;;  %v12651_v11 = vld [vmem:[%s14791_s23 + $0x248] ss:$48 sps:$4 sm:$0xff]   ;;  %v12668_v46 = vld [vmem:[%s14791_s23 + $0x364] ss:$48 sps:$4 sm:$0xff]   ;;  %v12671_v4 = vld [vmem:[%s14791_s23 + $0x36c] ss:$48 sps:$4 sm:$0xff]  }
 0xd90   : > { %v15604_v7 = vadd.f32 %v4882_v42, %v4868_v20  ;;  %6873 = vmatprep.subr.bf16.mxu0 %v12653_v1  ;;  %v12657_v42 = vld [vmem:[%s14791_s23 + $0x2a8] ss:$48 sps:$4 sm:$0xff]   ;;  %v12666_v8 = vld [vmem:[%s14791_s23 + $0x360] ss:$48 sps:$4 sm:$0xff]   ;;  %v12692_v41 = vld [vmem:[%s14791_s23 + $0x4e4] ss:$48 sps:$4 sm:$0xff]  }
 0xd91   : > { %v4895_v24 = vadd.f32 %v4894_v22, %v15596_v15  ;;  %v4898_v16 = vadd.f32 %v15600_v14, %v15598_v58  ;;  %6788 = vmatpush1.bf16.msra.mxu1 %v12648_v50  ;;  %v12669_v23 = vld [vmem:[%s14791_s23 + $0x368] ss:$48 sps:$4 sm:$0xff]   ;;  %v12690_v53 = vld [vmem:[%s14791_s23 + $0x4e0] ss:$48 sps:$4 sm:$0xff]   ;;  %v12698_v2 = vld [vmem:[%s14791_s23 + $0x544] ss:$48 sps:$4 sm:$0xff]  }
 0xd92   : > { %6789 = vmatprep.subr.bf16.mxu1 %v12656_v62  ;;  %v12693_v59 = vld [vmem:[%s14791_s23 + $0x4e8] ss:$48 sps:$4 sm:$0xff]   ;;  %v12701_v31 = vld [vmem:[%s14791_s23 + $0x54c] ss:$48 sps:$4 sm:$0xff]   ;;  %v12696_v1 = vld [vmem:[%s14791_s23 + $0x540] ss:$48 sps:$4 sm:$0xff]  }
 0xd93   : > { %4896 = vadd.xlane.f32.xlu1 %v4895_v24  ;;  %v4899_v25 = vadd.f32 %v4898_v16, %v15604_v7  ;;  %6874 = vmatpush1.bf16.msra.mxu0 %v12651_v11  ;;  %v12699_v50 = vld [vmem:[%s14791_s23 + $0x548] ss:$48 sps:$4 sm:$0xff]   ;;  %v12704_v11 = vld [vmem:[%s14791_s23 + $0x5a4] ss:$48 sps:$4 sm:$0xff]   ;;  %v12707_v62 = vld [vmem:[%s14791_s23 + $0x5ac] ss:$48 sps:$4 sm:$0xff]  }
 0xd94   : > { %6875 = vmatprep.subr.bf16.mxu0 %v12659_v26  ;;  %v12702_v26 = vld [vmem:[%s14791_s23 + $0x5a0] ss:$48 sps:$4 sm:$0xff]  }
 0xd95   : > { %4900 = vadd.xlane.f32.xlu0 %v4899_v25  ;;  %6790 = vmatpush1.bf16.msra.mxu1 %v12654_v55  ;;  %v12705_v55 = vld [vmem:[%s14791_s23 + $0x5a8] ss:$48 sps:$4 sm:$0xff]  }
 0xd96   : > { %6791 = vmatprep.subr.bf16.mxu1 %v12662_v51  ;;  %v12713_v51 = vld [vmem:[%s14791_s23 + $0x60c] ss:$48 sps:$4 sm:$0xff]  }
 0xd97   : > { %6876 = vmatpush1.bf16.msra.mxu0 %v12657_v42  ;;  %v12710_v42 = vld [vmem:[%s14791_s23 + $0x604] ss:$48 sps:$4 sm:$0xff]  }
 0xd98   : > { %6877 = vmatprep.subr.bf16.mxu0 %v12665_v61 }
 0xd99   : > { %6792 = vmatpush1.bf16.msra.mxu1 %v12660_v21 }
 0xd9a   : > { %6793 = vmatprep.subr.bf16.mxu1 %v12668_v46 }
 0xd9b   : > { %6878 = vmatpush1.bf16.msra.mxu0 %v12663_v0 }
 0xd9c   : > { %6879 = vmatprep.subr.bf16.mxu0 %v12671_v4 }
 0xd9d   : > { %6794 = vmatpush1.bf16.msra.mxu1 %v12666_v8 }
 0xd9e   : > { %6795 = vmatprep.subr.bf16.mxu1 %v12674_v44 }
 0xd9f   : > { %6880 = vmatpush1.bf16.msra.mxu0 %v12669_v23  ;;  %v15708_v23 = vld [vmem:[%s811_s25] sm:$0x7] }
 0xda0   : > { %6881 = vmatprep.subr.bf16.mxu0 %v12677_v13 }
 0xda1   : > { %6796 = vmatpush1.bf16.msra.mxu1 %v12672_v60 }
 0xda2   : > { %6797 = vmatprep.subr.bf16.mxu1 %v12680_v45  ;;  %v12708_v45 = vld [vmem:[%s14791_s23 + $0x600] ss:$48 sps:$4 sm:$0xff]  }
 0xda3   : > { %6882 = vmatpush1.bf16.msra.mxu0 %v12675_v47 }
 0xda4   : > { %6883 = vmatprep.subr.bf16.mxu0 %v12683_v3  ;;  %v12711_v3 = vld [vmem:[%s14791_s23 + $0x608] ss:$48 sps:$4 sm:$0xff]  }
 0xda5   : > { %6798 = vmatpush1.bf16.msra.mxu1 %v12678_v52  ;;  %v12716_v52 = vld [vmem:[%s14791_s23 + $0x664] ss:$48 sps:$4 sm:$0xff]  }
 0xda6   : > { %6799 = vmatprep.subr.bf16.mxu1 %v12686_v54  ;;  %v12722_v54 = vld [vmem:[%s14791_s23 + $0x6c4] ss:$48 sps:$4 sm:$0xff]  }
 0xda7   : > { %6884 = vmatpush1.bf16.msra.mxu0 %v12681_v6  ;;  %v12719_v6 = vld [vmem:[%s14791_s23 + $0x66c] ss:$48 sps:$4 sm:$0xff]  }
 0xda8   : > { %6885 = vmatprep.subr.bf16.mxu0 %v12689_v9  ;;  %v12720_v9 = vld [vmem:[%s14791_s23 + $0x6c0] ss:$48 sps:$4 sm:$0xff]  }
 0xda9   : > { %6800 = vmatpush1.bf16.msra.mxu1 %v12684_v43  ;;  %v12717_v43 = vld [vmem:[%s14791_s23 + $0x668] ss:$48 sps:$4 sm:$0xff]  }
 0xdaa   : > { %6801 = vmatprep.subr.bf16.mxu1 %v12692_v41  ;;  %v12723_v41 = vld [vmem:[%s14791_s23 + $0x6c8] ss:$48 sps:$4 sm:$0xff]  }
 0xdab   : > { %6886 = vmatpush1.bf16.msra.mxu0 %v12687_v29  ;;  %v12725_v29 = vld [vmem:[%s14791_s23 + $0x6cc] ss:$48 sps:$4 sm:$0xff]  }
 0xdac   : > { %6887 = vmatprep.subr.bf16.mxu0 %v12695_v57  ;;  %v12728_v57 = vld [vmem:[%s14791_s23 + $0x724] ss:$48 sps:$4 sm:$0xff]  }
 0xdad   : > { %6802 = vmatpush1.bf16.msra.mxu1 %v12690_v53  ;;  %v12731_v53 = vld [vmem:[%s14791_s23 + $0x72c] ss:$48 sps:$4 sm:$0xff]  }
 0xdae   : > { %6803 = vmatprep.subr.bf16.mxu1 %v12698_v2  ;;  %v12729_v2 = vld [vmem:[%s14791_s23 + $0x728] ss:$48 sps:$4 sm:$0xff]  }
 0xdaf   : > { %6888 = vmatpush1.bf16.msra.mxu0 %v12693_v59  ;;  %v12726_v59 = vld [vmem:[%s14791_s23 + $0x720] ss:$48 sps:$4 sm:$0xff]  }
 0xdb0   : > { %6889 = vmatprep.subr.bf16.mxu0 %v12701_v31  ;;  %v12734_v31 = vld [vmem:[%s14791_s23 + $0x784] ss:$48 sps:$4 sm:$0xff]  }
 0xdb1   : > { %6804 = vmatpush1.bf16.msra.mxu1 %v12696_v1  ;;  %v12737_v1 = vld [vmem:[%s14791_s23 + $0x78c] ss:$48 sps:$4 sm:$0xff]  }
 0xdb2   : > { %6805 = vmatprep.subr.bf16.mxu1 %v12704_v11  ;;  %v12735_v11 = vld [vmem:[%s14791_s23 + $0x788] ss:$48 sps:$4 sm:$0xff]  }
 0xdb3   : > { %6890 = vmatpush1.bf16.msra.mxu0 %v12699_v50  ;;  %v12732_v50 = vld [vmem:[%s14791_s23 + $0x780] ss:$48 sps:$4 sm:$0xff]  }
 0xdb4   : > { %6891 = vmatprep.subr.bf16.mxu0 %v12707_v62  ;;  %v12740_v62 = vld [vmem:[%s14791_s23 + $0x7e4] ss:$48 sps:$4 sm:$0xff]  }
 0xdb5   : > { %6806 = vmatpush1.bf16.msra.mxu1 %v12702_v26  ;;  %v12743_v26 = vld [vmem:[%s14791_s23 + $0x7ec] ss:$48 sps:$4 sm:$0xff]  }
 0xdb6   : > { %6818 = vmatprep.subr.bf16.mxu1 %v12710_v42  ;;  %v12741_v42 = vld [vmem:[%s14791_s23 + $0x7e8] ss:$48 sps:$4 sm:$0xff]  }
 0xdb7   : > { %6892 = vmatpush1.bf16.msra.mxu0 %v12705_v55  ;;  %v12738_v55 = vld [vmem:[%s14791_s23 + $0x7e0] ss:$48 sps:$4 sm:$0xff]  }
 0xdb8   : > { %6904 = vmatprep.subr.bf16.mxu0 %v12713_v51  ;;  %v12746_v51 = vld [vmem:[%s14791_s23 + $0x844] ss:$48 sps:$4 sm:$0xff]  }
 0xe20   : > { %v4897_v48 = vpop.xlane.xlu1 %4896 }
 0xe21   : > { %v4902_v63 = vmul.f32 0.0026041667, %v4897_v48 }
 0xe22   : > { %v4901_v56 = vpop.xlane.xlu0 %4900 }
 0xe23   : > { %v15651_v10 = vsub.f32 %v15592_v5, %v4902_v63  ;;  %v15654_v12 = vsub.f32 %v15594_v49, %v4902_v63  ;;  %v4903_v27 = vmul.f32 0.0026041667, %v4901_v56  ;;  %v15657_v19 = vsub.f32 %v15596_v15, %v4902_v63  ;;  %v15714_v63 = vld [vmem:[%s820_s3] sm:$0x7] }
 0xe25   : > { %v15660_v18 = vsub.f32 %v15598_v58, %v4903_v27  ;;  %v15663_v20 = vsub.f32 %v15600_v14, %v4903_v27  ;;  %v4910_v22 = vmul.f32 %v15651_v10, %v15651_v10  ;;  %v4911_v24 = vmul.f32 %v15654_v12, %v15654_v12 }
 0xe26   : > { %v15674_v28 = vsub.f32 %v15604_v7, %v4903_v27  ;;  %v4912_v35 = vmul.f32 %v15657_v19, %v15657_v19  ;;  %v4944_v27 = vrot.slane %v15708_v23, %v14915_v32 }
 0xe27   : > { %v4913_v16 = vmul.f32 %v15660_v18, %v15660_v18  ;;  %v4914_v25 = vmul.f32 %v15663_v20, %v15663_v20  ;;  %v4916_v36 = vadd.f32 %v4911_v24, %v4910_v22  ;;  %v4940_v24 = vrot.slane %v15708_v23, %v14921_v34 }
 0xe28   : > { %v4915_v39 = vmul.f32 %v15674_v28, %v15674_v28 }
 0xe29   : > { %v4917_v37 = vadd.f32 %v4916_v36, %v4912_v35  ;;  %v4920_v38 = vadd.f32 %v4914_v25, %v4913_v16  ;;  %v4966_v25 = vrot.slane %v15714_v63, %v14915_v32 }
 0xe2b   : > { %4918 = vadd.xlane.f32.xlu0 %v4917_v37  ;;  %v4921_v40 = vadd.f32 %v4920_v38, %v4915_v39 }
 0xe2f   : > { %4922 = vadd.xlane.f32.xlu0 %v4921_v40 }
 0xeb8   : > { %v4919_v61 = vpop.xlane.xlu0 %4918 }
 0xeb9   : > { %v4924_v21 = vmul.f32 0.0026041667, %v4919_v61  ;;  %v12749_v61 = vld [vmem:[%s14791_s23 + $0x84c] ss:$48 sps:$4 sm:$0xff]  }
 0xebb   : > { %v4926_v0 = vadd.f32 1e-05, %v4924_v21 }
 0xebc   : > { %v4923_v46 = vpop.xlane.xlu0 %4922 }
 0xebd   : > { %13480 = vrsqrt.f32 %v4926_v0  ;;  %v4925_v4 = vmul.f32 0.0026041667, %v4923_v46  ;;  %v4948_v46 = vrot.slane %v15708_v23, %v14918_v33  ;;  %v12750_v23 = vld [vmem:[%s14791_s23 + $0x8a0] ss:$48 sps:$4 sm:$0xff]  }
 0xebf   : > { %v4927_v8 = vadd.f32 1e-05, %v4925_v4  ;;  %v12744_v4 = vld [vmem:[%s14791_s23 + $0x840] ss:$48 sps:$4 sm:$0xff]  }
 0xec1   : > { %13482 = vrsqrt.f32 %v4927_v8  ;;  %v12747_v8 = vld [vmem:[%s14791_s23 + $0x848] ss:$48 sps:$4 sm:$0xff]  }
 0xec7   : > { %v15710_v48 = vpop.eup %13480 }
 0xec8   : > { %v4931_v56 = vmul.f32 %v15710_v48, %v15654_v12  ;;  %v4930_v22 = vmul.f32 %v15710_v48, %v15651_v10  ;;  %v4962_v12 = vrot.slane %v15714_v63, %v14921_v34  ;;  %v4932_v0 = vmul.f32 %v15710_v48, %v15657_v19  ;;  %v12753_v48 = vld [vmem:[%s14791_s23 + $0x8a8] ss:$48 sps:$4 sm:$0xff]  }
 0xec9   : > { %v4970_v19 = vrot.slane %v15714_v63, %v14918_v33 }
 0xeca   : > { %v4953_v36 = vmul.f32 %v4944_v27, %v4931_v56  ;;  %v4952_v37 = vmul.f32 %v4940_v24, %v4930_v22  ;;  %v12752_v56 = vld [vmem:[%s14791_s23 + $0x8a4] ss:$48 sps:$4 sm:$0xff]   ;;  %v4954_v22 = vmul.f32 %v4948_v46, %v4932_v0  ;;  %v12815_v0 = vld [vmem:[%s14791_s23 + $0x37c] ss:$48 sps:$4 sm:$0xff]  }
 0xecb   : > { %v15724_v16 = vpop.eup %13482 }
 0xecc   : > { %v4934_v35 = vmul.f32 %v15724_v16, %v15663_v20  ;;  %v4933_v10 = vmul.f32 %v15724_v16, %v15660_v18  ;;  %v4975_v40 = vadd.f32 %v4966_v25, %v4953_v36  ;;  %v4974_v13 = vadd.f32 %v4962_v12, %v4952_v37  ;;  %v12714_v18 = vld [vmem:[%s14791_s23 + $0x660] ss:$48 sps:$4 sm:$0xff]   ;;  %v12759_v36 = vld [vmem:[%s14791_s23 + $0x18] ss:$48 sps:$4 sm:$0xff]   ;;  %v12767_v37 = vld [vmem:[%s14791_s23 + $0x7c] ss:$48 sps:$4 sm:$0xff]  }
 0xecd   : > { %v4935_v21 = vmul.f32 %v15724_v16, %v15674_v28  ;;  %v12758_v16 = vld [vmem:[%s14791_s23 + $0x14] ss:$48 sps:$4 sm:$0xff]  }
 0xece   : > { %v4956_v38 = vmul.f32 %v4944_v27, %v4934_v35  ;;  %v4955_v39 = vmul.f32 %v4940_v24, %v4933_v10  ;;  %v12755_v27 = vld [vmem:[%s14791_s23 + $0x8ac] ss:$48 sps:$4 sm:$0xff]   ;;  %v12756_v35 = vld [vmem:[%s14791_s23 + $0x10] ss:$48 sps:$4 sm:$0xff]   ;;  %v12764_v10 = vld [vmem:[%s14791_s23 + $0x74] ss:$48 sps:$4 sm:$0xff]  }
 0xecf   : > { %v4957_v28 = vmul.f32 %v4948_v46, %v4935_v21  ;;  %v12812_v21 = vld [vmem:[%s14791_s23 + $0x374] ss:$48 sps:$4 sm:$0xff]   ;;  %v12810_v46 = vld [vmem:[%s14791_s23 + $0x370] ss:$48 sps:$4 sm:$0xff]  }
 0xed0   : > { %v4978_v44 = vadd.f32 %v4966_v25, %v4956_v38  ;;  %v4977_v60 = vadd.f32 %v4962_v12, %v4955_v39  ;;  %v12761_v25 = vld [vmem:[%s14791_s23 + $0x1c] ss:$48 sps:$4 sm:$0xff]   ;;  %v4976_v12 = vadd.f32 %v4970_v19, %v4954_v22  ;;  %v12762_v38 = vld [vmem:[%s14791_s23 + $0x70] ss:$48 sps:$4 sm:$0xff]   ;;  %v12765_v39 = vld [vmem:[%s14791_s23 + $0x78] ss:$48 sps:$4 sm:$0xff]  }
 0xed1   : > { %v4979_v24 = vadd.f32 %v4970_v19, %v4957_v28  ;;  %v12819_v28 = vld [vmem:[%s14791_s23 + $0x3d8] ss:$48 sps:$4 sm:$0xff]   ;;  %v12824_v22 = vld [vmem:[%s14791_s23 + $0x434] ss:$48 sps:$4 sm:$0xff]   ;;  %v12827_v19 = vld [vmem:[%s14791_s23 + $0x43c] ss:$48 sps:$4 sm:$0xff]  }
 0xed2   : > { %v15734_v47 = vpack.c.bf16 %v4978_v44, %v4975_v40  ;;  %v15738_v20 = vpack.c.bf16 %v4977_v60, %v4974_v13  ;;  %v12770_v40 = vld [vmem:[%s14791_s23 + $0xd4] ss:$48 sps:$4 sm:$0xff]   ;;  %v12773_v44 = vld [vmem:[%s14791_s23 + $0xdc] ss:$48 sps:$4 sm:$0xff]   ;;  %v12768_v13 = vld [vmem:[%s14791_s23 + $0xd0] ss:$48 sps:$4 sm:$0xff]  }
 0xed3   : > { %v15785_v63 = vpack.c.bf16 %v4979_v24, %v4976_v12  ;;  %v12771_v60 = vld [vmem:[%s14791_s23 + $0xd8] ss:$48 sps:$4 sm:$0xff]   ;;  %v12830_v24 = vld [vmem:[%s14791_s23 + $0x494] ss:$48 sps:$4 sm:$0xff]  }
 0xed4   : > { %6807 = vmatprep.mubr.bf16.mxu1 %v15734_v47  ;;  %6893 = vmatprep.mubr.bf16.mxu0 %v15734_v47  ;;  %v12831_v12 = vld [vmem:[%s14791_s23 + $0x498] ss:$48 sps:$4 sm:$0xff]  }
 0xed5   : > { %6808 = vmatmul.mubr.bf16.vlgmr.msra.gmra.mrb[60].mxu1 %v15738_v20  ;;  %6894 = vmatmul.mubr.bf16.vlgmr.msra.gmra.mrb[76].mxu0 %v15738_v20 }
 0xed6   : > { %6819 = vmatpush1.bf16.msra.mxu1 %v12708_v45  ;;  %6905 = vmatpush1.bf16.msra.mxu0 %v12711_v3  ;;  %v12776_v45 = vld [vmem:[%s14791_s23 + $0x134] ss:$48 sps:$4 sm:$0xff]   ;;  %v12779_v3 = vld [vmem:[%s14791_s23 + $0x13c] ss:$48 sps:$4 sm:$0xff]  }
 0xed7   : > { %6820 = vmatprep.subr.bf16.mxu1 %v12716_v52  ;;  %6906 = vmatprep.subr.bf16.mxu0 %v12719_v6  ;;  %v12774_v52 = vld [vmem:[%s14791_s23 + $0x130] ss:$48 sps:$4 sm:$0xff]   ;;  %v12777_v6 = vld [vmem:[%s14791_s23 + $0x138] ss:$48 sps:$4 sm:$0xff]  }
 0xed8   : > { %6850 = vmatprep.mubr.bf16.mxu1 %v14116_v17  ;;  %6936 = vmatprep.mubr.bf16.mxu0 %v14116_v17 }
 0xeda   : > { %6821 = vmatpush1.bf16.msra.mxu1 %v12714_v18  ;;  %6907 = vmatpush1.bf16.msra.mxu0 %v12717_v43  ;;  %v12782_v18 = vld [vmem:[%s14791_s23 + $0x194] ss:$48 sps:$4 sm:$0xff]   ;;  %v12785_v43 = vld [vmem:[%s14791_s23 + $0x19c] ss:$48 sps:$4 sm:$0xff]  }
 0xedb   : > { %6822 = vmatprep.subr.bf16.mxu1 %v12722_v54  ;;  %6908 = vmatprep.subr.bf16.mxu0 %v12725_v29  ;;  %v12780_v54 = vld [vmem:[%s14791_s23 + $0x190] ss:$48 sps:$4 sm:$0xff]   ;;  %v12783_v29 = vld [vmem:[%s14791_s23 + $0x198] ss:$48 sps:$4 sm:$0xff]  }
 0xede   : > { %6823 = vmatpush1.bf16.msra.mxu1 %v12720_v9  ;;  %6909 = vmatpush1.bf16.msra.mxu0 %v12723_v41  ;;  %v12788_v9 = vld [vmem:[%s14791_s23 + $0x1f4] ss:$48 sps:$4 sm:$0xff]   ;;  %v12791_v41 = vld [vmem:[%s14791_s23 + $0x1fc] ss:$48 sps:$4 sm:$0xff]  }
 0xedf   : > { %6824 = vmatprep.subr.bf16.mxu1 %v12728_v57  ;;  %6910 = vmatprep.subr.bf16.mxu0 %v12731_v53  ;;  %v12786_v57 = vld [vmem:[%s14791_s23 + $0x1f0] ss:$48 sps:$4 sm:$0xff]   ;;  %v12789_v53 = vld [vmem:[%s14791_s23 + $0x1f8] ss:$48 sps:$4 sm:$0xff]  }
 0xee2   : > { %6825 = vmatpush1.bf16.msra.mxu1 %v12726_v59  ;;  %6911 = vmatpush1.bf16.msra.mxu0 %v12729_v2  ;;  %v12794_v59 = vld [vmem:[%s14791_s23 + $0x254] ss:$48 sps:$4 sm:$0xff]   ;;  %v12797_v2 = vld [vmem:[%s14791_s23 + $0x25c] ss:$48 sps:$4 sm:$0xff]  }
 0xee3   : > { %6826 = vmatprep.subr.bf16.mxu1 %v12734_v31  ;;  %6912 = vmatprep.subr.bf16.mxu0 %v12737_v1  ;;  %v12792_v31 = vld [vmem:[%s14791_s23 + $0x250] ss:$48 sps:$4 sm:$0xff]   ;;  %v12795_v1 = vld [vmem:[%s14791_s23 + $0x258] ss:$48 sps:$4 sm:$0xff]  }
 0xee6   : > { %6827 = vmatpush1.bf16.msra.mxu1 %v12732_v50  ;;  %6913 = vmatpush1.bf16.msra.mxu0 %v12735_v11  ;;  %v12800_v50 = vld [vmem:[%s14791_s23 + $0x2b4] ss:$48 sps:$4 sm:$0xff]   ;;  %v12803_v11 = vld [vmem:[%s14791_s23 + $0x2bc] ss:$48 sps:$4 sm:$0xff]  }
 0xee7   : > { %6828 = vmatprep.subr.bf16.mxu1 %v12740_v62  ;;  %6914 = vmatprep.subr.bf16.mxu0 %v12743_v26  ;;  %v12798_v62 = vld [vmem:[%s14791_s23 + $0x2b0] ss:$48 sps:$4 sm:$0xff]   ;;  %v12801_v26 = vld [vmem:[%s14791_s23 + $0x2b8] ss:$48 sps:$4 sm:$0xff]  }
 0xeea   : > { %6829 = vmatpush1.bf16.msra.mxu1 %v12738_v55  ;;  %6915 = vmatpush1.bf16.msra.mxu0 %v12741_v42  ;;  %v12806_v55 = vld [vmem:[%s14791_s23 + $0x314] ss:$48 sps:$4 sm:$0xff]   ;;  %v12809_v42 = vld [vmem:[%s14791_s23 + $0x31c] ss:$48 sps:$4 sm:$0xff]  }
 0xeeb   : > { %6830 = vmatprep.subr.bf16.mxu1 %v12746_v51  ;;  %6916 = vmatprep.subr.bf16.mxu0 %v12749_v61  ;;  %v12804_v51 = vld [vmem:[%s14791_s23 + $0x310] ss:$48 sps:$4 sm:$0xff]   ;;  %v12807_v61 = vld [vmem:[%s14791_s23 + $0x318] ss:$48 sps:$4 sm:$0xff]  }
 0xeee   : > { %6831 = vmatpush1.bf16.msra.mxu1 %v12744_v4  ;;  %6917 = vmatpush1.bf16.msra.mxu0 %v12747_v8  ;;  %v12813_v4 = vld [vmem:[%s14791_s23 + $0x378] ss:$48 sps:$4 sm:$0xff]   ;;  %v12818_v8 = vld [vmem:[%s14791_s23 + $0x3d4] ss:$48 sps:$4 sm:$0xff]  }
 0xeef   : > { %6832 = vmatprep.subr.bf16.mxu1 %v12752_v56  ;;  %6918 = vmatprep.subr.bf16.mxu0 %v12755_v27  ;;  %v12821_v56 = vld [vmem:[%s14791_s23 + $0x3dc] ss:$48 sps:$4 sm:$0xff]   ;;  %v12816_v27 = vld [vmem:[%s14791_s23 + $0x3d0] ss:$48 sps:$4 sm:$0xff]  }
 0xef2   : > { %6833 = vmatpush1.bf16.msra.mxu1 %v12750_v23  ;;  %6919 = vmatpush1.bf16.msra.mxu0 %v12753_v48  ;;  %v12822_v23 = vld [vmem:[%s14791_s23 + $0x430] ss:$48 sps:$4 sm:$0xff]   ;;  %v12825_v48 = vld [vmem:[%s14791_s23 + $0x438] ss:$48 sps:$4 sm:$0xff]  }
 0xef3   : > { %6947 = vmatprep.subr.bf16.mxu1 %v12758_v16  ;;  %7033 = vmatprep.subr.bf16.mxu0 %v12761_v25  ;;  %v12833_v16 = vld [vmem:[%s14791_s23 + $0x49c] ss:$48 sps:$4 sm:$0xff]   ;;  %v12828_v25 = vld [vmem:[%s14791_s23 + $0x490] ss:$48 sps:$4 sm:$0xff]  }
 0xef5   : > { %6851 = vmatmul.mubr.bf16.vlgmr.msra.gmra.mrb[60].mxu1 %v15785_v63  ;;  %6937 = vmatmul.mubr.bf16.vlgmr.msra.gmra.mrb[76].mxu0 %v15785_v63 }
 0xef6   : > { %6948 = vmatpush1.bf16.msra.mxu1 %v12756_v35  ;;  %6979 = vmatprep.mubr.bf16.mxu1 %v15734_v47  ;;  %v12836_v35 = vld [vmem:[%s14791_s23 + $0x4f4] ss:$48 sps:$4 sm:$0xff]  }
 0xef7   : > { %7034 = vmatpush1.bf16.msra.mxu0 %v12759_v36  ;;  %7065 = vmatprep.mubr.bf16.mxu0 %v15734_v47  ;;  %v12839_v36 = vld [vmem:[%s14791_s23 + $0x4fc] ss:$48 sps:$4 sm:$0xff]  }
 0xef8   : > { %6949 = vmatprep.subr.bf16.mxu1 %v12764_v10  ;;  %7035 = vmatprep.subr.bf16.mxu0 %v12767_v37  ;;  %v12834_v10 = vld [vmem:[%s14791_s23 + $0x4f0] ss:$48 sps:$4 sm:$0xff]   ;;  %v12837_v37 = vld [vmem:[%s14791_s23 + $0x4f8] ss:$48 sps:$4 sm:$0xff]  }
 0xefa   : > { %6950 = vmatpush1.bf16.msra.mxu1 %v12762_v38  ;;  %v12842_v38 = vld [vmem:[%s14791_s23 + $0x554] ss:$48 sps:$4 sm:$0xff]  }
 0xefb   : > { %7036 = vmatpush1.bf16.msra.mxu0 %v12765_v39  ;;  %6951 = vmatprep.subr.bf16.mxu1 %v12770_v40  ;;  %v12845_v39 = vld [vmem:[%s14791_s23 + $0x55c] ss:$48 sps:$4 sm:$0xff]   ;;  %v12840_v40 = vld [vmem:[%s14791_s23 + $0x550] ss:$48 sps:$4 sm:$0xff]  }
 0xefc   : > { %7037 = vmatprep.subr.bf16.mxu0 %v12773_v44  ;;  %v12843_v44 = vld [vmem:[%s14791_s23 + $0x558] ss:$48 sps:$4 sm:$0xff]  }
 0xefe   : > { %6952 = vmatpush1.bf16.msra.mxu1 %v12768_v13  ;;  %v12848_v13 = vld [vmem:[%s14791_s23 + $0x5b4] ss:$48 sps:$4 sm:$0xff]  }
 0xeff   : > { %7038 = vmatpush1.bf16.msra.mxu0 %v12771_v60  ;;  %6953 = vmatprep.subr.bf16.mxu1 %v12776_v45  ;;  %v12851_v60 = vld [vmem:[%s14791_s23 + $0x5bc] ss:$48 sps:$4 sm:$0xff]   ;;  %v12846_v45 = vld [vmem:[%s14791_s23 + $0x5b0] ss:$48 sps:$4 sm:$0xff]  }
 0xf00   : > { %7039 = vmatprep.subr.bf16.mxu0 %v12779_v3  ;;  %v12849_v3 = vld [vmem:[%s14791_s23 + $0x5b8] ss:$48 sps:$4 sm:$0xff]  }
 0xf02   : > { %6954 = vmatpush1.bf16.msra.mxu1 %v12774_v52  ;;  %v12854_v52 = vld [vmem:[%s14791_s23 + $0x614] ss:$48 sps:$4 sm:$0xff]  }
 0xf03   : > { %7040 = vmatpush1.bf16.msra.mxu0 %v12777_v6  ;;  %6955 = vmatprep.subr.bf16.mxu1 %v12782_v18  ;;  %v12857_v6 = vld [vmem:[%s14791_s23 + $0x61c] ss:$48 sps:$4 sm:$0xff]   ;;  %v12852_v18 = vld [vmem:[%s14791_s23 + $0x610] ss:$48 sps:$4 sm:$0xff]  }
 0xf04   : > { %7041 = vmatprep.subr.bf16.mxu0 %v12785_v43  ;;  %v12855_v43 = vld [vmem:[%s14791_s23 + $0x618] ss:$48 sps:$4 sm:$0xff]  }
 0xf06   : > { %6956 = vmatpush1.bf16.msra.mxu1 %v12780_v54  ;;  %v12860_v54 = vld [vmem:[%s14791_s23 + $0x674] ss:$48 sps:$4 sm:$0xff]  }
 0xf07   : > { %7042 = vmatpush1.bf16.msra.mxu0 %v12783_v29  ;;  %6957 = vmatprep.subr.bf16.mxu1 %v12788_v9  ;;  %v12863_v29 = vld [vmem:[%s14791_s23 + $0x67c] ss:$48 sps:$4 sm:$0xff]   ;;  %v12858_v9 = vld [vmem:[%s14791_s23 + $0x670] ss:$48 sps:$4 sm:$0xff]  }
 0xf08   : > { %7043 = vmatprep.subr.bf16.mxu0 %v12791_v41  ;;  %v12861_v41 = vld [vmem:[%s14791_s23 + $0x678] ss:$48 sps:$4 sm:$0xff]  }
 0xf0a   : > { %6958 = vmatpush1.bf16.msra.mxu1 %v12786_v57  ;;  %v12866_v57 = vld [vmem:[%s14791_s23 + $0x6d4] ss:$48 sps:$4 sm:$0xff]  }
 0xf0b   : > { %7044 = vmatpush1.bf16.msra.mxu0 %v12789_v53  ;;  %6959 = vmatprep.subr.bf16.mxu1 %v12794_v59  ;;  %v12869_v53 = vld [vmem:[%s14791_s23 + $0x6dc] ss:$48 sps:$4 sm:$0xff]   ;;  %v12864_v59 = vld [vmem:[%s14791_s23 + $0x6d0] ss:$48 sps:$4 sm:$0xff]  }
 0xf0c   : > { %7045 = vmatprep.subr.bf16.mxu0 %v12797_v2  ;;  %v12867_v2 = vld [vmem:[%s14791_s23 + $0x6d8] ss:$48 sps:$4 sm:$0xff]  }
 0xf0e   : > { %6960 = vmatpush1.bf16.msra.mxu1 %v12792_v31  ;;  %v12872_v31 = vld [vmem:[%s14791_s23 + $0x734] ss:$48 sps:$4 sm:$0xff]  }
 0xf0f   : > { %7046 = vmatpush1.bf16.msra.mxu0 %v12795_v1  ;;  %6961 = vmatprep.subr.bf16.mxu1 %v12800_v50  ;;  %v12875_v1 = vld [vmem:[%s14791_s23 + $0x73c] ss:$48 sps:$4 sm:$0xff]   ;;  %v12870_v50 = vld [vmem:[%s14791_s23 + $0x730] ss:$48 sps:$4 sm:$0xff]  }
 0xf10   : > { %7047 = vmatprep.subr.bf16.mxu0 %v12803_v11  ;;  %v12873_v11 = vld [vmem:[%s14791_s23 + $0x738] ss:$48 sps:$4 sm:$0xff]  }
 0xf12   : > { %6962 = vmatpush1.bf16.msra.mxu1 %v12798_v62  ;;  %v12878_v62 = vld [vmem:[%s14791_s23 + $0x794] ss:$48 sps:$4 sm:$0xff]  }
 0xf13   : > { %7048 = vmatpush1.bf16.msra.mxu0 %v12801_v26  ;;  %6963 = vmatprep.subr.bf16.mxu1 %v12806_v55  ;;  %v12881_v26 = vld [vmem:[%s14791_s23 + $0x79c] ss:$48 sps:$4 sm:$0xff]   ;;  %v12876_v55 = vld [vmem:[%s14791_s23 + $0x790] ss:$48 sps:$4 sm:$0xff]  }
 0xf14   : > { %7049 = vmatprep.subr.bf16.mxu0 %v12809_v42  ;;  %v12879_v42 = vld [vmem:[%s14791_s23 + $0x798] ss:$48 sps:$4 sm:$0xff]  }
 0xf16   : > { %6964 = vmatpush1.bf16.msra.mxu1 %v12804_v51  ;;  %v12884_v51 = vld [vmem:[%s14791_s23 + $0x7f4] ss:$48 sps:$4 sm:$0xff]  }
 0xf17   : > { %7050 = vmatpush1.bf16.msra.mxu0 %v12807_v61  ;;  %6965 = vmatprep.subr.bf16.mxu1 %v12812_v21  ;;  %v12887_v61 = vld [vmem:[%s14791_s23 + $0x7fc] ss:$48 sps:$4 sm:$0xff]   ;;  %v12882_v21 = vld [vmem:[%s14791_s23 + $0x7f0] ss:$48 sps:$4 sm:$0xff]  }
 0xf18   : > { %7051 = vmatprep.subr.bf16.mxu0 %v12815_v0  ;;  %v12885_v0 = vld [vmem:[%s14791_s23 + $0x7f8] ss:$48 sps:$4 sm:$0xff]  }
 0xf1a   : > { %6966 = vmatpush1.bf16.msra.mxu1 %v12810_v46  ;;  %v12890_v46 = vld [vmem:[%s14791_s23 + $0x854] ss:$48 sps:$4 sm:$0xff]  }
 0xf1b   : > { %7052 = vmatpush1.bf16.msra.mxu0 %v12813_v4  ;;  %6967 = vmatprep.subr.bf16.mxu1 %v12818_v8  ;;  %v12893_v4 = vld [vmem:[%s14791_s23 + $0x85c] ss:$48 sps:$4 sm:$0xff]   ;;  %v12888_v8 = vld [vmem:[%s14791_s23 + $0x850] ss:$48 sps:$4 sm:$0xff]  }
 0xf1c   : > { %7053 = vmatprep.subr.bf16.mxu0 %v12821_v56  ;;  %v12891_v56 = vld [vmem:[%s14791_s23 + $0x858] ss:$48 sps:$4 sm:$0xff]  }
 0xf1e   : > { %6968 = vmatpush1.bf16.msra.mxu1 %v12816_v27  ;;  %v12896_v27 = vld [vmem:[%s14791_s23 + $0x8b4] ss:$48 sps:$4 sm:$0xff]  }
 0xf1f   : > { %7054 = vmatpush1.bf16.msra.mxu0 %v12819_v28  ;;  %6969 = vmatprep.subr.bf16.mxu1 %v12824_v22  ;;  %v12899_v28 = vld [vmem:[%s14791_s23 + $0x8bc] ss:$48 sps:$4 sm:$0xff]   ;;  %v12894_v22 = vld [vmem:[%s14791_s23 + $0x8b0] ss:$48 sps:$4 sm:$0xff]  }
 0xf20   : > { %7055 = vmatprep.subr.bf16.mxu0 %v12827_v19  ;;  %v12897_v19 = vld [vmem:[%s14791_s23 + $0x8b8] ss:$48 sps:$4 sm:$0xff]  }
 0xf22   : > { %6970 = vmatpush1.bf16.msra.mxu1 %v12822_v23  ;;  %v12902_v23 = vld [vmem:[%s14791_s23 + $0x24] ss:$48 sps:$4 sm:$0xff]  }
 0xf23   : > { %7056 = vmatpush1.bf16.msra.mxu0 %v12825_v48  ;;  %6971 = vmatprep.subr.bf16.mxu1 %v12830_v24  ;;  %v12905_v48 = vld [vmem:[%s14791_s23 + $0x2c] ss:$48 sps:$4 sm:$0xff]   ;;  %v12900_v24 = vld [vmem:[%s14791_s23 + $0x20] ss:$48 sps:$4 sm:$0xff]  }
 0xf24   : > { %7057 = vmatprep.subr.bf16.mxu0 %v12833_v16  ;;  %v12903_v16 = vld [vmem:[%s14791_s23 + $0x28] ss:$48 sps:$4 sm:$0xff]  }
 0xf26   : > { %6972 = vmatpush1.bf16.msra.mxu1 %v12828_v25  ;;  %v12908_v25 = vld [vmem:[%s14791_s23 + $0x84] ss:$48 sps:$4 sm:$0xff]  }
 0xf27   : > { %7058 = vmatpush1.bf16.msra.mxu0 %v12831_v12  ;;  %6973 = vmatprep.subr.bf16.mxu1 %v12836_v35  ;;  %v12911_v12 = vld [vmem:[%s14791_s23 + $0x8c] ss:$48 sps:$4 sm:$0xff]   ;;  %v12906_v35 = vld [vmem:[%s14791_s23 + $0x80] ss:$48 sps:$4 sm:$0xff]  }
 0xf28   : > { %7059 = vmatprep.subr.bf16.mxu0 %v12839_v36  ;;  %v12909_v36 = vld [vmem:[%s14791_s23 + $0x88] ss:$48 sps:$4 sm:$0xff]  }
 0xf2a   : > { %6974 = vmatpush1.bf16.msra.mxu1 %v12834_v10  ;;  %v12914_v10 = vld [vmem:[%s14791_s23 + $0xe4] ss:$48 sps:$4 sm:$0xff]  }
 0xf2b   : > { %7060 = vmatpush1.bf16.msra.mxu0 %v12837_v37  ;;  %6975 = vmatprep.subr.bf16.mxu1 %v12842_v38  ;;  %v12917_v37 = vld [vmem:[%s14791_s23 + $0xec] ss:$48 sps:$4 sm:$0xff]   ;;  %v12912_v38 = vld [vmem:[%s14791_s23 + $0xe0] ss:$48 sps:$4 sm:$0xff]  }
 0xf2c   : > { %7061 = vmatprep.subr.bf16.mxu0 %v12845_v39  ;;  %v12915_v39 = vld [vmem:[%s14791_s23 + $0xe8] ss:$48 sps:$4 sm:$0xff]  }
 0xf2e   : > { %6976 = vmatpush1.bf16.msra.mxu1 %v12840_v40  ;;  %v12920_v40 = vld [vmem:[%s14791_s23 + $0x144] ss:$48 sps:$4 sm:$0xff]  }
 0xf2f   : > { %7062 = vmatpush1.bf16.msra.mxu0 %v12843_v44  ;;  %6977 = vmatprep.subr.bf16.mxu1 %v12848_v13  ;;  %v12923_v44 = vld [vmem:[%s14791_s23 + $0x14c] ss:$48 sps:$4 sm:$0xff]   ;;  %v12921_v13 = vld [vmem:[%s14791_s23 + $0x148] ss:$48 sps:$4 sm:$0xff]  }
 0xf30   : > { %7063 = vmatprep.subr.bf16.mxu0 %v12851_v60  ;;  %v12926_v60 = vld [vmem:[%s14791_s23 + $0x1a4] ss:$48 sps:$4 sm:$0xff]  }
 0xf32   : > { %6978 = vmatpush1.bf16.msra.mxu1 %v12846_v45  ;;  %v12929_v45 = vld [vmem:[%s14791_s23 + $0x1ac] ss:$48 sps:$4 sm:$0xff]  }
 0xf33   : > { %7064 = vmatpush1.bf16.msra.mxu0 %v12849_v3  ;;  %6990 = vmatprep.subr.bf16.mxu1 %v12854_v52  ;;  %v12924_v3 = vld [vmem:[%s14791_s23 + $0x1a0] ss:$48 sps:$4 sm:$0xff]   ;;  %v12927_v52 = vld [vmem:[%s14791_s23 + $0x1a8] ss:$48 sps:$4 sm:$0xff]  }
 0xf34   : > { %7076 = vmatprep.subr.bf16.mxu0 %v12857_v6  ;;  %v12932_v6 = vld [vmem:[%s14791_s23 + $0x204] ss:$48 sps:$4 sm:$0xff]  }
 0xf35   : > { %6980 = vmatmul.mubr.bf16.vlgmr.msra.gmra.mrb[64].mxu1 %v15738_v20 }
 0xf36   : > { %7066 = vmatmul.mubr.bf16.vlgmr.msra.gmra.mrb[80].mxu0 %v15738_v20  ;;  %6991 = vmatpush1.bf16.msra.mxu1 %v12852_v18  ;;  %v12935_v18 = vld [vmem:[%s14791_s23 + $0x20c] ss:$48 sps:$4 sm:$0xff]  }
 0xf37   : > { %7077 = vmatpush1.bf16.msra.mxu0 %v12855_v43  ;;  %6992 = vmatprep.subr.bf16.mxu1 %v12860_v54  ;;  %v12930_v43 = vld [vmem:[%s14791_s23 + $0x200] ss:$48 sps:$4 sm:$0xff]   ;;  %v12933_v54 = vld [vmem:[%s14791_s23 + $0x208] ss:$48 sps:$4 sm:$0xff]  }
 0xf38   : > { %7078 = vmatprep.subr.bf16.mxu0 %v12863_v29  ;;  %7022 = vmatprep.mubr.bf16.mxu1 %v14116_v17  ;;  %v12938_v29 = vld [vmem:[%s14791_s23 + $0x264] ss:$48 sps:$4 sm:$0xff]  }
 0xf39   : > { %7108 = vmatprep.mubr.bf16.mxu0 %v14116_v17 }
 0xf3a   : > { %6993 = vmatpush1.bf16.msra.mxu1 %v12858_v9  ;;  %v12941_v9 = vld [vmem:[%s14791_s23 + $0x26c] ss:$48 sps:$4 sm:$0xff]  }
 0xf3b   : > { %7079 = vmatpush1.bf16.msra.mxu0 %v12861_v41  ;;  %6994 = vmatprep.subr.bf16.mxu1 %v12866_v57  ;;  %v12936_v41 = vld [vmem:[%s14791_s23 + $0x260] ss:$48 sps:$4 sm:$0xff]   ;;  %v12939_v57 = vld [vmem:[%s14791_s23 + $0x268] ss:$48 sps:$4 sm:$0xff]  }
 0xf3c   : > { %7080 = vmatprep.subr.bf16.mxu0 %v12869_v53  ;;  %v12944_v53 = vld [vmem:[%s14791_s23 + $0x2c4] ss:$48 sps:$4 sm:$0xff]  }
 0xf3e   : > { %6995 = vmatpush1.bf16.msra.mxu1 %v12864_v59  ;;  %v12947_v59 = vld [vmem:[%s14791_s23 + $0x2cc] ss:$48 sps:$4 sm:$0xff]  }
 0xf3f   : > { %7081 = vmatpush1.bf16.msra.mxu0 %v12867_v2  ;;  %6996 = vmatprep.subr.bf16.mxu1 %v12872_v31  ;;  %v12942_v2 = vld [vmem:[%s14791_s23 + $0x2c0] ss:$48 sps:$4 sm:$0xff]   ;;  %v12945_v31 = vld [vmem:[%s14791_s23 + $0x2c8] ss:$48 sps:$4 sm:$0xff]  }
 0xf40   : > { %7082 = vmatprep.subr.bf16.mxu0 %v12875_v1  ;;  %v12950_v1 = vld [vmem:[%s14791_s23 + $0x324] ss:$48 sps:$4 sm:$0xff]  }
 0xf42   : > { %6997 = vmatpush1.bf16.msra.mxu1 %v12870_v50  ;;  %v12953_v50 = vld [vmem:[%s14791_s23 + $0x32c] ss:$48 sps:$4 sm:$0xff]  }
 0xf43   : > { %7083 = vmatpush1.bf16.msra.mxu0 %v12873_v11  ;;  %6998 = vmatprep.subr.bf16.mxu1 %v12878_v62  ;;  %v12948_v11 = vld [vmem:[%s14791_s23 + $0x320] ss:$48 sps:$4 sm:$0xff]   ;;  %v12951_v62 = vld [vmem:[%s14791_s23 + $0x328] ss:$48 sps:$4 sm:$0xff]  }
 0xf44   : > { %7084 = vmatprep.subr.bf16.mxu0 %v12881_v26  ;;  %v12956_v26 = vld [vmem:[%s14791_s23 + $0x384] ss:$48 sps:$4 sm:$0xff]  }
 0xf46   : > { %6999 = vmatpush1.bf16.msra.mxu1 %v12876_v55  ;;  %v12959_v55 = vld [vmem:[%s14791_s23 + $0x38c] ss:$48 sps:$4 sm:$0xff]  }
 0xf47   : > { %7085 = vmatpush1.bf16.msra.mxu0 %v12879_v42  ;;  %7000 = vmatprep.subr.bf16.mxu1 %v12884_v51  ;;  %v12954_v42 = vld [vmem:[%s14791_s23 + $0x380] ss:$48 sps:$4 sm:$0xff]   ;;  %v12957_v51 = vld [vmem:[%s14791_s23 + $0x388] ss:$48 sps:$4 sm:$0xff]  }
 0xf48   : > { %7086 = vmatprep.subr.bf16.mxu0 %v12887_v61  ;;  %v12962_v61 = vld [vmem:[%s14791_s23 + $0x3e4] ss:$48 sps:$4 sm:$0xff]  }
 0xf4a   : > { %7001 = vmatpush1.bf16.msra.mxu1 %v12882_v21  ;;  %v12965_v21 = vld [vmem:[%s14791_s23 + $0x3ec] ss:$48 sps:$4 sm:$0xff]  }
 0xf4b   : > { %7087 = vmatpush1.bf16.msra.mxu0 %v12885_v0  ;;  %7002 = vmatprep.subr.bf16.mxu1 %v12890_v46  ;;  %v12960_v0 = vld [vmem:[%s14791_s23 + $0x3e0] ss:$48 sps:$4 sm:$0xff]   ;;  %v12963_v46 = vld [vmem:[%s14791_s23 + $0x3e8] ss:$48 sps:$4 sm:$0xff]  }
 0xf4c   : > { %7088 = vmatprep.subr.bf16.mxu0 %v12893_v4  ;;  %v12968_v4 = vld [vmem:[%s14791_s23 + $0x444] ss:$48 sps:$4 sm:$0xff]  }
 0xf4e   : > { %7003 = vmatpush1.bf16.msra.mxu1 %v12888_v8  ;;  %v12971_v8 = vld [vmem:[%s14791_s23 + $0x44c] ss:$48 sps:$4 sm:$0xff]  }
 0xf4f   : > { %7089 = vmatpush1.bf16.msra.mxu0 %v12891_v56  ;;  %7004 = vmatprep.subr.bf16.mxu1 %v12896_v27  ;;  %v12966_v56 = vld [vmem:[%s14791_s23 + $0x440] ss:$48 sps:$4 sm:$0xff]   ;;  %v12969_v27 = vld [vmem:[%s14791_s23 + $0x448] ss:$48 sps:$4 sm:$0xff]  }
 0xf50   : > { %7090 = vmatprep.subr.bf16.mxu0 %v12899_v28  ;;  %v12974_v28 = vld [vmem:[%s14791_s23 + $0x4a4] ss:$48 sps:$4 sm:$0xff]  }
 0xf52   : > { %7005 = vmatpush1.bf16.msra.mxu1 %v12894_v22  ;;  %v12977_v22 = vld [vmem:[%s14791_s23 + $0x4ac] ss:$48 sps:$4 sm:$0xff]  }
 0xf53   : > { %7091 = vmatpush1.bf16.msra.mxu0 %v12897_v19  ;;  %7119 = vmatprep.subr.bf16.mxu1 %v12902_v23  ;;  %v12972_v19 = vld [vmem:[%s14791_s23 + $0x4a0] ss:$48 sps:$4 sm:$0xff]   ;;  %v12975_v23 = vld [vmem:[%s14791_s23 + $0x4a8] ss:$48 sps:$4 sm:$0xff]  }
 0xf54   : > { %7205 = vmatprep.subr.bf16.mxu0 %v12905_v48  ;;  %v12980_v48 = vld [vmem:[%s14791_s23 + $0x504] ss:$48 sps:$4 sm:$0xff]  }
 0xf55   : > { %7023 = vmatmul.mubr.bf16.vlgmr.msra.gmra.mrb[64].mxu1 %v15785_v63 }
 0xf56   : > { %7109 = vmatmul.mubr.bf16.vlgmr.msra.gmra.mrb[80].mxu0 %v15785_v63  ;;  %7120 = vmatpush1.bf16.msra.mxu1 %v12900_v24  ;;  %v12983_v24 = vld [vmem:[%s14791_s23 + $0x50c] ss:$48 sps:$4 sm:$0xff]  }
 0xf57   : > { %7151 = vmatprep.mubr.bf16.mxu1 %v15734_v47  ;;  %7206 = vmatpush1.bf16.msra.mxu0 %v12903_v16  ;;  %v12978_v16 = vld [vmem:[%s14791_s23 + $0x500] ss:$48 sps:$4 sm:$0xff]  }
 0xf58   : > { %7237 = vmatprep.mubr.bf16.mxu0 %v15734_v47  ;;  %7121 = vmatprep.subr.bf16.mxu1 %v12908_v25  ;;  %v12918_v47 = vld [vmem:[%s14791_s23 + $0x140] ss:$48 sps:$4 sm:$0xff]   ;;  %v12981_v25 = vld [vmem:[%s14791_s23 + $0x508] ss:$48 sps:$4 sm:$0xff]  }
 0xf59   : > { %7207 = vmatprep.subr.bf16.mxu0 %v12911_v12  ;;  %v12986_v12 = vld [vmem:[%s14791_s23 + $0x564] ss:$48 sps:$4 sm:$0xff]  }
 0xf5a   : > { %7122 = vmatpush1.bf16.msra.mxu1 %v12906_v35  ;;  %v12989_v35 = vld [vmem:[%s14791_s23 + $0x56c] ss:$48 sps:$4 sm:$0xff]  }
 0xf5b   : > { %7208 = vmatpush1.bf16.msra.mxu0 %v12909_v36  ;;  %7123 = vmatprep.subr.bf16.mxu1 %v12914_v10  ;;  %v12984_v36 = vld [vmem:[%s14791_s23 + $0x560] ss:$48 sps:$4 sm:$0xff]   ;;  %v12987_v10 = vld [vmem:[%s14791_s23 + $0x568] ss:$48 sps:$4 sm:$0xff]  }
 0xf5c   : > { %7209 = vmatprep.subr.bf16.mxu0 %v12917_v37  ;;  %v12992_v37 = vld [vmem:[%s14791_s23 + $0x5c4] ss:$48 sps:$4 sm:$0xff]  }
 0xf5e   : > { %7124 = vmatpush1.bf16.msra.mxu1 %v12912_v38  ;;  %v12995_v38 = vld [vmem:[%s14791_s23 + $0x5cc] ss:$48 sps:$4 sm:$0xff]  }
 0xf5f   : > { %7210 = vmatpush1.bf16.msra.mxu0 %v12915_v39  ;;  %7125 = vmatprep.subr.bf16.mxu1 %v12920_v40  ;;  %v12990_v39 = vld [vmem:[%s14791_s23 + $0x5c0] ss:$48 sps:$4 sm:$0xff]   ;;  %v12993_v40 = vld [vmem:[%s14791_s23 + $0x5c8] ss:$48 sps:$4 sm:$0xff]  }
 0xf60   : > { %7211 = vmatprep.subr.bf16.mxu0 %v12923_v44  ;;  %v12998_v44 = vld [vmem:[%s14791_s23 + $0x624] ss:$48 sps:$4 sm:$0xff]  }
 0xf62   : > { %7126 = vmatpush1.bf16.msra.mxu1 %v12918_v47  ;;  %v13001_v47 = vld [vmem:[%s14791_s23 + $0x62c] ss:$48 sps:$4 sm:$0xff]  }
 0xf63   : > { %7212 = vmatpush1.bf16.msra.mxu0 %v12921_v13  ;;  %7127 = vmatprep.subr.bf16.mxu1 %v12926_v60  ;;  %v12996_v13 = vld [vmem:[%s14791_s23 + $0x620] ss:$48 sps:$4 sm:$0xff]   ;;  %v12999_v60 = vld [vmem:[%s14791_s23 + $0x628] ss:$48 sps:$4 sm:$0xff]  }
 0xf64   : > { %7213 = vmatprep.subr.bf16.mxu0 %v12929_v45  ;;  %v13004_v45 = vld [vmem:[%s14791_s23 + $0x684] ss:$48 sps:$4 sm:$0xff]  }
 0xf66   : > { %7128 = vmatpush1.bf16.msra.mxu1 %v12924_v3  ;;  %v13007_v3 = vld [vmem:[%s14791_s23 + $0x68c] ss:$48 sps:$4 sm:$0xff]  }
 0xf67   : > { %7214 = vmatpush1.bf16.msra.mxu0 %v12927_v52  ;;  %7129 = vmatprep.subr.bf16.mxu1 %v12932_v6  ;;  %v13002_v52 = vld [vmem:[%s14791_s23 + $0x680] ss:$48 sps:$4 sm:$0xff]   ;;  %v13005_v6 = vld [vmem:[%s14791_s23 + $0x688] ss:$48 sps:$4 sm:$0xff]  }
 0xf68   : > { %7215 = vmatprep.subr.bf16.mxu0 %v12935_v18  ;;  %v13010_v18 = vld [vmem:[%s14791_s23 + $0x6e4] ss:$48 sps:$4 sm:$0xff]  }
 0xf6a   : > { %7130 = vmatpush1.bf16.msra.mxu1 %v12930_v43  ;;  %v13013_v43 = vld [vmem:[%s14791_s23 + $0x6ec] ss:$48 sps:$4 sm:$0xff]  }
 0xf6b   : > { %7216 = vmatpush1.bf16.msra.mxu0 %v12933_v54  ;;  %7131 = vmatprep.subr.bf16.mxu1 %v12938_v29  ;;  %v13011_v54 = vld [vmem:[%s14791_s23 + $0x6e8] ss:$48 sps:$4 sm:$0xff]   ;;  %v13016_v29 = vld [vmem:[%s14791_s23 + $0x744] ss:$48 sps:$4 sm:$0xff]  }
 0xf6c   : > { %7217 = vmatprep.subr.bf16.mxu0 %v12941_v9  ;;  %v13019_v9 = vld [vmem:[%s14791_s23 + $0x74c] ss:$48 sps:$4 sm:$0xff]  }
 0xf6e   : > { %7132 = vmatpush1.bf16.msra.mxu1 %v12936_v41  ;;  %v13014_v41 = vld [vmem:[%s14791_s23 + $0x740] ss:$48 sps:$4 sm:$0xff]  }
 0xf6f   : > { %7218 = vmatpush1.bf16.msra.mxu0 %v12939_v57  ;;  %7133 = vmatprep.subr.bf16.mxu1 %v12944_v53  ;;  %v13017_v57 = vld [vmem:[%s14791_s23 + $0x748] ss:$48 sps:$4 sm:$0xff]   ;;  %v13025_v53 = vld [vmem:[%s14791_s23 + $0x7ac] ss:$48 sps:$4 sm:$0xff]  }
 0xf70   : > { %7219 = vmatprep.subr.bf16.mxu0 %v12947_v59  ;;  %v13020_v59 = vld [vmem:[%s14791_s23 + $0x7a0] ss:$48 sps:$4 sm:$0xff]  }
 0xf72   : > { %7134 = vmatpush1.bf16.msra.mxu1 %v12942_v2  ;;  %v13023_v2 = vld [vmem:[%s14791_s23 + $0x7a8] ss:$48 sps:$4 sm:$0xff]  }
 0xf73   : > { %7220 = vmatpush1.bf16.msra.mxu0 %v12945_v31  ;;  %7135 = vmatprep.subr.bf16.mxu1 %v12950_v1  ;;  %v13028_v31 = vld [vmem:[%s14791_s23 + $0x804] ss:$48 sps:$4 sm:$0xff]   ;;  %v13031_v1 = vld [vmem:[%s14791_s23 + $0x80c] ss:$48 sps:$4 sm:$0xff]  }
 0xf74   : > { %7221 = vmatprep.subr.bf16.mxu0 %v12953_v50  ;;  %v13026_v50 = vld [vmem:[%s14791_s23 + $0x800] ss:$48 sps:$4 sm:$0xff]  }
 0xf76   : > { %7136 = vmatpush1.bf16.msra.mxu1 %v12948_v11  ;;  %v13029_v11 = vld [vmem:[%s14791_s23 + $0x808] ss:$48 sps:$4 sm:$0xff]  }
 0xf77   : > { %7222 = vmatpush1.bf16.msra.mxu0 %v12951_v62  ;;  %7137 = vmatprep.subr.bf16.mxu1 %v12956_v26  ;;  %v13034_v62 = vld [vmem:[%s14791_s23 + $0x864] ss:$48 sps:$4 sm:$0xff]   ;;  %v13037_v26 = vld [vmem:[%s14791_s23 + $0x86c] ss:$48 sps:$4 sm:$0xff]  }
 0xf78   : > { %7223 = vmatprep.subr.bf16.mxu0 %v12959_v55  ;;  %v13032_v55 = vld [vmem:[%s14791_s23 + $0x860] ss:$48 sps:$4 sm:$0xff]  }
 0xf7a   : > { %7138 = vmatpush1.bf16.msra.mxu1 %v12954_v42  ;;  %v13035_v42 = vld [vmem:[%s14791_s23 + $0x868] ss:$48 sps:$4 sm:$0xff]  }
 0xf7b   : > { %7224 = vmatpush1.bf16.msra.mxu0 %v12957_v51  ;;  %7139 = vmatprep.subr.bf16.mxu1 %v12962_v61  ;;  %v13040_v51 = vld [vmem:[%s14791_s23 + $0x8c4] ss:$48 sps:$4 sm:$0xff]   ;;  %v13043_v61 = vld [vmem:[%s14791_s23 + $0x8cc] ss:$48 sps:$4 sm:$0xff]  }
 0xf7c   : > { %7225 = vmatprep.subr.bf16.mxu0 %v12965_v21  ;;  %v13038_v21 = vld [vmem:[%s14791_s23 + $0x8c0] ss:$48 sps:$4 sm:$0xff]  }
 0xf7e   : > { %7140 = vmatpush1.bf16.msra.mxu1 %v12960_v0  ;;  %v13041_v0 = vld [vmem:[%s14791_s23 + $0x8c8] ss:$48 sps:$4 sm:$0xff]  }
 0xf7f   : > { %7226 = vmatpush1.bf16.msra.mxu0 %v12963_v46  ;;  %7141 = vmatprep.subr.bf16.mxu1 %v12968_v4  ;;  %v13046_v46 = vld [vmem:[%s14800_s8 + $0x4] ss:$12 sps:$4 sm:$0xff]   ;;  %v13047_v4 = vld [vmem:[%s14800_s8 + $0xc8] ss:$12 sps:$4 sm:$0xff]  }
 0xf80   : > { %7227 = vmatprep.subr.bf16.mxu0 %v12971_v8  ;;  %v13044_v8 = vld [vmem:[%s14800_s8] ss:$12 sps:$4 sm:$0xff]  }
 0xf82   : > { %7142 = vmatpush1.bf16.msra.mxu1 %v12966_v56  ;;  %v13048_v56 = vld [vmem:[%s14800_s8 + $0x8] ss:$12 sps:$4 sm:$0xff]  }
 0xf83   : > { %7228 = vmatpush1.bf16.msra.mxu0 %v12969_v27  ;;  %7143 = vmatprep.subr.bf16.mxu1 %v12974_v28  ;;  %v13051_v27 = vld [vmem:[%s14800_s8 + $0x1c] ss:$12 sps:$4 sm:$0xff]   ;;  %v13052_v28 = vld [vmem:[%s14800_s8 + $0xe0] ss:$12 sps:$4 sm:$0xff]  }
 0xf84   : > { %7229 = vmatprep.subr.bf16.mxu0 %v12977_v22  ;;  %v13049_v22 = vld [vmem:[%s14800_s8 + $0x18] ss:$12 sps:$4 sm:$0xff]  }
 0xf86   : > { %7144 = vmatpush1.bf16.msra.mxu1 %v12972_v19  ;;  %v13053_v19 = vld [vmem:[%s14800_s8 + $0x20] ss:$12 sps:$4 sm:$0xff]  }
 0xf87   : > { %7230 = vmatpush1.bf16.msra.mxu0 %v12975_v23  ;;  %7145 = vmatprep.subr.bf16.mxu1 %v12980_v48  ;;  %v13056_v23 = vld [vmem:[%s14800_s8 + $0x34] ss:$12 sps:$4 sm:$0xff]   ;;  %v13057_v48 = vld [vmem:[%s14800_s8 + $0xf8] ss:$12 sps:$4 sm:$0xff]  }
 0xf88   : > { %7231 = vmatprep.subr.bf16.mxu0 %v12983_v24  ;;  %v13054_v24 = vld [vmem:[%s14800_s8 + $0x30] ss:$12 sps:$4 sm:$0xff]  }
 0xf8a   : > { %7146 = vmatpush1.bf16.msra.mxu1 %v12978_v16  ;;  %v13061_v16 = vld [vmem:[%s14800_s8 + $0x4c] ss:$12 sps:$4 sm:$0xff]  }
 0xf8b   : > { %7232 = vmatpush1.bf16.msra.mxu0 %v12981_v25  ;;  %7147 = vmatprep.subr.bf16.mxu1 %v12986_v12  ;;  %v13062_v25 = vld [vmem:[%s14800_s8 + $0x110] ss:$12 sps:$4 sm:$0xff]   ;;  %v13059_v12 = vld [vmem:[%s14800_s8 + $0x48] ss:$12 sps:$4 sm:$0xff]  }
 0xf8c   : > { %7233 = vmatprep.subr.bf16.mxu0 %v12989_v35  ;;  %v13063_v35 = vld [vmem:[%s14800_s8 + $0x50] ss:$12 sps:$4 sm:$0xff]  }
 0xf8e   : > { %7148 = vmatpush1.bf16.msra.mxu1 %v12984_v36  ;;  %v13066_v36 = vld [vmem:[%s14800_s8 + $0x64] ss:$12 sps:$4 sm:$0xff]  }
 0xf8f   : > { %7234 = vmatpush1.bf16.msra.mxu0 %v12987_v10  ;;  %7149 = vmatprep.subr.bf16.mxu1 %v12992_v37  ;;  %v13067_v10 = vld [vmem:[%s14800_s8 + $0x128] ss:$12 sps:$4 sm:$0xff]   ;;  %v13064_v37 = vld [vmem:[%s14800_s8 + $0x60] ss:$12 sps:$4 sm:$0xff]  }
 0xf90   : > { %7235 = vmatprep.subr.bf16.mxu0 %v12995_v38  ;;  %v16014_v38 = vld [vmem:[%s14794_s19] sm:$0xff] }
 0xf92   : > { %7150 = vmatpush1.bf16.msra.mxu1 %v12990_v39  ;;  %v5289_v39 = vsub.s32 3, %v14910_v30 }
 0xf93   : > { %7236 = vmatpush1.bf16.msra.mxu0 %v12993_v40  ;;  %7162 = vmatprep.subr.bf16.mxu1 %v12998_v44  ;;  %v13068_v40 = vld [vmem:[%s14800_s8 + $0x68] ss:$12 sps:$4 sm:$0xff]  }
 0xf94   : > { %7248 = vmatprep.subr.bf16.mxu0 %v13001_v47  ;;  %v13071_v44 = vld [vmem:[%s14800_s8 + $0x7c] ss:$12 sps:$4 sm:$0xff]   ;;  %v13072_v47 = vld [vmem:[%s14800_s8 + $0x140] ss:$12 sps:$4 sm:$0xff]  }
 0xf95   : > { %7152 = vmatmul.mubr.bf16.vlgmr.msra.gmra.mrb[68].mxu1 %v15738_v20 }
 0xf96   : > { %7238 = vmatmul.mubr.bf16.vlgmr.msra.gmra.mrb[84].mxu0 %v15738_v20  ;;  %7163 = vmatpush1.bf16.msra.mxu1 %v12996_v13  ;;  %v13008_v20 = vld [vmem:[%s14791_s23 + $0x6e0] ss:$48 sps:$4 sm:$0xff]   ;;  %v5278_v13 = vrot.slane %v16014_v38, %v14921_v34 }
 0xf97   : > { %7249 = vmatpush1.bf16.msra.mxu0 %v12999_v60  ;;  %7164 = vmatprep.subr.bf16.mxu1 %v13004_v45  ;;  %v5286_v60 = vrot.slane %v16014_v38, %v14918_v33  ;;  %v5282_v45 = vrot.slane %v16014_v38, %v14915_v32 }
 0xf98   : > { %7250 = vmatprep.subr.bf16.mxu0 %v13007_v3  ;;  %7194 = vmatprep.mubr.bf16.mxu1 %v14116_v17  ;;  %v5290_v3 = vrot.slane %v16014_v38, %v5289_v39 }
 0xf99   : > { %7280 = vmatprep.mubr.bf16.mxu0 %v14116_v17  ;;  %v13022_v17 = vld [vmem:[%s14791_s23 + $0x7a4] ss:$48 sps:$4 sm:$0xff]  }
 0xf9a   : > { %7165 = vmatpush1.bf16.msra.mxu1 %v13002_v52  ;;  %v13069_v52 = vld [vmem:[%s14800_s8 + $0x78] ss:$12 sps:$4 sm:$0xff]  }
 0xf9b   : > { %7251 = vmatpush1.bf16.msra.mxu0 %v13005_v6  ;;  %7166 = vmatprep.subr.bf16.mxu1 %v13010_v18  ;;  %v13073_v6 = vld [vmem:[%s14800_s8 + $0x80] ss:$12 sps:$4 sm:$0xff]  }
 0xf9c   : > { %7252 = vmatprep.subr.bf16.mxu0 %v13013_v43  ;;  %v13076_v18 = vld [vmem:[%s14800_s8 + $0x94] ss:$12 sps:$4 sm:$0xff]  }
 0xf9e   : > { %7167 = vmatpush1.bf16.msra.mxu1 %v13008_v20 }
 0xf9f   : > { %7253 = vmatpush1.bf16.msra.mxu0 %v13011_v54  ;;  %7168 = vmatprep.subr.bf16.mxu1 %v13016_v29  ;;  %v13077_v54 = vld [vmem:[%s14800_s8 + $0x158] ss:$12 sps:$4 sm:$0xff]  }
 0xfa0   : > { %7254 = vmatprep.subr.bf16.mxu0 %v13019_v9 }
 0xfa2   : > { %7169 = vmatpush1.bf16.msra.mxu1 %v13014_v41 }
 0xfa3   : > { %7255 = vmatpush1.bf16.msra.mxu0 %v13017_v57  ;;  %7170 = vmatprep.subr.bf16.mxu1 %v13022_v17 }
 0xfa4   : > { %7256 = vmatprep.subr.bf16.mxu0 %v13025_v53 }
 0xfa6   : > { %7171 = vmatpush1.bf16.msra.mxu1 %v13020_v59 }
 0xfa7   : > { %7257 = vmatpush1.bf16.msra.mxu0 %v13023_v2  ;;  %7172 = vmatprep.subr.bf16.mxu1 %v13028_v31  ;;  %v13074_v31 = vld [vmem:[%s14800_s8 + $0x90] ss:$12 sps:$4 sm:$0xff]  }
 0xfa8   : > { %7258 = vmatprep.subr.bf16.mxu0 %v13031_v1 }
 0xfaa   : > { %7173 = vmatpush1.bf16.msra.mxu1 %v13026_v50 }
 0xfab   : > { %7259 = vmatpush1.bf16.msra.mxu0 %v13029_v11  ;;  %7174 = vmatprep.subr.bf16.mxu1 %v13034_v62 }
 0xfac   : > { %7260 = vmatprep.subr.bf16.mxu0 %v13037_v26  ;;  %v13078_v26 = vld [vmem:[%s14800_s8 + $0x98] ss:$12 sps:$4 sm:$0xff]  }
 0xfae   : > { %7175 = vmatpush1.bf16.msra.mxu1 %v13032_v55  ;;  %v13081_v55 = vld [vmem:[%s14800_s8 + $0xac] ss:$12 sps:$4 sm:$0xff]  }
 0xfaf   : > { %7261 = vmatpush1.bf16.msra.mxu0 %v13035_v42  ;;  %7176 = vmatprep.subr.bf16.mxu1 %v13040_v51 }
 0xfb0   : > { %7262 = vmatprep.subr.bf16.mxu0 %v13043_v61  ;;  %v13082_v61 = vld [vmem:[%s14800_s8 + $0x170] ss:$12 sps:$4 sm:$0xff]  }
 0xfb2   : > { %7177 = vmatpush1.bf16.msra.mxu1 %v13038_v21 }
 0xfb3   : > { %7263 = vmatpush1.bf16.msra.mxu0 %v13041_v0  ;;  %9247 = vmatprep.subr.bf16.mxu1 %v13046_v46 }
 0xfb4   : > { %11542 = vmatprep.subr.bf16.mxu0 %v13047_v4 }
 0xfb5   : > { %7195 = vmatmul.mubr.bf16.vlgmr.msra.gmra.mrb[68].mxu1 %v15785_v63 }
 0xfb6   : > { %7281 = vmatmul.mubr.bf16.vlgmr.msra.gmra.mrb[84].mxu0 %v15785_v63  ;;  %9248 = vmatpush1.bf16.msra.mxu1 %v13044_v8  ;;  %v13058_v63 = vld [vmem:[%s14800_s8 + $0x38] ss:$12 sps:$4 sm:$0xff]  }
 0xfb7   : > { %11543 = vmatpush3.bf16.msra.mxu0 %v13048_v56  ;;  %9249 = vmatprep.subr.bf16.mxu1 %v13051_v27 }
 0xfb8   : > { %11544 = vmatprep.subr.bf16.mxu0 %v13052_v28 }
 0xfba   : > { %9250 = vmatpush1.bf16.msra.mxu1 %v13049_v22  ;;  %v13079_v22 = vld [vmem:[%s14800_s8 + $0xa8] ss:$12 sps:$4 sm:$0xff]  }
 0xfbb   : > { %11545 = vmatpush3.bf16.msra.mxu0 %v13053_v19  ;;  %9251 = vmatprep.subr.bf16.mxu1 %v13056_v23 }
 0xfbc   : > { %11546 = vmatprep.subr.bf16.mxu0 %v13057_v48  ;;  %v13083_v48 = vld [vmem:[%s14800_s8 + $0xb0] ss:$12 sps:$4 sm:$0xff]  }
 0xfbe   : > { %9252 = vmatpush1.bf16.msra.mxu1 %v13054_v24 }
 0xfbf   : > { %11547 = vmatpush3.bf16.msra.mxu0 %v13058_v63  ;;  %9253 = vmatprep.subr.bf16.mxu1 %v13061_v16  ;;  %v13086_v16 = vld [vmem:[%s14800_s8 + $0xc4] ss:$12 sps:$4 sm:$0xff]  }
 0xfc0   : > { %11548 = vmatprep.subr.bf16.mxu0 %v13062_v25  ;;  %v13087_v25 = vld [vmem:[%s14800_s8 + $0x248] ss:$12 sps:$4 sm:$0xff]  }
 0xfc2   : > { %9254 = vmatpush1.bf16.msra.mxu1 %v13059_v12  ;;  %v13084_v12 = vld [vmem:[%s14800_s8 + $0xc0] ss:$12 sps:$4 sm:$0xff]  }
 0xfc3   : > { %11549 = vmatpush3.bf16.msra.mxu0 %v13063_v35  ;;  %9255 = vmatprep.subr.bf16.mxu1 %v13066_v36  ;;  %v13088_v35 = vld [vmem:[%s14800_s8 + $0x188] ss:$12 sps:$4 sm:$0xff]  }
 0xfc4   : > { %11550 = vmatprep.subr.bf16.mxu0 %v13067_v10  ;;  %v13091_v36 = vld [vmem:[%s14800_s8 + $0xdc] ss:$12 sps:$4 sm:$0xff]   ;;  %v13092_v10 = vld [vmem:[%s14800_s8 + $0x260] ss:$12 sps:$4 sm:$0xff]  }
 0xfc6   : > { %9256 = vmatpush1.bf16.msra.mxu1 %v13064_v37  ;;  %v13089_v37 = vld [vmem:[%s14800_s8 + $0xd8] ss:$12 sps:$4 sm:$0xff]  }
 0xfc7   : > { %11551 = vmatpush3.bf16.msra.mxu0 %v13068_v40  ;;  %9257 = vmatprep.subr.bf16.mxu1 %v13071_v44  ;;  %v13093_v40 = vld [vmem:[%s14800_s8 + $0x1a0] ss:$12 sps:$4 sm:$0xff]  }
 0xfc8   : > { %v6852_v43 = vpop.f32.mrb[60].mxu1  ;;  %v6938_v20 = vpop.f32.mrb[76].mxu0  ;;  %11552 = vmatprep.subr.bf16.mxu0 %v13072_v47  ;;  %v13096_v44 = vld [vmem:[%s14800_s8 + $0xf4] ss:$12 sps:$4 sm:$0xff]   ;;  %v13097_v47 = vld [vmem:[%s14800_s8 + $0x278] ss:$12 sps:$4 sm:$0xff]  }
 0xfc9   : > { %v11913_v29 = vadd.f32 %v6852_v43, %v5278_v13  ;;  %v11917_v9 = vadd.f32 %v6938_v20, %v5286_v60  ;;  %v6854_v41 = vpop.f32.mrb[61].mxu1  ;;  %v6940_v57 = vpop.f32.mrb[77].mxu0  ;;  %v13107_v43 = vld [vmem:[%s14800_s8 + $0x2a8] ss:$12 sps:$4 sm:$0xff]   ;;  %v13104_v20 = vld [vmem:[%s14800_s8 + $0x120] ss:$12 sps:$4 sm:$0xff]  }
 0xfca   : > { %v11914_v17 = vadd.f32 %v6854_v41, %v5282_v45  ;;  %v11918_v53 = vadd.f32 %v6940_v57, %v5290_v3  ;;  %v6856_v59 = vpop.f32.mrb[62].mxu1  ;;  %v6942_v2 = vpop.f32.mrb[78].mxu0  ;;  %9258 = vmatpush1.bf16.msra.mxu1 %v13069_v52  ;;  %v13099_v52 = vld [vmem:[%s14800_s8 + $0x108] ss:$12 sps:$4 sm:$0xff]   ;;  %v13109_v41 = vld [vmem:[%s14800_s8 + $0x138] ss:$12 sps:$4 sm:$0xff]  }
 0xfcb   : > { %v11915_v1 = vadd.f32 %v6856_v59, %v5278_v13  ;;  %v11919_v50 = vadd.f32 %v6942_v2, %v5286_v60  ;;  %11553 = vmatpush3.bf16.msra.mxu0 %v13073_v6  ;;  %v6858_v11 = vpop.f32.mrb[63].mxu1  ;;  %v6944_v62 = vpop.f32.mrb[79].mxu0  ;;  %9259 = vmatprep.subr.bf16.mxu1 %v13076_v18  ;;  %v7291_v21 = vmax.f32 %v11913_v29, 0.0  ;;  %v7293_v0 = vmax.f32 %v11917_v9, 0.0  ;;  %v13094_v13 = vld [vmem:[%s14800_s8 + $0xf0] ss:$12 sps:$4 sm:$0xff]  }
 0xfcc   : > { %v11916_v42 = vadd.f32 %v6858_v11, %v5282_v45  ;;  %v11920_v51 = vadd.f32 %v6944_v62, %v5290_v3  ;;  %11554 = vmatprep.subr.bf16.mxu0 %v13077_v54  ;;  %v7292_v8 = vmax.f32 %v11914_v17, 0.0  ;;  %v7294_v56 = vmax.f32 %v11918_v53, 0.0  ;;  %v13098_v60 = vld [vmem:[%s14800_s8 + $0x1b8] ss:$12 sps:$4 sm:$0xff]   ;;  %v13102_v3 = vld [vmem:[%s14800_s8 + $0x290] ss:$12 sps:$4 sm:$0xff]  }
 0xfcd   : > { %v7303_v46 = vmax.f32 %v11915_v1, 0.0  ;;  %v7305_v4 = vmax.f32 %v11919_v50, 0.0  ;;  %v13101_v45 = vld [vmem:[%s14800_s8 + $0x10c] ss:$12 sps:$4 sm:$0xff]   ;;  %v13103_v6 = vld [vmem:[%s14800_s8 + $0x1d0] ss:$12 sps:$4 sm:$0xff]  }
 0xfce   : > { %v7304_v27 = vmax.f32 %v11916_v42, 0.0  ;;  %v7306_v28 = vmax.f32 %v11920_v51, 0.0  ;;  %9260 = vmatpush1.bf16.msra.mxu1 %v13074_v31  ;;  %v13106_v18 = vld [vmem:[%s14800_s8 + $0x124] ss:$12 sps:$4 sm:$0xff]   ;;  %v13108_v54 = vld [vmem:[%s14800_s8 + $0x1e8] ss:$12 sps:$4 sm:$0xff]  }
 0xfcf   : > { %v16038_v19 = vpack.c.bf16 %v7303_v46, %v7291_v21  ;;  %v16040_v23 = vpack.c.bf16 %v7305_v4, %v7293_v0  ;;  %11555 = vmatpush3.bf16.msra.mxu0 %v13078_v26  ;;  %9261 = vmatprep.subr.bf16.mxu1 %v13081_v55  ;;  %v13111_v29 = vld [vmem:[%s14800_s8 + $0x13c] ss:$12 sps:$4 sm:$0xff]   ;;  %v13112_v9 = vld [vmem:[%s14800_s8 + $0x2c0] ss:$12 sps:$4 sm:$0xff]   ;;  %v13117_v53 = vld [vmem:[%s14800_s8 + $0x2d8] ss:$12 sps:$4 sm:$0xff]  }
 0xfd0   : > { %v7316_v24 = vpack.c.bf16 %v7304_v27, %v7292_v8  ;;  %v16043_v63 = vpack.c.bf16 %v7306_v28, %v7294_v56  ;;  %11556 = vmatprep.subr.bf16.mxu0 %v13082_v61  ;;  %v13113_v57 = vld [vmem:[%s14800_s8 + $0x200] ss:$12 sps:$4 sm:$0xff]   ;;  %v13114_v59 = vld [vmem:[%s14800_s8 + $0x150] ss:$12 sps:$4 sm:$0xff]   ;;  %v13118_v2 = vld [vmem:[%s14800_s8 + $0x218] ss:$12 sps:$4 sm:$0xff]  }
 0xfd1   : > { %v13116_v17 = vld [vmem:[%s14800_s8 + $0x154] ss:$12 sps:$4 sm:$0xff]   ;;  %v13121_v31 = vld [vmem:[%s14800_s8 + $0x16c] ss:$12 sps:$4 sm:$0xff]   ;;  %v13122_v1 = vld [vmem:[%s14800_s8 + $0x2f0] ss:$12 sps:$4 sm:$0xff]  }
 0xfd2   : > { %9262 = vmatpush1.bf16.msra.mxu1 %v13079_v22  ;;  %9279 = vmatprep.mubr.bf16.mxu1 %v7316_v24  ;;  %v13119_v50 = vld [vmem:[%s14800_s8 + $0x168] ss:$12 sps:$4 sm:$0xff]   ;;  %v13123_v11 = vld [vmem:[%s14800_s8 + $0x230] ss:$12 sps:$4 sm:$0xff]   ;;  %v13124_v55 = vld [vmem:[%s14800_s8 + $0x180] ss:$12 sps:$4 sm:$0xff]  }
 0xfd3   : > { %11557 = vmatpush3.bf16.msra.mxu0 %v13083_v48  ;;  %9537 = vmatprep.mubr.bf16.mxu0 %v7316_v24  ;;  %v13126_v62 = vld [vmem:[%s14800_s8 + $0x184] ss:$12 sps:$4 sm:$0xff]   ;;  %v13148_v26 = vld [vmem:[%s14800_s8 + $0x3c8] ss:$12 sps:$4 sm:$0xff]   ;;  %v13153_v61 = vld [vmem:[%s14800_s8 + $0x3e0] ss:$12 sps:$4 sm:$0xff]  }
 0xfd4   : > { %9263 = vmatprep.subr.bf16.mxu1 %v13086_v16  ;;  %11564 = vmatprep.subr.bf16.mxu0 %v13087_v25  ;;  %v13129_v42 = vld [vmem:[%s14800_s8 + $0x19c] ss:$12 sps:$4 sm:$0xff]   ;;  %v13127_v21 = vld [vmem:[%s14800_s8 + $0x198] ss:$12 sps:$4 sm:$0xff]   ;;  %v13132_v0 = vld [vmem:[%s14800_s8 + $0x1b4] ss:$12 sps:$4 sm:$0xff]  }
 0xfd5   : > { %v13149_v51 = vld [vmem:[%s14800_s8 + $0x308] ss:$12 sps:$4 sm:$0xff]   ;;  %v13154_v46 = vld [vmem:[%s14800_s8 + $0x320] ss:$12 sps:$4 sm:$0xff]   ;;  %v13158_v4 = vld [vmem:[%s14800_s8 + $0x3f8] ss:$12 sps:$4 sm:$0xff]  }
 0xfd6   : > { %9538 = vmatmul.mubr.bf16.vlgmr.msra.gmra.mrb[88].mxu0 %v16038_v19  ;;  %9264 = vmatpush1.bf16.msra.mxu1 %v13084_v12  ;;  %v13130_v8 = vld [vmem:[%s14800_s8 + $0x1b0] ss:$12 sps:$4 sm:$0xff]   ;;  %v13135_v56 = vld [vmem:[%s14800_s8 + $0x1cc] ss:$12 sps:$4 sm:$0xff]   ;;  %v13133_v22 = vld [vmem:[%s14800_s8 + $0x1c8] ss:$12 sps:$4 sm:$0xff]  }
 0xfd7   : > { %11565 = vmatpush3.bf16.msra.mxu0 %v13088_v35  ;;  %9578 = vmatprep.mubr.bf16.mxu0 %v16043_v63  ;;  %v13159_v27 = vld [vmem:[%s14800_s8 + $0x338] ss:$12 sps:$4 sm:$0xff]   ;;  %v13163_v28 = vld [vmem:[%s14800_s8 + $0x410] ss:$12 sps:$4 sm:$0xff]   ;;  %v13168_v24 = vld [vmem:[%s14800_s8 + $0x428] ss:$12 sps:$4 sm:$0xff]  }
 0xfd8   : > { %9265 = vmatprep.subr.bf16.mxu1 %v13091_v36  ;;  %11566 = vmatprep.subr.bf16.mxu0 %v13092_v10  ;;  %v13164_v48 = vld [vmem:[%s14800_s8 + $0x350] ss:$12 sps:$4 sm:$0xff]   ;;  %v13169_v25 = vld [vmem:[%s14800_s8 + $0x368] ss:$12 sps:$4 sm:$0xff]   ;;  %v13173_v12 = vld [vmem:[%s14800_s8 + $0x440] ss:$12 sps:$4 sm:$0xff]  }
 0xfd9   : > { %v13141_v16 = vld [vmem:[%s14800_s8 + $0x1fc] ss:$12 sps:$4 sm:$0xff]   ;;  %v13139_v35 = vld [vmem:[%s14800_s8 + $0x1f8] ss:$12 sps:$4 sm:$0xff]   ;;  %v13144_v36 = vld [vmem:[%s14800_s8 + $0x214] ss:$12 sps:$4 sm:$0xff]  }
 0xfda   : > { %9266 = vmatpush1.bf16.msra.mxu1 %v13089_v37  ;;  %v13174_v10 = vld [vmem:[%s14800_s8 + $0x380] ss:$12 sps:$4 sm:$0xff]   ;;  %v13178_v37 = vld [vmem:[%s14800_s8 + $0x458] ss:$12 sps:$4 sm:$0xff]  }
 0xfdb   : > { %11567 = vmatpush3.bf16.msra.mxu0 %v13093_v40  ;;  %9267 = vmatprep.subr.bf16.mxu1 %v13096_v44  ;;  %v13142_v40 = vld [vmem:[%s14800_s8 + $0x210] ss:$12 sps:$4 sm:$0xff]   ;;  %v13147_v44 = vld [vmem:[%s14800_s8 + $0x22c] ss:$12 sps:$4 sm:$0xff]  }
 0xfdc   : > { %11568 = vmatprep.subr.bf16.mxu0 %v13097_v47  ;;  %v13179_v47 = vld [vmem:[%s14800_s8 + $0x398] ss:$12 sps:$4 sm:$0xff]  }
 0xfde   : > { %9268 = vmatpush1.bf16.msra.mxu1 %v13094_v13  ;;  %v13183_v13 = vld [vmem:[%s14800_s8 + $0x470] ss:$12 sps:$4 sm:$0xff]  }
 0xfdf   : > { %11569 = vmatpush3.bf16.msra.mxu0 %v13098_v60  ;;  %9269 = vmatprep.subr.bf16.mxu1 %v13101_v45  ;;  %v13145_v60 = vld [vmem:[%s14800_s8 + $0x228] ss:$12 sps:$4 sm:$0xff]   ;;  %v13152_v45 = vld [vmem:[%s14800_s8 + $0x244] ss:$12 sps:$4 sm:$0xff]  }
 0xfe0   : > { %11570 = vmatprep.subr.bf16.mxu0 %v13102_v3  ;;  %v13184_v3 = vld [vmem:[%s14800_s8 + $0x3b0] ss:$12 sps:$4 sm:$0xff]  }
 0xfe2   : > { %9270 = vmatpush1.bf16.msra.mxu1 %v13099_v52  ;;  %v13188_v52 = vld [vmem:[%s14800_s8 + $0x548] ss:$12 sps:$4 sm:$0xff]  }
 0xfe3   : > { %11571 = vmatpush3.bf16.msra.mxu0 %v13103_v6  ;;  %9271 = vmatprep.subr.bf16.mxu1 %v13106_v18  ;;  %v13150_v6 = vld [vmem:[%s14800_s8 + $0x240] ss:$12 sps:$4 sm:$0xff]   ;;  %v13157_v18 = vld [vmem:[%s14800_s8 + $0x25c] ss:$12 sps:$4 sm:$0xff]  }
 0xfe4   : > { %11572 = vmatprep.subr.bf16.mxu0 %v13107_v43  ;;  %v13155_v43 = vld [vmem:[%s14800_s8 + $0x258] ss:$12 sps:$4 sm:$0xff]  }
 0xfe6   : > { %9272 = vmatpush1.bf16.msra.mxu1 %v13104_v20  ;;  %v13162_v20 = vld [vmem:[%s14800_s8 + $0x274] ss:$12 sps:$4 sm:$0xff]  }
 0xfe7   : > { %11573 = vmatpush3.bf16.msra.mxu0 %v13108_v54  ;;  %9273 = vmatprep.subr.bf16.mxu1 %v13111_v29  ;;  %v13160_v54 = vld [vmem:[%s14800_s8 + $0x270] ss:$12 sps:$4 sm:$0xff]   ;;  %v13167_v29 = vld [vmem:[%s14800_s8 + $0x28c] ss:$12 sps:$4 sm:$0xff]  }
 0xfe8   : > { %11574 = vmatprep.subr.bf16.mxu0 %v13112_v9  ;;  %v13165_v9 = vld [vmem:[%s14800_s8 + $0x288] ss:$12 sps:$4 sm:$0xff]  }
 0xfea   : > { %9274 = vmatpush1.bf16.msra.mxu1 %v13109_v41  ;;  %v13172_v41 = vld [vmem:[%s14800_s8 + $0x2a4] ss:$12 sps:$4 sm:$0xff]  }
 0xfeb   : > { %11575 = vmatpush3.bf16.msra.mxu0 %v13113_v57  ;;  %9275 = vmatprep.subr.bf16.mxu1 %v13116_v17  ;;  %v5293_v57 = vsub.s32 4, %v14910_v30  ;;  %v13170_v17 = vld [vmem:[%s14800_s8 + $0x2a0] ss:$12 sps:$4 sm:$0xff]  }
 0xfec   : > { %11576 = vmatprep.subr.bf16.mxu0 %v13117_v53  ;;  %v5301_v53 = vsub.s32 6, %v14910_v30 }
 0xfee   : > { %9276 = vmatpush1.bf16.msra.mxu1 %v13114_v59  ;;  %v5297_v59 = vsub.s32 5, %v14910_v30 }
 0xfef   : > { %11577 = vmatpush3.bf16.msra.mxu0 %v13118_v2  ;;  %9277 = vmatprep.subr.bf16.mxu1 %v13121_v31  ;;  %v5305_v2 = vsub.s32 7, %v14910_v30  ;;  %v13177_v31 = vld [vmem:[%s14800_s8 + $0x2bc] ss:$12 sps:$4 sm:$0xff]   ;;  %v13291_v30 = vld [vmem:[%s14800_s8 + $0x52c] ss:$12 sps:$4 sm:$0xff]  }
 0xff0   : > { %11578 = vmatprep.subr.bf16.mxu0 %v13122_v1  ;;  %v5294_v1 = vrot.slane %v16014_v38, %v5293_v57  ;;  %v13199_v57 = vld [vmem:[%s14800_s8 + $0x4b8] ss:$12 sps:$4 sm:$0xff]  }
 0xff2   : > { %9278 = vmatpush1.bf16.msra.mxu1 %v13119_v50  ;;  %v5302_v50 = vrot.slane %v16014_v38, %v5301_v53  ;;  %v13200_v53 = vld [vmem:[%s14800_s8 + $0x330] ss:$12 sps:$4 sm:$0xff]  }
 0xff3   : > { %11579 = vmatpush3.bf16.msra.mxu0 %v13123_v11  ;;  %9290 = vmatprep.subr.bf16.mxu1 %v13126_v62  ;;  %v5298_v11 = vrot.slane %v16014_v38, %v5297_v59  ;;  %v13175_v62 = vld [vmem:[%s14800_s8 + $0x2b8] ss:$12 sps:$4 sm:$0xff]   ;;  %v13204_v59 = vld [vmem:[%s14800_s8 + $0x4d0] ss:$12 sps:$4 sm:$0xff]  }
 0xff4   : > { %11586 = vmatprep.subr.bf16.mxu0 %v13148_v26  ;;  %v5306_v26 = vrot.slane %v16014_v38, %v5305_v2  ;;  %v13187_v38 = vld [vmem:[%s14800_s8 + $0x2ec] ss:$12 sps:$4 sm:$0xff]   ;;  %v13208_v2 = vld [vmem:[%s14800_s8 + $0x5a8] ss:$12 sps:$4 sm:$0xff]  }
 0xff5   : > { %9280 = vmatmul.mubr.bf16.vlgmr.msra.gmra.mrb[72].mxu1 %v16038_v19  ;;  %v13138_v19 = vld [vmem:[%s14800_s8 + $0x1e4] ss:$12 sps:$4 sm:$0xff]  }
 0xff6   : > { %9579 = vmatmul.mubr.bf16.vlgmr.msra.gmra.mrb[92].mxu0 %v16040_v23  ;;  %9291 = vmatpush1.bf16.msra.mxu1 %v13124_v55  ;;  %v13182_v55 = vld [vmem:[%s14800_s8 + $0x2d4] ss:$12 sps:$4 sm:$0xff]  }
 0xff7   : > { %9322 = vmatprep.mubr.bf16.mxu1 %v16043_v63  ;;  %9292 = vmatprep.subr.bf16.mxu1 %v13129_v42  ;;  %v13136_v63 = vld [vmem:[%s14800_s8 + $0x1e0] ss:$12 sps:$4 sm:$0xff]  }
 0xff8   : > { %11587 = vmatpush3.bf16.msra.mxu0 %v13149_v51 }
 0xff9   : > { %11588 = vmatprep.subr.bf16.mxu0 %v13153_v61 }
 0xffa   : > { %9293 = vmatpush1.bf16.msra.mxu1 %v13127_v21 }
 0xffb   : > { %9294 = vmatprep.subr.bf16.mxu1 %v13132_v0 }
 0xffc   : > { %11589 = vmatpush3.bf16.msra.mxu0 %v13154_v46 }
 0xffd   : > { %11590 = vmatprep.subr.bf16.mxu0 %v13158_v4 }
 0xffe   : > { %9295 = vmatpush1.bf16.msra.mxu1 %v13130_v8 }
 0xfff   : > { %9296 = vmatprep.subr.bf16.mxu1 %v13135_v56  ;;  %v13180_v56 = vld [vmem:[%s14800_s8 + $0x2d0] ss:$12 sps:$4 sm:$0xff]  }
0x1000   : > { %11591 = vmatpush3.bf16.msra.mxu0 %v13159_v27 }
0x1001   : > { %11592 = vmatprep.subr.bf16.mxu0 %v13163_v28 }
0x1002   : > { %9297 = vmatpush1.bf16.msra.mxu1 %v13133_v22 }
0x1003   : > { %9298 = vmatprep.subr.bf16.mxu1 %v13138_v19 }
0x1004   : > { %11593 = vmatpush3.bf16.msra.mxu0 %v13164_v48 }
0x1005   : > { %11594 = vmatprep.subr.bf16.mxu0 %v13168_v24 }
0x1006   : > { %9299 = vmatpush1.bf16.msra.mxu1 %v13136_v63 }
0x1007   : > { %9300 = vmatprep.subr.bf16.mxu1 %v13141_v16 }
0x1008   : > { %11595 = vmatpush3.bf16.msra.mxu0 %v13169_v25 }
0x1009   : > { %11596 = vmatprep.subr.bf16.mxu0 %v13173_v12 }
0x100a   : > { %9301 = vmatpush1.bf16.msra.mxu1 %v13139_v35 }
0x100b   : > { %9302 = vmatprep.subr.bf16.mxu1 %v13144_v36 }
0x100c   : > { %11597 = vmatpush3.bf16.msra.mxu0 %v13174_v10 }
0x100d   : > { %11598 = vmatprep.subr.bf16.mxu0 %v13178_v37 }
0x100e   : > { %9303 = vmatpush1.bf16.msra.mxu1 %v13142_v40  ;;  %v13185_v40 = vld [vmem:[%s14800_s8 + $0x2e8] ss:$12 sps:$4 sm:$0xff]  }
0x100f   : > { %9304 = vmatprep.subr.bf16.mxu1 %v13147_v44 }
0x1010   : > { %11599 = vmatpush3.bf16.msra.mxu0 %v13179_v47 }
0x1011   : > { %11600 = vmatprep.subr.bf16.mxu0 %v13183_v13 }
0x1012   : > { %9305 = vmatpush1.bf16.msra.mxu1 %v13145_v60  ;;  %v13192_v60 = vld [vmem:[%s14800_s8 + $0x304] ss:$12 sps:$4 sm:$0xff]  }
0x1013   : > { %9306 = vmatprep.subr.bf16.mxu1 %v13152_v45 }
0x1014   : > { %11601 = vmatpush3.bf16.msra.mxu0 %v13184_v3 }
0x1015   : > { %11608 = vmatprep.subr.bf16.mxu0 %v13188_v52  ;;  %v13189_v52 = vld [vmem:[%s14800_s8 + $0x488] ss:$12 sps:$4 sm:$0xff]  }
0x1016   : > { %9307 = vmatpush1.bf16.msra.mxu1 %v13150_v6 }
0x1017   : > { %9308 = vmatprep.subr.bf16.mxu1 %v13157_v18  ;;  %v13193_v18 = vld [vmem:[%s14800_s8 + $0x560] ss:$12 sps:$4 sm:$0xff]  }
0x101a   : > { %9309 = vmatpush1.bf16.msra.mxu1 %v13155_v43  ;;  %v13190_v43 = vld [vmem:[%s14800_s8 + $0x300] ss:$12 sps:$4 sm:$0xff]  }
0x101b   : > { %9310 = vmatprep.subr.bf16.mxu1 %v13162_v20  ;;  %v13197_v20 = vld [vmem:[%s14800_s8 + $0x31c] ss:$12 sps:$4 sm:$0xff]  }
0x101e   : > { %9311 = vmatpush1.bf16.msra.mxu1 %v13160_v54  ;;  %v13194_v54 = vld [vmem:[%s14800_s8 + $0x4a0] ss:$12 sps:$4 sm:$0xff]  }
0x101f   : > { %9312 = vmatprep.subr.bf16.mxu1 %v13167_v29  ;;  %v13198_v29 = vld [vmem:[%s14800_s8 + $0x578] ss:$12 sps:$4 sm:$0xff]  }
0x1022   : > { %9313 = vmatpush1.bf16.msra.mxu1 %v13165_v9  ;;  %v13195_v9 = vld [vmem:[%s14800_s8 + $0x318] ss:$12 sps:$4 sm:$0xff]  }
0x1023   : > { %9314 = vmatprep.subr.bf16.mxu1 %v13172_v41  ;;  %v13202_v41 = vld [vmem:[%s14800_s8 + $0x334] ss:$12 sps:$4 sm:$0xff]  }
0x1026   : > { %9315 = vmatpush1.bf16.msra.mxu1 %v13170_v17  ;;  %v13203_v17 = vld [vmem:[%s14800_s8 + $0x590] ss:$12 sps:$4 sm:$0xff]  }
0x1027   : > { %9316 = vmatprep.subr.bf16.mxu1 %v13177_v31  ;;  %v13205_v31 = vld [vmem:[%s14800_s8 + $0x348] ss:$12 sps:$4 sm:$0xff]  }
0x1028   : > { %v7024_v42 = vpop.f32.mrb[64].mxu1 }
0x1029   : > { %v11921_v51 = vadd.f32 %v7024_v42, %v5294_v1  ;;  %v7110_v61 = vpop.f32.mrb[80].mxu0  ;;  %v7026_v21 = vpop.f32.mrb[65].mxu1  ;;  %v13218_v42 = vld [vmem:[%s14800_s8 + $0x5d8] ss:$12 sps:$4 sm:$0xff]  }
0x102a   : > { %v11925_v0 = vadd.f32 %v7110_v61, %v5302_v50  ;;  %v11922_v46 = vadd.f32 %v7026_v21, %v5298_v11  ;;  %v7112_v4 = vpop.f32.mrb[81].mxu0  ;;  %v7028_v8 = vpop.f32.mrb[66].mxu1  ;;  %9317 = vmatpush1.bf16.msra.mxu1 %v13175_v62  ;;  %v13210_v62 = vld [vmem:[%s14800_s8 + $0x360] ss:$12 sps:$4 sm:$0xff]   ;;  %v13219_v21 = vld [vmem:[%s14800_s8 + $0x518] ss:$12 sps:$4 sm:$0xff]  }
0x102b   : > { %v11926_v27 = vadd.f32 %v7112_v4, %v5306_v26  ;;  %v11923_v28 = vadd.f32 %v7028_v8, %v5294_v1  ;;  %v7114_v22 = vpop.f32.mrb[82].mxu0  ;;  %v7030_v19 = vpop.f32.mrb[67].mxu1  ;;  %9318 = vmatprep.subr.bf16.mxu1 %v13182_v55  ;;  %v7295_v16 = vmax.f32 %v11921_v51, 0.0  ;;  %v13212_v1 = vld [vmem:[%s14800_s8 + $0x364] ss:$12 sps:$4 sm:$0xff]  }
0x102c   : > { %v11927_v48 = vadd.f32 %v7114_v22, %v5302_v50  ;;  %v11924_v24 = vadd.f32 %v7030_v19, %v5298_v11  ;;  %v7116_v63 = vpop.f32.mrb[83].mxu0  ;;  %v7297_v35 = vmax.f32 %v11925_v0, 0.0  ;;  %v7296_v36 = vmax.f32 %v11922_v46, 0.0  ;;  %v13209_v50 = vld [vmem:[%s14800_s8 + $0x4e8] ss:$12 sps:$4 sm:$0xff]  }
0x102d   : > { %v7307_v25 = vmax.f32 %v11923_v28, 0.0  ;;  %v11928_v12 = vadd.f32 %v7116_v63, %v5306_v26  ;;  %v7298_v44 = vmax.f32 %v11926_v27, 0.0  ;;  %v13213_v11 = vld [vmem:[%s14800_s8 + $0x5c0] ss:$12 sps:$4 sm:$0xff]   ;;  %v13217_v26 = vld [vmem:[%s14800_s8 + $0x37c] ss:$12 sps:$4 sm:$0xff]  }
0x102e   : > { %v7309_v10 = vmax.f32 %v11927_v48, 0.0  ;;  %v7308_v37 = vmax.f32 %v11924_v24, 0.0  ;;  %9319 = vmatpush1.bf16.msra.mxu1 %v13180_v56  ;;  %v13214_v55 = vld [vmem:[%s14800_s8 + $0x500] ss:$12 sps:$4 sm:$0xff]   ;;  %v13215_v51 = vld [vmem:[%s14800_s8 + $0x378] ss:$12 sps:$4 sm:$0xff]  }
0x102f   : > { %v16139_v47 = vpack.c.bf16 %v7307_v25, %v7295_v16  ;;  %v7310_v13 = vmax.f32 %v11928_v12, 0.0  ;;  %9320 = vmatprep.subr.bf16.mxu1 %v13187_v38  ;;  %v13222_v61 = vld [vmem:[%s14800_s8 + $0x394] ss:$12 sps:$4 sm:$0xff]   ;;  %v13223_v0 = vld [vmem:[%s14800_s8 + $0x5f0] ss:$12 sps:$4 sm:$0xff]  }
0x1030   : > { %v16142_v45 = vpack.c.bf16 %v7309_v10, %v7297_v35  ;;  %v7320_v3 = vpack.c.bf16 %v7308_v37, %v7296_v36  ;;  %v13220_v46 = vld [vmem:[%s14800_s8 + $0x390] ss:$12 sps:$4 sm:$0xff]   ;;  %v13227_v4 = vld [vmem:[%s14800_s8 + $0x3ac] ss:$12 sps:$4 sm:$0xff]   ;;  %v13252_v56 = vld [vmem:[%s14800_s8 + $0x6c8] ss:$12 sps:$4 sm:$0xff]  }
0x1031   : > { %v16145_v6 = vpack.c.bf16 %v7310_v13, %v7298_v44  ;;  %v13224_v8 = vld [vmem:[%s14800_s8 + $0x530] ss:$12 sps:$4 sm:$0xff]   ;;  %v13225_v27 = vld [vmem:[%s14800_s8 + $0x3a8] ss:$12 sps:$4 sm:$0xff]   ;;  %v13257_v19 = vld [vmem:[%s14800_s8 + $0x6e0] ss:$12 sps:$4 sm:$0xff]  }
0x1032   : > { %9321 = vmatpush1.bf16.msra.mxu1 %v13185_v40  ;;  %9619 = vmatprep.mubr.bf16.mxu0 %v7320_v3  ;;  %v13230_v28 = vld [vmem:[%s14800_s8 + $0x3c4] ss:$12 sps:$4 sm:$0xff]   ;;  %v13253_v22 = vld [vmem:[%s14800_s8 + $0x608] ss:$12 sps:$4 sm:$0xff]   ;;  %v13228_v38 = vld [vmem:[%s14800_s8 + $0x3c0] ss:$12 sps:$4 sm:$0xff]  }
0x1033   : > { %9620 = vmatmul.mubr.bf16.vlgmr.msra.gmra.mrb[96].mxu0 %v16139_v47  ;;  %9333 = vmatprep.subr.bf16.mxu1 %v13192_v60  ;;  %v13233_v48 = vld [vmem:[%s14800_s8 + $0x3dc] ss:$12 sps:$4 sm:$0xff]   ;;  %v13258_v24 = vld [vmem:[%s14800_s8 + $0x620] ss:$12 sps:$4 sm:$0xff]   ;;  %v13262_v63 = vld [vmem:[%s14800_s8 + $0x6f8] ss:$12 sps:$4 sm:$0xff]  }
0x1034   : > { %11609 = vmatpush3.bf16.msra.mxu0 %v13189_v52  ;;  %9660 = vmatprep.mubr.bf16.mxu0 %v16145_v6  ;;  %v13231_v16 = vld [vmem:[%s14800_s8 + $0x3d8] ss:$12 sps:$4 sm:$0xff]   ;;  %v13236_v25 = vld [vmem:[%s14800_s8 + $0x3f4] ss:$12 sps:$4 sm:$0xff]   ;;  %v13267_v35 = vld [vmem:[%s14800_s8 + $0x710] ss:$12 sps:$4 sm:$0xff]  }
0x1035   : > { %9323 = vmatmul.mubr.bf16.vlgmr.msra.gmra.mrb[72].mxu1 %v16040_v23  ;;  %11610 = vmatprep.subr.bf16.mxu0 %v13193_v18  ;;  %v13207_v23 = vld [vmem:[%s14800_s8 + $0x34c] ss:$12 sps:$4 sm:$0xff]   ;;  %v13234_v36 = vld [vmem:[%s14800_s8 + $0x3f0] ss:$12 sps:$4 sm:$0xff]   ;;  %v13272_v40 = vld [vmem:[%s14800_s8 + $0x728] ss:$12 sps:$4 sm:$0xff]  }
0x1036   : > { %9334 = vmatpush1.bf16.msra.mxu1 %v13190_v43  ;;  %9365 = vmatprep.mubr.bf16.mxu1 %v7320_v3  ;;  %v13263_v12 = vld [vmem:[%s14800_s8 + $0x638] ss:$12 sps:$4 sm:$0xff]   ;;  %v13268_v37 = vld [vmem:[%s14800_s8 + $0x650] ss:$12 sps:$4 sm:$0xff]   ;;  %v13237_v44 = vld [vmem:[%s14800_s8 + $0x408] ss:$12 sps:$4 sm:$0xff]  }
0x1037   : > { %9335 = vmatprep.subr.bf16.mxu1 %v13197_v20  ;;  %v13239_v10 = vld [vmem:[%s14800_s8 + $0x40c] ss:$12 sps:$4 sm:$0xff]   ;;  %v13242_v13 = vld [vmem:[%s14800_s8 + $0x424] ss:$12 sps:$4 sm:$0xff]   ;;  %v13273_v60 = vld [vmem:[%s14800_s8 + $0x668] ss:$12 sps:$4 sm:$0xff]  }
0x1038   : > { %11611 = vmatpush3.bf16.msra.mxu0 %v13194_v54  ;;  %v13277_v3 = vld [vmem:[%s14800_s8 + $0x740] ss:$12 sps:$4 sm:$0xff]   ;;  %v13245_v18 = vld [vmem:[%s14800_s8 + $0x43c] ss:$12 sps:$4 sm:$0xff]   ;;  %v13282_v20 = vld [vmem:[%s14800_s8 + $0x758] ss:$12 sps:$4 sm:$0xff]  }
0x1039   : > { %11612 = vmatprep.subr.bf16.mxu0 %v13198_v29  ;;  %v13240_v52 = vld [vmem:[%s14800_s8 + $0x420] ss:$12 sps:$4 sm:$0xff]   ;;  %v13243_v54 = vld [vmem:[%s14800_s8 + $0x438] ss:$12 sps:$4 sm:$0xff]  }
0x103a   : > { %9336 = vmatpush1.bf16.msra.mxu1 %v13195_v9  ;;  %v13278_v43 = vld [vmem:[%s14800_s8 + $0x680] ss:$12 sps:$4 sm:$0xff]   ;;  %v13283_v9 = vld [vmem:[%s14800_s8 + $0x698] ss:$12 sps:$4 sm:$0xff]  }
0x103b   : > { %9337 = vmatprep.subr.bf16.mxu1 %v13202_v41  ;;  %v13248_v29 = vld [vmem:[%s14800_s8 + $0x454] ss:$12 sps:$4 sm:$0xff]   ;;  %v13287_v41 = vld [vmem:[%s14800_s8 + $0x770] ss:$12 sps:$4 sm:$0xff]  }
0x103c   : > { %11613 = vmatpush3.bf16.msra.mxu0 %v13199_v57  ;;  %v13246_v57 = vld [vmem:[%s14800_s8 + $0x450] ss:$12 sps:$4 sm:$0xff]  }
0x103d   : > { %11614 = vmatprep.subr.bf16.mxu0 %v13203_v17  ;;  %v13251_v17 = vld [vmem:[%s14800_s8 + $0x46c] ss:$12 sps:$4 sm:$0xff]  }
0x103e   : > { %9338 = vmatpush1.bf16.msra.mxu1 %v13200_v53  ;;  %v13288_v53 = vld [vmem:[%s14800_s8 + $0x6b0] ss:$12 sps:$4 sm:$0xff]  }
0x103f   : > { %9339 = vmatprep.subr.bf16.mxu1 %v13207_v23  ;;  %v13292_v23 = vld [vmem:[%s14800_s8 + $0x848] ss:$12 sps:$4 sm:$0xff]  }
0x1040   : > { %11615 = vmatpush3.bf16.msra.mxu0 %v13204_v59  ;;  %v13249_v59 = vld [vmem:[%s14800_s8 + $0x468] ss:$12 sps:$4 sm:$0xff]  }
0x1041   : > { %11616 = vmatprep.subr.bf16.mxu0 %v13208_v2  ;;  %v13256_v2 = vld [vmem:[%s14800_s8 + $0x484] ss:$12 sps:$4 sm:$0xff]  }
0x1042   : > { %9340 = vmatpush1.bf16.msra.mxu1 %v13205_v31  ;;  %v13254_v31 = vld [vmem:[%s14800_s8 + $0x480] ss:$12 sps:$4 sm:$0xff]  }
0x1043   : > { %9341 = vmatprep.subr.bf16.mxu1 %v13212_v1  ;;  %v13261_v1 = vld [vmem:[%s14800_s8 + $0x49c] ss:$12 sps:$4 sm:$0xff]  }
0x1044   : > { %11617 = vmatpush3.bf16.msra.mxu0 %v13209_v50  ;;  %v13259_v50 = vld [vmem:[%s14800_s8 + $0x498] ss:$12 sps:$4 sm:$0xff]  }
0x1045   : > { %11618 = vmatprep.subr.bf16.mxu0 %v13213_v11  ;;  %v13266_v11 = vld [vmem:[%s14800_s8 + $0x4b4] ss:$12 sps:$4 sm:$0xff]  }
0x1046   : > { %9342 = vmatpush1.bf16.msra.mxu1 %v13210_v62  ;;  %v13264_v62 = vld [vmem:[%s14800_s8 + $0x4b0] ss:$12 sps:$4 sm:$0xff]  }
0x1047   : > { %9343 = vmatprep.subr.bf16.mxu1 %v13217_v26  ;;  %v13271_v26 = vld [vmem:[%s14800_s8 + $0x4cc] ss:$12 sps:$4 sm:$0xff]  }
0x1048   : > { %11619 = vmatpush3.bf16.msra.mxu0 %v13214_v55  ;;  %v13269_v55 = vld [vmem:[%s14800_s8 + $0x4c8] ss:$12 sps:$4 sm:$0xff]  }
0x1049   : > { %11620 = vmatprep.subr.bf16.mxu0 %v13218_v42  ;;  %v13276_v42 = vld [vmem:[%s14800_s8 + $0x4e4] ss:$12 sps:$4 sm:$0xff]  }
0x104a   : > { %9344 = vmatpush1.bf16.msra.mxu1 %v13215_v51  ;;  %v5272_v51 = vld [vmem:[%s14794_s19 + $0x8] sm:$0xf] }
0x104b   : > { %9345 = vmatprep.subr.bf16.mxu1 %v13222_v61  ;;  %v13281_v61 = vld [vmem:[%s14800_s8 + $0x4fc] ss:$12 sps:$4 sm:$0xff]  }
0x104c   : > { %11621 = vmatpush3.bf16.msra.mxu0 %v13219_v21  ;;  %v5318_v21 = vrot.slane %v5272_v51, %v14918_v33 }
0x104d   : > { %11622 = vmatprep.subr.bf16.mxu0 %v13223_v0  ;;  %v5314_v0 = vrot.slane %v5272_v51, %v14915_v32 }
0x104e   : > { %9346 = vmatpush1.bf16.msra.mxu1 %v13220_v46  ;;  %v13279_v46 = vld [vmem:[%s14800_s8 + $0x4f8] ss:$12 sps:$4 sm:$0xff]  }
0x104f   : > { %9347 = vmatprep.subr.bf16.mxu1 %v13227_v4  ;;  %v5322_v4 = vrot.slane %v5272_v51, %v5289_v39 }
0x1050   : > { %11623 = vmatpush3.bf16.msra.mxu0 %v13224_v8  ;;  %v13286_v8 = vld [vmem:[%s14800_s8 + $0x514] ss:$12 sps:$4 sm:$0xff]  }
0x1051   : > { %11630 = vmatprep.subr.bf16.mxu0 %v13252_v56 }
0x1052   : > { %9348 = vmatpush1.bf16.msra.mxu1 %v13225_v27 }
0x1053   : > { %9661 = vmatmul.mubr.bf16.vlgmr.msra.gmra.mrb[100].mxu0 %v16142_v45  ;;  %9349 = vmatprep.subr.bf16.mxu1 %v13230_v28 }
0x1054   : > { %11631 = vmatpush3.bf16.msra.mxu0 %v13253_v22 }
0x1055   : > { %11632 = vmatprep.subr.bf16.mxu0 %v13257_v19 }
0x1056   : > { %9350 = vmatpush1.bf16.msra.mxu1 %v13228_v38 }
0x1057   : > { %9351 = vmatprep.subr.bf16.mxu1 %v13233_v48 }
0x1058   : > { %11633 = vmatpush3.bf16.msra.mxu0 %v13258_v24 }
0x1059   : > { %11634 = vmatprep.subr.bf16.mxu0 %v13262_v63  ;;  %v13284_v63 = vld [vmem:[%s14800_s8 + $0x510] ss:$12 sps:$4 sm:$0xff]  }
0x105a   : > { %9352 = vmatpush1.bf16.msra.mxu1 %v13231_v16 }
0x105b   : > { %9353 = vmatprep.subr.bf16.mxu1 %v13236_v25 }
0x105c   : > { %11635 = vmatpush3.bf16.msra.mxu0 %v13263_v12 }
0x105d   : > { %11636 = vmatprep.subr.bf16.mxu0 %v13267_v35 }
0x105e   : > { %9354 = vmatpush1.bf16.msra.mxu1 %v13234_v36 }
0x105f   : > { %9355 = vmatprep.subr.bf16.mxu1 %v13239_v10 }
0x1060   : > { %11637 = vmatpush3.bf16.msra.mxu0 %v13268_v37 }
0x1061   : > { %11638 = vmatprep.subr.bf16.mxu0 %v13272_v40 }
0x1062   : > { %9356 = vmatpush1.bf16.msra.mxu1 %v13237_v44 }
0x1063   : > { %9357 = vmatprep.subr.bf16.mxu1 %v13242_v13 }
0x1064   : > { %11639 = vmatpush3.bf16.msra.mxu0 %v13273_v60 }
0x1065   : > { %11640 = vmatprep.subr.bf16.mxu0 %v13277_v3 }
0x1066   : > { %9358 = vmatpush1.bf16.msra.mxu1 %v13240_v52 }
0x1067   : > { %9359 = vmatprep.subr.bf16.mxu1 %v13245_v18  ;;  %v13289_v18 = vld [vmem:[%s14800_s8 + $0x528] ss:$12 sps:$4 sm:$0xff]  }
0x1068   : > { %11641 = vmatpush3.bf16.msra.mxu0 %v13278_v43 }
0x1069   : > { %11642 = vmatprep.subr.bf16.mxu0 %v13282_v20 }
0x106a   : > { %9360 = vmatpush1.bf16.msra.mxu1 %v13243_v54 }
0x106b   : > { %9361 = vmatprep.subr.bf16.mxu1 %v13248_v29  ;;  %v13296_v29 = vld [vmem:[%s14800_s8 + $0x544] ss:$12 sps:$4 sm:$0xff]  }
0x106c   : > { %11643 = vmatpush3.bf16.msra.mxu0 %v13283_v9 }
0x106d   : > { %11644 = vmatprep.subr.bf16.mxu0 %v13287_v41 }
0x106e   : > { %9362 = vmatpush1.bf16.msra.mxu1 %v13246_v57  ;;  %v13293_v57 = vld [vmem:[%s14800_s8 + $0x788] ss:$12 sps:$4 sm:$0xff]  }
0x106f   : > { %9363 = vmatprep.subr.bf16.mxu1 %v13251_v17 }
0x1070   : > { %11645 = vmatpush3.bf16.msra.mxu0 %v13288_v53  ;;  %v13297_v53 = vld [vmem:[%s14800_s8 + $0x860] ss:$12 sps:$4 sm:$0xff]  }
0x1071   : > { %11652 = vmatprep.subr.bf16.mxu0 %v13292_v23  ;;  %v13294_v23 = vld [vmem:[%s14800_s8 + $0x540] ss:$12 sps:$4 sm:$0xff]  }
0x1072   : > { %9364 = vmatpush1.bf16.msra.mxu1 %v13249_v59  ;;  %v13301_v59 = vld [vmem:[%s14800_s8 + $0x55c] ss:$12 sps:$4 sm:$0xff]  }
0x1073   : > { %9376 = vmatprep.subr.bf16.mxu1 %v13256_v2  ;;  %v13298_v2 = vld [vmem:[%s14800_s8 + $0x7a0] ss:$12 sps:$4 sm:$0xff]  }
0x1075   : > { %9366 = vmatmul.mubr.bf16.vlgmr.msra.gmra.mrb[72].mxu1 %v16139_v47  ;;  %v13274_v47 = vld [vmem:[%s14800_s8 + $0x4e0] ss:$12 sps:$4 sm:$0xff]  }
0x1076   : > { %9377 = vmatpush1.bf16.msra.mxu1 %v13254_v31  ;;  %9408 = vmatprep.mubr.bf16.mxu1 %v16145_v6  ;;  %v5310_v6 = vrot.slane %v5272_v51, %v14921_v34  ;;  %v13302_v31 = vld [vmem:[%s14800_s8 + $0x878] ss:$12 sps:$4 sm:$0xff]   ;;  %v13309_v51 = vld [vmem:[%s14800_s8 + $0x588] ss:$12 sps:$4 sm:$0xff]  }
0x1077   : > { %9378 = vmatprep.subr.bf16.mxu1 %v13261_v1  ;;  %v13299_v1 = vld [vmem:[%s14800_s8 + $0x558] ss:$12 sps:$4 sm:$0xff]  }
0x107a   : > { %9379 = vmatpush1.bf16.msra.mxu1 %v13259_v50  ;;  %v13306_v50 = vld [vmem:[%s14800_s8 + $0x574] ss:$12 sps:$4 sm:$0xff]  }
0x107b   : > { %9380 = vmatprep.subr.bf16.mxu1 %v13266_v11  ;;  %v13303_v11 = vld [vmem:[%s14800_s8 + $0x7b8] ss:$12 sps:$4 sm:$0xff]  }
0x107e   : > { %9381 = vmatpush1.bf16.msra.mxu1 %v13264_v62  ;;  %v13307_v62 = vld [vmem:[%s14800_s8 + $0x890] ss:$12 sps:$4 sm:$0xff]  }
0x107f   : > { %9382 = vmatprep.subr.bf16.mxu1 %v13271_v26  ;;  %v13304_v26 = vld [vmem:[%s14800_s8 + $0x570] ss:$12 sps:$4 sm:$0xff]  }
0x1082   : > { %9383 = vmatpush1.bf16.msra.mxu1 %v13269_v55  ;;  %v13311_v55 = vld [vmem:[%s14800_s8 + $0x58c] ss:$12 sps:$4 sm:$0xff]  }
0x1083   : > { %9384 = vmatprep.subr.bf16.mxu1 %v13276_v42  ;;  %v13308_v42 = vld [vmem:[%s14800_s8 + $0x7d0] ss:$12 sps:$4 sm:$0xff]  }
0x1086   : > { %9385 = vmatpush1.bf16.msra.mxu1 %v13274_v47  ;;  %v13312_v47 = vld [vmem:[%s14800_s8 + $0x8a8] ss:$12 sps:$4 sm:$0xff]  }
0x1087   : > { %9386 = vmatprep.subr.bf16.mxu1 %v13281_v61  ;;  %v13316_v61 = vld [vmem:[%s14800_s8 + $0x5a4] ss:$12 sps:$4 sm:$0xff]  }
0x1088   : > { %v7196_v56 = vpop.f32.mrb[68].mxu1 }
0x1089   : > { %v11929_v27 = vadd.f32 %v7196_v56, %v5310_v6  ;;  %v7282_v28 = vpop.f32.mrb[84].mxu0  ;;  %v7198_v22 = vpop.f32.mrb[69].mxu1  ;;  %v13319_v56 = vld [vmem:[%s14800_s8 + $0x5b8] ss:$12 sps:$4 sm:$0xff]  }
0x108a   : > { %v11933_v19 = vadd.f32 %v7282_v28, %v5318_v21  ;;  %v11930_v38 = vadd.f32 %v7198_v22, %v5314_v0  ;;  %v7284_v48 = vpop.f32.mrb[85].mxu0  ;;  %v7200_v24 = vpop.f32.mrb[70].mxu1  ;;  %9387 = vmatpush1.bf16.msra.mxu1 %v13279_v46  ;;  %v13321_v46 = vld [vmem:[%s14800_s8 + $0x5bc] ss:$12 sps:$4 sm:$0xff]   ;;  %v13323_v28 = vld [vmem:[%s14800_s8 + $0x818] ss:$12 sps:$4 sm:$0xff]  }
0x108b   : > { %v11934_v16 = vadd.f32 %v7284_v48, %v5322_v4  ;;  %v11931_v25 = vadd.f32 %v7200_v24, %v5310_v6  ;;  %v7286_v12 = vpop.f32.mrb[86].mxu0  ;;  %v7202_v35 = vpop.f32.mrb[71].mxu1  ;;  %9388 = vmatprep.subr.bf16.mxu1 %v13286_v8  ;;  %v7299_v37 = vmax.f32 %v11929_v27, 0.0  ;;  %v13313_v6 = vld [vmem:[%s14800_s8 + $0x7e8] ss:$12 sps:$4 sm:$0xff]  }
0x108c   : > { %v11935_v39 = vadd.f32 %v7286_v12, %v5318_v21  ;;  %v11932_v36 = vadd.f32 %v7202_v35, %v5314_v0  ;;  %v7288_v10 = vpop.f32.mrb[87].mxu0  ;;  %v7301_v13 = vmax.f32 %v11933_v19, 0.0  ;;  %v7300_v60 = vmax.f32 %v11930_v38, 0.0  ;;  %v13317_v21 = vld [vmem:[%s14800_s8 + $0x8c0] ss:$12 sps:$4 sm:$0xff]  }
0x108d   : > { %v7311_v40 = vmax.f32 %v11931_v25, 0.0  ;;  %v11936_v44 = vadd.f32 %v7288_v10, %v5322_v4  ;;  %v7302_v43 = vmax.f32 %v11934_v16, 0.0  ;;  %v13314_v0 = vld [vmem:[%s14800_s8 + $0x5a0] ss:$12 sps:$4 sm:$0xff]   ;;  %v13322_v8 = vld [vmem:[%s14800_s8 + $0x8d8] ss:$12 sps:$4 sm:$0xff]  }
0x108e   : > { %v7313_v3 = vmax.f32 %v11935_v39, 0.0  ;;  %v7312_v52 = vmax.f32 %v11932_v36, 0.0  ;;  %9389 = vmatpush1.bf16.msra.mxu1 %v13284_v63  ;;  %v13318_v4 = vld [vmem:[%s14800_s8 + $0x800] ss:$12 sps:$4 sm:$0xff]   ;;  %v13327_v19 = vld [vmem:[%s14800_s8 + $0x8f0] ss:$12 sps:$4 sm:$0xff]  }
0x108f   : > { %v16237_v20 = vpack.c.bf16 %v7311_v40, %v7299_v37  ;;  %v7314_v54 = vmax.f32 %v11936_v44, 0.0  ;;  %9390 = vmatprep.subr.bf16.mxu1 %v13291_v30  ;;  %v13326_v27 = vld [vmem:[%s14800_s8 + $0x5d4] ss:$12 sps:$4 sm:$0xff]   ;;  %v13324_v48 = vld [vmem:[%s14800_s8 + $0x5d0] ss:$12 sps:$4 sm:$0xff]  }
0x1090   : > { %v16240_v9 = vpack.c.bf16 %v7313_v3, %v7301_v13  ;;  %v16242_v41 = vpack.c.bf16 %v7312_v52, %v7300_v60  ;;  %v13331_v16 = vld [vmem:[%s14800_s8 + $0x5ec] ss:$12 sps:$4 sm:$0xff]   ;;  %v13328_v12 = vld [vmem:[%s14800_s8 + $0x830] ss:$12 sps:$4 sm:$0xff]   ;;  %v13329_v30 = vld [vmem:[%s14800_s8 + $0x5e8] ss:$12 sps:$4 sm:$0xff]  }
0x1091   : > { %v16245_v17 = vpack.c.bf16 %v7314_v54, %v7302_v43  ;;  %v13334_v39 = vld [vmem:[%s14800_s8 + $0x604] ss:$12 sps:$4 sm:$0xff]   ;;  %v13332_v36 = vld [vmem:[%s14800_s8 + $0x600] ss:$12 sps:$4 sm:$0xff]   ;;  %v13337_v10 = vld [vmem:[%s14800_s8 + $0x61c] ss:$12 sps:$4 sm:$0xff]  }
0x1092   : > { %9391 = vmatpush1.bf16.msra.mxu1 %v13289_v18  ;;  %9701 = vmatprep.mubr.bf16.mxu0 %v16242_v41  ;;  %v13335_v37 = vld [vmem:[%s14800_s8 + $0x618] ss:$12 sps:$4 sm:$0xff]   ;;  %v13340_v40 = vld [vmem:[%s14800_s8 + $0x634] ss:$12 sps:$4 sm:$0xff]   ;;  %v13338_v44 = vld [vmem:[%s14800_s8 + $0x630] ss:$12 sps:$4 sm:$0xff]  }
0x1093   : > { %9702 = vmatmul.mubr.bf16.vlgmr.msra.gmra.mrb[104].mxu0 %v16237_v20  ;;  %9392 = vmatprep.subr.bf16.mxu1 %v13296_v29  ;;  %v13343_v13 = vld [vmem:[%s14800_s8 + $0x64c] ss:$12 sps:$4 sm:$0xff]   ;;  %v13341_v60 = vld [vmem:[%s14800_s8 + $0x648] ss:$12 sps:$4 sm:$0xff]   ;;  %v13346_v3 = vld [vmem:[%s14800_s8 + $0x664] ss:$12 sps:$4 sm:$0xff]  }
0x1094   : > { %11653 = vmatpush3.bf16.msra.mxu0 %v13293_v57  ;;  %9742 = vmatprep.mubr.bf16.mxu0 %v16245_v17  ;;  %v13349_v52 = vld [vmem:[%s14800_s8 + $0x67c] ss:$12 sps:$4 sm:$0xff]   ;;  %v13347_v18 = vld [vmem:[%s14800_s8 + $0x678] ss:$12 sps:$4 sm:$0xff]   ;;  %v13352_v43 = vld [vmem:[%s14800_s8 + $0x694] ss:$12 sps:$4 sm:$0xff]  }
0x1095   : > { %11654 = vmatprep.subr.bf16.mxu0 %v13297_v53 }
0x1096   : > { %9393 = vmatpush1.bf16.msra.mxu1 %v13294_v23  ;;  %v13355_v23 = vld [vmem:[%s14800_s8 + $0x6ac] ss:$12 sps:$4 sm:$0xff]  }
0x1097   : > { %9394 = vmatprep.subr.bf16.mxu1 %v13301_v59 }
0x1098   : > { %11655 = vmatpush3.bf16.msra.mxu0 %v13298_v2 }
0x1099   : > { %11656 = vmatprep.subr.bf16.mxu0 %v13302_v31 }
0x109a   : > { %9395 = vmatpush1.bf16.msra.mxu1 %v13299_v1  ;;  %v13353_v1 = vld [vmem:[%s14800_s8 + $0x6a8] ss:$12 sps:$4 sm:$0xff]  }
0x109b   : > { %9396 = vmatprep.subr.bf16.mxu1 %v13306_v50 }
0x109c   : > { %11657 = vmatpush3.bf16.msra.mxu0 %v13303_v11  ;;  %v13358_v11 = vld [vmem:[%s14800_s8 + $0x6c4] ss:$12 sps:$4 sm:$0xff]  }
0x109d   : > { %11658 = vmatprep.subr.bf16.mxu0 %v13307_v62  ;;  %v13356_v62 = vld [vmem:[%s14800_s8 + $0x6c0] ss:$12 sps:$4 sm:$0xff]  }
0x109e   : > { %9397 = vmatpush1.bf16.msra.mxu1 %v13304_v26  ;;  %v13361_v26 = vld [vmem:[%s14800_s8 + $0x6dc] ss:$12 sps:$4 sm:$0xff]  }
0x109f   : > { %9398 = vmatprep.subr.bf16.mxu1 %v13311_v55  ;;  %v13359_v55 = vld [vmem:[%s14800_s8 + $0x6d8] ss:$12 sps:$4 sm:$0xff]  }
0x10a0   : > { %11659 = vmatpush3.bf16.msra.mxu0 %v13308_v42  ;;  %v13364_v42 = vld [vmem:[%s14800_s8 + $0x6f4] ss:$12 sps:$4 sm:$0xff]  }
0x10a1   : > { %11660 = vmatprep.subr.bf16.mxu0 %v13312_v47  ;;  %v13362_v47 = vld [vmem:[%s14800_s8 + $0x6f0] ss:$12 sps:$4 sm:$0xff]  }
0x10a2   : > { %9399 = vmatpush1.bf16.msra.mxu1 %v13309_v51  ;;  %v13367_v51 = vld [vmem:[%s14800_s8 + $0x70c] ss:$12 sps:$4 sm:$0xff]  }
0x10a3   : > { %9400 = vmatprep.subr.bf16.mxu1 %v13316_v61  ;;  %v13365_v61 = vld [vmem:[%s14800_s8 + $0x708] ss:$12 sps:$4 sm:$0xff]  }
0x10a4   : > { %11661 = vmatpush3.bf16.msra.mxu0 %v13313_v6  ;;  %v13370_v6 = vld [vmem:[%s14800_s8 + $0x724] ss:$12 sps:$4 sm:$0xff]  }
0x10a5   : > { %11662 = vmatprep.subr.bf16.mxu0 %v13317_v21  ;;  %v13368_v21 = vld [vmem:[%s14800_s8 + $0x720] ss:$12 sps:$4 sm:$0xff]  }
0x10a6   : > { %9401 = vmatpush1.bf16.msra.mxu1 %v13314_v0  ;;  %v13373_v0 = vld [vmem:[%s14800_s8 + $0x73c] ss:$12 sps:$4 sm:$0xff]  }
0x10a7   : > { %9402 = vmatprep.subr.bf16.mxu1 %v13321_v46  ;;  %v13371_v46 = vld [vmem:[%s14800_s8 + $0x738] ss:$12 sps:$4 sm:$0xff]  }
0x10a8   : > { %11663 = vmatpush3.bf16.msra.mxu0 %v13318_v4  ;;  %v13376_v4 = vld [vmem:[%s14800_s8 + $0x754] ss:$12 sps:$4 sm:$0xff]  }
0x10a9   : > { %v11558_v22 = vpop.f32.mrb[88].mxu0  ;;  %11664 = vmatprep.subr.bf16.mxu0 %v13322_v8  ;;  %v13374_v8 = vld [vmem:[%s14800_s8 + $0x750] ss:$12 sps:$4 sm:$0xff]  }
0x10aa   : > { %v11559_v38 = vpop.f32.mrb[89].mxu0  ;;  %9403 = vmatpush1.bf16.msra.mxu1 %v13319_v56  ;;  %v13379_v56 = vld [vmem:[%s14800_s8 + $0x76c] ss:$12 sps:$4 sm:$0xff]  }
0x10ab   : > { %v11560_v24 = vadd.f32 %v11559_v38, %v11558_v22  ;;  %v11561_v63 = vpop.f32.mrb[90].mxu0  ;;  %9404 = vmatprep.subr.bf16.mxu1 %v13326_v27  ;;  %v13377_v27 = vld [vmem:[%s14800_s8 + $0x768] ss:$12 sps:$4 sm:$0xff]   ;;  %v13380_v22 = vld [vmem:[%s14800_s8 + $0x780] ss:$12 sps:$4 sm:$0xff]  }
0x10ac   : > { %v11562_v25 = vpop.f32.mrb[91].mxu0  ;;  %11665 = vmatpush3.bf16.msra.mxu0 %v13323_v28  ;;  %v13382_v28 = vld [vmem:[%s14800_s8 + $0x784] ss:$12 sps:$4 sm:$0xff]  }
0x10ad   : > { %v11563_v35 = vadd.f32 %v11562_v25, %v11561_v63  ;;  %11666 = vmatprep.subr.bf16.mxu0 %v13327_v19  ;;  %v13385_v19 = vld [vmem:[%s14800_s8 + $0x79c] ss:$12 sps:$4 sm:$0xff]   ;;  %v13383_v38 = vld [vmem:[%s14800_s8 + $0x798] ss:$12 sps:$4 sm:$0xff]  }
0x10ae   : > { %9405 = vmatpush1.bf16.msra.mxu1 %v13324_v48  ;;  %v13388_v48 = vld [vmem:[%s14800_s8 + $0x7b4] ss:$12 sps:$4 sm:$0xff]   ;;  %v13391_v63 = vld [vmem:[%s14800_s8 + $0x7cc] ss:$12 sps:$4 sm:$0xff]   ;;  %v13394_v25 = vld [vmem:[%s14800_s8 + $0x7e4] ss:$12 sps:$4 sm:$0xff]  }
0x10af   : > { %9406 = vmatprep.subr.bf16.mxu1 %v13331_v16  ;;  %v13389_v16 = vld [vmem:[%s14800_s8 + $0x7c8] ss:$12 sps:$4 sm:$0xff]  }
0x10b0   : > { %11667 = vmatpush3.bf16.msra.mxu0 %v13328_v12  ;;  %v13397_v12 = vld [vmem:[%s14800_s8 + $0x7fc] ss:$12 sps:$4 sm:$0xff]  }
0x10b2   : > { %9407 = vmatpush1.bf16.msra.mxu1 %v13329_v30 }
0x10b3   : > { %9743 = vmatmul.mubr.bf16.vlgmr.msra.gmra.mrb[108].mxu0 %v16240_v9  ;;  %9419 = vmatprep.subr.bf16.mxu1 %v13334_v39  ;;  %v13400_v39 = vld [vmem:[%s14800_s8 + $0x814] ss:$12 sps:$4 sm:$0xff]  }
0x10b5   : > { %9409 = vmatmul.mubr.bf16.vlgmr.msra.gmra.mrb[72].mxu1 %v16142_v45  ;;  %v13344_v45 = vld [vmem:[%s14800_s8 + $0x660] ss:$12 sps:$4 sm:$0xff]  }
0x10b6   : > { %9420 = vmatpush1.bf16.msra.mxu1 %v13332_v36  ;;  %9451 = vmatprep.mubr.bf16.mxu1 %v16242_v41  ;;  %v13350_v41 = vld [vmem:[%s14800_s8 + $0x690] ss:$12 sps:$4 sm:$0xff]  }
0x10b7   : > { %9421 = vmatprep.subr.bf16.mxu1 %v13337_v10 }
0x10ba   : > { %9422 = vmatpush1.bf16.msra.mxu1 %v13335_v37 }
0x10bb   : > { %9423 = vmatprep.subr.bf16.mxu1 %v13340_v40 }
0x10be   : > { %9424 = vmatpush1.bf16.msra.mxu1 %v13338_v44 }
0x10bf   : > { %9425 = vmatprep.subr.bf16.mxu1 %v13343_v13  ;;  %v13398_v13 = vld [vmem:[%s14800_s8 + $0x810] ss:$12 sps:$4 sm:$0xff]  }
0x10c2   : > { %9426 = vmatpush1.bf16.msra.mxu1 %v13341_v60  ;;  %v13403_v60 = vld [vmem:[%s14800_s8 + $0x82c] ss:$12 sps:$4 sm:$0xff]  }
0x10c3   : > { %9427 = vmatprep.subr.bf16.mxu1 %v13346_v3 }
0x10c6   : > { %9428 = vmatpush1.bf16.msra.mxu1 %v13344_v45  ;;  %v13401_v45 = vld [vmem:[%s14800_s8 + $0x828] ss:$12 sps:$4 sm:$0xff]  }
0x10c7   : > { %9429 = vmatprep.subr.bf16.mxu1 %v13349_v52  ;;  %v13406_v52 = vld [vmem:[%s14800_s8 + $0x844] ss:$12 sps:$4 sm:$0xff]  }
0x10c9   : > { %v11580_v54 = vpop.f32.mrb[92].mxu0 }
0x10ca   : > { %v11581_v29 = vpop.f32.mrb[93].mxu0  ;;  %9430 = vmatpush1.bf16.msra.mxu1 %v13347_v18  ;;  %v13404_v18 = vld [vmem:[%s14800_s8 + $0x840] ss:$12 sps:$4 sm:$0xff]  }
0x10cb   : > { %v11582_v57 = vadd.f32 %v11581_v29, %v11580_v54  ;;  %v11583_v53 = vpop.f32.mrb[94].mxu0  ;;  %9431 = vmatprep.subr.bf16.mxu1 %v13352_v43  ;;  %v13409_v43 = vld [vmem:[%s14800_s8 + $0x85c] ss:$12 sps:$4 sm:$0xff]   ;;  %v13407_v54 = vld [vmem:[%s14800_s8 + $0x858] ss:$12 sps:$4 sm:$0xff]  }
0x10cc   : > { %v11584_v59 = vpop.f32.mrb[95].mxu0  ;;  %v13412_v29 = vld [vmem:[%s14800_s8 + $0x874] ss:$12 sps:$4 sm:$0xff]  }
0x10cd   : > { %v16297_v2 = vadd.f32 %v11582_v57, %v11560_v24  ;;  %v11585_v31 = vadd.f32 %v11584_v59, %v11583_v53  ;;  %v13386_v24 = vld [vmem:[%s14800_s8 + $0x7b0] ss:$12 sps:$4 sm:$0xff]   ;;  %v13415_v57 = vld [vmem:[%s14800_s8 + $0x88c] ss:$12 sps:$4 sm:$0xff]   ;;  %v13413_v53 = vld [vmem:[%s14800_s8 + $0x888] ss:$12 sps:$4 sm:$0xff]  }
0x10ce   : > { %9432 = vmatpush1.bf16.msra.mxu1 %v13350_v41  ;;  %v13410_v41 = vld [vmem:[%s14800_s8 + $0x870] ss:$12 sps:$4 sm:$0xff]   ;;  %v13416_v59 = vld [vmem:[%s14800_s8 + $0x8a0] ss:$12 sps:$4 sm:$0xff]  }
0x10cf   : > { %v16300_v50 = vadd.f32 %v11585_v31, %v11563_v35  ;;  %9433 = vmatprep.subr.bf16.mxu1 %v13355_v23  ;;  %v13395_v35 = vld [vmem:[%s14800_s8 + $0x7f8] ss:$12 sps:$4 sm:$0xff]  }
0x10d0   : > { %v13418_v23 = vld [vmem:[%s14800_s8 + $0x8a4] ss:$12 sps:$4 sm:$0xff]  }
0x10d2   : > { %9434 = vmatpush1.bf16.msra.mxu1 %v13353_v1  ;;  %v13419_v1 = vld [vmem:[%s14800_s8 + $0x8b8] ss:$12 sps:$4 sm:$0xff]  }
0x10d3   : > { %9435 = vmatprep.subr.bf16.mxu1 %v13358_v11  ;;  %v13424_v11 = vld [vmem:[%s14800_s8 + $0x8d4] ss:$12 sps:$4 sm:$0xff]  }
0x10d6   : > { %9436 = vmatpush1.bf16.msra.mxu1 %v13356_v62 }
0x10d7   : > { %9437 = vmatprep.subr.bf16.mxu1 %v13361_v26 }
0x10da   : > { %9438 = vmatpush1.bf16.msra.mxu1 %v13359_v55 }
0x10db   : > { %9439 = vmatprep.subr.bf16.mxu1 %v13364_v42 }
0x10de   : > { %9440 = vmatpush1.bf16.msra.mxu1 %v13362_v47 }
0x10df   : > { %9441 = vmatprep.subr.bf16.mxu1 %v13367_v51  ;;  %v13422_v51 = vld [vmem:[%s14800_s8 + $0x8d0] ss:$12 sps:$4 sm:$0xff]  }
0x10e2   : > { %9442 = vmatpush1.bf16.msra.mxu1 %v13365_v61  ;;  %v13427_v61 = vld [vmem:[%s14800_s8 + $0x8ec] ss:$12 sps:$4 sm:$0xff]  }
0x10e3   : > { %9443 = vmatprep.subr.bf16.mxu1 %v13370_v6 }
0x10e6   : > { %9444 = vmatpush1.bf16.msra.mxu1 %v13368_v21  ;;  %v13425_v21 = vld [vmem:[%s14800_s8 + $0x8e8] ss:$12 sps:$4 sm:$0xff]  }
0x10e7   : > { %9445 = vmatprep.subr.bf16.mxu1 %v13373_v0 }
0x10ea   : > { %9446 = vmatpush1.bf16.msra.mxu1 %v13371_v46 }
0x10eb   : > { %9447 = vmatprep.subr.bf16.mxu1 %v13376_v4 }
0x10ee   : > { %9448 = vmatpush1.bf16.msra.mxu1 %v13374_v8 }
0x10ef   : > { %9449 = vmatprep.subr.bf16.mxu1 %v13379_v56 }
0x10f2   : > { %9450 = vmatpush1.bf16.msra.mxu1 %v13377_v27 }
0x10f3   : > { %9462 = vmatprep.subr.bf16.mxu1 %v13382_v28 }
0x10f5   : > { %9452 = vmatmul.mubr.bf16.vlgmr.msra.gmra.mrb[72].mxu1 %v16237_v20  ;;  %v13392_v20 = vld [vmem:[%s14800_s8 + $0x7e0] ss:$12 sps:$4 sm:$0xff]  }
0x10f6   : > { %9463 = vmatpush1.bf16.msra.mxu1 %v13380_v22  ;;  %9494 = vmatprep.mubr.bf16.mxu1 %v16245_v17 }
0x10f7   : > { %9464 = vmatprep.subr.bf16.mxu1 %v13385_v19 }
0x10fa   : > { %9465 = vmatpush1.bf16.msra.mxu1 %v13383_v38 }
0x10fb   : > { %9466 = vmatprep.subr.bf16.mxu1 %v13388_v48  ;;  %v9757_v48 = vld [vmem:[%s856_s20] sm:$0x7] }
0x10fe   : > { %9467 = vmatpush1.bf16.msra.mxu1 %v13386_v24 }
0x10ff   : > { %9468 = vmatprep.subr.bf16.mxu1 %v13391_v63 }
0x1102   : > { %9469 = vmatpush1.bf16.msra.mxu1 %v13389_v16 }
0x1103   : > { %9470 = vmatprep.subr.bf16.mxu1 %v13394_v25 }
0x1106   : > { %9471 = vmatpush1.bf16.msra.mxu1 %v13392_v20  ;;  %v11602_v17 = vpop.f32.mrb[96].mxu0  ;;  %v9770_v20 = vrot.slane %v9757_v48, %v14918_v33 }
0x1107   : > { %v11603_v30 = vpop.f32.mrb[97].mxu0  ;;  %9472 = vmatprep.subr.bf16.mxu1 %v13397_v12 }
0x1108   : > { %v11604_v36 = vadd.f32 %v11603_v30, %v11602_v17  ;;  %v11605_v10 = vpop.f32.mrb[98].mxu0 }
0x1109   : > { %v11606_v37 = vpop.f32.mrb[99].mxu0 }
0x110a   : > { %v9622_v40 = vadd.f32 %v11604_v36, %v16297_v2  ;;  %v11607_v44 = vadd.f32 %v11606_v37, %v11605_v10  ;;  %9473 = vmatpush1.bf16.msra.mxu1 %v13395_v35  ;;  %v13421_v2 = vld [vmem:[%s14800_s8 + $0x8bc] ss:$12 sps:$4 sm:$0xff]   ;;  %v9762_v36 = vrot.slane %v9757_v48, %v14921_v34  ;;  %v9766_v37 = vrot.slane %v9757_v48, %v14915_v32 }
0x110b   : > { %9474 = vmatprep.subr.bf16.mxu1 %v13400_v39  ;;  %v13500_v48 = vld [vmem:[#allocation26 + $0x98] sm:$0xff] (!%p11402_p3)  }
0x110c   : > { %v9625_v3 = vadd.f32 %v11607_v44, %v16300_v50 }
0x110e   : > { %9475 = vmatpush1.bf16.msra.mxu1 %v13398_v13 }
0x110f   : > { %9476 = vmatprep.subr.bf16.mxu1 %v13403_v60 }
0x1112   : > { %9477 = vmatpush1.bf16.msra.mxu1 %v13401_v45 }
0x1113   : > { %9478 = vmatprep.subr.bf16.mxu1 %v13406_v52 }
0x1116   : > { %9479 = vmatpush1.bf16.msra.mxu1 %v13404_v18 }
0x1117   : > { %9480 = vmatprep.subr.bf16.mxu1 %v13409_v43 }
0x111a   : > { %9481 = vmatpush1.bf16.msra.mxu1 %v13407_v54 }
0x111b   : > { %9482 = vmatprep.subr.bf16.mxu1 %v13412_v29 }
0x111e   : > { %9483 = vmatpush1.bf16.msra.mxu1 %v13410_v41  ;;  %v13491_v41 = vld [vmem:[#allocation26 + $0x80] sm:$0xff] (!%p11402_p3)  }
0x111f   : > { %9484 = vmatprep.subr.bf16.mxu1 %v13415_v57  ;;  %v13492_v57 = vld [vmem:[#allocation26] sm:$0xff] (!%p11402_p3)  }
0x1122   : > { %9485 = vmatpush1.bf16.msra.mxu1 %v13413_v53  ;;  %v14120_v53 = vmov (!%p11402_p3), 0.0  }
0x1123   : > { %9486 = vmatprep.subr.bf16.mxu1 %v13418_v23 }
0x1126   : > { %v11624_v31 = vpop.f32.mrb[100].mxu0  ;;  %9487 = vmatpush1.bf16.msra.mxu1 %v13416_v59 }
0x1127   : > { %v11625_v50 = vpop.f32.mrb[101].mxu0  ;;  %9488 = vmatprep.subr.bf16.mxu1 %v13421_v2 }
0x1128   : > { %v11626_v62 = vadd.f32 %v11625_v50, %v11624_v31  ;;  %v11627_v26 = vpop.f32.mrb[102].mxu0 }
0x1129   : > { %v11628_v55 = vpop.f32.mrb[103].mxu0 }
0x112a   : > { %v9663_v42 = vadd.f32 %v11626_v62, %v9622_v40  ;;  %v11629_v47 = vadd.f32 %v11628_v55, %v11627_v26  ;;  %9489 = vmatpush1.bf16.msra.mxu1 %v13419_v1 }
0x112b   : > { %9490 = vmatprep.subr.bf16.mxu1 %v13424_v11 }
0x112c   : > { %v9666_v6 = vadd.f32 %v11629_v47, %v9625_v3 }
0x112e   : > { %9491 = vmatpush1.bf16.msra.mxu1 %v13422_v51 }
0x112f   : > { %9492 = vmatprep.subr.bf16.mxu1 %v13427_v61 }
0x1132   : > { %9493 = vmatpush1.bf16.msra.mxu1 %v13425_v21 }
0x1133   : > { %11889 = vmatprep.subr.bf16.mxu1 (!%p11402_p3), %v14120_v53 }
0x1135   : > { %9495 = vmatmul.mubr.bf16.vlgmr.msra.gmra.mrb[72].mxu1 %v16240_v9 }
0x1136   : > { %11890 = vmatpush3.bf16.msra.mxu1 (!%p11402_p3), %v13491_v41  ;;  %11905 = vmatprep.mubr.msk.bf16.mxu1 (!%p11402_p3), %vm14121_vm5, %v14120_v53 }
0x1137   : > { %11891 = vmatprep.subr.bf16.mxu1 (!%p11402_p3), %v14120_v53 }
0x1166   : > { %v11646_v0 = vpop.f32.mrb[104].mxu0 }
0x1167   : > { %v11647_v46 = vpop.f32.mrb[105].mxu0 }
0x1168   : > { %v11648_v4 = vadd.f32 %v11647_v46, %v11646_v0  ;;  %v11649_v8 = vpop.f32.mrb[106].mxu0 }
0x1169   : > { %v11650_v56 = vpop.f32.mrb[107].mxu0 }
0x116a   : > { %v9704_v27 = vadd.f32 %v11648_v4, %v9663_v42  ;;  %v11651_v28 = vadd.f32 %v11650_v56, %v11649_v8  ;;  %v13493_v8 = vld [vmem:[#allocation26 + $0x48] sm:$0xff] (!%p11402_p3)  }
0x116b   : > { %v13494_v56 = vld [vmem:[#allocation26 + $0x88] sm:$0xff] (!%p11402_p3)  }
0x116c   : > { %v9707_v22 = vadd.f32 %v11651_v28, %v9666_v6  ;;  %11892 = vmatpush3.bf16.msra.mxu1 (!%p11402_p3), %v13494_v56  ;;  %v13496_v28 = vld [vmem:[#allocation26 + $0x50] sm:$0xff] (!%p11402_p3)  }
0x116d   : > { %11893 = vmatprep.subr.bf16.mxu1 (!%p11402_p3), %v14120_v53 }
0x1186   : > { %v11668_v19 = vpop.f32.mrb[108].mxu0 }
0x1187   : > { %v11669_v38 = vpop.f32.mrb[109].mxu0 }
0x1188   : > { %v11670_v24 = vadd.f32 %v11669_v38, %v11668_v19  ;;  %v11671_v63 = vpop.f32.mrb[110].mxu0  ;;  %v13498_v19 = vld [vmem:[#allocation26 + $0x10] sm:$0xff] (!%p11402_p3)   ;;  %v13499_v38 = vld [vmem:[#allocation26 + $0x58] sm:$0xff] (!%p11402_p3)  }
0x1189   : > { %v11672_v16 = vpop.f32.mrb[111].mxu0 }
0x118a   : > { %v9745_v25 = vadd.f32 %v11670_v24, %v9704_v27  ;;  %v11673_v12 = vadd.f32 %v11672_v16, %v11671_v63  ;;  %v13495_v27 = vld [vmem:[#allocation26 + $0x8] sm:$0xff] (!%p11402_p3)   ;;  %v13501_v24 = vld [vmem:[#allocation26 + $0x18] sm:$0xff] (!%p11402_p3)   ;;  %v13502_v63 = vld [vmem:[#allocation26 + $0x60] sm:$0xff] (!%p11402_p3)  }
0x118b   : > { %v13503_v16 = vld [vmem:[#allocation26 + $0xa0] sm:$0xff] (!%p11402_p3)  }
0x118c   : > { %v9753_v9 = vadd.f32 %v9745_v25, %v15596_v15  ;;  %v9748_v17 = vadd.f32 %v11673_v12, %v9707_v22  ;;  %v13497_v22 = vld [vmem:[#allocation26 + $0x90] sm:$0xff] (!%p11402_p3)   ;;  %v13504_v25 = vld [vmem:[#allocation26 + $0x20] sm:$0xff] (!%p11402_p3)   ;;  %v13506_v12 = vld [vmem:[#allocation26 + $0xa8] sm:$0xff] (!%p11402_p3)  }
0x118d   : > { %11894 = vmatpush3.bf16.msra.mxu1 (!%p11402_p3), %v13497_v22 }
0x118e   : > { %v9776_v35 = vadd.f32 %v9770_v20, %v9753_v9  ;;  %v9756_v30 = vadd.f32 %v9748_v17, %v15604_v7  ;;  %11895 = vmatprep.subr.bf16.mxu1 (!%p11402_p3), %v14120_v53  ;;  %v13507_v9 = vld [vmem:[#allocation26 + $0x28] sm:$0xff] (!%p11402_p3)   ;;  %v13508_v17 = vld [vmem:[#allocation26 + $0x70] sm:$0xff] (!%p11402_p3)  }
0x1190   : > { %9782 = vst [vmem:[#allocation2 + $0x10] sm:$0xff] %v9776_v35  ;;  %v9779_v39 = vadd.f32 %v9770_v20, %v9756_v30  ;;  %v13505_v20 = vld [vmem:[#allocation26 + $0x68] sm:$0xff] (!%p11402_p3)   ;;  %v13510_v30 = vld [vmem:[#allocation26 + $0x30] sm:$0xff] (!%p11402_p3)  }
0x1191   : > { %11896 = vmatpush3.bf16.msra.mxu1 (!%p11402_p3), %v13500_v48 }
0x1192   : > { %9785 = vst [vmem:[#allocation2 + $0x28] sm:$0xff] %v9779_v39  ;;  %11897 = vmatprep.subr.bf16.mxu1 (!%p11402_p3), %v14120_v53 }
0x1195   : > { %11898 = vmatpush3.bf16.msra.mxu1 (!%p11402_p3), %v13503_v16 }
0x1196   : > { %11899 = vmatprep.subr.bf16.mxu1 (!%p11402_p3), %v14120_v53 }
0x1199   : > { %11900 = vmatpush3.bf16.msra.mxu1 (!%p11402_p3), %v13506_v12 }
0x119a   : > { %11901 = vmatprep.subr.bf16.mxu1 (!%p11402_p3), %v14120_v53 }
0x1208   : > { %v9496_v10 = vpop.f32.mrb[72].mxu1 }
0x1209   : > { %v9751_v40 = vadd.f32 %v9496_v10, %v15592_v5  ;;  %v9498_v44 = vpop.f32.mrb[73].mxu1  ;;  %v13513_v10 = vld [vmem:[#allocation26 + $0x38] sm:$0xff] (!%p11402_p3)  }
0x120a   : > { %v9752_v13 = vadd.f32 %v9498_v44, %v15594_v49  ;;  %v9500_v60 = vpop.f32.mrb[74].mxu1  ;;  %9789 = sbr.rel (%p11402_p3) target bundleno = 5170 (0x1432), region = 156 }
0x120b   : > { %v9774_v3 = vadd.f32 %v9762_v36, %v9751_v40  ;;  %v9754_v15 = vadd.f32 %v9500_v60, %v15598_v58  ;;  %v9502_v45 = vpop.f32.mrb[75].mxu1  ;;  %v13490_v58 = vld [vmem:[#allocation26 + $0x40] sm:$0xff] (!%p11402_p3)  }
0x120c   : > { %v9775_v52 = vadd.f32 %v9766_v37, %v9752_v13  ;;  %v9755_v7 = vadd.f32 %v9502_v45, %v15600_v14  ;;  %11674 = vmatprep.subr.bf16.mxu0 (!%p11402_p3), %v13490_v58 }
0x120d   : > { %9780 = vst [vmem:[#allocation2] sm:$0xff] %v9774_v3  ;;  %v9777_v18 = vadd.f32 %v9762_v36, %v9754_v15  ;;  %11675 = vmatpush3.bf16.msra.mxu0 (!%p11402_p3), %v13492_v57  ;;  %v13512_v36 = vld [vmem:[#allocation26 + $0xb8] sm:$0xff] (!%p11402_p3)  }
0x120e   : > { %9781 = vst [vmem:[#allocation2 + $0x8] sm:$0xff] %v9775_v52  ;;  %v9778_v43 = vadd.f32 %v9766_v37, %v9755_v7  ;;  %v9792_v5 = vadd.f32 (!%p11402_p3), %v9775_v52, %v9774_v3  ;;  %11676 = vmatprep.subr.bf16.mxu0 (!%p11402_p3), %v13493_v8  ;;  %v9790_v15 = vld [vmem:[#allocation23] sm:$0x7] (!%p11402_p3) }
0x120f   : > { %9783 = vst [vmem:[#allocation2 + $0x18] sm:$0xff] %v9777_v18 }
0x1210   : > { %9784 = vst [vmem:[#allocation2 + $0x20] sm:$0xff] %v9778_v43  ;;  %v9796_v54 = vadd.f32 (!%p11402_p3), %v9778_v43, %v9777_v18  ;;  %v9793_v49 = vadd.f32 (!%p11402_p3), %v9792_v5, %v9776_v35  ;;  %v9846_v5 = vrot.slane (!%p11402_p3), %v9790_v15, %v14918_v33 }
0x1211   : > { %11677 = vmatpush3.bf16.msra.mxu0 %v13495_v27 }
0x1212   : > { %9794 = vadd.xlane.f32.xlu0 %v9793_v49  ;;  %v9797_v29 = vadd.f32 %v9796_v54, %v9779_v39  ;;  %11678 = vmatprep.subr.bf16.mxu0 %v13496_v28  ;;  %v9838_v49 = vrot.slane %v9790_v15, %v14921_v34 }
0x1215   : > { %11679 = vmatpush3.bf16.msra.mxu0 %v13498_v19 }
0x1216   : > { %9798 = vadd.xlane.f32.xlu0 %v9797_v29  ;;  %11680 = vmatprep.subr.bf16.mxu0 %v13499_v38 }
0x1219   : > { %11681 = vmatpush3.bf16.msra.mxu0 %v13501_v24 }
0x121a   : > { %11682 = vmatprep.subr.bf16.mxu0 %v13502_v63 }
0x121d   : > { %11683 = vmatpush3.bf16.msra.mxu0 %v13504_v25 }
0x121e   : > { %11684 = vmatprep.subr.bf16.mxu0 %v13505_v20 }
0x1221   : > { %11685 = vmatpush3.bf16.msra.mxu0 %v13507_v9 }
0x1222   : > { %11686 = vmatprep.subr.bf16.mxu0 %v13508_v17 }
0x1225   : > { %11687 = vmatpush3.bf16.msra.mxu0 %v13510_v30 }
0x129f   : > { %v9795_v14 = vpop.xlane.xlu0 %9794 }
0x12a0   : > { %v9800_v23 = vmul.f32 0.0026041667, %v9795_v14 }
0x12a2   : > { %v16369_v59 = vsub.f32 %v9774_v3, %v9800_v23  ;;  %v16371_v2 = vsub.f32 %v9775_v52, %v9800_v23  ;;  %v16373_v31 = vsub.f32 %v9776_v35, %v9800_v23  ;;  %v13509_v35 = vld [vmem:[#allocation26 + $0xb0] sm:$0xff]   ;;  %v9791_v52 = vld [vmem:[#allocation24] sm:$0x7] }
0x12a3   : > { %v9799_v1 = vpop.xlane.xlu0 %9798  ;;  %11902 = vmatpush3.bf16.msra.mxu1 %v13509_v35  ;;  %v9864_v58 = vrot.slane %v9791_v52, %v14915_v32  ;;  %v9868_v41 = vrot.slane %v9791_v52, %v14918_v33 }
0x12a4   : > { %v9801_v50 = vmul.f32 0.0026041667, %v9799_v1  ;;  %v9808_v11 = vmul.f32 %v16369_v59, %v16369_v59  ;;  %v9809_v62 = vmul.f32 %v16371_v2, %v16371_v2  ;;  %v9810_v26 = vmul.f32 %v16373_v31, %v16373_v31  ;;  %11903 = vmatprep.subr.bf16.mxu1 %v14120_v53 }
0x12a5   : > { %v9860_v1 = vrot.slane %v9791_v52, %v14921_v34 }
0x12a6   : > { %v16381_v55 = vsub.f32 %v9777_v18, %v9801_v50  ;;  %v16383_v42 = vsub.f32 %v9778_v43, %v9801_v50  ;;  %v16385_v47 = vsub.f32 %v9779_v39, %v9801_v50  ;;  %v9814_v51 = vadd.f32 %v9809_v62, %v9808_v11  ;;  %v13511_v39 = vld [vmem:[#allocation26 + $0x78] sm:$0xff]  }
0x12a7   : > { %11688 = vmatprep.subr.bf16.mxu0 %v13511_v39  ;;  %11904 = vmatpush3.bf16.msra.mxu1 %v13512_v36  ;;  %v9842_v18 = vrot.slane %v9790_v15, %v14915_v32 }
0x12a8   : > { %v9815_v61 = vadd.f32 %v9814_v51, %v9810_v26  ;;  %v9811_v6 = vmul.f32 %v16381_v55, %v16381_v55  ;;  %v9812_v21 = vmul.f32 %v16383_v42, %v16383_v42  ;;  %v9813_v0 = vmul.f32 %v16385_v47, %v16385_v47  ;;  %11689 = vmatpush3.bf16.msra.mxu0 %v13513_v10 }
0x12aa   : > { %9816 = vadd.xlane.f32.xlu1 %v9815_v61  ;;  %v9818_v46 = vadd.f32 %v9812_v21, %v9811_v6 }
0x12ac   : > { %v9819_v4 = vadd.f32 %v9818_v46, %v9813_v0  ;;  %v11403_v46 = vld [vmem:[#allocation27] ss:$0 sm:$0xff] }
0x12ae   : > { %9820 = vadd.xlane.f32.xlu1 %v9819_v4 }
0x1337   : > { %v9817_v37 = vpop.xlane.xlu1 %9816 }
0x1338   : > { %v9822_v40 = vmul.f32 0.0026041667, %v9817_v37 }
0x133a   : > { %v9824_v44 = vadd.f32 1e-05, %v9822_v40 }
0x133b   : > { %v9821_v13 = vpop.xlane.xlu1 %9820 }
0x133c   : > { %13514 = vrsqrt.f32 %v9824_v44  ;;  %v9823_v60 = vmul.f32 0.0026041667, %v9821_v13 }
0x133e   : > { %v9825_v3 = vadd.f32 1e-05, %v9823_v60 }
0x1340   : > { %13516 = vrsqrt.f32 %v9825_v3 }
0x1346   : > { %v13515_v45 = vpop.eup %13514 }
0x1347   : > { %v9829_v7 = vmul.f32 %v13515_v45, %v16371_v2  ;;  %v9830_v43 = vmul.f32 %v13515_v45, %v16373_v31  ;;  %v9828_v54 = vmul.f32 %v13515_v45, %v16369_v59 }
0x1349   : > { %v9851_v53 = vmul.f32 %v9842_v18, %v9829_v7  ;;  %v9852_v23 = vmul.f32 %v9846_v5, %v9830_v43  ;;  %v9850_v31 = vmul.f32 %v9838_v49, %v9828_v54 }
0x134a   : > { %v13517_v29 = vpop.eup %13516 }
0x134b   : > { %v9832_v57 = vmul.f32 %v13517_v29, %v16383_v42  ;;  %v9833_v14 = vmul.f32 %v13517_v29, %v16385_v47  ;;  %v9831_v2 = vmul.f32 %v13517_v29, %v16381_v55  ;;  %v9873_v62 = vadd.f32 %v9864_v58, %v9851_v53 }
0x134c   : > { %v9874_v51 = vadd.f32 %v9868_v41, %v9852_v23  ;;  %v9872_v61 = vadd.f32 %v9860_v1, %v9850_v31 }
0x134d   : > { %v9854_v50 = vmul.f32 %v9842_v18, %v9832_v57  ;;  %v9855_v59 = vmul.f32 %v9846_v5, %v9833_v14  ;;  %v9853_v11 = vmul.f32 %v9838_v49, %v9831_v2 }
0x134f   : > { %v9876_v26 = vadd.f32 %v9864_v58, %v9854_v50  ;;  %v9877_v32 = vadd.f32 %v9868_v41, %v9855_v59  ;;  %v9875_v33 = vadd.f32 %v9860_v1, %v9853_v11 }
0x1351   : > { %v9879_v6 = vpack.c.bf16 %v9876_v26, %v9873_v62  ;;  %v9880_v42 = vpack.c.bf16 %v9877_v32, %v9874_v51  ;;  %v9878_v21 = vpack.c.bf16 %v9875_v33, %v9872_v61 }
0x1353   : > { %10112 = vmatprep.mubr.bf16.mxu0 %v9879_v6  ;;  %11906 = vmatmul.mubr.bf16.vlgmr.msra.gmra.mrb[0].mxu1 %v9880_v42 }
0x1354   : > { %10113 = vmatmul.mubr.bf16.vlgmr.msra.gmra.mrb[0].mxu0 %v9878_v21 }
0x1426   : > { %v10155_v47 = vpop.f32.mrb[0].mxu1 }
0x1427   : > { %v11690_v55 = vpop.f32.mrb[0].mxu0  ;;  %v11907_v0 = vpop.f32.mrb[1].mxu1 }
0x1428   : > { %v11691_v34 = vpop.f32.mrb[1].mxu0  ;;  %v10158_v4 = vpop.f32.mrb[2].mxu1 }
0x1429   : > { %v11692_v8 = vadd.f32 %v11691_v34, %v11690_v55  ;;  %v11693_v56 = vpop.f32.mrb[2].mxu0  ;;  %v11908_v27 = vpop.f32.mrb[3].mxu1 }
0x142a   : > { %v11694_v28 = vpop.f32.mrb[3].mxu0 }
0x142b   : > { %v10115_v22 = vadd.f32 %v11692_v8, %v11403_v46  ;;  %v11695_v19 = vadd.f32 %v11694_v28, %v11693_v56 }
0x142d   : > { %v10156_v38 = vadd.f32 %v10155_v47, %v10115_v22  ;;  %v10118_v48 = vadd.f32 %v11695_v19, %v11403_v46 }
0x142f   : > { %10162 = vst [vmem:[#allocation29] sm:$0xff] %v10156_v38  ;;  %v10159_v24 = vadd.f32 %v10158_v4, %v10118_v48 }
0x1431   : > { %10163 = vst [vmem:[#allocation29 + $0x8] sm:$0xff] %v10159_v24 }
0x1432 PF: > { %s16570_s24 = sld [smem:[#allocation43_spill]]  ;;  %s14122_s29 = smov [#allocation29]  }
0x1433   : > { %s10170_s28 = sshll.u32 %s14122_s29, 4  ;;  %s10171_s28 = int_to_ptr.vmem [resolvable:$true] %s10170_s28 }
0x1434   : > { %s13988_s21 = scalar_lea.vmem %s10171_s28, 256  ;;  %p13995_p5 = scmp.lt.s32.totalorder %s10171_s28, %s10171_s28 }
0x1435   : > { %p13989_p7 = scmp.ne.s32.totalorder %s10171_s28, %s13988_s21  ;;  %p13996_p13 = scmp.lt.s32.totalorder %s13988_s21, %s13988_s21 }
0x1437   : > { %p13997_p6 = por %p13996_p13, %p13995_p5 }
0x1438   : > { %p12131_p4 = scmp.eq.s32.totalorder %s16570_s24, 5 }
0x143a   : > { %p13990_p0 = pnand %p13989_p7, %p12131_p4 }
0x143c   : > { %p13991_p8 = pneg %p13990_p0 }
0x143e   : > { %p13998_p1 = pnand %p13997_p6, %p13991_p8 }
0x1440   : > { %14001 = shalt.err (!%p13998_p1)
}
0x1441   : > { %s16571_s6 = sld [smem:[#allocation57_spill]] }
0x1447   : > { %s14002_s18 = scalar_lea.hbm %s16571_s6, 256 }
0x1448   : > { %p14003_p12 = scmp.ne.s32.totalorder %s16571_s6, %s14002_s18  ;;  %p14008_p10 = scmp.lt.u32.totalorder %s14002_s18, %s16571_s6 }
0x144a   : > { %p14004_p9 = pnand %p14003_p12, %p12131_p4 }
0x144c   : > { %p14005_p11 = pneg %p14004_p9 }
0x144e   : > { %p14010_p2 = pnand %p14008_p10, %p14005_p11 }
0x1450   : > { %14013 = shalt.err (!%p14010_p2)
}
0x1451   : > { %s14123_s23 = smov 128   ;;  %s14124_s0 = smov 8  }
0x1452   : > { %12067 = dma.vmem_to_hbm [thread:$0]  (%p12131_p4), %s10171_s28, 256, %s16571_s6, [#allocation5], %s14123_s23, %s14123_s23, %s14124_s0  }
0x1453   : > { %14071 = dma.done.wait (%p12131_p4), [#allocation5], 256  }
0x1454   : > { %14073 = vsyncadd (%p12131_p4), [#allocation5], 4294967040 }
0x1455 PF: > { %s16572_s24 = sld [smem:[#allocation44_spill]]  ;;  %s16573_s21 = sld [smem:[#allocation41_spill]] }
0x1456   : > { %s16574_s22 = sld [smem:[#allocation42_spill]]  ;;  %s16575_s23 = sld [smem:[#allocation45_spill]] }
0x145b   : > { %p45_p3 = scmp.ge.s32.totalorder %s16572_s24, 8  }
0x145d   :  { %47 = sbr.rel (!%p45_p3) target bundleno = 28 (0x1c), region = 270 }
0x1464   :  { %10186 = vsyncpa [#allocation4], 1 }
0x1465   :  { %10188 = vsyncpa [#allocation4 + $0x1], 1 }
0x1466   :  { %10189 = vsyncpa [#allocation7], 1 }
0x1467   :  { %10191 = vsyncpa [#allocation7 + $0x1], 1 }
0x1468   :  { %10192 = vsyncpa [#allocation10], 1 }
0x1469   :  { %10194 = vsyncpa [#allocation10 + $0x1], 1 }
0x146a   :  { %10195 = vsyncpa [#allocation13], 1 }
0x146b   :  { %10197 = vsyncpa [#allocation13 + $0x1], 1 }
0x146c   :  { %10198 = vsyncpa [#allocation16], 1 }
0x146d   :  { %10200 = vsyncpa [#allocation16 + $0x1], 1 }
0x146e   :  { %10201 = vsyncpa [#allocation19], 1 }
0x146f   :  { %10203 = vsyncpa [#allocation19 + $0x1], 1 }
0x1470   :  { %10204 = vsyncpa [#allocation22], 1 }
0x1471   :  { %10206 = vsyncpa [#allocation22 + $0x1], 1 }
0x1472   :  { %10207 = vsyncpa [#allocation25], 1 }
0x1473   :  { %10208 = vsyncpa [#allocation28], 1 }
0x1474   :  { %10209 = vsyncpa [#allocation5], 1 }
0x1475   :  { %10211 = vsyncpa [#allocation5 + $0x1], 1 }

</bundles_post_ra>
